<compile_context>
chip_gen: v7x
topology: tpu7x:2x2x1
jax: 0.10.0
libtpu: 0.0.40
codegen_flags: <defaults>
</compile_context>

<pallas_src>
from functools import partial

import jax
import jax.numpy as jnp
from jax.experimental import pallas as pl
from jax.experimental.pallas import tpu as pltpu

_BN_EPS = 1e-5
_HALO = 16          # left halo width == bf16 sublane tile -> aligned interior store


# ----------------------------------------------------------------------------
# In-kernel building blocks.
# ----------------------------------------------------------------------------
def _conv3x3_bn_relu(act, pad_ref, w_ref, b_ref):
    """Fused Conv3x3(pad=1) + folded-BN bias + ReLU.

    act    : (Nb, Hl, W, Cin)  bf16 value
    pad_ref: (Nb, Hl+2, Wp, Cin) bf16 VMEM halo'd staging buffer, Wp >= HALO+W+1
    w_ref  : (9*Cin, Cout) bf16, BN scale pre-folded, row = kh*3*Cin + kw*Cin + ci
    b_ref  : (1, Cout) f32 folded bias
    returns (Nb, Hl, W, Cout) f32
    """
    Nb, Hl, W, Cin = act.shape
    Cout = w_ref.shape[-1]
    Wp = pad_ref.shape[2]
    L = _HALO

    # Write only the halo + interior: no full-buffer zeroing, and the interior
    # store lands at sublane offset L=16 (bf16 tile aligned -> unmasked vst).
    zrow = jnp.zeros((Nb, 1, Wp, Cin), jnp.bfloat16)
    zcol = jnp.zeros((Nb, Hl, 1, Cin), jnp.bfloat16)
    pad_ref[:, 0:1, :, :] = zrow                        # top halo row
    pad_ref[:, Hl + 1:Hl + 2, :, :] = zrow              # bottom halo row
    pad_ref[:, 1:Hl + 1, L - 1:L, :] = zcol             # left halo column
    pad_ref[:, 1:Hl + 1, L + W:L + W + 1, :] = zcol     # right halo column
    pad_ref[:, 1:Hl + 1, L:L + W, :] = act              # aligned interior store

    # dx taps: three overlapping W-wide windows of the halo'd buffer
    # (kw = 0 -> left neighbour, 1 -> centre, 2 -> right neighbour).
    xl = pad_ref[:, :, L - 1:L - 1 + W, :]
    xc = pad_ref[:, :, L:L + W, :]
    xr = pad_ref[:, :, L + 1:L + 1 + W, :]
    big = jnp.concatenate([xl, xc, xr], axis=-1)        # (Nb, Hl+2, W, 3*Cin)

    M = Nb * Hl * W
    K3 = 3 * Cin
    if K3 >= 128:
        # Deep-K path: 3 MXU matmuls over dy, K = 3*Cin, shared f32 accumulator.
        acc = jnp.dot(big[:, 0:Hl].reshape(M, K3), w_ref[0:K3, :],
                      preferred_element_type=jnp.float32)
        for kh in (1, 2):
            acc = acc + jnp.dot(big[:, kh:kh + Hl].reshape(M, K3),
                                w_ref[kh * K3:(kh + 1) * K3, :],
                                preferred_element_type=jnp.float32)
    else:
        # First conv only: 3*Cin too shallow -> fold all 9 taps, K = 9*Cin.
        patch = jnp.concatenate([big[:, kh:kh + Hl] for kh in range(3)],
                                axis=-1).reshape(M, 9 * Cin)
        acc = jnp.dot(patch, w_ref[...], preferred_element_type=jnp.float32)

    y = jnp.maximum(acc + b_ref[...], 0.0)              # BN scale already in weights
    return y.reshape(Nb, Hl, W, Cout)


def _maxpool_h2(y):
    """MaxPool2d(kernel=(2,1), stride=(2,1)): max over pairs of rows (height)."""
    Nb, Hl, W, C = y.shape
    return jnp.max(y.reshape(Nb, Hl // 2, 2, W, C), axis=2)


def _cnn_kernel(x_ref,
                w1a, b1a, w1b, b1b,
                w2a, b2a, w2b, b2b,
                w3a, b3a, w3b, b3b,
                o_ref,
                p1a, p1b, p2a, p2b, p3a, p3b):
    a = _conv3x3_bn_relu(x_ref[...], p1a, w1a, b1a)                     # block 1
    a = _conv3x3_bn_relu(a.astype(jnp.bfloat16), p1b, w1b, b1b)
    a = _maxpool_h2(a)
    a = _conv3x3_bn_relu(a.astype(jnp.bfloat16), p2a, w2a, b2a)         # block 2
    a = _conv3x3_bn_relu(a.astype(jnp.bfloat16), p2b, w2b, b2b)
    a = _maxpool_h2(a)
    a = _conv3x3_bn_relu(a.astype(jnp.bfloat16), p3a, w3a, b3a)         # block 3
    a = _conv3x3_bn_relu(a.astype(jnp.bfloat16), p3b, w3b, b3b)
    a = _maxpool_h2(a)
    o_ref[...] = a                                      # (Nb, H//8, W, 256) f32, lane-dense


def _const_spec(shape):
    """Whole-array block with a grid-constant index map (weights / bias)."""
    ndim = len(shape)

    def index_map(n):
        return (0,) * ndim

    return pl.BlockSpec(shape, index_map)


# ----------------------------------------------------------------------------
# Wrapper.
# ----------------------------------------------------------------------------
@partial(jax.jit, static_argnames=("block_n",))
def cnn_forward(x_nchw, params, block_n=1):
    """x_nchw: (N, Cin, H, W) f32 -> (N, 256, H//8, W), matching the PyTorch module."""
    N, Cin, H, W = x_nchw.shape
    assert H % 8 == 0, "H must be divisible by 8 (three (2,1) max-pools)"
    assert N % block_n == 0
    Ho = H // 8
    # Halo'd staging width: image at columns [HALO, HALO+W), zero halo columns at
    # HALO-1 and HALO+W, rest is never read.
    Wp = _HALO + ((W + 1 + 15) // 16) * 16

    x = jnp.transpose(x_nchw, (0, 2, 3, 1)).astype(jnp.bfloat16)    # NCHW -> NHWC, bf16

    flat = [a for conv in params for a in conv]     # 6 x (w_folded bf16, bias f32)

    in_specs = [pl.BlockSpec((block_n, H, W, Cin), lambda n: (n, 0, 0, 0))]
    in_specs += [_const_spec(a.shape) for a in flat]

    # Per-conv input channels / heights -> halo'd bf16 VMEM staging buffers.
    chans = [Cin, 64, 64, 128, 128, 256]
    heights = [H, H, H // 2, H // 2, H // 4, H // 4]
    scratch = [pltpu.VMEM((block_n, h + 2, Wp, c), jnp.bfloat16)
               for h, c in zip(heights, chans)]

    out_nhwc = pl.pallas_call(
        _cnn_kernel,
        out_shape=jax.ShapeDtypeStruct((N, Ho, W, 256), jnp.float32),
        grid=(N // block_n,),
        in_specs=in_specs,
        out_specs=pl.BlockSpec((block_n, Ho, W, 256), lambda n: (n, 0, 0, 0)),
        scratch_shapes=scratch,
        compiler_params=pltpu.CompilerParams(
            dimension_semantics=("parallel",),
            vmem_limit_bytes=32 * 1024 * 1024),
    )(x, *flat)

    # Kept only to match the PyTorch module's NCHW output layout.
    return jnp.transpose(out_nhwc, (0, 3, 1, 2))


# ----------------------------------------------------------------------------
# Deterministic synthetic parameters (conv bias + eval-mode BN folded).
# ----------------------------------------------------------------------------
def _make_conv_bn_params(key, cin, cout):
    kw_, kb, kg, kbt, km, kv = jax.random.split(key, 6)
    w = jax.random.normal(kw_, (3, 3, cin, cout), jnp.float32) / jnp.sqrt(9.0 * cin)
    conv_b = 0.01 * jax.random.normal(kb, (cout,), jnp.float32)
    gamma = 1.0 + 0.1 * jax.random.normal(kg, (cout,), jnp.float32)
    beta = 0.05 * jax.random.normal(kbt, (cout,), jnp.float32)
    run_mean = 0.05 * jax.random.normal(km, (cout,), jnp.float32)
    run_var = 1.0 + 0.1 * jax.random.uniform(kv, (cout,), jnp.float32)

    # Fold BatchNorm (eval mode) into the conv:
    #   y = scale * (conv(x, w) + conv_b - mean) + beta
    #     = conv(x, w * scale) + ((conv_b - mean) * scale + beta)
    scale = gamma / jnp.sqrt(run_var + _BN_EPS)
    bias = (conv_b - run_mean) * scale + beta

    w_folded = (w * scale).astype(jnp.bfloat16)            # (3,3,cin,cout) HWIO, bf16
    kernel_params = (w_folded.reshape(9 * cin, cout),       # row = kh*3*cin + kw*cin + ci
                     bias.reshape(1, cout).astype(jnp.float32))
    ref_params = (w_folded, bias.astype(jnp.float32))
    return kernel_params, ref_params


def make_cnn_params(key, in_channels):
    plan = [(in_channels, 64), (64, 64), (64, 128), (128, 128), (128, 256), (256, 256)]
    kernel_params, ref_params = [], []
    for cin, cout in plan:
        key, sub = jax.random.split(key)
        kp, rp = _make_conv_bn_params(sub, cin, cout)
        kernel_params.append(kp)
        ref_params.append(rp)
    return kernel_params, ref_params


# ----------------------------------------------------------------------------
# Pure-JAX reference with matching numerics (bf16 weights/activations, f32 accum).
# ----------------------------------------------------------------------------
def cnn_reference(x_nchw, ref_params):
    a = jnp.transpose(x_nchw, (0, 2, 3, 1)).astype(jnp.bfloat16)
    y = None
    for i, (w, b) in enumerate(ref_params):
        y = jax.lax.conv_general_dilated(
            a, w, window_strides=(1, 1), padding="SAME",
            dimension_numbers=("NHWC", "HWIO", "NHWC"),
            preferred_element_type=jnp.float32)
        y = jnp.maximum(y + b, 0.0)
        if i % 2 == 1:                                      # end of a VGG block
            n, hh, ww, cc = y.shape
            y = jnp.max(y.reshape(n, hh // 2, 2, ww, cc), axis=2)
        a = y.astype(jnp.bfloat16)
    return jnp.transpose(y, (0, 3, 1, 2))


if __name__ == "__main__":
    key = jax.random.PRNGKey(0)
    k_params, k_x = jax.random.split(key)

    # H=8 so the three (2,1) max-pools give H_out=1 (matches the module docstring).
    N, C_IN, H, W = 4, 4, 8, 16
    kernel_params, ref_params = make_cnn_params(k_params, C_IN)
    x = jax.random.normal(k_x, (N, C_IN, H, W), jnp.float32)

    out = cnn_forward(x, kernel_params, block_n=2)   # 2 images folded into the matmul M dim
    out = jax.block_until_ready(out)

    assert out.shape == (N, 256, H // 8, W), out.shape
    assert out.dtype == jnp.float32
    assert bool(jnp.all(jnp.isfinite(out)))

    # Validate against the reference (bf16 matmuls -> loose tolerance).
    ref = cnn_reference(x, ref_params)
    assert bool(jnp.allclose(out, ref, rtol=5e-2, atol=5e-2)), \
        float(jnp.max(jnp.abs(out - ref)))

    print("KERNEL_OK")
</pallas_src>

<mosaic_0001>
module attributes {stable_mosaic.version = 11 : i64} {
  func.func @_cnn_kernel(%arg0: i32, %arg1: memref<2x8x16x4xbf16, #tpu.memory_space<vmem>>, %arg2: memref<36x64xbf16, #tpu.memory_space<vmem>>, %arg3: memref<1x64xf32, #tpu.memory_space<vmem>>, %arg4: memref<576x64xbf16, #tpu.memory_space<vmem>>, %arg5: memref<1x64xf32, #tpu.memory_space<vmem>>, %arg6: memref<576x128xbf16, #tpu.memory_space<vmem>>, %arg7: memref<1x128xf32, #tpu.memory_space<vmem>>, %arg8: memref<1152x128xbf16, #tpu.memory_space<vmem>>, %arg9: memref<1x128xf32, #tpu.memory_space<vmem>>, %arg10: memref<1152x256xbf16, #tpu.memory_space<vmem>>, %arg11: memref<1x256xf32, #tpu.memory_space<vmem>>, %arg12: memref<2304x256xbf16, #tpu.memory_space<vmem>>, %arg13: memref<1x256xf32, #tpu.memory_space<vmem>>, %arg14: memref<2x1x16x256xf32, #tpu.memory_space<vmem>>, %arg15: memref<2x10x48x4xbf16, #tpu.memory_space<vmem>>, %arg16: memref<2x10x48x64xbf16, #tpu.memory_space<vmem>>, %arg17: memref<2x6x48x64xbf16, #tpu.memory_space<vmem>>, %arg18: memref<2x6x48x128xbf16, #tpu.memory_space<vmem>>, %arg19: memref<2x4x48x128xbf16, #tpu.memory_space<vmem>>, %arg20: memref<2x4x48x256xbf16, #tpu.memory_space<vmem>>) attributes {dimension_semantics = [#tpu.dimension_semantics<parallel>], iteration_bounds = array<i64: 2>, scalar_prefetch = 0 : i64, scratch_operands = 6 : i64, tpu.core_type = #tpu.core_type<tc>, window_params = [{transform_indices = @transform_0, window_bounds = array<i64: 2, 8, 16, 4>}, {pipeline_mode = #tpu.pipeline_mode<synchronous>, transform_indices = @transform_1, window_bounds = array<i64: 36, 64>}, {pipeline_mode = #tpu.pipeline_mode<synchronous>, transform_indices = @transform_2, window_bounds = array<i64: 1, 64>}, {pipeline_mode = #tpu.pipeline_mode<synchronous>, transform_indices = @transform_3, window_bounds = array<i64: 576, 64>}, {pipeline_mode = #tpu.pipeline_mode<synchronous>, transform_indices = @transform_4, window_bounds = array<i64: 1, 64>}, {pipeline_mode = #tpu.pipeline_mode<synchronous>, transform_indices = @transform_5, window_bounds = array<i64: 576, 128>}, {pipeline_mode = #tpu.pipeline_mode<synchronous>, transform_indices = @transform_6, window_bounds = array<i64: 1, 128>}, {pipeline_mode = #tpu.pipeline_mode<synchronous>, transform_indices = @transform_7, window_bounds = array<i64: 1152, 128>}, {pipeline_mode = #tpu.pipeline_mode<synchronous>, transform_indices = @transform_8, window_bounds = array<i64: 1, 128>}, {pipeline_mode = #tpu.pipeline_mode<synchronous>, transform_indices = @transform_9, window_bounds = array<i64: 1152, 256>}, {pipeline_mode = #tpu.pipeline_mode<synchronous>, transform_indices = @transform_10, window_bounds = array<i64: 1, 256>}, {pipeline_mode = #tpu.pipeline_mode<synchronous>, transform_indices = @transform_11, window_bounds = array<i64: 2304, 256>}, {pipeline_mode = #tpu.pipeline_mode<synchronous>, transform_indices = @transform_12, window_bounds = array<i64: 1, 256>}, {transform_indices = @transform_13, window_bounds = array<i64: 2, 1, 16, 256>}]} {
    %c0 = arith.constant 0 : index
    %c0_0 = arith.constant 0 : index
    %c0_1 = arith.constant 0 : index
    %c0_2 = arith.constant 0 : index
    %0 = vector.load %arg1[%c0, %c0_0, %c0_1, %c0_2] : memref<2x8x16x4xbf16, #tpu.memory_space<vmem>>, vector<2x8x16x4xbf16>
    %cst = arith.constant 0.000000e+00 : bf16
    %1 = vector.broadcast %cst : bf16 to vector<2x1x48x4xbf16>
    %cst_3 = arith.constant 0.000000e+00 : bf16
    %2 = vector.broadcast %cst_3 : bf16 to vector<2x8x1x4xbf16>
    %c0_4 = arith.constant 0 : index
    %c0_5 = arith.constant 0 : index
    %c0_6 = arith.constant 0 : index
    %c0_7 = arith.constant 0 : index
    %3 = vector.load %arg15[%c0_4, %c0_5, %c0_6, %c0_7] : memref<2x10x48x4xbf16, #tpu.memory_space<vmem>>, vector<2x1x48x4xbf16>
    tpu.vector_store %arg15[%c0_4, %c0_5, %c0_6, %c0_7], %1 {strides = array<i32>} : memref<2x10x48x4xbf16, #tpu.memory_space<vmem>>, vector<2x1x48x4xbf16>,
    %c0_8 = arith.constant 0 : index
    %c9 = arith.constant 9 : index
    %c0_9 = arith.constant 0 : index
    %c0_10 = arith.constant 0 : index
    %4 = vector.load %arg15[%c0_8, %c9, %c0_9, %c0_10] : memref<2x10x48x4xbf16, #tpu.memory_space<vmem>>, vector<2x1x48x4xbf16>
    tpu.vector_store %arg15[%c0_8, %c9, %c0_9, %c0_10], %1 {strides = array<i32>} : memref<2x10x48x4xbf16, #tpu.memory_space<vmem>>, vector<2x1x48x4xbf16>,
    %c0_11 = arith.constant 0 : index
    %c1 = arith.constant 1 : index
    %c15 = arith.constant 15 : index
    %c0_12 = arith.constant 0 : index
    %5 = vector.load %arg15[%c0_11, %c1, %c15, %c0_12] : memref<2x10x48x4xbf16, #tpu.memory_space<vmem>>, vector<2x8x1x4xbf16>
    tpu.vector_store %arg15[%c0_11, %c1, %c15, %c0_12], %2 {strides = array<i32>} : memref<2x10x48x4xbf16, #tpu.memory_space<vmem>>, vector<2x8x1x4xbf16>,
    %c0_13 = arith.constant 0 : index
    %c1_14 = arith.constant 1 : index
    %c32 = arith.constant 32 : index
    %c0_15 = arith.constant 0 : index
    %6 = vector.load %arg15[%c0_13, %c1_14, %c32, %c0_15] : memref<2x10x48x4xbf16, #tpu.memory_space<vmem>>, vector<2x8x1x4xbf16>
    tpu.vector_store %arg15[%c0_13, %c1_14, %c32, %c0_15], %2 {strides = array<i32>} : memref<2x10x48x4xbf16, #tpu.memory_space<vmem>>, vector<2x8x1x4xbf16>,
    %c0_16 = arith.constant 0 : index
    %c1_17 = arith.constant 1 : index
    %c16 = arith.constant 16 : index
    %c0_18 = arith.constant 0 : index
    %7 = vector.load %arg15[%c0_16, %c1_17, %c16, %c0_18] : memref<2x10x48x4xbf16, #tpu.memory_space<vmem>>, vector<2x8x16x4xbf16>
    tpu.vector_store %arg15[%c0_16, %c1_17, %c16, %c0_18], %0 {strides = array<i32>} : memref<2x10x48x4xbf16, #tpu.memory_space<vmem>>, vector<2x8x16x4xbf16>,
    %c0_19 = arith.constant 0 : index
    %c0_20 = arith.constant 0 : index
    %c15_21 = arith.constant 15 : index
    %c0_22 = arith.constant 0 : index
    %8 = vector.load %arg15[%c0_19, %c0_20, %c15_21, %c0_22] : memref<2x10x48x4xbf16, #tpu.memory_space<vmem>>, vector<2x10x16x4xbf16>
    %c0_23 = arith.constant 0 : index
    %c0_24 = arith.constant 0 : index
    %c16_25 = arith.constant 16 : index
    %c0_26 = arith.constant 0 : index
    %9 = vector.load %arg15[%c0_23, %c0_24, %c16_25, %c0_26] : memref<2x10x48x4xbf16, #tpu.memory_space<vmem>>, vector<2x10x16x4xbf16>
    %c0_27 = arith.constant 0 : index
    %c0_28 = arith.constant 0 : index
    %c17 = arith.constant 17 : index
    %c0_29 = arith.constant 0 : index
    %10 = vector.load %arg15[%c0_27, %c0_28, %c17, %c0_29] : memref<2x10x48x4xbf16, #tpu.memory_space<vmem>>, vector<2x10x16x4xbf16>
    %11 = tpu.concatenate %8, %9, %10 in 3 : vector<2x10x16x4xbf16>, vector<2x10x16x4xbf16>, vector<2x10x16x4xbf16> -> vector<2x10x16x12xbf16>
    %12 = vector.extract_strided_slice %11 {offsets = [0, 0, 0, 0], sizes = [2, 8, 16, 12], strides = [1, 1, 1, 1]} : vector<2x10x16x12xbf16> to vector<2x8x16x12xbf16>
    %13 = vector.extract_strided_slice %11 {offsets = [0, 1, 0, 0], sizes = [2, 8, 16, 12], strides = [1, 1, 1, 1]} : vector<2x10x16x12xbf16> to vector<2x8x16x12xbf16>
    %14 = vector.extract_strided_slice %11 {offsets = [0, 2, 0, 0], sizes = [2, 8, 16, 12], strides = [1, 1, 1, 1]} : vector<2x10x16x12xbf16> to vector<2x8x16x12xbf16>
    %15 = tpu.concatenate %12, %13, %14 in 3 : vector<2x8x16x12xbf16>, vector<2x8x16x12xbf16>, vector<2x8x16x12xbf16> -> vector<2x8x16x36xbf16>
    %16 = vector.shape_cast %15 : vector<2x8x16x36xbf16> to vector<256x36xbf16>
    %c0_30 = arith.constant 0 : index
    %c0_31 = arith.constant 0 : index
    %17 = vector.load %arg2[%c0_30, %c0_31] : memref<36x64xbf16, #tpu.memory_space<vmem>>, vector<36x64xbf16>
    %cst_32 = arith.constant dense<0.000000e+00> : vector<256x64xf32>
    %18 = tpu.matmul %16, %17, %cst_32 {dimension_numbers = #tpu.dot_dimension_numbers<[1], [0], [0], [1], [0, 0, 1, 1], [], []>} : vector<256x36xbf16>, vector<36x64xbf16>, vector<256x64xf32> -> vector<256x64xf32>
    %c0_33 = arith.constant 0 : index
    %c0_34 = arith.constant 0 : index
    %19 = vector.load %arg3[%c0_33, %c0_34] : memref<1x64xf32, #tpu.memory_space<vmem>>, vector<1x64xf32>
    %20 = vector.broadcast %19 : vector<1x64xf32> to vector<256x64xf32>
    %21 = arith.addf %18, %20 : vector<256x64xf32>
    %cst_35 = arith.constant 0.000000e+00 : f32
    %22 = vector.broadcast %cst_35 : f32 to vector<256x64xf32>
    %23 = arith.maximumf %21, %22 : vector<256x64xf32>
    %24 = vector.shape_cast %23 : vector<256x64xf32> to vector<2x8x16x64xf32>
    %25 = arith.truncf %24 : vector<2x8x16x64xf32> to vector<2x8x16x64xbf16>
    %cst_36 = arith.constant 0.000000e+00 : bf16
    %26 = vector.broadcast %cst_36 : bf16 to vector<2x1x48x64xbf16>
    %cst_37 = arith.constant 0.000000e+00 : bf16
    %27 = vector.broadcast %cst_37 : bf16 to vector<2x8x1x64xbf16>
    %c0_38 = arith.constant 0 : index
    %c0_39 = arith.constant 0 : index
    %c0_40 = arith.constant 0 : index
    %c0_41 = arith.constant 0 : index
    %28 = vector.load %arg16[%c0_38, %c0_39, %c0_40, %c0_41] : memref<2x10x48x64xbf16, #tpu.memory_space<vmem>>, vector<2x1x48x64xbf16>
    tpu.vector_store %arg16[%c0_38, %c0_39, %c0_40, %c0_41], %26 {strides = array<i32>} : memref<2x10x48x64xbf16, #tpu.memory_space<vmem>>, vector<2x1x48x64xbf16>,
    %c0_42 = arith.constant 0 : index
    %c9_43 = arith.constant 9 : index
    %c0_44 = arith.constant 0 : index
    %c0_45 = arith.constant 0 : index
    %29 = vector.load %arg16[%c0_42, %c9_43, %c0_44, %c0_45] : memref<2x10x48x64xbf16, #tpu.memory_space<vmem>>, vector<2x1x48x64xbf16>
    tpu.vector_store %arg16[%c0_42, %c9_43, %c0_44, %c0_45], %26 {strides = array<i32>} : memref<2x10x48x64xbf16, #tpu.memory_space<vmem>>, vector<2x1x48x64xbf16>,
    %c0_46 = arith.constant 0 : index
    %c1_47 = arith.constant 1 : index
    %c15_48 = arith.constant 15 : index
    %c0_49 = arith.constant 0 : index
    %30 = vector.load %arg16[%c0_46, %c1_47, %c15_48, %c0_49] : memref<2x10x48x64xbf16, #tpu.memory_space<vmem>>, vector<2x8x1x64xbf16>
    tpu.vector_store %arg16[%c0_46, %c1_47, %c15_48, %c0_49], %27 {strides = array<i32>} : memref<2x10x48x64xbf16, #tpu.memory_space<vmem>>, vector<2x8x1x64xbf16>,
    %c0_50 = arith.constant 0 : index
    %c1_51 = arith.constant 1 : index
    %c32_52 = arith.constant 32 : index
    %c0_53 = arith.constant 0 : index
    %31 = vector.load %arg16[%c0_50, %c1_51, %c32_52, %c0_53] : memref<2x10x48x64xbf16, #tpu.memory_space<vmem>>, vector<2x8x1x64xbf16>
    tpu.vector_store %arg16[%c0_50, %c1_51, %c32_52, %c0_53], %27 {strides = array<i32>} : memref<2x10x48x64xbf16, #tpu.memory_space<vmem>>, vector<2x8x1x64xbf16>,
    %c0_54 = arith.constant 0 : index
    %c1_55 = arith.constant 1 : index
    %c16_56 = arith.constant 16 : index
    %c0_57 = arith.constant 0 : index
    %32 = vector.load %arg16[%c0_54, %c1_55, %c16_56, %c0_57] : memref<2x10x48x64xbf16, #tpu.memory_space<vmem>>, vector<2x8x16x64xbf16>
    tpu.vector_store %arg16[%c0_54, %c1_55, %c16_56, %c0_57], %25 {strides = array<i32>} : memref<2x10x48x64xbf16, #tpu.memory_space<vmem>>, vector<2x8x16x64xbf16>,
    %c0_58 = arith.constant 0 : index
    %c0_59 = arith.constant 0 : index
    %c15_60 = arith.constant 15 : index
    %c0_61 = arith.constant 0 : index
    %33 = vector.load %arg16[%c0_58, %c0_59, %c15_60, %c0_61] : memref<2x10x48x64xbf16, #tpu.memory_space<vmem>>, vector<2x10x16x64xbf16>
    %c0_62 = arith.constant 0 : index
    %c0_63 = arith.constant 0 : index
    %c16_64 = arith.constant 16 : index
    %c0_65 = arith.constant 0 : index
    %34 = vector.load %arg16[%c0_62, %c0_63, %c16_64, %c0_65] : memref<2x10x48x64xbf16, #tpu.memory_space<vmem>>, vector<2x10x16x64xbf16>
    %c0_66 = arith.constant 0 : index
    %c0_67 = arith.constant 0 : index
    %c17_68 = arith.constant 17 : index
    %c0_69 = arith.constant 0 : index
    %35 = vector.load %arg16[%c0_66, %c0_67, %c17_68, %c0_69] : memref<2x10x48x64xbf16, #tpu.memory_space<vmem>>, vector<2x10x16x64xbf16>
    %36 = tpu.concatenate %33, %34, %35 in 3 : vector<2x10x16x64xbf16>, vector<2x10x16x64xbf16>, vector<2x10x16x64xbf16> -> vector<2x10x16x192xbf16>
    %37 = vector.extract_strided_slice %36 {offsets = [0, 0, 0, 0], sizes = [2, 8, 16, 192], strides = [1, 1, 1, 1]} : vector<2x10x16x192xbf16> to vector<2x8x16x192xbf16>
    %38 = vector.shape_cast %37 : vector<2x8x16x192xbf16> to vector<256x192xbf16>
    %c0_70 = arith.constant 0 : index
    %c0_71 = arith.constant 0 : index
    %39 = vector.load %arg4[%c0_70, %c0_71] : memref<576x64xbf16, #tpu.memory_space<vmem>>, vector<192x64xbf16>
    %cst_72 = arith.constant dense<0.000000e+00> : vector<256x64xf32>
    %40 = tpu.matmul %38, %39, %cst_72 {dimension_numbers = #tpu.dot_dimension_numbers<[1], [0], [0], [1], [0, 0, 1, 1], [], []>} : vector<256x192xbf16>, vector<192x64xbf16>, vector<256x64xf32> -> vector<256x64xf32>
    %41 = vector.extract_strided_slice %36 {offsets = [0, 1, 0, 0], sizes = [2, 8, 16, 192], strides = [1, 1, 1, 1]} : vector<2x10x16x192xbf16> to vector<2x8x16x192xbf16>
    %42 = vector.shape_cast %41 : vector<2x8x16x192xbf16> to vector<256x192xbf16>
    %c192 = arith.constant 192 : index
    %c0_73 = arith.constant 0 : index
    %43 = vector.load %arg4[%c192, %c0_73] : memref<576x64xbf16, #tpu.memory_space<vmem>>, vector<192x64xbf16>
    %cst_74 = arith.constant dense<0.000000e+00> : vector<256x64xf32>
    %44 = tpu.matmul %42, %43, %cst_74 {dimension_numbers = #tpu.dot_dimension_numbers<[1], [0], [0], [1], [0, 0, 1, 1], [], []>} : vector<256x192xbf16>, vector<192x64xbf16>, vector<256x64xf32> -> vector<256x64xf32>
    %45 = arith.addf %40, %44 : vector<256x64xf32>
    %46 = vector.extract_strided_slice %36 {offsets = [0, 2, 0, 0], sizes = [2, 8, 16, 192], strides = [1, 1, 1, 1]} : vector<2x10x16x192xbf16> to vector<2x8x16x192xbf16>
    %47 = vector.shape_cast %46 : vector<2x8x16x192xbf16> to vector<256x192xbf16>
    %c384 = arith.constant 384 : index
    %c0_75 = arith.constant 0 : index
    %48 = vector.load %arg4[%c384, %c0_75] : memref<576x64xbf16, #tpu.memory_space<vmem>>, vector<192x64xbf16>
    %cst_76 = arith.constant dense<0.000000e+00> : vector<256x64xf32>
    %49 = tpu.matmul %47, %48, %cst_76 {dimension_numbers = #tpu.dot_dimension_numbers<[1], [0], [0], [1], [0, 0, 1, 1], [], []>} : vector<256x192xbf16>, vector<192x64xbf16>, vector<256x64xf32> -> vector<256x64xf32>
    %50 = arith.addf %45, %49 : vector<256x64xf32>
    %c0_77 = arith.constant 0 : index
    %c0_78 = arith.constant 0 : index
    %51 = vector.load %arg5[%c0_77, %c0_78] : memref<1x64xf32, #tpu.memory_space<vmem>>, vector<1x64xf32>
    %52 = vector.broadcast %51 : vector<1x64xf32> to vector<256x64xf32>
    %53 = arith.addf %50, %52 : vector<256x64xf32>
    %cst_79 = arith.constant 0.000000e+00 : f32
    %54 = vector.broadcast %cst_79 : f32 to vector<256x64xf32>
    %55 = arith.maximumf %53, %54 : vector<256x64xf32>
    %56 = vector.shape_cast %55 : vector<256x64xf32> to vector<2x8x16x64xf32>
    %57 = vector.shape_cast %56 : vector<2x8x16x64xf32> to vector<2x4x2x16x64xf32>
    %cst_80 = arith.constant dense<0xFF800000> : vector<2x4x16x64xf32>
    %58 = vector.multi_reduction <maximumf>, %57, %cst_80 [2] : vector<2x4x2x16x64xf32> to vector<2x4x16x64xf32>
    %59 = arith.truncf %58 : vector<2x4x16x64xf32> to vector<2x4x16x64xbf16>
    %cst_81 = arith.constant 0.000000e+00 : bf16
    %60 = vector.broadcast %cst_81 : bf16 to vector<2x1x48x64xbf16>
    %cst_82 = arith.constant 0.000000e+00 : bf16
    %61 = vector.broadcast %cst_82 : bf16 to vector<2x4x1x64xbf16>
    %c0_83 = arith.constant 0 : index
    %c0_84 = arith.constant 0 : index
    %c0_85 = arith.constant 0 : index
    %c0_86 = arith.constant 0 : index
    %62 = vector.load %arg17[%c0_83, %c0_84, %c0_85, %c0_86] : memref<2x6x48x64xbf16, #tpu.memory_space<vmem>>, vector<2x1x48x64xbf16>
    tpu.vector_store %arg17[%c0_83, %c0_84, %c0_85, %c0_86], %60 {strides = array<i32>} : memref<2x6x48x64xbf16, #tpu.memory_space<vmem>>, vector<2x1x48x64xbf16>,
    %c0_87 = arith.constant 0 : index
    %c5 = arith.constant 5 : index
    %c0_88 = arith.constant 0 : index
    %c0_89 = arith.constant 0 : index
    %63 = vector.load %arg17[%c0_87, %c5, %c0_88, %c0_89] : memref<2x6x48x64xbf16, #tpu.memory_space<vmem>>, vector<2x1x48x64xbf16>
    tpu.vector_store %arg17[%c0_87, %c5, %c0_88, %c0_89], %60 {strides = array<i32>} : memref<2x6x48x64xbf16, #tpu.memory_space<vmem>>, vector<2x1x48x64xbf16>,
    %c0_90 = arith.constant 0 : index
    %c1_91 = arith.constant 1 : index
    %c15_92 = arith.constant 15 : index
    %c0_93 = arith.constant 0 : index
    %64 = vector.load %arg17[%c0_90, %c1_91, %c15_92, %c0_93] : memref<2x6x48x64xbf16, #tpu.memory_space<vmem>>, vector<2x4x1x64xbf16>
    tpu.vector_store %arg17[%c0_90, %c1_91, %c15_92, %c0_93], %61 {strides = array<i32>} : memref<2x6x48x64xbf16, #tpu.memory_space<vmem>>, vector<2x4x1x64xbf16>,
    %c0_94 = arith.constant 0 : index
    %c1_95 = arith.constant 1 : index
    %c32_96 = arith.constant 32 : index
    %c0_97 = arith.constant 0 : index
    %65 = vector.load %arg17[%c0_94, %c1_95, %c32_96, %c0_97] : memref<2x6x48x64xbf16, #tpu.memory_space<vmem>>, vector<2x4x1x64xbf16>
    tpu.vector_store %arg17[%c0_94, %c1_95, %c32_96, %c0_97], %61 {strides = array<i32>} : memref<2x6x48x64xbf16, #tpu.memory_space<vmem>>, vector<2x4x1x64xbf16>,
    %c0_98 = arith.constant 0 : index
    %c1_99 = arith.constant 1 : index
    %c16_100 = arith.constant 16 : index
    %c0_101 = arith.constant 0 : index
    %66 = vector.load %arg17[%c0_98, %c1_99, %c16_100, %c0_101] : memref<2x6x48x64xbf16, #tpu.memory_space<vmem>>, vector<2x4x16x64xbf16>
    tpu.vector_store %arg17[%c0_98, %c1_99, %c16_100, %c0_101], %59 {strides = array<i32>} : memref<2x6x48x64xbf16, #tpu.memory_space<vmem>>, vector<2x4x16x64xbf16>,
    %c0_102 = arith.constant 0 : index
    %c0_103 = arith.constant 0 : index
    %c15_104 = arith.constant 15 : index
    %c0_105 = arith.constant 0 : index
    %67 = vector.load %arg17[%c0_102, %c0_103, %c15_104, %c0_105] : memref<2x6x48x64xbf16, #tpu.memory_space<vmem>>, vector<2x6x16x64xbf16>
    %c0_106 = arith.constant 0 : index
    %c0_107 = arith.constant 0 : index
    %c16_108 = arith.constant 16 : index
    %c0_109 = arith.constant 0 : index
    %68 = vector.load %arg17[%c0_106, %c0_107, %c16_108, %c0_109] : memref<2x6x48x64xbf16, #tpu.memory_space<vmem>>, vector<2x6x16x64xbf16>
    %c0_110 = arith.constant 0 : index
    %c0_111 = arith.constant 0 : index
    %c17_112 = arith.constant 17 : index
    %c0_113 = arith.constant 0 : index
    %69 = vector.load %arg17[%c0_110, %c0_111, %c17_112, %c0_113] : memref<2x6x48x64xbf16, #tpu.memory_space<vmem>>, vector<2x6x16x64xbf16>
    %70 = tpu.concatenate %67, %68, %69 in 3 : vector<2x6x16x64xbf16>, vector<2x6x16x64xbf16>, vector<2x6x16x64xbf16> -> vector<2x6x16x192xbf16>
    %71 = vector.extract_strided_slice %70 {offsets = [0, 0, 0, 0], sizes = [2, 4, 16, 192], strides = [1, 1, 1, 1]} : vector<2x6x16x192xbf16> to vector<2x4x16x192xbf16>
    %72 = vector.shape_cast %71 : vector<2x4x16x192xbf16> to vector<128x192xbf16>
    %c0_114 = arith.constant 0 : index
    %c0_115 = arith.constant 0 : index
    %73 = vector.load %arg6[%c0_114, %c0_115] : memref<576x128xbf16, #tpu.memory_space<vmem>>, vector<192x128xbf16>
    %cst_116 = arith.constant dense<0.000000e+00> : vector<128x128xf32>
    %74 = tpu.matmul %72, %73, %cst_116 {dimension_numbers = #tpu.dot_dimension_numbers<[1], [0], [0], [1], [0, 0, 1, 1], [], []>} : vector<128x192xbf16>, vector<192x128xbf16>, vector<128x128xf32> -> vector<128x128xf32>
    %75 = vector.extract_strided_slice %70 {offsets = [0, 1, 0, 0], sizes = [2, 4, 16, 192], strides = [1, 1, 1, 1]} : vector<2x6x16x192xbf16> to vector<2x4x16x192xbf16>
    %76 = vector.shape_cast %75 : vector<2x4x16x192xbf16> to vector<128x192xbf16>
    %c192_117 = arith.constant 192 : index
    %c0_118 = arith.constant 0 : index
    %77 = vector.load %arg6[%c192_117, %c0_118] : memref<576x128xbf16, #tpu.memory_space<vmem>>, vector<192x128xbf16>
    %cst_119 = arith.constant dense<0.000000e+00> : vector<128x128xf32>
    %78 = tpu.matmul %76, %77, %cst_119 {dimension_numbers = #tpu.dot_dimension_numbers<[1], [0], [0], [1], [0, 0, 1, 1], [], []>} : vector<128x192xbf16>, vector<192x128xbf16>, vector<128x128xf32> -> vector<128x128xf32>
    %79 = arith.addf %74, %78 : vector<128x128xf32>
    %80 = vector.extract_strided_slice %70 {offsets = [0, 2, 0, 0], sizes = [2, 4, 16, 192], strides = [1, 1, 1, 1]} : vector<2x6x16x192xbf16> to vector<2x4x16x192xbf16>
    %81 = vector.shape_cast %80 : vector<2x4x16x192xbf16> to vector<128x192xbf16>
    %c384_120 = arith.constant 384 : index
    %c0_121 = arith.constant 0 : index
    %82 = vector.load %arg6[%c384_120, %c0_121] : memref<576x128xbf16, #tpu.memory_space<vmem>>, vector<192x128xbf16>
    %cst_122 = arith.constant dense<0.000000e+00> : vector<128x128xf32>
    %83 = tpu.matmul %81, %82, %cst_122 {dimension_numbers = #tpu.dot_dimension_numbers<[1], [0], [0], [1], [0, 0, 1, 1], [], []>} : vector<128x192xbf16>, vector<192x128xbf16>, vector<128x128xf32> -> vector<128x128xf32>
    %84 = arith.addf %79, %83 : vector<128x128xf32>
    %c0_123 = arith.constant 0 : index
    %c0_124 = arith.constant 0 : index
    %85 = vector.load %arg7[%c0_123, %c0_124] : memref<1x128xf32, #tpu.memory_space<vmem>>, vector<1x128xf32>
    %86 = vector.broadcast %85 : vector<1x128xf32> to vector<128x128xf32>
    %87 = arith.addf %84, %86 : vector<128x128xf32>
    %cst_125 = arith.constant 0.000000e+00 : f32
    %88 = vector.broadcast %cst_125 : f32 to vector<128x128xf32>
    %89 = arith.maximumf %87, %88 : vector<128x128xf32>
    %90 = vector.shape_cast %89 : vector<128x128xf32> to vector<2x4x16x128xf32>
    %91 = arith.truncf %90 : vector<2x4x16x128xf32> to vector<2x4x16x128xbf16>
    %cst_126 = arith.constant 0.000000e+00 : bf16
    %92 = vector.broadcast %cst_126 : bf16 to vector<2x1x48x128xbf16>
    %cst_127 = arith.constant 0.000000e+00 : bf16
    %93 = vector.broadcast %cst_127 : bf16 to vector<2x4x1x128xbf16>
    %c0_128 = arith.constant 0 : index
    %c0_129 = arith.constant 0 : index
    %c0_130 = arith.constant 0 : index
    %c0_131 = arith.constant 0 : index
    %94 = vector.load %arg18[%c0_128, %c0_129, %c0_130, %c0_131] : memref<2x6x48x128xbf16, #tpu.memory_space<vmem>>, vector<2x1x48x128xbf16>
    tpu.vector_store %arg18[%c0_128, %c0_129, %c0_130, %c0_131], %92 {strides = array<i32>} : memref<2x6x48x128xbf16, #tpu.memory_space<vmem>>, vector<2x1x48x128xbf16>,
    %c0_132 = arith.constant 0 : index
    %c5_133 = arith.constant 5 : index
    %c0_134 = arith.constant 0 : index
    %c0_135 = arith.constant 0 : index
    %95 = vector.load %arg18[%c0_132, %c5_133, %c0_134, %c0_135] : memref<2x6x48x128xbf16, #tpu.memory_space<vmem>>, vector<2x1x48x128xbf16>
    tpu.vector_store %arg18[%c0_132, %c5_133, %c0_134, %c0_135], %92 {strides = array<i32>} : memref<2x6x48x128xbf16, #tpu.memory_space<vmem>>, vector<2x1x48x128xbf16>,
    %c0_136 = arith.constant 0 : index
    %c1_137 = arith.constant 1 : index
    %c15_138 = arith.constant 15 : index
    %c0_139 = arith.constant 0 : index
    %96 = vector.load %arg18[%c0_136, %c1_137, %c15_138, %c0_139] : memref<2x6x48x128xbf16, #tpu.memory_space<vmem>>, vector<2x4x1x128xbf16>
    tpu.vector_store %arg18[%c0_136, %c1_137, %c15_138, %c0_139], %93 {strides = array<i32>} : memref<2x6x48x128xbf16, #tpu.memory_space<vmem>>, vector<2x4x1x128xbf16>,
    %c0_140 = arith.constant 0 : index
    %c1_141 = arith.constant 1 : index
    %c32_142 = arith.constant 32 : index
    %c0_143 = arith.constant 0 : index
    %97 = vector.load %arg18[%c0_140, %c1_141, %c32_142, %c0_143] : memref<2x6x48x128xbf16, #tpu.memory_space<vmem>>, vector<2x4x1x128xbf16>
    tpu.vector_store %arg18[%c0_140, %c1_141, %c32_142, %c0_143], %93 {strides = array<i32>} : memref<2x6x48x128xbf16, #tpu.memory_space<vmem>>, vector<2x4x1x128xbf16>,
    %c0_144 = arith.constant 0 : index
    %c1_145 = arith.constant 1 : index
    %c16_146 = arith.constant 16 : index
    %c0_147 = arith.constant 0 : index
    %98 = vector.load %arg18[%c0_144, %c1_145, %c16_146, %c0_147] : memref<2x6x48x128xbf16, #tpu.memory_space<vmem>>, vector<2x4x16x128xbf16>
    tpu.vector_store %arg18[%c0_144, %c1_145, %c16_146, %c0_147], %91 {strides = array<i32>} : memref<2x6x48x128xbf16, #tpu.memory_space<vmem>>, vector<2x4x16x128xbf16>,
    %c0_148 = arith.constant 0 : index
    %c0_149 = arith.constant 0 : index
    %c15_150 = arith.constant 15 : index
    %c0_151 = arith.constant 0 : index
    %99 = vector.load %arg18[%c0_148, %c0_149, %c15_150, %c0_151] : memref<2x6x48x128xbf16, #tpu.memory_space<vmem>>, vector<2x6x16x128xbf16>
    %c0_152 = arith.constant 0 : index
    %c0_153 = arith.constant 0 : index
    %c16_154 = arith.constant 16 : index
    %c0_155 = arith.constant 0 : index
    %100 = vector.load %arg18[%c0_152, %c0_153, %c16_154, %c0_155] : memref<2x6x48x128xbf16, #tpu.memory_space<vmem>>, vector<2x6x16x128xbf16>
    %c0_156 = arith.constant 0 : index
    %c0_157 = arith.constant 0 : index
    %c17_158 = arith.constant 17 : index
    %c0_159 = arith.constant 0 : index
    %101 = vector.load %arg18[%c0_156, %c0_157, %c17_158, %c0_159] : memref<2x6x48x128xbf16, #tpu.memory_space<vmem>>, vector<2x6x16x128xbf16>
    %102 = tpu.concatenate %99, %100, %101 in 3 : vector<2x6x16x128xbf16>, vector<2x6x16x128xbf16>, vector<2x6x16x128xbf16> -> vector<2x6x16x384xbf16>
    %103 = vector.extract_strided_slice %102 {offsets = [0, 0, 0, 0], sizes = [2, 4, 16, 384], strides = [1, 1, 1, 1]} : vector<2x6x16x384xbf16> to vector<2x4x16x384xbf16>
    %104 = vector.shape_cast %103 : vector<2x4x16x384xbf16> to vector<128x384xbf16>
    %c0_160 = arith.constant 0 : index
    %c0_161 = arith.constant 0 : index
    %105 = vector.load %arg8[%c0_160, %c0_161] : memref<1152x128xbf16, #tpu.memory_space<vmem>>, vector<384x128xbf16>
    %cst_162 = arith.constant dense<0.000000e+00> : vector<128x128xf32>
    %106 = tpu.matmul %104, %105, %cst_162 {dimension_numbers = #tpu.dot_dimension_numbers<[1], [0], [0], [1], [0, 0, 1, 1], [], []>} : vector<128x384xbf16>, vector<384x128xbf16>, vector<128x128xf32> -> vector<128x128xf32>
    %107 = vector.extract_strided_slice %102 {offsets = [0, 1, 0, 0], sizes = [2, 4, 16, 384], strides = [1, 1, 1, 1]} : vector<2x6x16x384xbf16> to vector<2x4x16x384xbf16>
    %108 = vector.shape_cast %107 : vector<2x4x16x384xbf16> to vector<128x384xbf16>
    %c384_163 = arith.constant 384 : index
    %c0_164 = arith.constant 0 : index
    %109 = vector.load %arg8[%c384_163, %c0_164] : memref<1152x128xbf16, #tpu.memory_space<vmem>>, vector<384x128xbf16>
    %cst_165 = arith.constant dense<0.000000e+00> : vector<128x128xf32>
    %110 = tpu.matmul %108, %109, %cst_165 {dimension_numbers = #tpu.dot_dimension_numbers<[1], [0], [0], [1], [0, 0, 1, 1], [], []>} : vector<128x384xbf16>, vector<384x128xbf16>, vector<128x128xf32> -> vector<128x128xf32>
    %111 = arith.addf %106, %110 : vector<128x128xf32>
    %112 = vector.extract_strided_slice %102 {offsets = [0, 2, 0, 0], sizes = [2, 4, 16, 384], strides = [1, 1, 1, 1]} : vector<2x6x16x384xbf16> to vector<2x4x16x384xbf16>
    %113 = vector.shape_cast %112 : vector<2x4x16x384xbf16> to vector<128x384xbf16>
    %c768 = arith.constant 768 : index
    %c0_166 = arith.constant 0 : index
    %114 = vector.load %arg8[%c768, %c0_166] : memref<1152x128xbf16, #tpu.memory_space<vmem>>, vector<384x128xbf16>
    %cst_167 = arith.constant dense<0.000000e+00> : vector<128x128xf32>
    %115 = tpu.matmul %113, %114, %cst_167 {dimension_numbers = #tpu.dot_dimension_numbers<[1], [0], [0], [1], [0, 0, 1, 1], [], []>} : vector<128x384xbf16>, vector<384x128xbf16>, vector<128x128xf32> -> vector<128x128xf32>
    %116 = arith.addf %111, %115 : vector<128x128xf32>
    %c0_168 = arith.constant 0 : index
    %c0_169 = arith.constant 0 : index
    %117 = vector.load %arg9[%c0_168, %c0_169] : memref<1x128xf32, #tpu.memory_space<vmem>>, vector<1x128xf32>
    %118 = vector.broadcast %117 : vector<1x128xf32> to vector<128x128xf32>
    %119 = arith.addf %116, %118 : vector<128x128xf32>
    %cst_170 = arith.constant 0.000000e+00 : f32
    %120 = vector.broadcast %cst_170 : f32 to vector<128x128xf32>
    %121 = arith.maximumf %119, %120 : vector<128x128xf32>
    %122 = vector.shape_cast %121 : vector<128x128xf32> to vector<2x4x16x128xf32>
    %123 = vector.shape_cast %122 : vector<2x4x16x128xf32> to vector<2x2x2x16x128xf32>
    %cst_171 = arith.constant dense<0xFF800000> : vector<2x2x16x128xf32>
    %124 = vector.multi_reduction <maximumf>, %123, %cst_171 [2] : vector<2x2x2x16x128xf32> to vector<2x2x16x128xf32>
    %125 = arith.truncf %124 : vector<2x2x16x128xf32> to vector<2x2x16x128xbf16>
    %cst_172 = arith.constant 0.000000e+00 : bf16
    %126 = vector.broadcast %cst_172 : bf16 to vector<2x1x48x128xbf16>
    %cst_173 = arith.constant 0.000000e+00 : bf16
    %127 = vector.broadcast %cst_173 : bf16 to vector<2x2x1x128xbf16>
    %c0_174 = arith.constant 0 : index
    %c0_175 = arith.constant 0 : index
    %c0_176 = arith.constant 0 : index
    %c0_177 = arith.constant 0 : index
    %128 = vector.load %arg19[%c0_174, %c0_175, %c0_176, %c0_177] : memref<2x4x48x128xbf16, #tpu.memory_space<vmem>>, vector<2x1x48x128xbf16>
    tpu.vector_store %arg19[%c0_174, %c0_175, %c0_176, %c0_177], %126 {strides = array<i32>} : memref<2x4x48x128xbf16, #tpu.memory_space<vmem>>, vector<2x1x48x128xbf16>,
    %c0_178 = arith.constant 0 : index
    %c3 = arith.constant 3 : index
    %c0_179 = arith.constant 0 : index
    %c0_180 = arith.constant 0 : index
    %129 = vector.load %arg19[%c0_178, %c3, %c0_179, %c0_180] : memref<2x4x48x128xbf16, #tpu.memory_space<vmem>>, vector<2x1x48x128xbf16>
    tpu.vector_store %arg19[%c0_178, %c3, %c0_179, %c0_180], %126 {strides = array<i32>} : memref<2x4x48x128xbf16, #tpu.memory_space<vmem>>, vector<2x1x48x128xbf16>,
    %c0_181 = arith.constant 0 : index
    %c1_182 = arith.constant 1 : index
    %c15_183 = arith.constant 15 : index
    %c0_184 = arith.constant 0 : index
    %130 = vector.load %arg19[%c0_181, %c1_182, %c15_183, %c0_184] : memref<2x4x48x128xbf16, #tpu.memory_space<vmem>>, vector<2x2x1x128xbf16>
    tpu.vector_store %arg19[%c0_181, %c1_182, %c15_183, %c0_184], %127 {strides = array<i32>} : memref<2x4x48x128xbf16, #tpu.memory_space<vmem>>, vector<2x2x1x128xbf16>,
    %c0_185 = arith.constant 0 : index
    %c1_186 = arith.constant 1 : index
    %c32_187 = arith.constant 32 : index
    %c0_188 = arith.constant 0 : index
    %131 = vector.load %arg19[%c0_185, %c1_186, %c32_187, %c0_188] : memref<2x4x48x128xbf16, #tpu.memory_space<vmem>>, vector<2x2x1x128xbf16>
    tpu.vector_store %arg19[%c0_185, %c1_186, %c32_187, %c0_188], %127 {strides = array<i32>} : memref<2x4x48x128xbf16, #tpu.memory_space<vmem>>, vector<2x2x1x128xbf16>,
    %c0_189 = arith.constant 0 : index
    %c1_190 = arith.constant 1 : index
    %c16_191 = arith.constant 16 : index
    %c0_192 = arith.constant 0 : index
    %132 = vector.load %arg19[%c0_189, %c1_190, %c16_191, %c0_192] : memref<2x4x48x128xbf16, #tpu.memory_space<vmem>>, vector<2x2x16x128xbf16>
    tpu.vector_store %arg19[%c0_189, %c1_190, %c16_191, %c0_192], %125 {strides = array<i32>} : memref<2x4x48x128xbf16, #tpu.memory_space<vmem>>, vector<2x2x16x128xbf16>,
    %c0_193 = arith.constant 0 : index
    %c0_194 = arith.constant 0 : index
    %c15_195 = arith.constant 15 : index
    %c0_196 = arith.constant 0 : index
    %133 = vector.load %arg19[%c0_193, %c0_194, %c15_195, %c0_196] : memref<2x4x48x128xbf16, #tpu.memory_space<vmem>>, vector<2x4x16x128xbf16>
    %c0_197 = arith.constant 0 : index
    %c0_198 = arith.constant 0 : index
    %c16_199 = arith.constant 16 : index
    %c0_200 = arith.constant 0 : index
    %134 = vector.load %arg19[%c0_197, %c0_198, %c16_199, %c0_200] : memref<2x4x48x128xbf16, #tpu.memory_space<vmem>>, vector<2x4x16x128xbf16>
    %c0_201 = arith.constant 0 : index
    %c0_202 = arith.constant 0 : index
    %c17_203 = arith.constant 17 : index
    %c0_204 = arith.constant 0 : index
    %135 = vector.load %arg19[%c0_201, %c0_202, %c17_203, %c0_204] : memref<2x4x48x128xbf16, #tpu.memory_space<vmem>>, vector<2x4x16x128xbf16>
    %136 = tpu.concatenate %133, %134, %135 in 3 : vector<2x4x16x128xbf16>, vector<2x4x16x128xbf16>, vector<2x4x16x128xbf16> -> vector<2x4x16x384xbf16>
    %137 = vector.extract_strided_slice %136 {offsets = [0, 0, 0, 0], sizes = [2, 2, 16, 384], strides = [1, 1, 1, 1]} : vector<2x4x16x384xbf16> to vector<2x2x16x384xbf16>
    %138 = vector.shape_cast %137 : vector<2x2x16x384xbf16> to vector<64x384xbf16>
    %c0_205 = arith.constant 0 : index
    %c0_206 = arith.constant 0 : index
    %139 = vector.load %arg10[%c0_205, %c0_206] : memref<1152x256xbf16, #tpu.memory_space<vmem>>, vector<384x256xbf16>
    %cst_207 = arith.constant dense<0.000000e+00> : vector<64x256xf32>
    %140 = tpu.matmul %138, %139, %cst_207 {dimension_numbers = #tpu.dot_dimension_numbers<[1], [0], [0], [1], [0, 0, 1, 1], [], []>} : vector<64x384xbf16>, vector<384x256xbf16>, vector<64x256xf32> -> vector<64x256xf32>
    %141 = vector.extract_strided_slice %136 {offsets = [0, 1, 0, 0], sizes = [2, 2, 16, 384], strides = [1, 1, 1, 1]} : vector<2x4x16x384xbf16> to vector<2x2x16x384xbf16>
    %142 = vector.shape_cast %141 : vector<2x2x16x384xbf16> to vector<64x384xbf16>
    %c384_208 = arith.constant 384 : index
    %c0_209 = arith.constant 0 : index
    %143 = vector.load %arg10[%c384_208, %c0_209] : memref<1152x256xbf16, #tpu.memory_space<vmem>>, vector<384x256xbf16>
    %cst_210 = arith.constant dense<0.000000e+00> : vector<64x256xf32>
    %144 = tpu.matmul %142, %143, %cst_210 {dimension_numbers = #tpu.dot_dimension_numbers<[1], [0], [0], [1], [0, 0, 1, 1], [], []>} : vector<64x384xbf16>, vector<384x256xbf16>, vector<64x256xf32> -> vector<64x256xf32>
    %145 = arith.addf %140, %144 : vector<64x256xf32>
    %146 = vector.extract_strided_slice %136 {offsets = [0, 2, 0, 0], sizes = [2, 2, 16, 384], strides = [1, 1, 1, 1]} : vector<2x4x16x384xbf16> to vector<2x2x16x384xbf16>
    %147 = vector.shape_cast %146 : vector<2x2x16x384xbf16> to vector<64x384xbf16>
    %c768_211 = arith.constant 768 : index
    %c0_212 = arith.constant 0 : index
    %148 = vector.load %arg10[%c768_211, %c0_212] : memref<1152x256xbf16, #tpu.memory_space<vmem>>, vector<384x256xbf16>
    %cst_213 = arith.constant dense<0.000000e+00> : vector<64x256xf32>
    %149 = tpu.matmul %147, %148, %cst_213 {dimension_numbers = #tpu.dot_dimension_numbers<[1], [0], [0], [1], [0, 0, 1, 1], [], []>} : vector<64x384xbf16>, vector<384x256xbf16>, vector<64x256xf32> -> vector<64x256xf32>
    %150 = arith.addf %145, %149 : vector<64x256xf32>
    %c0_214 = arith.constant 0 : index
    %c0_215 = arith.constant 0 : index
    %151 = vector.load %arg11[%c0_214, %c0_215] : memref<1x256xf32, #tpu.memory_space<vmem>>, vector<1x256xf32>
    %152 = vector.broadcast %151 : vector<1x256xf32> to vector<64x256xf32>
    %153 = arith.addf %150, %152 : vector<64x256xf32>
    %cst_216 = arith.constant 0.000000e+00 : f32
    %154 = vector.broadcast %cst_216 : f32 to vector<64x256xf32>
    %155 = arith.maximumf %153, %154 : vector<64x256xf32>
    %156 = vector.shape_cast %155 : vector<64x256xf32> to vector<2x2x16x256xf32>
    %157 = arith.truncf %156 : vector<2x2x16x256xf32> to vector<2x2x16x256xbf16>
    %cst_217 = arith.constant 0.000000e+00 : bf16
    %158 = vector.broadcast %cst_217 : bf16 to vector<2x1x48x256xbf16>
    %cst_218 = arith.constant 0.000000e+00 : bf16
    %159 = vector.broadcast %cst_218 : bf16 to vector<2x2x1x256xbf16>
    %c0_219 = arith.constant 0 : index
    %c0_220 = arith.constant 0 : index
    %c0_221 = arith.constant 0 : index
    %c0_222 = arith.constant 0 : index
    %160 = vector.load %arg20[%c0_219, %c0_220, %c0_221, %c0_222] : memref<2x4x48x256xbf16, #tpu.memory_space<vmem>>, vector<2x1x48x256xbf16>
    tpu.vector_store %arg20[%c0_219, %c0_220, %c0_221, %c0_222], %158 {strides = array<i32>} : memref<2x4x48x256xbf16, #tpu.memory_space<vmem>>, vector<2x1x48x256xbf16>,
    %c0_223 = arith.constant 0 : index
    %c3_224 = arith.constant 3 : index
    %c0_225 = arith.constant 0 : index
    %c0_226 = arith.constant 0 : index
    %161 = vector.load %arg20[%c0_223, %c3_224, %c0_225, %c0_226] : memref<2x4x48x256xbf16, #tpu.memory_space<vmem>>, vector<2x1x48x256xbf16>
    tpu.vector_store %arg20[%c0_223, %c3_224, %c0_225, %c0_226], %158 {strides = array<i32>} : memref<2x4x48x256xbf16, #tpu.memory_space<vmem>>, vector<2x1x48x256xbf16>,
    %c0_227 = arith.constant 0 : index
    %c1_228 = arith.constant 1 : index
    %c15_229 = arith.constant 15 : index
    %c0_230 = arith.constant 0 : index
    %162 = vector.load %arg20[%c0_227, %c1_228, %c15_229, %c0_230] : memref<2x4x48x256xbf16, #tpu.memory_space<vmem>>, vector<2x2x1x256xbf16>
    tpu.vector_store %arg20[%c0_227, %c1_228, %c15_229, %c0_230], %159 {strides = array<i32>} : memref<2x4x48x256xbf16, #tpu.memory_space<vmem>>, vector<2x2x1x256xbf16>,
    %c0_231 = arith.constant 0 : index
    %c1_232 = arith.constant 1 : index
    %c32_233 = arith.constant 32 : index
    %c0_234 = arith.constant 0 : index
    %163 = vector.load %arg20[%c0_231, %c1_232, %c32_233, %c0_234] : memref<2x4x48x256xbf16, #tpu.memory_space<vmem>>, vector<2x2x1x256xbf16>
    tpu.vector_store %arg20[%c0_231, %c1_232, %c32_233, %c0_234], %159 {strides = array<i32>} : memref<2x4x48x256xbf16, #tpu.memory_space<vmem>>, vector<2x2x1x256xbf16>,
    %c0_235 = arith.constant 0 : index
    %c1_236 = arith.constant 1 : index
    %c16_237 = arith.constant 16 : index
    %c0_238 = arith.constant 0 : index
    %164 = vector.load %arg20[%c0_235, %c1_236, %c16_237, %c0_238] : memref<2x4x48x256xbf16, #tpu.memory_space<vmem>>, vector<2x2x16x256xbf16>
    tpu.vector_store %arg20[%c0_235, %c1_236, %c16_237, %c0_238], %157 {strides = array<i32>} : memref<2x4x48x256xbf16, #tpu.memory_space<vmem>>, vector<2x2x16x256xbf16>,
    %c0_239 = arith.constant 0 : index
    %c0_240 = arith.constant 0 : index
    %c15_241 = arith.constant 15 : index
    %c0_242 = arith.constant 0 : index
    %165 = vector.load %arg20[%c0_239, %c0_240, %c15_241, %c0_242] : memref<2x4x48x256xbf16, #tpu.memory_space<vmem>>, vector<2x4x16x256xbf16>
    %c0_243 = arith.constant 0 : index
    %c0_244 = arith.constant 0 : index
    %c16_245 = arith.constant 16 : index
    %c0_246 = arith.constant 0 : index
    %166 = vector.load %arg20[%c0_243, %c0_244, %c16_245, %c0_246] : memref<2x4x48x256xbf16, #tpu.memory_space<vmem>>, vector<2x4x16x256xbf16>
    %c0_247 = arith.constant 0 : index
    %c0_248 = arith.constant 0 : index
    %c17_249 = arith.constant 17 : index
    %c0_250 = arith.constant 0 : index
    %167 = vector.load %arg20[%c0_247, %c0_248, %c17_249, %c0_250] : memref<2x4x48x256xbf16, #tpu.memory_space<vmem>>, vector<2x4x16x256xbf16>
    %168 = tpu.concatenate %165, %166, %167 in 3 : vector<2x4x16x256xbf16>, vector<2x4x16x256xbf16>, vector<2x4x16x256xbf16> -> vector<2x4x16x768xbf16>
    %169 = vector.extract_strided_slice %168 {offsets = [0, 0, 0, 0], sizes = [2, 2, 16, 768], strides = [1, 1, 1, 1]} : vector<2x4x16x768xbf16> to vector<2x2x16x768xbf16>
    %170 = vector.shape_cast %169 : vector<2x2x16x768xbf16> to vector<64x768xbf16>
    %c0_251 = arith.constant 0 : index
    %c0_252 = arith.constant 0 : index
    %171 = vector.load %arg12[%c0_251, %c0_252] : memref<2304x256xbf16, #tpu.memory_space<vmem>>, vector<768x256xbf16>
    %cst_253 = arith.constant dense<0.000000e+00> : vector<64x256xf32>
    %172 = tpu.matmul %170, %171, %cst_253 {dimension_numbers = #tpu.dot_dimension_numbers<[1], [0], [0], [1], [0, 0, 1, 1], [], []>} : vector<64x768xbf16>, vector<768x256xbf16>, vector<64x256xf32> -> vector<64x256xf32>
    %173 = vector.extract_strided_slice %168 {offsets = [0, 1, 0, 0], sizes = [2, 2, 16, 768], strides = [1, 1, 1, 1]} : vector<2x4x16x768xbf16> to vector<2x2x16x768xbf16>
    %174 = vector.shape_cast %173 : vector<2x2x16x768xbf16> to vector<64x768xbf16>
    %c768_254 = arith.constant 768 : index
    %c0_255 = arith.constant 0 : index
    %175 = vector.load %arg12[%c768_254, %c0_255] : memref<2304x256xbf16, #tpu.memory_space<vmem>>, vector<768x256xbf16>
    %cst_256 = arith.constant dense<0.000000e+00> : vector<64x256xf32>
    %176 = tpu.matmul %174, %175, %cst_256 {dimension_numbers = #tpu.dot_dimension_numbers<[1], [0], [0], [1], [0, 0, 1, 1], [], []>} : vector<64x768xbf16>, vector<768x256xbf16>, vector<64x256xf32> -> vector<64x256xf32>
    %177 = arith.addf %172, %176 : vector<64x256xf32>
    %178 = vector.extract_strided_slice %168 {offsets = [0, 2, 0, 0], sizes = [2, 2, 16, 768], strides = [1, 1, 1, 1]} : vector<2x4x16x768xbf16> to vector<2x2x16x768xbf16>
    %179 = vector.shape_cast %178 : vector<2x2x16x768xbf16> to vector<64x768xbf16>
    %c1536 = arith.constant 1536 : index
    %c0_257 = arith.constant 0 : index
    %180 = vector.load %arg12[%c1536, %c0_257] : memref<2304x256xbf16, #tpu.memory_space<vmem>>, vector<768x256xbf16>
    %cst_258 = arith.constant dense<0.000000e+00> : vector<64x256xf32>
    %181 = tpu.matmul %179, %180, %cst_258 {dimension_numbers = #tpu.dot_dimension_numbers<[1], [0], [0], [1], [0, 0, 1, 1], [], []>} : vector<64x768xbf16>, vector<768x256xbf16>, vector<64x256xf32> -> vector<64x256xf32>
    %182 = arith.addf %177, %181 : vector<64x256xf32>
    %c0_259 = arith.constant 0 : index
    %c0_260 = arith.constant 0 : index
    %183 = vector.load %arg13[%c0_259, %c0_260] : memref<1x256xf32, #tpu.memory_space<vmem>>, vector<1x256xf32>
    %184 = vector.broadcast %183 : vector<1x256xf32> to vector<64x256xf32>
    %185 = arith.addf %182, %184 : vector<64x256xf32>
    %cst_261 = arith.constant 0.000000e+00 : f32
    %186 = vector.broadcast %cst_261 : f32 to vector<64x256xf32>
    %187 = arith.maximumf %185, %186 : vector<64x256xf32>
    %188 = vector.shape_cast %187 : vector<64x256xf32> to vector<2x2x16x256xf32>
    %189 = vector.shape_cast %188 : vector<2x2x16x256xf32> to vector<2x1x2x16x256xf32>
    %cst_262 = arith.constant dense<0xFF800000> : vector<2x1x16x256xf32>
    %190 = vector.multi_reduction <maximumf>, %189, %cst_262 [2] : vector<2x1x2x16x256xf32> to vector<2x1x16x256xf32>
    %c0_263 = arith.constant 0 : index
    %c0_264 = arith.constant 0 : index
    %c0_265 = arith.constant 0 : index
    %c0_266 = arith.constant 0 : index
    %191 = vector.load %arg14[%c0_263, %c0_264, %c0_265, %c0_266] : memref<2x1x16x256xf32, #tpu.memory_space<vmem>>, vector<2x1x16x256xf32>
    tpu.vector_store %arg14[%c0_263, %c0_264, %c0_265, %c0_266], %190 {strides = array<i32>} : memref<2x1x16x256xf32, #tpu.memory_space<vmem>>, vector<2x1x16x256xf32>,
    return
  }
  func.func @transform_0(%arg0: i32) -> (i32, i32, i32, i32) {
    %c0_i32 = arith.constant 0 : i32
    %c0_i32_0 = arith.constant 0 : i32
    %c0_i32_1 = arith.constant 0 : i32
    %c0_i32_2 = arith.constant 0 : i32
    return %arg0, %c0_i32, %c0_i32_0, %c0_i32_1 : i32, i32, i32, i32
  }
  func.func @transform_1(%arg0: i32) -> (i32, i32) {
    %c0_i32 = arith.constant 0 : i32
    %c0_i32_0 = arith.constant 0 : i32
    %c0_i32_1 = arith.constant 0 : i32
    return %c0_i32, %c0_i32_0 : i32, i32
  }
  func.func @transform_2(%arg0: i32) -> (i32, i32) {
    %c0_i32 = arith.constant 0 : i32
    %c0_i32_0 = arith.constant 0 : i32
    %c0_i32_1 = arith.constant 0 : i32
    return %c0_i32, %c0_i32_0 : i32, i32
  }
  func.func @transform_3(%arg0: i32) -> (i32, i32) {
    %c0_i32 = arith.constant 0 : i32
    %c0_i32_0 = arith.constant 0 : i32
    %c0_i32_1 = arith.constant 0 : i32
    return %c0_i32, %c0_i32_0 : i32, i32
  }
  func.func @transform_4(%arg0: i32) -> (i32, i32) {
    %c0_i32 = arith.constant 0 : i32
    %c0_i32_0 = arith.constant 0 : i32
    %c0_i32_1 = arith.constant 0 : i32
    return %c0_i32, %c0_i32_0 : i32, i32
  }
  func.func @transform_5(%arg0: i32) -> (i32, i32) {
    %c0_i32 = arith.constant 0 : i32
    %c0_i32_0 = arith.constant 0 : i32
    %c0_i32_1 = arith.constant 0 : i32
    return %c0_i32, %c0_i32_0 : i32, i32
  }
  func.func @transform_6(%arg0: i32) -> (i32, i32) {
    %c0_i32 = arith.constant 0 : i32
    %c0_i32_0 = arith.constant 0 : i32
    %c0_i32_1 = arith.constant 0 : i32
    return %c0_i32, %c0_i32_0 : i32, i32
  }
  func.func @transform_7(%arg0: i32) -> (i32, i32) {
    %c0_i32 = arith.constant 0 : i32
    %c0_i32_0 = arith.constant 0 : i32
    %c0_i32_1 = arith.constant 0 : i32
    return %c0_i32, %c0_i32_0 : i32, i32
  }
  func.func @transform_8(%arg0: i32) -> (i32, i32) {
    %c0_i32 = arith.constant 0 : i32
    %c0_i32_0 = arith.constant 0 : i32
    %c0_i32_1 = arith.constant 0 : i32
    return %c0_i32, %c0_i32_0 : i32, i32
  }
  func.func @transform_9(%arg0: i32) -> (i32, i32) {
    %c0_i32 = arith.constant 0 : i32
    %c0_i32_0 = arith.constant 0 : i32
    %c0_i32_1 = arith.constant 0 : i32
    return %c0_i32, %c0_i32_0 : i32, i32
  }
  func.func @transform_10(%arg0: i32) -> (i32, i32) {
    %c0_i32 = arith.constant 0 : i32
    %c0_i32_0 = arith.constant 0 : i32
    %c0_i32_1 = arith.constant 0 : i32
    return %c0_i32, %c0_i32_0 : i32, i32
  }
  func.func @transform_11(%arg0: i32) -> (i32, i32) {
    %c0_i32 = arith.constant 0 : i32
    %c0_i32_0 = arith.constant 0 : i32
    %c0_i32_1 = arith.constant 0 : i32
    return %c0_i32, %c0_i32_0 : i32, i32
  }
  func.func @transform_12(%arg0: i32) -> (i32, i32) {
    %c0_i32 = arith.constant 0 : i32
    %c0_i32_0 = arith.constant 0 : i32
    %c0_i32_1 = arith.constant 0 : i32
    return %c0_i32, %c0_i32_0 : i32, i32
  }
  func.func @transform_13(%arg0: i32) -> (i32, i32, i32, i32) {
    %c0_i32 = arith.constant 0 : i32
    %c0_i32_0 = arith.constant 0 : i32
    %c0_i32_1 = arith.constant 0 : i32
    %c0_i32_2 = arith.constant 0 : i32
    return %arg0, %c0_i32, %c0_i32_0, %c0_i32_1 : i32, i32, i32, i32
  }
}

</mosaic_0001>

<bundles_post_ra>
// kernel: cnn_forward.1
= control target key start
LH: loop header
LB: loop body
LE: loop exit
PB: predicated region body
PF: predicated region fallthrough
CT: control target
= control target key end

     0   :  { %s19478_s0 = inlined_call_operand.vmem [shape: bf16[4,8,16,4], index: 0, kind: input, shape index: {}]   ;;  %s19479_s1 = inlined_call_operand.hbm [shape: bf16[36,64], index: 1, kind: input, shape index: {}]   ;;  %s19480_s2 = inlined_call_operand.hbm [shape: f32[1,64], index: 2, kind: input, shape index: {}]   ;;  %s19481_s3 = inlined_call_operand.vmem [shape: bf16[576,64], index: 3, kind: input, shape index: {}]   ;;  %s19482_s4 = inlined_call_operand.hbm [shape: f32[1,64], index: 4, kind: input, shape index: {}]   ;;  %s19483_s5 = inlined_call_operand.hbm [shape: bf16[576,128], index: 5, kind: input, shape index: {}]   ;;  %s19484_s6 = inlined_call_operand.hbm [shape: f32[1,128], index: 6, kind: input, shape index: {}]   ;;  %s19485_s7 = inlined_call_operand.hbm [shape: bf16[1152,128], index: 7, kind: input, shape index: {}]   ;;  %s19486_s8 = inlined_call_operand.hbm [shape: f32[1,128], index: 8, kind: input, shape index: {}]   ;;  %s19487_s9 = inlined_call_operand.hbm [shape: bf16[1152,256], index: 9, kind: input, shape index: {}]   ;;  %s19488_s10 = inlined_call_operand.hbm [shape: f32[1,256], index: 10, kind: input, shape index: {}]   ;;  %s19489_s11 = inlined_call_operand.hbm [shape: bf16[2304,256], index: 11, kind: input, shape index: {}]   ;;  %s19490_s12 = inlined_call_operand.hbm [shape: f32[1,256], index: 12, kind: input, shape index: {}]   ;;  %s19491_s13 = inlined_call_operand.hbm [shape: f32[4,1,16,256], index: 13, kind: output, shape index: {}]  }
   0x1   :  { %19512 = sst [smem:[#allocation47_spill]] %s19480_s2 }
   0x2   :  { %19513 = sst [smem:[#allocation48_spill]] %s19483_s5 }
   0x3   :  { %19514 = sst [smem:[#allocation49_spill]] %s19491_s13 }
   0x4   :  { %18 = vsyncpa [#allocation9], 0 }
   0x5   :  { %19 = vsyncpa [#allocation12], 0 }
   0x6   :  { %20 = vsyncpa [#allocation15], 0 }
   0x7   :  { %21 = vsyncpa [#allocation18], 0 }
   0x8   :  { %22 = vsyncpa [#allocation21], 0 }
   0x9   :  { %23 = vsyncpa [#allocation24], 0 }
   0xa   :  { %24 = vsyncpa [#allocation10], 0 }
   0xb   :  { %26 = vsyncpa [#allocation10 + $0x1], 0  ;;  %s15837_s25 = smov 0   ;;  %s15839_s26 = smov 0  }
   0xc   :  { %s15841_s27 = smov 0   ;;  %s15843_s28 = smov 0  }
   0xd LB: > { %19515 = sst [smem:[#allocation34_spill]] %s15729_s25  ;;  %s15858_s29 = sadd.s32 4294967295, %s15741_s28   ;;  %s15741_s28 = sphi %s15843_s28, %s19587_s28   ;;  %s15737_s27 = sphi %s15841_s27, %s19589_s27   ;;  %s15733_s26 = sphi %s15839_s26, %s19591_s26   ;;  %s15729_s25 = sphi %s15837_s25, %s19590_s25  }
   0xe   : > { %19516 = sst [smem:[#allocation35_spill]] %s15737_s27  ;;  %s12851_s30 = sadd.s32 4294967294, %s15741_s28  }
   0xf   : > { %19517 = sst [smem:[#allocation36_spill]] %s15741_s28  ;;  %s15862_s14 = sadd.s32 1, %s15741_s28  }
  0x10   : > { %19518 = sst [smem:[#allocation37_spill]] %s15862_s14  ;;  %s317_s15 = sadd.s32 1, %s15737_s27 }
  0x11   : > { %s314_s16 = ssub.s32 %s15741_s28, %s15862_s14  ;;  %p327_p0 = scmp.ne.s32.totalorder %s15737_s27, %s15733_s26 }
  0x12   : > { %p315_p1 = scmp.eq.s32.totalorder %s314_s16, 0  ;;  %p328_p2 = scmp.eq.s32.totalorder %s15858_s29, 1 }
  0x13   : > { %p333_p3 = scmp.ne.s32.totalorder %s15733_s26, %s15729_s25  ;;  %p334_p4 = scmp.eq.s32.totalorder %s12851_s30, 1 }
  0x14   : > { %s15873_s17 = scalar_select %p315_p1, %s15737_s27, %s317_s15  }
  0x15   : > { %p15875_p5 = por %p328_p2, %p327_p0  ;;  %p15879_p6 = por %p334_p4, %p333_p3 }
  0x16   : > { %19519 = sst [smem:[#allocation38_spill]] %s15873_s17  ;;  %p12852_p7 = scmp.ge.s32.totalorder %s15741_s28, 1 }
  0x17   : > { %s19520_s18 = scalar_select %p15875_p5, 1, 0 }
  0x18   : > { %s19521_s19 = scalar_select %p15879_p6, 1, 0 }
  0x19   : > { %p341_p8 = scmp.lt.s32.totalorder %s15741_s28, 3  ;;  %p19497_p9 = scmp.eq.s32.totalorder %s15858_s29, 0 }
  0x1a   : > { %19522 = sst [smem:[#allocation39_spill]] %s19521_s19  ;;  %s15743_s21 = smov [#allocation11]  }
  0x1b   : > { %p15886_p10 = pnand %p12852_p7, %p341_p8  ;;  %s367_s22 = sshll.u32 %s15743_s21, 4  ;;  %s368_s22 = int_to_ptr.vmem [resolvable:$true] %s367_s22 }
  0x1c   : > { %s15744_s24 = smov [#allocation14]   ;;  %s15745_s15 = smov [#allocation17]  }
  0x1d   : > { %s19523_s20 = scalar_select %p15886_p10, 1, 0 }
  0x1e   : > { %p14329_p11 = pneg %p15886_p10  ;;  %s391_s30 = sshll.u32 %s15744_s24, 4  ;;  %s15898_s30 = int_to_ptr.vmem [resolvable:$true] %s391_s30 }
  0x1f   : > { %s15900_s16 = sshll.u32 %s15745_s15, 4  ;;  %s19525_s2 = sld [smem:[#allocation47_spill]]  ;;  %s416_s16 = int_to_ptr.vmem [resolvable:$true] %s15900_s16 }
  0x20   : > { %p15894_p12 = pnand %p19497_p9, %p14329_p11 }
  0x22   : > { %p15910_p0 = pneg %p15894_p12 }
  0x25   : > { %s15347_s21 = scalar_lea.hbm %s19525_s2, 16 }
  0x26   : > { %p15348_p13 = scmp.ne.s32.totalorder %s19525_s2, %s15347_s21  ;;  %p15354_p3 = scmp.lt.u32.totalorder %s15347_s21, %s19525_s2 }
  0x28   : > { %p15350_p1 = pnand %p15910_p0, %p15348_p13 }
  0x2a   : > { %p15351_p2 = pneg %p15350_p1 }
  0x2c   : > { %p15356_p4 = pnand %p15354_p3, %p15351_p2 }
  0x2e   : > { %15359 = shalt.err (!%p15356_p4)
}
  0x2f   : > { %s15360_s27 = scalar_lea.vmem %s368_s22, 16  ;;  %s15367_s14 = scalar_lea.vmem %s368_s22, 32 }
  0x30   : > { %p15361_p7 = scmp.ne.s32.totalorder %s368_s22, %s15360_s27  ;;  %p15368_p9 = scmp.lt.s32.totalorder %s368_s22, %s368_s22 }
  0x31   : > { %p15369_p6 = scmp.lt.s32.totalorder %s15367_s14, %s15360_s27 }
  0x32   : > { %p15363_p8 = pnand %p15361_p7, %p15910_p0 }
  0x33   : > { %p15370_p5 = por %p15369_p6, %p15368_p9 }
  0x34   : > { %p15364_p11 = pneg %p15363_p8 }
  0x36   : > { %p15371_p10 = pnand %p15370_p5, %p15364_p11 }
  0x38   : > { %15374 = shalt.err (!%p15371_p10)
}
  0x39   : > { %14335 = dma.hbm_to_vmem [thread:$0]  (!%p15894_p12), %s19525_s2, 16, %s368_s22, [#allocation12]  }
  0x3a   : > { %s19527_s5 = sld [smem:[#allocation48_spill]] }
  0x40   : > { %s15375_s15 = scalar_lea.hbm %s19527_s5, 4608 }
  0x41   : > { %p15376_p13 = scmp.ne.s32.totalorder %s19527_s5, %s15375_s15  ;;  %p15382_p5 = scmp.lt.u32.totalorder %s15375_s15, %s19527_s5 }
  0x43   : > { %p15378_p1 = pnand %p15376_p13, %p15910_p0 }
  0x45   : > { %p15379_p6 = pneg %p15378_p1 }
  0x47   : > { %p15384_p9 = pnand %p15382_p5, %p15379_p6 }
  0x49   : > { %15387 = shalt.err (!%p15384_p9)
}
  0x4a   : > { %s15388_s22 = scalar_lea.vmem %s15898_s30, 4608  ;;  %p15396_p4 = scmp.lt.s32.totalorder %s15898_s30, %s15898_s30 }
  0x4b   : > { %p15389_p10 = scmp.ne.s32.totalorder %s15898_s30, %s15388_s22  ;;  %p15397_p7 = scmp.lt.s32.totalorder %s15388_s22, %s15388_s22 }
  0x4d   : > { %p15391_p2 = pnand %p15389_p10, %p15910_p0  ;;  %p15398_p8 = por %p15397_p7, %p15396_p4 }
  0x4f   : > { %p15392_p3 = pneg %p15391_p2 }
  0x51   : > { %p15399_p11 = pnand %p15398_p8, %p15392_p3 }
  0x53   : > { %15402 = shalt.err (!%p15399_p11)
}
  0x54   : > { %s19502_s13 = smov 64   ;;  %s19503_s28 = smov 4  }
  0x55   : > { %14341 = dma.hbm_to_vmem [thread:$0]  (!%p15894_p12), %s19527_s5, 4608, %s15898_s30, [#allocation15], %s19502_s13, %s19502_s13, %s19503_s28  }
  0x56   : > { %s15403_s15 = scalar_lea.hbm %s19485_s7, 9216 }
  0x57   : > { %p15404_p13 = scmp.ne.s32.totalorder %s19485_s7, %s15403_s15  ;;  %p15410_p5 = scmp.lt.u32.totalorder %s15403_s15, %s19485_s7 }
  0x59   : > { %p15406_p1 = pnand %p15404_p13, %p15910_p0 }
  0x5b   : > { %p15407_p6 = pneg %p15406_p1 }
  0x5d   : > { %p15412_p9 = pnand %p15410_p5, %p15407_p6 }
  0x5f   : > { %15415 = shalt.err (!%p15412_p9)
}
  0x60   : > { %s15416_s17 = scalar_lea.vmem %s416_s16, 9216  ;;  %p15424_p4 = scmp.lt.s32.totalorder %s416_s16, %s416_s16 }
  0x61   : > { %p15417_p10 = scmp.ne.s32.totalorder %s416_s16, %s15416_s17  ;;  %p15425_p7 = scmp.lt.s32.totalorder %s15416_s17, %s15416_s17 }
  0x63   : > { %p15419_p2 = pnand %p15417_p10, %p15910_p0  ;;  %p15426_p8 = por %p15425_p7, %p15424_p4 }
  0x65   : > { %p15420_p3 = pneg %p15419_p2 }
  0x67   : > { %p15427_p11 = pnand %p15426_p8, %p15420_p3 }
  0x69   : > { %15430 = shalt.err (!%p15427_p11)
}
  0x6a   : > { %14347 = dma.hbm_to_vmem [thread:$0]  (!%p15894_p12), %s19485_s7, 9216, %s416_s16, [#allocation18], %s19502_s13, %s19502_s13, %s19503_s28  }
  0x6b   : > { %s15748_s19 = smov [#allocation20]   ;;  %s15431_s27 = scalar_lea.hbm %s19487_s9, 18432 }
  0x6c   : > { %s439_s21 = sshll.u32 %s15748_s19, 4  ;;  %p15432_p13 = scmp.ne.s32.totalorder %s19487_s9, %s15431_s27  ;;  %s440_s21 = int_to_ptr.vmem [resolvable:$true] %s439_s21 }
  0x6d   : > { %p15438_p5 = scmp.lt.u32.totalorder %s15431_s27, %s19487_s9 }
  0x6e   : > { %p15434_p1 = pnand %p15432_p13, %p15910_p0 }
  0x70   : > { %p15435_p6 = pneg %p15434_p1 }
  0x72   : > { %p15440_p9 = pnand %p15438_p5, %p15435_p6 }
  0x74   : > { %15443 = shalt.err (!%p15440_p9)
}
  0x75   : > { %s15444_s16 = scalar_lea.vmem %s440_s21, 18432  ;;  %p15452_p4 = scmp.lt.s32.totalorder %s440_s21, %s440_s21 }
  0x76   : > { %p15445_p10 = scmp.ne.s32.totalorder %s440_s21, %s15444_s16  ;;  %p15453_p7 = scmp.lt.s32.totalorder %s15444_s16, %s15444_s16 }
  0x78   : > { %p15447_p2 = pnand %p15445_p10, %p15910_p0  ;;  %p15454_p8 = por %p15453_p7, %p15452_p4 }
  0x7a   : > { %p15448_p3 = pneg %p15447_p2 }
  0x7c   : > { %p15455_p11 = pnand %p15454_p8, %p15448_p3 }
  0x7e   : > { %15458 = shalt.err (!%p15455_p11)
}
  0x7f   : > { %s15749_s2 = smov 128   ;;  %s15750_s30 = smov 8  }
  0x80   : > { %14353 = dma.hbm_to_vmem [thread:$0]  (!%p15894_p12), %s19487_s9, 18432, %s440_s21, [#allocation21], %s15749_s2, %s15749_s2, %s15750_s30  }
  0x81   : > { %s15751_s24 = smov [#allocation23]   ;;  %s15752_s27 = smov [#allocation8]  }
  0x82   : > { %s463_s15 = sshll.u32 %s15751_s24, 4  ;;  %s353_s14 = sshll.u32 %s15752_s27, 4  ;;  %s464_s15 = int_to_ptr.vmem [resolvable:$true] %s463_s15  ;;  %s15992_s14 = int_to_ptr.vmem [resolvable:$true] %s353_s14 }
  0x83   : > { %s15459_s16 = scalar_lea.hbm %s19489_s11, 36864 }
  0x84   : > { %p15460_p13 = scmp.ne.s32.totalorder %s19489_s11, %s15459_s16  ;;  %p15466_p5 = scmp.lt.u32.totalorder %s15459_s16, %s19489_s11 }
  0x86   : > { %p15462_p1 = pnand %p15460_p13, %p15910_p0 }
  0x88   : > { %p15463_p6 = pneg %p15462_p1 }
  0x8a   : > { %p15468_p9 = pnand %p15466_p5, %p15463_p6 }
  0x8c   : > { %15471 = shalt.err (!%p15468_p9)
}
  0x8d   : > { %s15472_s19 = scalar_lea.vmem %s464_s15, 36864  ;;  %p15480_p4 = scmp.lt.s32.totalorder %s464_s15, %s464_s15 }
  0x8e   : > { %p15473_p10 = scmp.ne.s32.totalorder %s464_s15, %s15472_s19  ;;  %p15481_p7 = scmp.lt.s32.totalorder %s15472_s19, %s15472_s19 }
  0x90   : > { %p15475_p2 = pnand %p15473_p10, %p15910_p0  ;;  %p15482_p8 = por %p15481_p7, %p15480_p4 }
  0x92   : > { %p15476_p3 = pneg %p15475_p2 }
  0x94   : > { %p15483_p11 = pnand %p15482_p8, %p15476_p3 }
  0x96   : > { %15486 = shalt.err (!%p15483_p11)
}
  0x97   : > { %14359 = dma.hbm_to_vmem [thread:$0]  (!%p15894_p12), %s19489_s11, 36864, %s464_s15, [#allocation24], %s15749_s2, %s15749_s2, %s15750_s30  }
  0x98   : > { %s15487_s22 = scalar_lea.hbm %s19479_s1, 320 }
  0x99   : > { %p15488_p13 = scmp.ne.s32.totalorder %s19479_s1, %s15487_s22  ;;  %p15494_p5 = scmp.lt.u32.totalorder %s15487_s22, %s19479_s1 }
  0x9b   : > { %p15490_p1 = pnand %p15488_p13, %p15910_p0 }
  0x9d   : > { %p15491_p6 = pneg %p15490_p1 }
  0x9f   : > { %p15496_p9 = pnand %p15494_p5, %p15491_p6 }
  0xa1   : > { %15499 = shalt.err (!%p15496_p9)
}
  0xa2   : > { %s15500_s2 = scalar_lea.vmem %s15992_s14, 320  ;;  %p15508_p4 = scmp.lt.s32.totalorder %s15992_s14, %s15992_s14 }
  0xa3   : > { %p15501_p10 = scmp.ne.s32.totalorder %s15992_s14, %s15500_s2  ;;  %p15509_p7 = scmp.lt.s32.totalorder %s15500_s2, %s15500_s2 }
  0xa5   : > { %p15503_p2 = pnand %p15501_p10, %p15910_p0  ;;  %p15510_p8 = por %p15509_p7, %p15508_p4 }
  0xa7   : > { %p15504_p3 = pneg %p15503_p2 }
  0xa9   : > { %p15511_p11 = pnand %p15510_p8, %p15504_p3 }
  0xab   : > { %15514 = shalt.err (!%p15511_p11)
}
  0xac   : > { %s19528_s30 = smov 4   ;;  %s19529_s15 = smov 64  }
  0xad   : > { %14332 = dma.hbm_to_vmem [thread:$0]  (!%p15894_p12), %s19479_s1, 320, %s15992_s14, [#allocation9], %s19529_s15, %s19529_s15, %s19528_s30  }
  0xae   : > { %s15753_s28 = smov [#allocation13]   ;;  %s15754_s27 = smov [#allocation16]  }
  0xaf   : > { %s381_s24 = sshll.u32 %s15753_s28, 4  ;;  %s405_s22 = sshll.u32 %s15754_s27, 4  ;;  %s382_s24 = int_to_ptr.vmem [resolvable:$true] %s381_s24  ;;  %s16038_s22 = int_to_ptr.vmem [resolvable:$true] %s405_s22 }
  0xb0   : > { %s15515_s5 = scalar_lea.hbm %s19482_s4, 16 }
  0xb1   : > { %p15516_p13 = scmp.ne.s32.totalorder %s19482_s4, %s15515_s5  ;;  %p15522_p5 = scmp.lt.u32.totalorder %s15515_s5, %s19482_s4 }
  0xb3   : > { %p15518_p1 = pnand %p15516_p13, %p15910_p0 }
  0xb5   : > { %p15519_p6 = pneg %p15518_p1 }
  0xb7   : > { %p15524_p9 = pnand %p15522_p5, %p15519_p6 }
  0xb9   : > { %15527 = shalt.err (!%p15524_p9)
}
  0xba   : > { %s15528_s30 = scalar_lea.vmem %s382_s24, 16  ;;  %s15535_s15 = scalar_lea.vmem %s382_s24, 32 }
  0xbb   : > { %p15529_p10 = scmp.ne.s32.totalorder %s382_s24, %s15528_s30  ;;  %p15536_p4 = scmp.lt.s32.totalorder %s382_s24, %s382_s24 }
  0xbc   : > { %p15537_p7 = scmp.lt.s32.totalorder %s15535_s15, %s15528_s30 }
  0xbd   : > { %p15531_p2 = pnand %p15529_p10, %p15910_p0 }
  0xbe   : > { %p15538_p8 = por %p15537_p7, %p15536_p4 }
  0xbf   : > { %p15532_p3 = pneg %p15531_p2 }
  0xc1   : > { %p15539_p11 = pnand %p15538_p8, %p15532_p3 }
  0xc3   : > { %15542 = shalt.err (!%p15539_p11)
}
  0xc4   : > { %14338 = dma.hbm_to_vmem [thread:$0]  (!%p15894_p12), %s19482_s4, 16, %s382_s24, [#allocation12]  }
  0xc5   : > { %s15543_s16 = scalar_lea.hbm %s19484_s6, 16 }
  0xc6   : > { %p15544_p13 = scmp.ne.s32.totalorder %s19484_s6, %s15543_s16  ;;  %p15550_p5 = scmp.lt.u32.totalorder %s15543_s16, %s19484_s6 }
  0xc8   : > { %p15546_p1 = pnand %p15544_p13, %p15910_p0 }
  0xca   : > { %p15547_p6 = pneg %p15546_p1 }
  0xcc   : > { %p15552_p9 = pnand %p15550_p5, %p15547_p6 }
  0xce   : > { %15555 = shalt.err (!%p15552_p9)
}
  0xcf   : > { %s15556_s24 = scalar_lea.vmem %s16038_s22, 16  ;;  %s15563_s14 = scalar_lea.vmem %s16038_s22, 32 }
  0xd0   : > { %p15557_p10 = scmp.ne.s32.totalorder %s16038_s22, %s15556_s24  ;;  %p15564_p4 = scmp.lt.s32.totalorder %s16038_s22, %s16038_s22 }
  0xd1   : > { %p15565_p7 = scmp.lt.s32.totalorder %s15563_s14, %s15556_s24 }
  0xd2   : > { %p15559_p2 = pnand %p15557_p10, %p15910_p0 }
  0xd3   : > { %p15566_p8 = por %p15565_p7, %p15564_p4 }
  0xd4   : > { %p15560_p3 = pneg %p15559_p2 }
  0xd6   : > { %p15567_p11 = pnand %p15566_p8, %p15560_p3 }
  0xd8   : > { %15570 = shalt.err (!%p15567_p11)
}
  0xd9   : > { %14344 = dma.hbm_to_vmem [thread:$0]  (!%p15894_p12), %s19484_s6, 16, %s16038_s22, [#allocation15]  }
  0xda   : > { %s15755_s13 = smov [#allocation19]   ;;  %s15756_s27 = smov [#allocation22]  }
  0xdb   : > { %s429_s28 = sshll.u32 %s15755_s13, 4  ;;  %s453_s17 = sshll.u32 %s15756_s27, 4  ;;  %s430_s28 = int_to_ptr.vmem [resolvable:$true] %s429_s28  ;;  %s16082_s17 = int_to_ptr.vmem [resolvable:$true] %s453_s17 }
  0xdc   : > { %s15571_s21 = scalar_lea.hbm %s19486_s8, 16 }
  0xdd   : > { %p15572_p13 = scmp.ne.s32.totalorder %s19486_s8, %s15571_s21  ;;  %p15578_p5 = scmp.lt.u32.totalorder %s15571_s21, %s19486_s8 }
  0xdf   : > { %p15574_p1 = pnand %p15572_p13, %p15910_p0 }
  0xe1   : > { %p15575_p6 = pneg %p15574_p1 }
  0xe3   : > { %p15580_p9 = pnand %p15578_p5, %p15575_p6 }
  0xe5   : > { %15583 = shalt.err (!%p15580_p9)
}
  0xe6   : > { %s15584_s14 = scalar_lea.vmem %s430_s28, 16  ;;  %s15591_s30 = scalar_lea.vmem %s430_s28, 32 }
  0xe7   : > { %p15585_p10 = scmp.ne.s32.totalorder %s430_s28, %s15584_s14  ;;  %p15592_p4 = scmp.lt.s32.totalorder %s430_s28, %s430_s28 }
  0xe8   : > { %p15593_p7 = scmp.lt.s32.totalorder %s15591_s30, %s15584_s14 }
  0xe9   : > { %p15587_p2 = pnand %p15585_p10, %p15910_p0 }
  0xea   : > { %p15594_p8 = por %p15593_p7, %p15592_p4 }
  0xeb   : > { %p15588_p3 = pneg %p15587_p2 }
  0xed   : > { %p15595_p11 = pnand %p15594_p8, %p15588_p3 }
  0xef   : > { %15598 = shalt.err (!%p15595_p11)
}
  0xf0   : > { %14350 = dma.hbm_to_vmem [thread:$0]  (!%p15894_p12), %s19486_s8, 16, %s430_s28, [#allocation18]  }
  0xf1   : > { %s15599_s5 = scalar_lea.hbm %s19488_s10, 32 }
  0xf2   : > { %p15600_p13 = scmp.ne.s32.totalorder %s19488_s10, %s15599_s5  ;;  %p15606_p5 = scmp.lt.u32.totalorder %s15599_s5, %s19488_s10 }
  0xf4   : > { %p15602_p1 = pnand %p15600_p13, %p15910_p0 }
  0xf6   : > { %p15603_p6 = pneg %p15602_p1 }
  0xf8   : > { %p15608_p9 = pnand %p15606_p5, %p15603_p6 }
  0xfa   : > { %15611 = shalt.err (!%p15608_p9)
}
  0xfb   : > { %s15612_s28 = scalar_lea.vmem %s16082_s17, 32  ;;  %p15620_p4 = scmp.lt.s32.totalorder %s16082_s17, %s16082_s17 }
  0xfc   : > { %p15613_p10 = scmp.ne.s32.totalorder %s16082_s17, %s15612_s28  ;;  %p15621_p7 = scmp.lt.s32.totalorder %s15612_s28, %s15612_s28 }
  0xfe   : > { %p15615_p2 = pnand %p15613_p10, %p15910_p0  ;;  %p15622_p8 = por %p15621_p7, %p15620_p4 }
 0x100   : > { %p15616_p3 = pneg %p15615_p2 }
 0x102   : > { %p15623_p11 = pnand %p15622_p8, %p15616_p3 }
 0x104   : > { %15626 = shalt.err (!%p15623_p11)
}
 0x105   : > { %14356 = dma.hbm_to_vmem [thread:$0]  (!%p15894_p12), %s19488_s10, 32, %s16082_s17, [#allocation21]  }
 0x106   : > { %s15757_s30 = smov [#allocation25]   ;;  %s15627_s16 = scalar_lea.hbm %s19490_s12, 32 }
 0x107   : > { %s477_s15 = sshll.u32 %s15757_s30, 4  ;;  %p15628_p13 = scmp.ne.s32.totalorder %s19490_s12, %s15627_s16  ;;  %s478_s15 = int_to_ptr.vmem [resolvable:$true] %s477_s15 }
 0x108   : > { %p15634_p5 = scmp.lt.u32.totalorder %s15627_s16, %s19490_s12 }
 0x109   : > { %p15630_p1 = pnand %p15628_p13, %p15910_p0 }
 0x10b   : > { %p15631_p6 = pneg %p15630_p1 }
 0x10d   : > { %p15636_p9 = pnand %p15634_p5, %p15631_p6 }
 0x10f   : > { %15639 = shalt.err (!%p15636_p9)
}
 0x110   : > { %s15640_s17 = scalar_lea.vmem %s478_s15, 32  ;;  %p15648_p4 = scmp.lt.s32.totalorder %s478_s15, %s478_s15 }
 0x111   : > { %p15641_p10 = scmp.ne.s32.totalorder %s478_s15, %s15640_s17  ;;  %p15649_p7 = scmp.lt.s32.totalorder %s15640_s17, %s15640_s17 }
 0x113   : > { %p15643_p2 = pnand %p15641_p10, %p15910_p0  ;;  %p15650_p8 = por %p15649_p7, %p15648_p4 }
 0x115   : > { %p15644_p3 = pneg %p15643_p2 }
 0x117   : > { %p15651_p11 = pnand %p15650_p8, %p15644_p3 }
 0x119   : > { %15654 = shalt.err (!%p15651_p11)
}
 0x11a   : > { %14362 = dma.hbm_to_vmem [thread:$0]  (!%p15894_p12), %s19490_s12, 32, %s478_s15, [#allocation24]  }
 0x11b   : > { %p19530_p13 = scmp.ne.s32.totalorder %s19523_s20, 0 }
 0x11d   : > { %500 = sbr.rel (%p19530_p13) target bundleno = 3635 (0xe33), region = 72 }
 0x124   : > { %p19531_p1 = scmp.eq.s32.totalorder %s15858_s29, 0 }
 0x126   : > { %15700 = dma.done.wait (%p19531_p1), [#allocation9], 320   ;;  %p19532_p0 = pmov %p19531_p1 }
 0x128   : > { %15702 = vsyncadd (%p19532_p0), [#allocation9], 4294966976  ;;  %p19533_p6 = pmov %p19532_p0 }
 0x129   : > { %p19534_p5 = pmov %p19532_p0 }
 0x12a   : > { %15704 = dma.done.wait (%p19533_p6), [#allocation12], 32  }
 0x12b   : > { %15706 = vsyncadd (%p19534_p5), [#allocation12], 4294967264  ;;  %p19535_p9 = pmov %p19532_p0 }
 0x12c   : > { %p19536_p12 = pmov %p19532_p0 }
 0x12d   : > { %15708 = dma.done.wait (%p19535_p9), [#allocation15], 4624  }
 0x12e   : > { %15710 = vsyncadd (%p19536_p12), [#allocation15], 4294962672  ;;  %p19537_p10 = pmov %p19532_p0 }
 0x12f   : > { %p19538_p2 = pmov %p19532_p0 }
 0x130   : > { %15712 = dma.done.wait (%p19537_p10), [#allocation18], 9232  }
 0x131   : > { %15714 = vsyncadd (%p19538_p2), [#allocation18], 4294958064  ;;  %p19539_p3 = pmov %p19532_p0 }
 0x132   : > { %p19540_p4 = pmov %p19532_p0 }
 0x133   : > { %15716 = dma.done.wait (%p19539_p3), [#allocation21], 18464  }
 0x134   : > { %15718 = vsyncadd (%p19540_p4), [#allocation21], 4294948832  ;;  %p19541_p7 = pmov %p19532_p0 }
 0x135   : > { %p19542_p8 = pmov %p19532_p0 }
 0x136   : > { %15720 = dma.done.wait (%p19541_p7), [#allocation24], 36896  }
 0x137   : > { %15722 = vsyncadd (%p19542_p8), [#allocation24], 4294930400  ;;  %s12878_s25 = sshll.u32 %s15858_s29, 1  ;;  %vm626_vm0 = vcmask 31744   ;;  %v15758_v0 = vmov 0   ;;  %vm692_vm1 = vcmask 24576  }
 0x138   : > { %p16172_p11 = scmp.lt.s32.totalorder %s12878_s25, 3  ;;  %635 = vst.msk [vmem:[#allocation2 + $0xe0] sm:$0xff] %vm626_vm0, %v15758_v0  ;;  %627 = vst.msk [vmem:[#allocation2] sm:$0xff] %vm626_vm0, %v15758_v0  ;;  %13970 = vmatprep.subr.bf16.mxu1 %v15758_v0  ;;  %vm693_vm2 = vsmask.f32 256  ;;  %s15759_s15 = smov 8  }
 0x139   : > { %628 = vst.msk [vmem:[#allocation2 + $0x8] sm:$0xff] %vm626_vm0, %v15758_v0  ;;  %629 = vst.msk [vmem:[#allocation2 + $0x10] sm:$0xff] %vm626_vm0, %v15758_v0  ;;  %v695_v5 = vld [vmem:[#allocation2 + $0x28] sm:$0x1]  ;;  %v698_v8 = vld [vmem:[#allocation2 + $0x40] sm:$0x1] }
 0x13a   : > { %630 = vst.msk [vmem:[#allocation2 + $0xf0] sm:$0xff] %vm626_vm0, %v15758_v0  ;;  %631 = vst.msk [vmem:[#allocation2 + $0xf8] sm:$0xff] %vm626_vm0, %v15758_v0  ;;  %s19593_s25 = smov (!%p16172_p11, %s12878_s25), 3  ;;  %v701_v9 = vld [vmem:[#allocation2 + $0x58] sm:$0x1]  ;;  %vm1175_vm4 = vcmask 1046528  }
 0x13b   : > { %632 = vst.msk [vmem:[#allocation2 + $0x100] sm:$0xff] %vm626_vm0, %v15758_v0  ;;  %634 = vst.msk [vmem:[#allocation2 + $0xd8] sm:$0xff] %vm626_vm0, %v15758_v0  ;;  %s13574_s23 = sshll.u32 %s19593_s25, 6  ;;  %v704_v12 = vld [vmem:[#allocation2 + $0x70] sm:$0x1]  ;;  %s15760_s13 = smov 4  }
 0x13c   : > { %636 = vst.msk [vmem:[#allocation2 + $0xe8] sm:$0xff] %vm626_vm0, %v15758_v0  ;;  %637 = vst.msk [vmem:[#allocation2 + $0x1c8] sm:$0xff] %vm626_vm0, %v15758_v0  ;;  %s16195_s30 = scalar_lea.vmem %s19478_s0, %s13574_s23  ;;  %v707_v16 = vld [vmem:[#allocation2 + $0x88] sm:$0x1]  ;;  %v713_v20 = vld [vmem:[#allocation2 + $0xb8] sm:$0x1] }
 0x13d   : > { %638 = vst.msk [vmem:[#allocation2 + $0x1d0] sm:$0xff] %vm626_vm0, %v15758_v0  ;;  %639 = vst.msk [vmem:[#allocation2 + $0x1d8] sm:$0xff] %vm626_vm0, %v15758_v0  ;;  %v14495_v2 = vld [vmem:[%s16195_s30 + $0x8] sm:$0xff]   ;;  %v14496_v3 = vld [vmem:[%s16195_s30] sm:$0xff]   ;;  %vm641_vm5 = vcmask 31751   ;;  %vm1416_vm8 = vcmask 64512  }
 0x13e   : > { %5613 = vst [vmem:[#allocation5] sm:$0xff] %v15758_v0  ;;  %5615 = vst [vmem:[#allocation5 + $0x10] sm:$0xff] %v15758_v0  ;;  %v14497_v4 = vld [vmem:[%s16195_s30 + $0x10] sm:$0xff]   ;;  %v14498_v7 = vld [vmem:[%s16195_s30 + $0x18] sm:$0xff]   ;;  %vm642_vm6 = vsmask.f32 7966 }
 0x13f   : > { %5616 = vst [vmem:[#allocation5 + $0x90] sm:$0xff] %v15758_v0  ;;  %5618 = vst [vmem:[#allocation5 + $0xa0] sm:$0xff] %v15758_v0  ;;  %v14499_v14 = vld [vmem:[%s16195_s30 + $0x20] sm:$0xff]   ;;  %v14500_v15 = vld [vmem:[%s16195_s30 + $0x28] sm:$0xff]   ;;  %s15761_s27 = smov 24   ;;  %s15762_s16 = smov 12  }
 0x140   : > { %5620 = vst [vmem:[#allocation5 + $0x78] sm:$0xff] %v15758_v0  ;;  %5622 = vst [vmem:[#allocation5 + $0x88] sm:$0xff] %v15758_v0  ;;  %v14501_v18 = vld [vmem:[%s16195_s30 + $0x30] sm:$0xff]   ;;  %v710_v21 = vld [vmem:[#allocation2 + $0xa0] sm:$0x1]  ;;  %vm2027_vm9 = vcmask 1041408  }
 0x141   : > { %5623 = vst [vmem:[#allocation5 + $0x108] sm:$0xff] %v15758_v0  ;;  %5625 = vst [vmem:[#allocation5 + $0x118] sm:$0xff] %v15758_v0  ;;  %v14502_v25 = vld [vmem:[%s16195_s30 + $0x38] sm:$0xff]   ;;  %v14503_v56 = vld [vmem:[%s16195_s30 + $0x40] sm:$0xff]   ;;  %vm1661_vm10 = vcmask 97280   ;;  %vm1726_vm11 = vcmask 195584  }
 0x142   : > { %7512 = vst [vmem:[#allocation6] sm:$0xff] %v15758_v0  ;;  %7514 = vst [vmem:[#allocation6 + $0x10] sm:$0xff] %v15758_v0  ;;  %v14504_v57 = vld [vmem:[%s16195_s30 + $0x48] sm:$0xff]   ;;  %v716_v58 = vld [vmem:[#allocation2 + $0xd0] sm:$0x1]  ;;  %vm1978_vm12 = vcmask 293888  }
 0x143   : > { %7515 = vst [vmem:[#allocation6 + $0x60] sm:$0xff] %v15758_v0  ;;  %7517 = vst [vmem:[#allocation6 + $0x70] sm:$0xff] %v15758_v0  ;;  %v14505_v59 = vld [vmem:[%s16195_s30 + $0x50] sm:$0xff]   ;;  %vm2240_vm13 = vcmask 523264   ;;  %vm2305_vm14 = vcmask 516096   ;;  %s15763_s25 = smov 64  }
 0x144   : > { %7519 = vst [vmem:[#allocation6 + $0x48] sm:$0xff] %v15758_v0  ;;  %7521 = vst [vmem:[#allocation6 + $0x58] sm:$0xff] %v15758_v0  ;;  %s13576_s2 = sshll.u32 %s15858_s29, 10  ;;  %s19581_s24 = sld [smem:[#allocation49_spill]] }
 0x145   : > { %7522 = vst [vmem:[#allocation6 + $0xa8] sm:$0xff] %v15758_v0  ;;  %7524 = vst [vmem:[#allocation6 + $0xb8] sm:$0xff] %v15758_v0  ;;  %p19582_p1 = scmp.ne.s32.totalorder %s19520_s18, 0  ;;  %s15764_s23 = smov [#allocation26]  }
 0x146   : > { %9324 = vst [vmem:[#allocation7] sm:$0xff] %v15758_v0  ;;  %9325 = vst [vmem:[#allocation7 + $0x8] sm:$0xff] %v15758_v0  ;;  %s15659_s22 = sshll.u32 %s15764_s23, 4  ;;  %s15660_s22 = int_to_ptr.vmem [resolvable:$false] %s15659_s22 }
 0x147   : > { %9328 = vst [vmem:[#allocation7 + $0x20] sm:$0xff] %v15758_v0  ;;  %9329 = vst [vmem:[#allocation7 + $0x28] sm:$0xff] %v15758_v0  ;;  %s15661_s14 = scalar_lea.vmem %s15660_s22, 2048 }
 0x148   : > { %9330 = vst [vmem:[#allocation7 + $0xc0] sm:$0xff] %v15758_v0  ;;  %9331 = vst [vmem:[#allocation7 + $0xc8] sm:$0xff] %v15758_v0 }
 0x149   : > { %9334 = vst [vmem:[#allocation7 + $0xe0] sm:$0xff] %v15758_v0  ;;  %9335 = vst [vmem:[#allocation7 + $0xe8] sm:$0xff] %v15758_v0 }
 0x14a   : > { %9337 = vst [vmem:[#allocation7 + $0x90] sm:$0xff] %v15758_v0  ;;  %9338 = vst [vmem:[#allocation7 + $0x98] sm:$0xff] %v15758_v0  ;;  %s19431_s28 = scalar_lea.hbm %s19581_s24, %s13576_s2 }
 0x14b   : > { %9341 = vst [vmem:[#allocation7 + $0xb0] sm:$0xff] %v15758_v0  ;;  %9342 = vst [vmem:[#allocation7 + $0xb8] sm:$0xff] %v15758_v0 }
 0x14c   : > { %9343 = vst [vmem:[#allocation7 + $0x150] sm:$0xff] %v15758_v0  ;;  %9344 = vst [vmem:[#allocation7 + $0x158] sm:$0xff] %v15758_v0 }
 0x14d   : > { %9347 = vst [vmem:[#allocation7 + $0x170] sm:$0xff] %v15758_v0  ;;  %9348 = vst [vmem:[#allocation7 + $0x178] sm:$0xff] %v15758_v0 }
 0x14e   : > { %vm16198_vm3 = vmand %vm692_vm1, %vm693_vm2  ;;  %840 = vst.msk [vmem:[#allocation2 + $0x38] sm:$0xff] %vm626_vm0, %v14495_v2 }
 0x14f   : > { %839 = vst.msk [vmem:[#allocation2 + $0x20] sm:$0xff] %vm626_vm0, %v14496_v3  ;;  %841 = vst.msk [vmem:[#allocation2 + $0x50] sm:$0xff] %vm626_vm0, %v14497_v4  ;;  %v696_v6 = vsel %vm16198_vm3, 0, %v695_v5  ;;  %v699_v10 = vsel %vm16198_vm3, 0, %v698_v8  ;;  %v702_v11 = vsel %vm16198_vm3, 0, %v701_v9  ;;  %v705_v13 = vsel %vm16198_vm3, 0, %v704_v12 }
 0x150   : > { %697 = vst [vmem:[#allocation2 + $0x28] sm:$0x1] %v696_v6  ;;  %842 = vst.msk [vmem:[#allocation2 + $0x68] sm:$0xff] %vm626_vm0, %v14498_v7  ;;  %v708_v17 = vsel %vm16198_vm3, 0, %v707_v16  ;;  %v714_v24 = vsel %vm16198_vm3, 0, %v713_v20  ;;  %v711_v28 = vsel %vm16198_vm3, 0, %v710_v21 }
 0x151   : > { %700 = vst [vmem:[#allocation2 + $0x40] sm:$0x1] %v699_v10  ;;  %703 = vst [vmem:[#allocation2 + $0x58] sm:$0x1] %v702_v11  ;;  %v717_v2 = vsel %vm16198_vm3, 0, %v716_v58  ;;  %v14506_v10 = vld [vmem:[%s16195_s30 + $0x58] sm:$0xff]  }
 0x152   : > { %706 = vst [vmem:[#allocation2 + $0x70] sm:$0x1] %v705_v13  ;;  %843 = vst.msk [vmem:[#allocation2 + $0x80] sm:$0xff] %vm626_vm0, %v14499_v14  ;;  %v719_v3 = vld [vmem:[#allocation2 + $0x118] sm:$0x1]  ;;  %v14507_v12 = vld [vmem:[%s16195_s30 + $0x60] sm:$0xff]  }
 0x153   : > { %844 = vst.msk [vmem:[#allocation2 + $0x98] sm:$0xff] %vm626_vm0, %v14500_v15  ;;  %709 = vst [vmem:[#allocation2 + $0x88] sm:$0x1] %v708_v17  ;;  %v722_v4 = vld [vmem:[#allocation2 + $0x130] sm:$0x1]  ;;  %v720_v14 = vsel %vm16198_vm3, 0, %v719_v3 }
 0x154   : > { %845 = vst.msk [vmem:[#allocation2 + $0xb0] sm:$0xff] %vm626_vm0, %v14501_v18  ;;  %715 = vst [vmem:[#allocation2 + $0xb8] sm:$0x1] %v714_v24  ;;  %v725_v11 = vld [vmem:[#allocation2 + $0x148] sm:$0x1]  ;;  %v723_v15 = vsel %vm16198_vm3, 0, %v722_v4 }
 0x155   : > { %v16224_v19 = vld [vmem:[#allocation2 + $0x38] sm:$0xff]  ;;  %712 = vst [vmem:[#allocation2 + $0xa0] sm:$0x1] %v711_v28  ;;  %846 = vst.msk [vmem:[#allocation2 + $0xc8] sm:$0xff] %vm626_vm0, %v14502_v25  ;;  %v726_v16 = vsel %vm16198_vm3, 0, %v725_v11  ;;  %v14508_v17 = vld [vmem:[%s16195_s30 + $0x68] sm:$0xff]  }
 0x156   : > { %v1182_v22 = vrot.slane %v16224_v19, 1  ;;  %v858_v23 = vld [vmem:[#allocation2 + $0x20] sm:$0xff]  ;;  %v16232_v27 = vld [vmem:[#allocation2 + $0x50] sm:$0xff]  ;;  %v930_v42 = vshll.u32 %v16224_v19, 16  ;;  %v933_v50 = vshrl.u32 %v16224_v19, 16  ;;  %847 = vst.msk [vmem:[#allocation2 + $0x110] sm:$0xff] %vm626_vm0, %v14503_v56  ;;  %vm16306_vm7 = vmand %vm641_vm5, %vm642_vm6 }
 0x157   : > { %v1179_v26 = vrot.slane %v858_v23, 1  ;;  %v896_v29 = vld [vmem:[#allocation2 + $0x28] sm:$0x1]  ;;  %v937_v30 = vshll.u32 %v16232_v27, 16  ;;  %v1185_v31 = vrot.slane %v16232_v27, 1  ;;  %v923_v35 = vshll.u32 %v858_v23, 16  ;;  %vm16931_vm15 = vmand %vm2305_vm14, %vm693_vm2 }
 0x158   : > { %1244 = vrot.lane.b32.xlu1 %v1182_v22, %s15759_s15  ;;  %v1180_v32 = vrot.slane %v896_v29, 1  ;;  %v16241_v33 = vld [vmem:[#allocation2 + $0x68] sm:$0xff]  ;;  %v897_v34 = vld [vmem:[#allocation2 + $0x40] sm:$0x1]  ;;  %v898_v39 = vld [vmem:[#allocation2 + $0x58] sm:$0x1] }
 0x159   : > { %1240 = vrot.lane.b32.xlu0 %v1179_v26, %s15759_s15  ;;  %v939_v36 = vrot.slane %v937_v30, 1  ;;  %v944_v37 = vshll.u32 %v16241_v33, 16  ;;  %v1183_v38 = vrot.slane %v897_v34, 1  ;;  %v1186_v44 = vrot.slane %v898_v39, 1  ;;  %v899_v48 = vld [vmem:[#allocation2 + $0x70] sm:$0x1] }
 0x15a   : > { %v1181_v40 = vsel %vm1175_vm4, %v1179_v26, %v1180_v32  ;;  %v925_v45 = vrot.slane %v923_v35, 1  ;;  %v926_v46 = vshrl.u32 %v858_v23, 16  ;;  %v932_v49 = vrot.slane %v930_v42, 1  ;;  %v16257_v55 = vld [vmem:[#allocation2 + $0x80] sm:$0xff]  ;;  %848 = vst.msk [vmem:[#allocation2 + $0x128] sm:$0xff] %vm626_vm0, %v14504_v57  ;;  %v16271_v0 = vld [vmem:[#allocation2 + $0x98] sm:$0xff] }
 0x15b   : > { %v16246_v41 = vrot.slane %v944_v37, 1  ;;  %v1184_v43 = vsel %vm1175_vm4, %v1182_v22, %v1183_v38  ;;  %v1187_v51 = vsel %vm1175_vm4, %v1185_v31, %v1186_v44  ;;  %v1188_v53 = vrot.slane %v16241_v33, 1  ;;  %849 = vst.msk [vmem:[#allocation2 + $0x140] sm:$0xff] %vm626_vm0, %v14505_v59  ;;  %718 = vst [vmem:[#allocation2 + $0xd0] sm:$0x1] %v717_v2  ;;  %v16297_v23 = vld [vmem:[#allocation2 + $0xb0] sm:$0xff] }
 0x15c   : > { %1242 = vrot.lane.b32.xlu1 %v1181_v40, %s15759_s15  ;;  %v928_v52 = vor.u32 %v926_v46, %v925_v45  ;;  %v1189_v54 = vrot.slane %v899_v48, 1  ;;  %v951_v60 = vshll.u32 %v16257_v55, 16  ;;  %v935_v62 = vor.u32 %v933_v50, %v932_v49  ;;  %721 = vst [vmem:[#allocation2 + $0x118] sm:$0x1] %v720_v14  ;;  %724 = vst [vmem:[#allocation2 + $0x130] sm:$0x1] %v723_v15 }
 0x15d   : > { %1248 = vrot.lane.b32.xlu0 %v1185_v31, %s15759_s15  ;;  %v14450_v47 = vpack.i.bf16 %v16246_v41, %v939_v36  ;;  %v940_v63 = vshrl.u32 %v16232_v27, 16  ;;  %v947_v5 = vshrl.u32 %v16241_v33, 16  ;;  %v954_v6 = vshrl.u32 %v16257_v55, 16  ;;  %850 = vst.msk [vmem:[#allocation2 + $0x158] sm:$0xff] %vm626_vm0, %v14506_v10  ;;  %727 = vst [vmem:[#allocation2 + $0x148] sm:$0x1] %v726_v16 }
 0x15e   : > { %v1190_v61 = vsel %vm1175_vm4, %v1188_v53, %v1189_v54  ;;  %v14445_v7 = vpack.i.bf16 %v932_v49, %v925_v45  ;;  %v953_v8 = vrot.slane %v951_v60, 1  ;;  %v958_v9 = vshll.u32 %v16271_v0, 16  ;;  %851 = vst.msk [vmem:[#allocation2 + $0x170] sm:$0xff] %vm626_vm0, %v14507_v12  ;;  %v731_v18 = vld [vmem:[#allocation2 + $0x178] sm:$0x1]  ;;  %852 = vst.msk [vmem:[#allocation2 + $0x188] sm:$0xff] %vm626_vm0, %v14508_v17 }
 0x15f   : > { %v942_v13 = vor.u32 %v940_v63, %v939_v36  ;;  %v900_v19 = vld [vmem:[#allocation2 + $0x88] sm:$0x1]  ;;  %v732_v20 = vsel %vm16198_vm3, 0, %v731_v18  ;;  %v949_v21 = vor.u32 %v947_v5, %v16246_v41  ;;  %v728_v24 = vld [vmem:[#allocation2 + $0x160] sm:$0x1]  ;;  %v1191_v26 = vrot.slane %v16257_v55, 1 }
 0x160   : > { %1246 = vrot.lane.b32.xlu1 %v1184_v43, %s15759_s15  ;;  %v960_v22 = vrot.slane %v958_v9, 1  ;;  %733 = vst [vmem:[#allocation2 + $0x178] sm:$0x1] %v732_v20  ;;  %v956_v25 = vor.u32 %v954_v6, %v953_v8  ;;  %v1192_v27 = vrot.slane %v900_v19, 1  ;;  %v729_v28 = vsel %vm16198_vm3, 0, %v728_v24  ;;  %v16314_v36 = vld [vmem:[#allocation2 + $0xc8] sm:$0xff] }
 0x161   : > { %14451 = vrot.lane.b32.xlu0 %v14450_v47, %s15760_s13  ;;  %v965_v29 = vshll.u32 %v16297_v23, 16  ;;  %730 = vst [vmem:[#allocation2 + $0x160] sm:$0x1] %v729_v28  ;;  %v647_v31 = vld [vmem:[#allocation2 + $0x30] sm:$0x80]  ;;  %v16319_v40 = vld [vmem:[#allocation2 + $0xe0] sm:$0xff] }
 0x162   : > { %v14455_v32 = vpack.i.bf16 %v960_v22, %v953_v8  ;;  %v648_v34 = vsel %vm16306_vm7, 0, %v647_v31  ;;  %v644_v35 = vld [vmem:[#allocation2 + $0x18] sm:$0x80]  ;;  %v1193_v38 = vsel %vm1175_vm4, %v1191_v26, %v1192_v27  ;;  %v902_v39 = vld [vmem:[#allocation2 + $0xb8] sm:$0x1]  ;;  %v968_v42 = vshrl.u32 %v16297_v23, 16 }
 0x163   : > { %649 = vst [vmem:[#allocation2 + $0x30] sm:$0x80] %v648_v34  ;;  %v645_v37 = vsel %vm16306_vm7, 0, %v644_v35  ;;  %v967_v41 = vrot.slane %v965_v29, 1  ;;  %v901_v43 = vld [vmem:[#allocation2 + $0xa0] sm:$0x1] }
 0x164   : > { %1250 = vrot.lane.b32.xlu1 %v1187_v51, %s15759_s15  ;;  %646 = vst [vmem:[#allocation2 + $0x18] sm:$0x80] %v645_v37  ;;  %v650_v44 = vld [vmem:[#allocation2 + $0x48] sm:$0x80]  ;;  %v972_v45 = vshll.u32 %v16314_v36, 16  ;;  %v1197_v49 = vrot.slane %v16297_v23, 1 }
 0x165   : > { %1061 = vrot.lane.b32.xlu0 %v928_v52, %s15760_s13  ;;  %v16324_v46 = vld [vmem:[#allocation2 + $0xe8] sm:$0x1]  ;;  %v653_v48 = vld [vmem:[#allocation2 + $0x60] sm:$0x80]  ;;  %v1198_v50 = vrot.slane %v902_v39, 1  ;;  %v961_v51 = vshrl.u32 %v16271_v0, 16  ;;  %v970_v59 = vor.u32 %v968_v42, %v967_v41 }
 0x166   : > { %v16326_v47 = vld [vmem:[#allocation2 + $0x8] sm:$0xff]  ;;  %v656_v52 = vld [vmem:[#allocation2 + $0x78] sm:$0x80]  ;;  %v1194_v54 = vrot.slane %v16271_v0, 1  ;;  %v1195_v55 = vrot.slane %v901_v43, 1  ;;  %v979_v56 = vshll.u32 %v16319_v40, 16 }
 0x167   : > { %v651_v57 = vsel %vm16306_vm7, 0, %v650_v44  ;;  %v659_v58 = vld [vmem:[#allocation2 + $0x90] sm:$0x80]  ;;  %v982_v60 = vshrl.u32 %v16319_v40, 16  ;;  %v1203_v63 = vrot.slane %v16319_v40, 1  ;;  %v657_v0 = vsel %vm16306_vm7, 0, %v656_v52 }
 0x168   : > { %1254 = vrot.lane.b32.xlu1 %v1190_v61, %s15759_s15  ;;  %652 = vst [vmem:[#allocation2 + $0x48] sm:$0x80] %v651_v57  ;;  %v654_v61 = vsel %vm16306_vm7, 0, %v653_v48  ;;  %v660_v2 = vsel %vm16306_vm7, 0, %v659_v58  ;;  %v963_v3 = vor.u32 %v961_v51, %v960_v22  ;;  %v1204_v4 = vrot.slane %v16324_v46, 1  ;;  %v16368_v23 = vld [vmem:[#allocation2 + $0x110] sm:$0xff] }
 0x169   : > { %1065 = vrot.lane.b32.xlu0 %v935_v62, %s15760_s13  ;;  %v974_v62 = vrot.slane %v972_v45, 1  ;;  %655 = vst [vmem:[#allocation2 + $0x60] sm:$0x80] %v654_v61  ;;  %v916_v5 = vshll.u32 %v16326_v47, 16  ;;  %658 = vst [vmem:[#allocation2 + $0x78] sm:$0x80] %v657_v0  ;;  %v1199_v8 = vsel %vm1175_vm4, %v1197_v49, %v1198_v50  ;;  %v1196_v9 = vsel %vm1175_vm4, %v1194_v54, %v1195_v55 }
 0x16a   : > { %661 = vst [vmem:[#allocation2 + $0x90] sm:$0x80] %v660_v2  ;;  %v903_v6 = vld [vmem:[#allocation2 + $0xd0] sm:$0x1]  ;;  %v981_v10 = vrot.slane %v979_v56, 1  ;;  %v1200_v33 = vrot.slane %v16314_v36, 1  ;;  %v1205_v39 = vsel %vm1175_vm4, %v1203_v63, %v1204_v4 }
 0x16b   : > { %v1176_v11 = vrot.slane %v16326_v47, 1  ;;  %v1201_v12 = vrot.slane %v903_v6, 1  ;;  %v919_v15 = vshrl.u32 %v16326_v47, 16  ;;  %v14460_v16 = vpack.i.bf16 %v974_v62, %v967_v41  ;;  %v662_v18 = vld [vmem:[#allocation2 + $0xa8] sm:$0x80]  ;;  %v882_v37 = vld [vmem:[#allocation2 + $0x140] sm:$0xff] }
 0x16c   : > { %14446 = vrot.lane.b32.xlu1 %v14445_v7, %s15760_s13  ;;  %v895_v7 = vld [vmem:[#allocation2 + $0x10] sm:$0x1]  ;;  %v665_v19 = vld [vmem:[#allocation2 + $0xc0] sm:$0x80]  ;;  %v663_v20 = vsel %vm16306_vm7, 0, %v662_v18  ;;  %v984_v24 = vor.u32 %v982_v60, %v981_v10  ;;  %v993_v34 = vshll.u32 %v16368_v23, 16 }
 0x16d   : > { %1069 = vrot.lane.b32.xlu0 %v942_v13, %s15760_s13  ;;  %v918_v13 = vrot.slane %v916_v5, 1  ;;  %v1177_v14 = vrot.slane %v895_v7, 1  ;;  %v666_v22 = vsel %vm16306_vm7, 0, %v665_v19  ;;  %664 = vst [vmem:[#allocation2 + $0xa8] sm:$0x80] %v663_v20  ;;  %v996_v35 = vshrl.u32 %v16368_v23, 16 }
 0x16e   : > { %667 = vst [vmem:[#allocation2 + $0xc0] sm:$0x80] %v666_v22  ;;  %v734_v27 = vld [vmem:[#allocation2 + $0x190] sm:$0x1]  ;;  %v737_v31 = vld [vmem:[#allocation2 + $0x1a8] sm:$0x1] }
 0x16f   : > { %v14465_v28 = vpack.i.bf16 %v918_v13, %v981_v10  ;;  %v735_v29 = vsel %vm16198_vm3, 0, %v734_v27  ;;  %v16391_v44 = vld [vmem:[#allocation2 + $0x158] sm:$0xff]  ;;  %v1007_v45 = vshll.u32 %v882_v37, 16  ;;  %v907_v48 = vld [vmem:[#allocation2 + $0x130] sm:$0x1]  ;;  %v1178_v50 = vsel %vm1175_vm4, %v1176_v11, %v1177_v14 }
 0x170   : > { %1073 = vrot.lane.b32.xlu1 %v949_v21, %s15760_s13  ;;  %v14509_v21 = vld [vmem:[%s16195_s30 + $0x70] sm:$0xff]   ;;  %736 = vst [vmem:[#allocation2 + $0x190] sm:$0x1] %v735_v29  ;;  %v906_v46 = vld [vmem:[#allocation2 + $0x118] sm:$0x1]  ;;  %v921_v51 = vor.u32 %v919_v15, %v918_v13  ;;  %v995_v52 = vrot.slane %v993_v34, 1 }
 0x171   : > { %1077 = vrot.lane.b32.xlu0 %v956_v25, %s15760_s13  ;;  %853 = vst.msk [vmem:[#allocation2 + $0x1a0] sm:$0xff] %vm626_vm0, %v14509_v21  ;;  %v1202_v25 = vsel %vm1175_vm4, %v1200_v33, %v1201_v12  ;;  %v1009_v56 = vrot.slane %v1007_v45, 1  ;;  %v1010_v57 = vshrl.u32 %v882_v37, 16  ;;  %v1215_v58 = vrot.slane %v882_v37, 1  ;;  %v16422_v12 = vld [vmem:[#allocation2 + $0x188] sm:$0xff] }
 0x172   : > { %v1213_v60 = vrot.slane %v907_v48, 1  ;;  %v1017_v10 = vshrl.u32 %v16391_v44, 16  ;;  %v909_v13 = vld [vmem:[#allocation2 + $0x160] sm:$0x1]  ;;  %v671_v18 = vld [vmem:[#allocation2 + $0x120] sm:$0x80] }
 0x173   : > { %v1012_v2 = vor.u32 %v1010_v57, %v1009_v56  ;;  %v1028_v19 = vshll.u32 %v16422_v12, 16  ;;  %v672_v21 = vsel %vm16306_vm7, 0, %v671_v18  ;;  %v1218_v22 = vrot.slane %v16391_v44, 1  ;;  %v680_v34 = vld [vmem:[#allocation2 + $0x168] sm:$0x80] }
 0x174   : > { %14456 = vrot.lane.b32.xlu1 %v14455_v32, %s15760_s13  ;;  %v14510_v32 = vld [vmem:[%s16195_s30 + $0x78] sm:$0xff]   ;;  %673 = vst [vmem:[#allocation2 + $0x120] sm:$0x80] %v672_v21 }
 0x175   : > { %1258 = vrot.lane.b32.xlu0 %v1193_v38, %s15759_s15  ;;  %v738_v38 = vsel %vm16198_vm3, 0, %v737_v31  ;;  %854 = vst.msk [vmem:[#allocation2 + $0x1b8] sm:$0xff] %vm626_vm0, %v14510_v32  ;;  %v677_v31 = vld [vmem:[#allocation2 + $0x150] sm:$0x80] }
 0x176   : > { %739 = vst [vmem:[#allocation2 + $0x1a8] sm:$0x1] %v738_v38  ;;  %v678_v32 = vsel %vm16306_vm7, 0, %v677_v31  ;;  %v15310_v31 = vld [vmem:[#allocation2 + $0x68] sm:$0xff] }
 0x177   : > { %679 = vst [vmem:[#allocation2 + $0x150] sm:$0x80] %v678_v32 }
 0x178   : > { %1256 = vrot.lane.b32.xlu1 %v1191_v26, %s15759_s15  ;;  %v16372_v26 = vld [vmem:[#allocation2 + $0x128] sm:$0xff] }
 0x179   : > { %1252 = vrot.lane.b32.xlu0 %v1188_v53, %s15759_s15  ;;  %v975_v53 = vshrl.u32 %v16314_v36, 16  ;;  %v1209_v36 = vrot.slane %v16368_v23, 1  ;;  %v1000_v41 = vshll.u32 %v16372_v26, 16  ;;  %v1003_v42 = vshrl.u32 %v16372_v26, 16 }
 0x17a   : > { %v1212_v43 = vrot.slane %v16372_v26, 1  ;;  %v1219_v23 = vrot.slane %v909_v13, 1 }
 0x17b   : > { %v977_v17 = vor.u32 %v975_v53, %v974_v62  ;;  %v1002_v55 = vrot.slane %v1000_v41, 1  ;;  %v998_v62 = vor.u32 %v996_v35, %v995_v52  ;;  %v683_v35 = vld [vmem:[#allocation2 + $0x180] sm:$0x80] }
 0x17c   : > { %1085 = vrot.lane.b32.xlu1 %v970_v59, %s15760_s13  ;;  %v1210_v59 = vrot.slane %v906_v46, 1  ;;  %v1214_v47 = vsel %vm1175_vm4, %v1212_v43, %v1213_v60  ;;  %v1220_v26 = vsel %vm1175_vm4, %v1218_v22, %v1219_v23  ;;  %v684_v37 = vsel %vm16306_vm7, 0, %v683_v35 }
 0x17d   : > { %1081 = vrot.lane.b32.xlu0 %v963_v3, %s15760_s13  ;;  %v1005_v0 = vor.u32 %v1003_v42, %v1002_v55  ;;  %v886_v3 = vld [vmem:[#allocation2 + $0x170] sm:$0xff]  ;;  %v14470_v4 = vpack.i.bf16 %v1002_v55, %v995_v52  ;;  %685 = vst [vmem:[#allocation2 + $0x180] sm:$0x80] %v684_v37  ;;  %v15311_v37 = vld [vmem:[#allocation2 + $0x80] sm:$0xff] }
 0x17e   : > { %v1021_v5 = vshll.u32 %v886_v3, 16  ;;  %v1024_v6 = vshrl.u32 %v886_v3, 16  ;;  %v1221_v15 = vrot.slane %v886_v3, 1  ;;  %v863_v3 = vld [vmem:[#allocation2 + $0x60] sm:$0x80] }
 0x180   : > { %1266 = vrot.lane.b32.xlu1 %v1199_v8, %s15759_s15  ;;  %v740_v8 = vld [vmem:[#allocation2 + $0x1c0] sm:$0x1] }
 0x181   : > { %1262 = vrot.lane.b32.xlu0 %v1196_v9, %s15759_s15  ;;  %v1023_v9 = vrot.slane %v1021_v5, 1 }
 0x183   : > { %v1026_v14 = vor.u32 %v1024_v6, %v1023_v9 }
 0x184   : > { %1260 = vrot.lane.b32.xlu1 %v1194_v54, %s15759_s15  ;;  %v1014_v54 = vshll.u32 %v16391_v44, 16 }
 0x185   : > { %14461 = vrot.lane.b32.xlu0 %v14460_v16, %s15760_s13 }
 0x186   : > { %v1016_v40 = vrot.slane %v1014_v54, 1  ;;  %v861_v54 = vld [vmem:[#allocation2 + $0x48] sm:$0x80] }
 0x188   : > { %1089 = vrot.lane.b32.xlu1 %v977_v17, %s15760_s13  ;;  %v14475_v7 = vpack.i.bf16 %v1016_v40, %v1009_v56  ;;  %v668_v17 = vld [vmem:[#allocation2 + $0x108] sm:$0x80]  ;;  %v1019_v1 = vor.u32 %v1017_v10, %v1016_v40 }
 0x189   : > { %1264 = vrot.lane.b32.xlu0 %v1197_v49, %s15759_s15  ;;  %v908_v49 = vld [vmem:[#allocation2 + $0x148] sm:$0x1]  ;;  %v669_v20 = vsel %vm16306_vm7, 0, %v668_v17 }
 0x18a   : > { %v1216_v61 = vrot.slane %v908_v49, 1  ;;  %670 = vst [vmem:[#allocation2 + $0x108] sm:$0x80] %v669_v20  ;;  %v14513_v20 = vld [vmem:[#allocation8 + $0x10] ss:$0 sps:$4 sm:$0x33]  }
 0x18c   : > { %1270 = vrot.lane.b32.xlu1 %v1202_v25, %s15759_s15  ;;  %v1217_v53 = vsel %vm1175_vm4, %v1215_v58, %v1216_v61  ;;  %v16436_v25 = vrot.slane %v1028_v19, 1 }
 0x18d   : > { %1093 = vrot.lane.b32.xlu0 %v984_v24, %s15760_s13 }
 0x18e   : > { %v14480_v27 = vpack.i.bf16 %v16436_v25, %v1023_v9 }
 0x190   : > { %14466 = vrot.lane.b32.xlu1 %v14465_v28, %s15760_s13  ;;  %v674_v28 = vld [vmem:[#allocation2 + $0x138] sm:$0x80] }
 0x191   : > { %1274 = vrot.lane.b32.xlu0 %v1205_v39, %s15759_s15  ;;  %v675_v29 = vsel %vm16306_vm7, 0, %v674_v28  ;;  %v15309_v28 = vld [vmem:[#allocation5] sm:$0xff] }
 0x192   : > { %676 = vst [vmem:[#allocation2 + $0x138] sm:$0x80] %v675_v29 }
 0x194   : > { %1272 = vrot.lane.b32.xlu1 %v1203_v63, %s15759_s15  ;;  %v1211_v63 = vsel %vm1175_vm4, %v1209_v36, %v1210_v59 }
 0x195   : > { %1268 = vrot.lane.b32.xlu0 %v1200_v33, %s15759_s15  ;;  %v741_v33 = vsel %vm16198_vm3, 0, %v740_v8  ;;  %v14511_v8 = vld [vmem:[#allocation8] sm:$0xff]   ;;  %vm5627_vm3 = vcmask 1047559  }
 0x196   : > { %742 = vst [vmem:[#allocation2 + $0x1c0] sm:$0x1] %v741_v33  ;;  %13836 = vmatprep.subr.bf16.mxu0 %v14511_v8  ;;  %vm18338_vm5 = vmand %vm5627_vm3, %vm642_vm6 }
 0x197   : > { %13837 = vmatpush3.bf16.msra.mxu0 %v14511_v8 }
 0x198   : > { %1238 = vrot.lane.b32.xlu1 %v1178_v50, %s15759_s15  ;;  %v859_v50 = vld [vmem:[#allocation2 + $0x30] sm:$0x80] }
 0x199   : > { %1057 = vrot.lane.b32.xlu0 %v921_v51, %s15760_s13  ;;  %v857_v51 = vld [vmem:[#allocation2 + $0x18] sm:$0x80] }
 0x19c   : > { %1236 = vrot.lane.b32.xlu1 %v1176_v11, %s15759_s15  ;;  %v910_v11 = vld [vmem:[#allocation2 + $0x178] sm:$0x1] }
 0x19d   : > { %1101 = vrot.lane.b32.xlu0 %v998_v62, %s15760_s13  ;;  %v1222_v16 = vrot.slane %v910_v11, 1 }
 0x19f   : > { %v1223_v24 = vsel %vm1175_vm4, %v1221_v15, %v1222_v16 }
 0x1a0   : > { %1282 = vrot.lane.b32.xlu1 %v1211_v63, %s15759_s15 }
 0x1a1   : > { %1105 = vrot.lane.b32.xlu0 %v1005_v0, %s15760_s13 }
 0x1a4   : > { %1109 = vrot.lane.b32.xlu1 %v1012_v2, %s15760_s13 }
 0x1a5   : > { %14471 = vrot.lane.b32.xlu0 %v14470_v4, %s15760_s13 }
 0x1a8   : > { %1280 = vrot.lane.b32.xlu1 %v1209_v36, %s15759_s15  ;;  %v681_v36 = vsel %vm16306_vm7, 0, %v680_v34 }
 0x1a9   : > { %1286 = vrot.lane.b32.xlu0 %v1214_v47, %s15759_s15  ;;  %682 = vst [vmem:[#allocation2 + $0x168] sm:$0x80] %v681_v36  ;;  %v865_v47 = vld [vmem:[#allocation2 + $0x78] sm:$0x80] }
 0x1ac   : > { %14476 = vrot.lane.b32.xlu1 %v14475_v7, %s15760_s13 }
 0x1ad   : > { %1290 = vrot.lane.b32.xlu0 %v1217_v53, %s15759_s15  ;;  %v15306_v53 = vld [vmem:[#allocation2 + $0x20] sm:$0xff] }
 0x1b0   : > { %1288 = vrot.lane.b32.xlu1 %v1215_v58, %s15759_s15 }
 0x1b1   : > { %1284 = vrot.lane.b32.xlu0 %v1212_v43, %s15759_s15 }
 0x1b4   : > { %1117 = vrot.lane.b32.xlu1 %v1026_v14, %s15760_s13 }
 0x1b5   : > { %1113 = vrot.lane.b32.xlu0 %v1019_v1, %s15760_s13  ;;  %v15307_v1 = vld [vmem:[#allocation2 + $0x38] sm:$0xff] }
 0x1b8   : > { %1298 = vrot.lane.b32.xlu1 %v1223_v24, %s15759_s15  ;;  %v15308_v24 = vld [vmem:[#allocation2 + $0x50] sm:$0xff] }
 0x1b9   : > { %1294 = vrot.lane.b32.xlu0 %v1220_v26, %s15759_s15 }
 0x1bc   : > { %1292 = vrot.lane.b32.xlu1 %v1218_v22, %s15759_s15  ;;  %v2029_v22 = vsel %vm2027_vm9, %v14513_v20, 0 }
 0x1bd   : > { %14481 = vrot.lane.b32.xlu0 %v14480_v27, %s15760_s13 }
 0x1c1   : > { %1296 = vrot.lane.b32.xlu0 %v1221_v15, %s15759_s15  ;;  %v14512_v15 = vld [vmem:[#allocation8 + $0x8] sm:$0xff]  }
 0x1c2   : > { %13838 = vmatprep.subr.bf16.mxu0 %v14512_v15 }
 0x1c3   : > { %13839 = vmatpush3.bf16.msra.mxu0 %v14512_v15  ;;  %v1224_v15 = vrot.slane %v16422_v12, 1 }
 0x1c4   : > { %14282 = vmatprep.subr.msk.bf16.mxu0 %vm2027_vm9, %v14513_v20 }
 0x1c7   : > { %13841 = vmatpush3.bf16.msra.mxu0 %v2029_v22 }
 0x1c8   : > { %3433 = vmatprep.subr.bf16.mxu0 %v15309_v28 }
 0x1ca   : > { %v1245_v38 = vpop.permute.xlu1 %1244 }
 0x1cb   : > { %v1241_v39 = vpop.permute.xlu0 %1240 }
 0x1ce   : > { %v1243_v41 = vpop.permute.xlu1 %1242 }
 0x1cf   : > { %v1249_v42 = vpop.permute.xlu0 %1248 }
 0x1d2   : > { %v16453_v43 = vpop.permute.xlu1 %1246 }
 0x1d3   : > { %v14452_v44 = vpop.permute.xlu0 %14451 }
 0x1d4   : > { %v14453_v55 = vunpack.i.l.bf16 %v14452_v44  ;;  %v14454_v4 = vunpack.i.h.bf16 %v14452_v44 }
 0x1d6   : > { %v16455_v45 = vpop.permute.xlu1 %1250  ;;  %v1333_v0 = vsel %vm626_vm0, %v861_v54, %v14453_v55  ;;  %v1338_v10 = vsel %vm626_vm0, %v863_v3, %v14454_v4  ;;  %v16566_v3 = vld [vmem:[#allocation2 + $0x1b8] sm:$0xff] }
 0x1d7   : > { %v1062_v46 = vpop.permute.xlu0 %1061  ;;  %v16475_v2 = vsel %vm1416_vm8, %v1333_v0, %v1249_v42  ;;  %v15312_v42 = vld [vmem:[#allocation2 + $0x98] sm:$0xff] }
 0x1d8   : > { %v1325_v11 = vsel %vm626_vm0, %v15306_v53, %v1062_v46 }
 0x1d9   : > { %v16497_v17 = vsel %vm1416_vm8, %v1325_v11, %v1243_v41 }
 0x1da   : > { %v16457_v48 = vpop.permute.xlu1 %1254 }
 0x1db   : > { %v1066_v49 = vpop.permute.xlu0 %1065 }
 0x1dc   : > { %v1330_v19 = vsel %vm626_vm0, %v15307_v1, %v1066_v49  ;;  %v867_v49 = vld [vmem:[#allocation2 + $0x90] sm:$0x80] }
 0x1dd   : > { %v16509_v23 = vsel %vm1416_vm8, %v1330_v19, %v16453_v43 }
 0x1de   : > { %v14447_v52 = vpop.permute.xlu1 %14446 }
 0x1df   : > { %v14449_v56 = vunpack.i.h.bf16 %v14447_v52  ;;  %v14448_v57 = vunpack.i.l.bf16 %v14447_v52  ;;  %v1070_v58 = vpop.permute.xlu0 %1069  ;;  %v15313_v52 = vld [vmem:[#allocation2 + $0xb0] sm:$0xff] }
 0x1e0   : > { %v1335_v26 = vsel %vm626_vm0, %v15308_v24, %v1070_v58  ;;  %v689_v58 = vld [vmem:[#allocation2 + $0x1b0] sm:$0x80] }
 0x1e1   : > { %v1328_v59 = vsel %vm626_vm0, %v859_v50, %v14449_v56  ;;  %v1323_v60 = vsel %vm626_vm0, %v857_v51, %v14448_v57  ;;  %v16518_v29 = vsel %vm1416_vm8, %v1335_v26, %v16455_v45  ;;  %v869_v50 = vld [vmem:[#allocation2 + $0xa8] sm:$0x80]  ;;  %v686_v57 = vld [vmem:[#allocation2 + $0x198] sm:$0x80] }
 0x1e2   : > { %v1074_v61 = vpop.permute.xlu1 %1073  ;;  %v16462_v40 = vsel %vm1416_vm8, %v1328_v59, %v1245_v38  ;;  %v16465_v62 = vsel %vm1416_vm8, %v1323_v60, %v1241_v39 }
 0x1e3   : > { %v16467_v63 = vpop.permute.xlu0 %1077  ;;  %1597 = vrot.lane.b32.xlu1 %v16462_v40, %s15761_s27  ;;  %1529 = vrot.lane.b32.xlu0 %v16465_v62, %s15762_s16  ;;  %v1340_v32 = vsel %vm626_vm0, %v15310_v31, %v1074_v61  ;;  %v687_v61 = vsel %vm16306_vm7, 0, %v686_v57 }
 0x1e4   : > { %v16529_v36 = vsel %vm1416_vm8, %v1340_v32, %v16457_v48  ;;  %v1345_v38 = vsel %vm626_vm0, %v15311_v37, %v16467_v63  ;;  %v890_v48 = vld [vmem:[#allocation2 + $0x1a0] sm:$0xff]  ;;  %v690_v63 = vsel %vm16306_vm7, 0, %v689_v58  ;;  %688 = vst [vmem:[#allocation2 + $0x198] sm:$0x80] %v687_v61  ;;  %v15314_v32 = vld [vmem:[#allocation2 + $0xc8] sm:$0xff]  ;;  %vm5653_vm7 = vcmask 1040384  }
 0x1e5   : > { %v1035_v59 = vshll.u32 %v890_v48, 16  ;;  %691 = vst [vmem:[#allocation2 + $0x1b0] sm:$0x80] %v690_v63  ;;  %v1227_v19 = vrot.slane %v890_v48, 1  ;;  %v913_v58 = vld [vmem:[#allocation2 + $0x1c0] sm:$0x1] }
 0x1e6   : > { %v16477_v5 = vpop.permute.xlu1 %14456 }
 0x1e7   : > { %v1259_v6 = vpop.permute.xlu0 %1258  ;;  %1601 = vrot.lane.b32.xlu1 %v16475_v2, %s15761_s27  ;;  %1533 = vrot.lane.b32.xlu0 %v16462_v40, %s15762_s16  ;;  %v14458_v7 = vunpack.i.l.bf16 %v16477_v5  ;;  %v14459_v51 = vunpack.i.h.bf16 %v16477_v5  ;;  %v1037_v8 = vrot.slane %v1035_v59, 1 }
 0x1e8   : > { %v16538_v41 = vsel %vm1416_vm8, %v1345_v38, %v1259_v6  ;;  %v1031_v6 = vshrl.u32 %v16422_v12, 16 }
 0x1e9   : > { %v1343_v14 = vsel %vm626_vm0, %v865_v47, %v14458_v7  ;;  %v1348_v4 = vsel %vm626_vm0, %v867_v49, %v14459_v51  ;;  %v911_v47 = vld [vmem:[#allocation2 + $0x190] sm:$0x1]  ;;  %v873_v49 = vld [vmem:[#allocation2 + $0xd8] sm:$0x80] }
 0x1ea   : > { %v1257_v13 = vpop.permute.xlu1 %1256  ;;  %v1033_v11 = vor.u32 %v1031_v6, %v16436_v25 }
 0x1eb   : > { %v1253_v9 = vpop.permute.xlu0 %1252  ;;  %1537 = vrot.lane.b32.xlu1 %v16475_v2, %s15762_s16  ;;  %v16500_v18 = vsel %vm1416_vm8, %v1343_v14, %v1257_v13  ;;  %v1042_v14 = vshll.u32 %v16566_v3, 16 }
 0x1ec   : > { %v16488_v33 = vsel %vm1416_vm8, %v1338_v10, %v1253_v9  ;;  %v1038_v9 = vshrl.u32 %v890_v48, 16  ;;  %v912_v10 = vld [vmem:[#allocation2 + $0x1a8] sm:$0x1]  ;;  %v15315_v48 = vld [vmem:[#allocation2 + $0xe0] sm:$0xff] }
 0x1ed   : > { %1605 = vrot.lane.b32.xlu0 %v16488_v33, %s15761_s27  ;;  %v1228_v20 = vrot.slane %v912_v10, 1  ;;  %v1044_v22 = vrot.slane %v1042_v14, 1 }
 0x1ee   : > { %v1086_v21 = vpop.permute.xlu1 %1085  ;;  %v1040_v1 = vor.u32 %v1038_v9, %v1037_v8  ;;  %v1231_v9 = vrot.slane %v913_v58, 1 }
 0x1ef   : > { %1541 = vrot.lane.b32.xlu1 %v16488_v33, %s15762_s16  ;;  %v1082_v16 = vpop.permute.xlu0 %1081  ;;  %v1355_v54 = vsel %vm626_vm0, %v15313_v52, %v1086_v21  ;;  %v1229_v26 = vsel %vm1175_vm4, %v1227_v19, %v1228_v20  ;;  %v14485_v12 = vpack.i.bf16 %v1044_v22, %v1037_v8  ;;  %v1230_v8 = vrot.slane %v16566_v3, 1 }
 0x1f0   : > { %v1350_v43 = vsel %vm626_vm0, %v15312_v42, %v1082_v16  ;;  %v1225_v16 = vrot.slane %v911_v47, 1  ;;  %v894_v42 = vld [vmem:[#allocation2 + $0x1d0] sm:$0xff] }
 0x1f1   : > { %1531 = vrot.lane.b32.xlu0 %v16497_v17, %s15762_s16  ;;  %v1052_v63 = vshrl.u32 %v894_v42, 16  ;;  %v1233_v14 = vrot.slane %v894_v42, 1 }
 0x1f2   : > { %v1267_v34 = vpop.permute.xlu1 %1266  ;;  %v1226_v24 = vsel %vm1175_vm4, %v1224_v15, %v1225_v16 }
 0x1f3   : > { %1609 = vrot.lane.b32.xlu1 %v16500_v18, %s15761_s27  ;;  %v1263_v27 = vpop.permute.xlu0 %1262  ;;  %v16564_v0 = vsel %vm1416_vm8, %v1355_v54, %v1267_v34 }
 0x1f4   : > { %v16546_v46 = vsel %vm1416_vm8, %v1350_v43, %v1263_v27 }
 0x1f5   : > { %1535 = vrot.lane.b32.xlu0 %v16509_v23, %s15762_s16 }
 0x1f6   : > { %v1261_v39 = vpop.permute.xlu1 %1260 }
 0x1f7   : > { %1599 = vrot.lane.b32.xlu1 %v16509_v23, %s15761_s27  ;;  %v16525_v35 = vpop.permute.xlu0 %14461  ;;  %v16574_v30 = vsel %vm1416_vm8, %v1348_v4, %v1261_v39  ;;  %v871_v39 = vld [vmem:[#allocation2 + $0xc0] sm:$0x80]  ;;  %v914_v4 = vld [vmem:[#allocation2 + $0x1d8] sm:$0x1] }
 0x1f8   : > { %v14463_v55 = vunpack.i.l.bf16 %v16525_v35  ;;  %v14464_v43 = vunpack.i.h.bf16 %v16525_v35  ;;  %v1049_v35 = vshll.u32 %v894_v42, 16 }
 0x1f9   : > { %1539 = vrot.lane.b32.xlu0 %v16518_v29, %s15762_s16 }
 0x1fa   : > { %v1090_v45 = vpop.permute.xlu1 %1089  ;;  %v1353_v5 = vsel %vm626_vm0, %v869_v50, %v14463_v55  ;;  %v1358_v52 = vsel %vm626_vm0, %v871_v39, %v14464_v43  ;;  %v876_v55 = vld [vmem:[#allocation2 + $0xf8] sm:$0xff]  ;;  %v1051_v61 = vrot.slane %v1049_v35, 1  ;;  %v15316_v39 = vld [vmem:[#allocation2 + $0x110] sm:$0xff] }
 0x1fb   : > { %1603 = vrot.lane.b32.xlu1 %v16518_v29, %s15761_s27  ;;  %v1265_v44 = vpop.permute.xlu0 %1264  ;;  %v1360_v34 = vsel %vm626_vm0, %v15314_v32, %v1090_v45  ;;  %v986_v47 = vshll.u32 %v876_v55, 16 }
 0x1fc   : > { %v16579_v53 = vsel %vm1416_vm8, %v1353_v5, %v1265_v44 }
 0x1fd   : > { %1607 = vrot.lane.b32.xlu0 %v16529_v36, %s15761_s27  ;;  %v988_v16 = vrot.slane %v986_v47, 1 }
 0x1fe   : > { %v1271_v60 = vpop.permute.xlu1 %1270 }
 0x1ff   : > { %1543 = vrot.lane.b32.xlu1 %v16529_v36, %s15762_s16  ;;  %v16553_v56 = vpop.permute.xlu0 %1093  ;;  %v1452_v38 = vsel %vm1416_vm8, %v1360_v34, %v1271_v60 }
 0x200   : > { %v1365_v45 = vsel %vm626_vm0, %v15315_v48, %v16553_v56  ;;  %v1045_v56 = vshrl.u32 %v16566_v3, 16 }
 0x201   : > { %1611 = vrot.lane.b32.xlu0 %v16538_v41, %s15761_s27 }
 0x202   : > { %v16584_v13 = vpop.permute.xlu1 %14466  ;;  %v1047_v6 = vor.u32 %v1045_v56, %v1044_v22  ;;  %v905_v22 = vld [vmem:[#allocation2 + $0x100] sm:$0x1]  ;;  %v879_v56 = vld [vmem:[#allocation2 + $0x120] sm:$0x80] }
 0x203   : > { %1547 = vrot.lane.b32.xlu1 %v16538_v41, %s15762_s16  ;;  %v1275_v7 = vpop.permute.xlu0 %1274  ;;  %v14468_v50 = vunpack.i.l.bf16 %v16584_v13 }
 0x204   : > { %v1456_v54 = vsel %vm1416_vm8, %v1365_v45, %v1275_v7 }
 0x205   : > { %1551 = vrot.lane.b32.xlu0 %v16546_v46, %s15762_s16  ;;  %v1363_v60 = vsel %vm626_vm0, %v873_v49, %v14468_v50  ;;  %v877_v49 = vld [vmem:[#allocation2 + $0x108] sm:$0x80] }
 0x206   : > { %v1273_v25 = vpop.permute.xlu1 %1272  ;;  %v15317_v50 = vld [vmem:[#allocation2 + $0x128] sm:$0xff] }
 0x207   : > { %1615 = vrot.lane.b32.xlu1 %v16546_v46, %s15761_s27  ;;  %v1269_v21 = vpop.permute.xlu0 %1268  ;;  %v1454_v7 = vsel %vm1416_vm8, %v1363_v60, %v1273_v25 }
 0x208   : > { %v1450_v59 = vsel %vm1416_vm8, %v1358_v52, %v1269_v21  ;;  %v14490_v21 = vpack.i.bf16 %v988_v16, %v1051_v61 }
 0x209   : > { %1545 = vrot.lane.b32.xlu0 %v16500_v18, %s15762_s16 }
 0x20a   : > { %v16599_v28 = vpop.permute.xlu1 %1238 }
 0x20b   : > { %1619 = vrot.lane.b32.xlu1 %v16564_v0, %s15761_s27  ;;  %v16595_v27 = vpop.permute.xlu0 %1057 }
 0x20d   : > { %1549 = vrot.lane.b32.xlu0 %v16574_v30, %s15762_s16 }
 0x20e   : > { %v16608_v37 = vpop.permute.xlu1 %1236 }
 0x20f   : > { %1613 = vrot.lane.b32.xlu1 %v16574_v30, %s15761_s27  ;;  %v16602_v31 = vpop.permute.xlu0 %1101 }
 0x210   : > { %v1375_v42 = vsel %vm626_vm0, %v15316_v39, %v16602_v31 }
 0x211   : > { %1617 = vrot.lane.b32.xlu0 %v16579_v53, %s15761_s27 }
 0x212   : > { %v1283_v51 = vpop.permute.xlu1 %1282 }
 0x213   : > { %1121 = vrot.lane.b32.xlu1 %v1033_v11, %s15760_s13  ;;  %v16613_v44 = vpop.permute.xlu0 %1105  ;;  %v1054_v11 = vor.u32 %v1052_v63, %v1051_v61  ;;  %v16651_v45 = vsel %vm1416_vm8, %v1375_v42, %v1283_v51  ;;  %v881_v63 = vld [vmem:[#allocation2 + $0x138] sm:$0x80] }
 0x214   : > { %v1380_v52 = vsel %vm626_vm0, %v15317_v50, %v16613_v44  ;;  %v15318_v44 = vld [vmem:[#allocation2 + $0x140] sm:$0xff] }
 0x215   : > { %1125 = vrot.lane.b32.xlu0 %v1040_v1, %s15760_s13  ;;  %v1232_v1 = vsel %vm1175_vm4, %v1230_v8, %v1231_v9 }
 0x216   : > { %v1110_v5 = vpop.permute.xlu1 %1109 }
 0x217   : > { %1302 = vrot.lane.b32.xlu1 %v1226_v24, %s15759_s15  ;;  %v16624_v57 = vpop.permute.xlu0 %14471  ;;  %v989_v24 = vshrl.u32 %v876_v55, 16 }
 0x218   : > { %v14473_v35 = vunpack.i.l.bf16 %v16624_v57  ;;  %v14474_v51 = vunpack.i.h.bf16 %v16624_v57 }
 0x219   : > { %1306 = vrot.lane.b32.xlu0 %v1229_v26, %s15759_s15  ;;  %v1206_v26 = vrot.slane %v876_v55, 1  ;;  %v991_v34 = vor.u32 %v989_v24, %v988_v16 }
 0x21a   : > { %v1373_v58 = vsel %vm626_vm0, %v877_v49, %v14473_v35  ;;  %v1378_v57 = vsel %vm626_vm0, %v879_v56, %v14474_v51 }
 0x21b   : > { %14486 = vrot.lane.b32.xlu1 %v14485_v12, %s15760_s13  ;;  %v1287_v10 = vpop.permute.xlu0 %1286  ;;  %v1207_v12 = vrot.slane %v905_v22, 1 }
 0x21c   : > { %v16660_v55 = vsel %vm1416_vm8, %v1380_v52, %v1287_v10 }
 0x21d   : > { %1300 = vrot.lane.b32.xlu0 %v1224_v15, %s15759_s15  ;;  %v1234_v15 = vrot.slane %v914_v4, 1 }
 0x21f   : > { %1304 = vrot.lane.b32.xlu1 %v1227_v19, %s15759_s15  ;;  %v1281_v19 = vpop.permute.xlu1 %1280  ;;  %v1235_v20 = vsel %vm1175_vm4, %v1233_v14, %v1234_v15  ;;  %v1291_v3 = vpop.permute.xlu0 %1290 }
 0x220   : > { %v16672_v61 = vsel %vm1416_vm8, %v1373_v58, %v1281_v19 }
 0x221   : > { %1555 = vrot.lane.b32.xlu0 %v16564_v0, %s15762_s16 }
 0x223   : > { %1559 = vrot.lane.b32.xlu1 %v1452_v38, %s15762_s16  ;;  %v16640_v25 = vpop.permute.xlu1 %14476  ;;  %v1285_v32 = vpop.permute.xlu0 %1284 }
 0x224   : > { %v14478_v4 = vunpack.i.l.bf16 %v16640_v25 }
 0x225   : > { %1623 = vrot.lane.b32.xlu0 %v1452_v38, %s15761_s27  ;;  %v1208_v38 = vsel %vm1175_vm4, %v1206_v26, %v1207_v12 }
 0x227   : > { %1553 = vrot.lane.b32.xlu1 %v16579_v53, %s15762_s16  ;;  %v1289_v43 = vpop.permute.xlu1 %1288  ;;  %v1114_v48 = vpop.permute.xlu0 %1113 }
 0x229   : > { %1627 = vrot.lane.b32.xlu0 %v1456_v54, %s15761_s27 }
 0x22b   : > { %1557 = vrot.lane.b32.xlu1 %v1450_v59, %s15762_s16  ;;  %v1118_v31 = vpop.permute.xlu1 %1117  ;;  %v1295_v54 = vpop.permute.xlu0 %1294 }
 0x22d   : > { %1621 = vrot.lane.b32.xlu0 %v1450_v59, %s15761_s27  ;;  %v1385_v59 = vsel %vm626_vm0, %v15318_v44, %v1110_v5  ;;  %v16684_v5 = vsel %vm1416_vm8, %v1378_v57, %v1285_v32 }
 0x22e   : > { %v16679_v47 = vsel %vm1416_vm8, %v1385_v59, %v1291_v3  ;;  %v15320_v3 = vld [vmem:[#allocation2 + $0x170] sm:$0xff] }
 0x22f   : > { %1625 = vrot.lane.b32.xlu1 %v1454_v7, %s15761_s27  ;;  %v16669_v60 = vpop.permute.xlu0 %14481  ;;  %v1383_v7 = vsel %vm626_vm0, %v881_v63, %v14478_v4 }
 0x230   : > { %v16692_v10 = vsel %vm1416_vm8, %v1383_v7, %v1289_v43  ;;  %v14483_v32 = vunpack.i.l.bf16 %v16669_v60 }
 0x231   : > { %1129 = vrot.lane.b32.xlu0 %v1047_v6, %s15760_s13  ;;  %v1299_v6 = vpop.permute.xlu1 %1298 }
 0x233   : > { %1133 = vrot.lane.b32.xlu1 %v1054_v11, %s15760_s13  ;;  %v15319_v11 = vld [vmem:[#allocation2 + $0x158] sm:$0xff] }
 0x235   : > { %1310 = vrot.lane.b32.xlu0 %v1232_v1, %s15759_s15  ;;  %v1293_v9 = vpop.permute.xlu1 %1292  ;;  %v883_v1 = vld [vmem:[#allocation2 + $0x150] sm:$0x80] }
 0x237   : > { %1314 = vrot.lane.b32.xlu1 %v1235_v20, %s15759_s15  ;;  %v14479_v20 = vunpack.i.h.bf16 %v16640_v25  ;;  %v855_v25 = vld [vmem:[#allocation2] sm:$0x80] }
 0x239   : > { %14491 = vrot.lane.b32.xlu0 %v14490_v21, %s15760_s13  ;;  %v1395_v21 = vsel %vm626_vm0, %v15320_v3, %v1118_v31  ;;  %v1388_v12 = vsel %vm626_vm0, %v883_v1, %v14479_v20  ;;  %v15321_v31 = vld [vmem:[#allocation2 + $0x8] sm:$0xff] }
 0x23a   : > { %v16719_v42 = vsel %vm1416_vm8, %v1388_v12, %v1293_v9 }
 0x23b   : > { %1308 = vrot.lane.b32.xlu1 %v1230_v8, %s15759_s15  ;;  %v1297_v8 = vpop.permute.xlu0 %1296 }
 0x23d   : > { %1312 = vrot.lane.b32.xlu0 %v1233_v14, %s15759_s15  ;;  %v1390_v14 = vsel %vm626_vm0, %v15319_v11, %v1114_v48 }
 0x23e   : > { %v16700_v19 = vsel %vm1416_vm8, %v1390_v14, %v1295_v54  ;;  %v1320_v54 = vsel %vm626_vm0, %v15321_v31, %v16595_v27 }
 0x23f   : > { %1097 = vrot.lane.b32.xlu1 %v991_v34, %s15760_s13  ;;  %v16713_v34 = vsel %vm1416_vm8, %v1395_v21, %v1299_v6 }
 0x241   : > { %1278 = vrot.lane.b32.xlu0 %v1208_v38, %s15759_s15  ;;  %v14469_v38 = vunpack.i.h.bf16 %v16584_v13 }
 0x243   : > { %1563 = vrot.lane.b32.xlu1 %v16651_v45, %s15762_s16  ;;  %v1318_v49 = vsel %vm626_vm0, %v855_v25, %v14469_v38 }
 0x244   : > { %v1418_v35 = vsel %vm1416_vm8, %v1318_v49, %v16608_v37  ;;  %v1420_v37 = vsel %vm1416_vm8, %v1320_v54, %v16599_v28 }
 0x245   : > { %1276 = vrot.lane.b32.xlu0 %v1206_v26, %s15759_s15  ;;  %v885_v26 = vld [vmem:[#allocation2 + $0x168] sm:$0x80] }
 0x246   : > { %v1393_v43 = vsel %vm626_vm0, %v885_v26, %v14483_v32 }
 0x247   : > { %1567 = vrot.lane.b32.xlu1 %v16660_v55, %s15762_s16  ;;  %v16728_v13 = vsel %vm1416_vm8, %v1393_v43, %v1297_v8 }
 0x249   : > { %1631 = vrot.lane.b32.xlu0 %v16660_v55, %s15761_s27 }
 0x24b   : > { %1561 = vrot.lane.b32.xlu1 %v16672_v61, %s15762_s16 }
 0x24d   : > { %1635 = vrot.lane.b32.xlu0 %v16679_v47, %s15761_s27 }
 0x24f   : > { %1565 = vrot.lane.b32.xlu1 %v16684_v5, %s15762_s16 }
 0x251   : > { %1629 = vrot.lane.b32.xlu0 %v16684_v5, %s15761_s27 }
 0x253   : > { %1633 = vrot.lane.b32.xlu1 %v16692_v10, %s15761_s27 }
 0x255   : > { %1571 = vrot.lane.b32.xlu0 %v16679_v47, %s15762_s16  ;;  %v1598_v15 = vpop.permute.xlu1 %1597  ;;  %v1530_v16 = vpop.permute.xlu0 %1529 }
 0x256   : > { %v1663_v56 = vsel %vm1661_vm10, %v1418_v35, %v1530_v16 }
 0x257   : > { %1575 = vrot.lane.b32.xlu1 %v16700_v19, %s15762_s16  ;;  %v1728_v44 = vsel %vm1726_vm11, %v1663_v56, %v1598_v15 }
 0x258   : > { %v1791_v6 = vshrl.u32 %v1728_v44, 16 }
 0x259   : > { %1639 = vrot.lane.b32.xlu0 %v16700_v19, %s15761_s27  ;;  %v1602_v22 = vpop.permute.xlu1 %1601  ;;  %v1534_v24 = vpop.permute.xlu0 %1533 }
 0x25a   : > { %v1667_v59 = vsel %vm1661_vm10, %v16465_v62, %v1534_v24 }
 0x25b   : > { %1569 = vrot.lane.b32.xlu1 %v16692_v10, %s15762_s16  ;;  %v1732_v7 = vsel %vm1726_vm11, %v1667_v59, %v1602_v22 }
 0x25c   : > { %v1801_v16 = vshrl.u32 %v1732_v7, 16 }
 0x25d   : > { %1643 = vrot.lane.b32.xlu0 %v16713_v34, %s15761_s27  ;;  %v1538_v39 = vpop.permute.xlu1 %1537 }
 0x25e   : > { %v1671_v27 = vsel %vm1661_vm10, %v16462_v40, %v1538_v39  ;;  %v1793_v40 = vrot.slane %v1791_v6, 7  ;;  %v1803_v39 = vrot.slane %v1801_v16, 7 }
 0x25f   : > { %v1606_v48 = vpop.permute.xlu0 %1605  ;;  %1573 = vrot.lane.b32.xlu1 %v16719_v42, %s15762_s16 }
 0x260   : > { %v1736_v11 = vsel %vm1726_vm11, %v1671_v27, %v1606_v48 }
 0x261   : > { %1637 = vrot.lane.b32.xlu0 %v16719_v42, %s15761_s27  ;;  %v1542_v50 = vpop.permute.xlu1 %1541  ;;  %v1811_v24 = vshrl.u32 %v1736_v11, 16 }
 0x263   : > { %v1532_v52 = vpop.permute.xlu0 %1531  ;;  %1641 = vrot.lane.b32.xlu1 %v16728_v13, %s15761_s27  ;;  %v1813_v56 = vrot.slane %v1811_v24, 7 }
 0x264   : > { %v1665_v63 = vsel %vm1661_vm10, %v1420_v37, %v1532_v52 }
 0x265   : > { %1579 = vrot.lane.b32.xlu0 %v16713_v34, %s15762_s16  ;;  %v1610_v51 = vpop.permute.xlu1 %1609 }
 0x267   : > { %v1536_v58 = vpop.permute.xlu0 %1535 }
 0x268   : > { %v1669_v62 = vsel %vm1661_vm10, %v16497_v17, %v1536_v58 }
 0x269   : > { %v1600_v4 = vpop.permute.xlu1 %1599 }
 0x26a   : > { %v1730_v57 = vsel %vm1726_vm11, %v1665_v63, %v1600_v4 }
 0x26b   : > { %v1794_v8 = vshrl.u32 %v1730_v57, 16  ;;  %v1540_v9 = vpop.permute.xlu0 %1539  ;;  %v1797_v28 = vshll.u32 %v1730_v57, 16 }
 0x26c   : > { %v1673_v3 = vsel %vm1661_vm10, %v16509_v23, %v1540_v9  ;;  %v1675_v23 = vsel %vm1661_vm10, %v16475_v2, %v1542_v50 }
 0x26d   : > { %v1796_v14 = vrot.slane %v1794_v8, 7  ;;  %v1604_v15 = vpop.permute.xlu1 %1603  ;;  %v1740_v31 = vsel %vm1726_vm11, %v1675_v23, %v1610_v51 }
 0x26e   : > { %v1734_v1 = vsel %vm1726_vm11, %v1669_v62, %v1604_v15 }
 0x26f   : > { %v1799_v20 = vor.u32 %v1797_v28, %v1796_v14  ;;  %v1804_v21 = vshrl.u32 %v1734_v1, 16  ;;  %v1608_v22 = vpop.permute.xlu0 %1607  ;;  %v1807_v32 = vshll.u32 %v1734_v1, 16 }
 0x270   : > { %v1738_v26 = vsel %vm1726_vm11, %v1673_v3, %v1608_v22 }
 0x271   : > { %v1806_v12 = vrot.slane %v1804_v21, 7  ;;  %v1814_v17 = vshrl.u32 %v1738_v26, 16  ;;  %v1544_v25 = vpop.permute.xlu1 %1543  ;;  %v1800_v38 = vsel %vm693_vm2, %v1793_v40, %v1799_v20  ;;  %v1817_v52 = vshll.u32 %v1738_v26, 16 }
 0x272   : > { %v1677_v43 = vsel %vm1661_vm10, %v16518_v29, %v1544_v25  ;;  %13842 = vmatprep.mubr.msk.bf16.mxu0 %vm1978_vm12, %v1800_v38  ;;  %v1821_v29 = vshrl.u32 %v1740_v31, 16 }
 0x273   : > { %v1809_v48 = vor.u32 %v1807_v32, %v1806_v12  ;;  %v1816_v49 = vrot.slane %v1814_v17, 7  ;;  %v1612_v35 = vpop.permute.xlu0 %1611 }
 0x274   : > { %v1742_v54 = vsel %vm1726_vm11, %v1677_v43, %v1612_v35  ;;  %v1823_v7 = vrot.slane %v1821_v29, 7 }
 0x275   : > { %v1819_v58 = vor.u32 %v1817_v52, %v1816_v49  ;;  %v1824_v44 = vshrl.u32 %v1742_v54, 16  ;;  %v1548_v59 = vpop.permute.xlu1 %1547  ;;  %v1810_v37 = vsel %vm693_vm2, %v1803_v39, %v1809_v48  ;;  %v1827_v4 = vshll.u32 %v1742_v54, 16  ;;  %v15322_v48 = vld [vmem:[#allocation2 + $0x188] sm:$0xff] }
 0x276   : > { %13843 = vmatmul.mubr.msk.bf16.vlgmr.msra.gmra.mrb[0].mxu0 %vm1978_vm12, %v1810_v37  ;;  %v1681_v51 = vsel %vm1661_vm10, %v16529_v36, %v1548_v59  ;;  %v14484_v54 = vunpack.i.h.bf16 %v16669_v60  ;;  %v887_v37 = vld [vmem:[#allocation2 + $0x180] sm:$0x80] }
 0x277   : > { %v1826_v63 = vrot.slane %v1824_v44, 7  ;;  %v1552_v2 = vpop.permute.xlu0 %1551  ;;  %v1820_v50 = vsel %vm693_vm2, %v1813_v56, %v1819_v58  ;;  %v15323_v56 = vld [vmem:[#allocation2 + $0x1a0] sm:$0xff] }
 0x278   : > { %13846 = vmatprep.mubr.msk.bf16.mxu0 %vm1978_vm12, %v1820_v50  ;;  %v1685_v9 = vsel %vm1661_vm10, %v16538_v41, %v1552_v2  ;;  %v1398_v60 = vsel %vm626_vm0, %v887_v37, %v14484_v54 }
 0x279   : > { %v1829_v27 = vor.u32 %v1827_v4, %v1826_v63  ;;  %v1616_v57 = vpop.permute.xlu1 %1615  ;;  %v889_v4 = vld [vmem:[#allocation2 + $0x198] sm:$0x80] }
 0x27a   : > { %v1746_v6 = vsel %vm1726_vm11, %v1681_v51, %v1616_v57 }
 0x27b   : > { %v1546_v8 = vpop.permute.xlu0 %1545  ;;  %v1834_v11 = vshrl.u32 %v1746_v6, 16  ;;  %v1830_v14 = vsel %vm693_vm2, %v1823_v7, %v1829_v27  ;;  %v1837_v3 = vshll.u32 %v1746_v6, 16 }
 0x27c   : > { %v1679_v36 = vsel %vm1661_vm10, %v16488_v33, %v1546_v8 }
 0x27d   : > { %v1620_v62 = vpop.permute.xlu1 %1619  ;;  %v1836_v1 = vrot.slane %v1834_v11, 7 }
 0x27e   : > { %v1750_v28 = vsel %vm1726_vm11, %v1685_v9, %v1620_v62  ;;  %13847 = vmatmul.mubr.msk.bf16.gmra.mrb[4].mxu0 %vm1978_vm12, %v1830_v14 }
 0x27f   : > { %v1844_v15 = vshrl.u32 %v1750_v28, 16  ;;  %v1550_v16 = vpop.permute.xlu0 %1549  ;;  %v1839_v12 = vor.u32 %v1837_v3, %v1836_v1  ;;  %v1847_v32 = vshll.u32 %v1750_v28, 16 }
 0x280   : > { %v1683_v41 = vsel %vm1661_vm10, %v16500_v18, %v1550_v16 }
 0x281   : > { %v1614_v40 = vpop.permute.xlu1 %1613  ;;  %v1846_v21 = vrot.slane %v1844_v15, 7 }
 0x282   : > { %v1744_v20 = vsel %vm1726_vm11, %v1679_v36, %v1614_v40 }
 0x283   : > { %v1831_v22 = vshrl.u32 %v1744_v20, 16  ;;  %v1618_v24 = vpop.permute.xlu0 %1617  ;;  %v1849_v39 = vor.u32 %v1847_v32, %v1846_v21 }
 0x284   : > { %v1748_v26 = vsel %vm1726_vm11, %v1683_v41, %v1618_v24 }
 0x285   : > { %v1833_v17 = vrot.slane %v1831_v22, 7  ;;  %v1841_v25 = vshrl.u32 %v1748_v26, 16  ;;  %v1122_v38 = vpop.permute.xlu1 %1121 }
 0x286   : > { %v1400_v49 = vsel %vm626_vm0, %v15322_v48, %v1122_v38 }
 0x287   : > { %v1843_v43 = vrot.slane %v1841_v25, 7  ;;  %v1126_v33 = vpop.permute.xlu0 %1125  ;;  %v1840_v23 = vsel %vm693_vm2, %v1833_v17, %v1839_v12 }
 0x288   : > { %13850 = vmatprep.mubr.msk.bf16.mxu0 %vm1978_vm12, %v1840_v23  ;;  %v1405_v58 = vsel %vm626_vm0, %v15323_v56, %v1126_v33  ;;  %v15324_v33 = vld [vmem:[#allocation2 + $0x1b8] sm:$0xff] }
 0x289   : > { %v1303_v18 = vpop.permute.xlu1 %1302  ;;  %v1850_v52 = vsel %vm693_vm2, %v1843_v43, %v1849_v39 }
 0x28a   : > { %v16787_v35 = vsel %vm1416_vm8, %v1400_v49, %v1303_v18  ;;  %13851 = vmatmul.mubr.msk.bf16.gmra.mrb[8].mxu0 %vm1978_vm12, %v1850_v52  ;;  %v15325_v52 = vld [vmem:[#allocation2 + $0x1d0] sm:$0xff] }
 0x28b   : > { %v1307_v31 = vpop.permute.xlu0 %1306  ;;  %1583 = vrot.lane.b32.xlu1 %v16787_v35, %s15762_s16  ;;  %1647 = vrot.lane.b32.xlu0 %v16787_v35, %s15761_s27 }
 0x28c   : > { %v16799_v59 = vsel %vm1416_vm8, %v1405_v58, %v1307_v31  ;;  %v891_v58 = vld [vmem:[#allocation2 + $0x1b0] sm:$0x80] }
 0x28d   : > { %v16796_v44 = vpop.permute.xlu1 %14486 }
 0x28e   : > { %v14488_v29 = vunpack.i.l.bf16 %v16796_v44  ;;  %v14489_v18 = vunpack.i.h.bf16 %v16796_v44 }
 0x28f   : > { %v1301_v63 = vpop.permute.xlu0 %1300  ;;  %1577 = vrot.lane.b32.xlu1 %v16728_v13, %s15762_s16  ;;  %1651 = vrot.lane.b32.xlu0 %v16799_v59, %s15761_s27 }
 0x290   : > { %v16808_v50 = vsel %vm1416_vm8, %v1398_v60, %v1301_v63  ;;  %v1403_v27 = vsel %vm626_vm0, %v889_v4, %v14488_v29  ;;  %v893_v63 = vld [vmem:[#allocation2 + $0x1c8] sm:$0x80]  ;;  %v1408_v44 = vsel %vm626_vm0, %v891_v58, %v14489_v18 }
 0x291   : > { %v1305_v2 = vpop.permute.xlu1 %1304 }
 0x292   : > { %v16816_v6 = vsel %vm1416_vm8, %v1403_v27, %v1305_v2 }
 0x293   : > { %v1556_v51 = vpop.permute.xlu0 %1555  ;;  %1645 = vrot.lane.b32.xlu0 %v16808_v50, %s15761_s27  ;;  %1581 = vrot.lane.b32.xlu1 %v16808_v50, %s15762_s16 }
 0x294   : > { %v1689_v7 = vsel %vm1661_vm10, %v16546_v46, %v1556_v51 }
 0x295   : > { %v1560_v57 = vpop.permute.xlu1 %1559 }
 0x296   : > { %v1693_v62 = vsel %vm1661_vm10, %v16564_v0, %v1560_v57 }
 0x297   : > { %v1624_v8 = vpop.permute.xlu0 %1623  ;;  %1587 = vrot.lane.b32.xlu0 %v16799_v59, %s15762_s16  ;;  %1649 = vrot.lane.b32.xlu1 %v16816_v6, %s15761_s27 }
 0x298   : > { %v1754_v9 = vsel %vm1726_vm11, %v1689_v7, %v1624_v8  ;;  %v15326_v8 = vld [vmem:[#allocation2 + $0xf8] sm:$0xff] }
 0x299   : > { %v1554_v11 = vpop.permute.xlu1 %1553  ;;  %v1854_v14 = vshrl.u32 %v1754_v9, 16  ;;  %v1857_v3 = vshll.u32 %v1754_v9, 16 }
 0x29a   : > { %v1687_v36 = vsel %vm1661_vm10, %v16574_v30, %v1554_v11 }
 0x29b   : > { %v1628_v28 = vpop.permute.xlu0 %1627  ;;  %v1856_v46 = vrot.slane %v1854_v14, 7 }
 0x29c   : > { %v1758_v15 = vsel %vm1726_vm11, %v1693_v62, %v1628_v28 }
 0x29d   : > { %v1864_v16 = vshrl.u32 %v1758_v15, 16  ;;  %v1558_v1 = vpop.permute.xlu1 %1557  ;;  %v1859_v26 = vor.u32 %v1857_v3, %v1856_v46  ;;  %v1867_v12 = vshll.u32 %v1758_v15, 16 }
 0x29e   : > { %v1691_v41 = vsel %vm1661_vm10, %v16579_v53, %v1558_v1 }
 0x29f   : > { %v1622_v40 = vpop.permute.xlu0 %1621  ;;  %v1866_v21 = vrot.slane %v1864_v16, 7 }
 0x2a0   : > { %v1752_v20 = vsel %vm1726_vm11, %v1687_v36, %v1622_v40  ;;  %v875_v40 = vld [vmem:[#allocation2 + $0xf0] sm:$0x80] }
 0x2a1   : > { %v1851_v22 = vshrl.u32 %v1752_v20, 16  ;;  %v1626_v0 = vpop.permute.xlu1 %1625  ;;  %v1869_v38 = vor.u32 %v1867_v12, %v1866_v21 }
 0x2a2   : > { %v1756_v24 = vsel %vm1726_vm11, %v1691_v41, %v1626_v0 }
 0x2a3   : > { %v1853_v32 = vrot.slane %v1851_v22, 7  ;;  %v1861_v17 = vshrl.u32 %v1756_v24, 16  ;;  %v1130_v25 = vpop.permute.xlu0 %1129 }
 0x2a4   : > { %v1410_v23 = vsel %vm626_vm0, %v15324_v33, %v1130_v25 }
 0x2a5   : > { %v1863_v39 = vrot.slane %v1861_v17, 7  ;;  %v1134_v30 = vpop.permute.xlu1 %1133  ;;  %v1860_v43 = vsel %vm693_vm2, %v1853_v32, %v1859_v26 }
 0x2a6   : > { %13854 = vmatprep.mubr.msk.bf16.mxu0 %vm1978_vm12, %v1860_v43  ;;  %v1415_v31 = vsel %vm626_vm0, %v15325_v52, %v1134_v30 }
 0x2a7   : > { %v1311_v53 = vpop.permute.xlu0 %1310  ;;  %v1870_v48 = vsel %vm693_vm2, %v1863_v39, %v1869_v38 }
 0x2a8   : > { %v1492_v49 = vsel %vm1416_vm8, %v1410_v23, %v1311_v53  ;;  %13855 = vmatmul.mubr.msk.bf16.gmra.mrb[12].mxu0 %vm1978_vm12, %v1870_v48 }
 0x2a9   : > { %1655 = vrot.lane.b32.xlu0 %v1492_v49, %s15761_s27  ;;  %1591 = vrot.lane.b32.xlu1 %v1492_v49, %s15762_s16  ;;  %v1315_v54 = vpop.permute.xlu1 %1314 }
 0x2aa   : > { %v1496_v56 = vsel %vm1416_vm8, %v1415_v31, %v1315_v54 }
 0x2ab   : > { %v14492_v37 = vpop.permute.xlu0 %14491 }
 0x2ac   : > { %v14493_v29 = vunpack.i.l.bf16 %v14492_v37  ;;  %v14494_v46 = vunpack.i.h.bf16 %v14492_v37 }
 0x2ad   : > { %1659 = vrot.lane.b32.xlu0 %v1496_v56, %s15761_s27  ;;  %1585 = vrot.lane.b32.xlu1 %v16816_v6, %s15762_s16  ;;  %v1309_v4 = vpop.permute.xlu1 %1308 }
 0x2ae   : > { %v1490_v60 = vsel %vm1416_vm8, %v1408_v44, %v1309_v4  ;;  %v1413_v27 = vsel %vm626_vm0, %v893_v63, %v14493_v29  ;;  %v1368_v22 = vsel %vm626_vm0, %v875_v40, %v14494_v46 }
 0x2af   : > { %v1313_v2 = vpop.permute.xlu0 %1312 }
 0x2b0   : > { %v1494_v57 = vsel %vm1416_vm8, %v1413_v27, %v1313_v2 }
 0x2b1   : > { %1653 = vrot.lane.b32.xlu0 %v1490_v60, %s15761_s27  ;;  %1589 = vrot.lane.b32.xlu1 %v1490_v60, %s15762_s16  ;;  %v1098_v51 = vpop.permute.xlu1 %1097 }
 0x2b2   : > { %v1370_v9 = vsel %vm626_vm0, %v15326_v8, %v1098_v51  ;;  %vm2255_vm0 = vcmask 523271  }
 0x2b3   : > { %v1279_v7 = vpop.permute.xlu0 %1278  ;;  %vm17029_vm1 = vmand %vm2255_vm0, %vm642_vm6 }
 0x2b4   : > { %v1460_v14 = vsel %vm1416_vm8, %v1370_v9, %v1279_v7  ;;  %v2307_v7 = vld [vmem:[#allocation3 + $0x28] sm:$0x1] }
 0x2b5   : > { %1657 = vrot.lane.b32.xlu1 %v1494_v57, %s15761_s27  ;;  %v1564_v11 = vpop.permute.xlu1 %1563  ;;  %v2310_v57 = vld [vmem:[#allocation3 + $0x40] sm:$0x1] }
 0x2b6   : > { %v1697_v15 = vsel %vm1661_vm10, %v1460_v14, %v1564_v11  ;;  %v2311_v8 = vsel %vm16931_vm15, 0, %v2310_v57  ;;  %v2308_v14 = vsel %vm16931_vm15, 0, %v2307_v7 }
 0x2b7   : > { %v1277_v62 = vpop.permute.xlu0 %1276  ;;  %2312 = vst [vmem:[#allocation3 + $0x40] sm:$0x1] %v2311_v8  ;;  %2309 = vst [vmem:[#allocation3 + $0x28] sm:$0x1] %v2308_v14 }
 0x2b8   : > { %v1458_v26 = vsel %vm1416_vm8, %v1368_v22, %v1277_v62  ;;  %vm18343_vm8 = vmand %vm5653_vm7, %vm693_vm2 }
 0x2b9   : > { %v1568_v28 = vpop.permute.xlu1 %1567 }
 0x2ba   : > { %v1701_v20 = vsel %vm1661_vm10, %v16651_v45, %v1568_v28 }
 0x2bb   : > { %v1632_v16 = vpop.permute.xlu0 %1631 }
 0x2bc   : > { %v1762_v1 = vsel %vm1726_vm11, %v1697_v15, %v1632_v16 }
 0x2bd   : > { %v1562_v36 = vpop.permute.xlu1 %1561  ;;  %v1874_v3 = vshrl.u32 %v1762_v1, 16  ;;  %v1877_v38 = vshll.u32 %v1762_v1, 16 }
 0x2be   : > { %v1695_v32 = vsel %vm1661_vm10, %v1458_v26, %v1562_v36  ;;  %v2316_v26 = vld [vmem:[#allocation3 + $0x70] sm:$0x1] }
 0x2bf   : > { %v1636_v21 = vpop.permute.xlu0 %1635  ;;  %v1876_v12 = vrot.slane %v1874_v3, 7 }
 0x2c0   : > { %v1766_v41 = vsel %vm1726_vm11, %v1701_v20, %v1636_v21 }
 0x2c1   : > { %v1884_v0 = vshrl.u32 %v1766_v41, 16  ;;  %v1566_v24 = vpop.permute.xlu1 %1565  ;;  %v1879_v23 = vor.u32 %v1877_v38, %v1876_v12  ;;  %v1887_v53 = vshll.u32 %v1766_v41, 16  ;;  %v2317_v12 = vsel %vm16931_vm15, 0, %v2316_v26 }
 0x2c2   : > { %v1699_v45 = vsel %vm1661_vm10, %v16672_v61, %v1566_v24  ;;  %2318 = vst [vmem:[#allocation3 + $0x70] sm:$0x1] %v2317_v12 }
 0x2c3   : > { %v1630_v17 = vpop.permute.xlu0 %1629  ;;  %v1886_v39 = vrot.slane %v1884_v0, 7 }
 0x2c4   : > { %v1760_v25 = vsel %vm1726_vm11, %v1695_v32, %v1630_v17  ;;  %v2322_v17 = vld [vmem:[#allocation3 + $0xa0] sm:$0x1] }
 0x2c5   : > { %v1871_v30 = vshrl.u32 %v1760_v25, 16  ;;  %v1634_v43 = vpop.permute.xlu1 %1633  ;;  %v1889_v52 = vor.u32 %v1887_v53, %v1886_v39  ;;  %v2319_v25 = vld [vmem:[#allocation3 + $0x88] sm:$0x1]  ;;  %v2323_v38 = vsel %vm16931_vm15, 0, %v2322_v17 }
 0x2c6   : > { %v1764_v33 = vsel %vm1726_vm11, %v1699_v45, %v1634_v43  ;;  %v2320_v39 = vsel %vm16931_vm15, 0, %v2319_v25  ;;  %2324 = vst [vmem:[#allocation3 + $0xa0] sm:$0x1] %v2323_v38  ;;  %v2334_v25 = vld [vmem:[#allocation3 + $0x130] sm:$0x1] }
 0x2c7   : > { %v1873_v48 = vrot.slane %v1871_v30, 7  ;;  %v1881_v49 = vshrl.u32 %v1764_v33, 16  ;;  %v1572_v18 = vpop.permute.xlu0 %1571  ;;  %2321 = vst [vmem:[#allocation3 + $0x88] sm:$0x1] %v2320_v39 }
 0x2c8   : > { %v1705_v58 = vsel %vm1661_vm10, %v16660_v55, %v1572_v18  ;;  %v16879_v55 = vld [vmem:[#allocation5] sm:$0xff] }
 0x2c9   : > { %v1883_v31 = vrot.slane %v1881_v49, 7  ;;  %v1576_v54 = vpop.permute.xlu1 %1575  ;;  %v1880_v56 = vsel %vm693_vm2, %v1873_v48, %v1879_v23  ;;  %2241 = vst.msk [vmem:[#allocation3] sm:$0xff] %vm2240_vm13, %v16879_v55  ;;  %2242 = vst.msk [vmem:[#allocation3 + $0x8] sm:$0xff] %vm2240_vm13, %v16879_v55 }
 0x2ca   : > { %13858 = vmatprep.mubr.msk.bf16.mxu0 %vm1978_vm12, %v1880_v56  ;;  %v1709_v44 = vsel %vm1661_vm10, %v16679_v47, %v1576_v54  ;;  %2243 = vst.msk [vmem:[#allocation3 + $0x10] sm:$0xff] %vm2240_vm13, %v16879_v55  ;;  %2244 = vst.msk [vmem:[#allocation3 + $0xf0] sm:$0xff] %vm2240_vm13, %v16879_v55 }
 0x2cb   : > { %v1640_v61 = vpop.permute.xlu0 %1639  ;;  %v1890_v37 = vsel %vm693_vm2, %v1883_v31, %v1889_v52  ;;  %2245 = vst.msk [vmem:[#allocation3 + $0xf8] sm:$0xff] %vm2240_vm13, %v16879_v55  ;;  %2246 = vst.msk [vmem:[#allocation3 + $0x100] sm:$0xff] %vm2240_vm13, %v16879_v55 }
 0x2cc   : > { %v1770_v29 = vsel %vm1726_vm11, %v1705_v58, %v1640_v61  ;;  %13859 = vmatmul.mubr.msk.bf16.gmra.mrb[16].mxu0 %vm1978_vm12, %v1890_v37  ;;  %2248 = vst.msk [vmem:[#allocation3 + $0xd8] sm:$0xff] %vm2240_vm13, %v16879_v55  ;;  %2249 = vst.msk [vmem:[#allocation3 + $0xe0] sm:$0xff] %vm2240_vm13, %v16879_v55  ;;  %v2328_v37 = vld [vmem:[#allocation3 + $0xd0] sm:$0x1] }
 0x2cd   : > { %v1570_v63 = vpop.permute.xlu1 %1569  ;;  %v1894_v4 = vshrl.u32 %v1770_v29, 16  ;;  %2250 = vst.msk [vmem:[#allocation3 + $0xe8] sm:$0xff] %vm2240_vm13, %v16879_v55  ;;  %2251 = vst.msk [vmem:[#allocation3 + $0x1c8] sm:$0xff] %vm2240_vm13, %v16879_v55  ;;  %v1897_v15 = vshll.u32 %v1770_v29, 16 }
 0x2ce   : > { %2252 = vst.msk [vmem:[#allocation3 + $0x1d0] sm:$0xff] %vm2240_vm13, %v16879_v55  ;;  %2253 = vst.msk [vmem:[#allocation3 + $0x1d8] sm:$0xff] %vm2240_vm13, %v16879_v55  ;;  %v1703_v11 = vsel %vm1661_vm10, %v16684_v5, %v1570_v63 }
 0x2cf   : > { %v1644_v60 = vpop.permute.xlu0 %1643  ;;  %4301 = vst.msk [vmem:[#allocation4] sm:$0xff] %vm2240_vm13, %v16879_v55  ;;  %4302 = vst.msk [vmem:[#allocation4 + $0x8] sm:$0xff] %vm2240_vm13, %v16879_v55  ;;  %v1896_v9 = vrot.slane %v1894_v4, 7 }
 0x2d0   : > { %v1774_v2 = vsel %vm1726_vm11, %v1709_v44, %v1644_v60  ;;  %4303 = vst.msk [vmem:[#allocation4 + $0x10] sm:$0xff] %vm2240_vm13, %v16879_v55  ;;  %4304 = vst.msk [vmem:[#allocation4 + $0x90] sm:$0xff] %vm2240_vm13, %v16879_v55  ;;  %v2325_v44 = vld [vmem:[#allocation3 + $0xb8] sm:$0x1] }
 0x2d1   : > { %v1904_v27 = vshrl.u32 %v1774_v2, 16  ;;  %v1574_v51 = vpop.permute.xlu1 %1573  ;;  %4305 = vst.msk [vmem:[#allocation4 + $0x98] sm:$0xff] %vm2240_vm13, %v16879_v55  ;;  %4306 = vst.msk [vmem:[#allocation4 + $0xa0] sm:$0xff] %vm2240_vm13, %v16879_v55  ;;  %v1899_v20 = vor.u32 %v1897_v15, %v1896_v9  ;;  %v1907_v3 = vshll.u32 %v1774_v2, 16  ;;  %v2326_v4 = vsel %vm16931_vm15, 0, %v2325_v44  ;;  %v14521_v44 = vld [vmem:[%s19481_s3 + $0x98] sm:$0xff]  }
 0x2d2   : > { %4308 = vst.msk [vmem:[#allocation4 + $0x78] sm:$0xff] %vm2240_vm13, %v16879_v55  ;;  %4309 = vst.msk [vmem:[#allocation4 + $0x80] sm:$0xff] %vm2240_vm13, %v16879_v55  ;;  %v1707_v1 = vsel %vm1661_vm10, %v16692_v10, %v1574_v51  ;;  %v2313_v10 = vld [vmem:[#allocation3 + $0x58] sm:$0x1] }
 0x2d3   : > { %4310 = vst.msk [vmem:[#allocation4 + $0x88] sm:$0xff] %vm2240_vm13, %v16879_v55  ;;  %4311 = vst.msk [vmem:[#allocation4 + $0x108] sm:$0xff] %vm2240_vm13, %v16879_v55  ;;  %v1638_v62 = vpop.permute.xlu0 %1637  ;;  %v1906_v16 = vrot.slane %v1904_v27, 7  ;;  %v2314_v32 = vsel %vm16931_vm15, 0, %v2313_v10 }
 0x2d4   : > { %4312 = vst.msk [vmem:[#allocation4 + $0x110] sm:$0xff] %vm2240_vm13, %v16879_v55  ;;  %4313 = vst.msk [vmem:[#allocation4 + $0x118] sm:$0xff] %vm2240_vm13, %v16879_v55  ;;  %v1768_v28 = vsel %vm1726_vm11, %v1703_v11, %v1638_v62 }
 0x2d5   : > { %v1891_v46 = vshrl.u32 %v1768_v28, 16  ;;  %v1642_v36 = vpop.permute.xlu1 %1641  ;;  %v1909_v41 = vor.u32 %v1907_v3, %v1906_v16  ;;  %2315 = vst [vmem:[#allocation3 + $0x58] sm:$0x1] %v2314_v32  ;;  %2327 = vst [vmem:[#allocation3 + $0xb8] sm:$0x1] %v2326_v4 }
 0x2d6   : > { %v1772_v40 = vsel %vm1726_vm11, %v1707_v1, %v1642_v36  ;;  %v2257_v4 = vld [vmem:[#allocation3 + $0x18] sm:$0x80] }
 0x2d7   : > { %v1893_v5 = vrot.slane %v1891_v46, 7  ;;  %v1901_v21 = vshrl.u32 %v1772_v40, 16  ;;  %v1580_v45 = vpop.permute.xlu0 %1579 }
 0x2d8   : > { %v1713_v30 = vsel %vm1661_vm10, %v16700_v19, %v1580_v45 }
 0x2d9   : > { %v1903_v22 = vrot.slane %v1901_v21, 7  ;;  %v1900_v0 = vsel %vm693_vm2, %v1893_v5, %v1899_v20 }
 0x2da   : > { %13862 = vmatprep.mubr.msk.bf16.mxu0 %vm1978_vm12, %v1900_v0 }
 0x2db   : > { %v1910_v24 = vsel %vm693_vm2, %v1903_v22, %v1909_v41 }
 0x2dc   : > { %13863 = vmatmul.mubr.msk.bf16.gmra.mrb[20].mxu0 %vm1978_vm12, %v1910_v24 }
 0x2fd   : > { %v1584_v43 = vpop.permute.xlu1 %1583  ;;  %v1648_v33 = vpop.permute.xlu0 %1647 }
 0x2fe   : > { %v1778_v23 = vsel %vm1726_vm11, %v1713_v30, %v1648_v33  ;;  %v1717_v53 = vsel %vm1661_vm10, %v16713_v34, %v1584_v43  ;;  %v2329_v34 = vsel %vm16931_vm15, 0, %v2328_v37  ;;  %v14514_v43 = vld [vmem:[%s19481_s3 + $0x60] sm:$0xff]   ;;  %v14520_v37 = vld [vmem:[%s19481_s3 + $0x90] sm:$0xff]  }
 0x2ff   : > { %v1914_v48 = vshrl.u32 %v1778_v23, 16  ;;  %v1917_v29 = vshll.u32 %v1778_v23, 16  ;;  %2330 = vst [vmem:[#allocation3 + $0xd0] sm:$0x1] %v2329_v34  ;;  %3434 = vmatpush1.bf16.msra.mxu0 %v14514_v43  ;;  %v2331_v23 = vld [vmem:[#allocation3 + $0x118] sm:$0x1] }
 0x300   : > { %3435 = vmatprep.subr.bf16.mxu0 %v16879_v55 }
 0x301   : > { %v1578_v49 = vpop.permute.xlu1 %1577  ;;  %v1652_v18 = vpop.permute.xlu0 %1651  ;;  %v1916_v31 = vrot.slane %v1914_v48, 7 }
 0x302   : > { %v1782_v52 = vsel %vm1726_vm11, %v1717_v53, %v1652_v18  ;;  %v1711_v54 = vsel %vm1661_vm10, %v16719_v42, %v1578_v49  ;;  %v2332_v53 = vsel %vm16931_vm15, 0, %v2331_v23  ;;  %v14515_v49 = vld [vmem:[%s19481_s3 + $0x68] sm:$0xff]   ;;  %v14516_v18 = vld [vmem:[%s19481_s3 + $0x70] sm:$0xff]  }
 0x303   : > { %v1924_v56 = vshrl.u32 %v1782_v52, 16  ;;  %v1919_v60 = vor.u32 %v1917_v29, %v1916_v31  ;;  %v1927_v7 = vshll.u32 %v1782_v52, 16  ;;  %2333 = vst [vmem:[#allocation3 + $0x118] sm:$0x1] %v2332_v53  ;;  %3436 = vmatpush1.bf16.msra.mxu0 %v14515_v49  ;;  %v14517_v52 = vld [vmem:[%s19481_s3 + $0x78] sm:$0xff]  }
 0x304   : > { %3437 = vmatprep.subr.bf16.mxu0 %v16879_v55  ;;  %v2340_v31 = vld [vmem:[#allocation3 + $0x160] sm:$0x1] }
 0x305   : > { %v1582_v58 = vpop.permute.xlu1 %1581  ;;  %v1646_v61 = vpop.permute.xlu0 %1645  ;;  %v1926_v2 = vrot.slane %v1924_v56, 7  ;;  %v2341_v56 = vsel %vm16931_vm15, 0, %v2340_v31 }
 0x306   : > { %v1776_v19 = vsel %vm1726_vm11, %v1711_v54, %v1646_v61  ;;  %v1715_v42 = vsel %vm1661_vm10, %v16728_v13, %v1582_v58  ;;  %v14518_v54 = vld [vmem:[%s19481_s3 + $0x80] sm:$0xff]   ;;  %v2337_v58 = vld [vmem:[#allocation3 + $0x148] sm:$0x1]  ;;  %2342 = vst [vmem:[#allocation3 + $0x160] sm:$0x1] %v2341_v56 }
 0x307   : > { %v1911_v63 = vshrl.u32 %v1776_v19, 16  ;;  %v1929_v11 = vor.u32 %v1927_v7, %v1926_v2  ;;  %3438 = vmatpush1.bf16.msra.mxu0 %v14516_v18  ;;  %v2338_v61 = vsel %vm16931_vm15, 0, %v2337_v58  ;;  %v14519_v19 = vld [vmem:[%s19481_s3 + $0x88] sm:$0xff]  }
 0x308   : > { %3439 = vmatprep.subr.bf16.mxu0 %v16879_v55  ;;  %2339 = vst [vmem:[#allocation3 + $0x148] sm:$0x1] %v2338_v61 }
 0x309   : > { %v1913_v27 = vrot.slane %v1911_v63, 7  ;;  %v1650_v51 = vpop.permute.xlu1 %1649  ;;  %v1588_v28 = vpop.permute.xlu0 %1587  ;;  %v17033_v63 = vld [vmem:[#allocation11] ss:$0 sm:$0xff] }
 0x30a   : > { %v1780_v57 = vsel %vm1726_vm11, %v1715_v42, %v1650_v51  ;;  %v1721_v13 = vsel %vm1661_vm10, %v16787_v35, %v1588_v28  ;;  %v2258_v42 = vsel %vm17029_vm1, 0, %v2257_v4  ;;  %v14523_v28 = vld [vmem:[%s19481_s3 + $0xa8] sm:$0xff]  }
 0x30b   : > { %v1921_v8 = vshrl.u32 %v1780_v57, 16  ;;  %v1920_v9 = vsel %vm693_vm2, %v1913_v27, %v1919_v60  ;;  %3440 = vmatpush1.bf16.msra.mxu0 %v14517_v52  ;;  %v14522_v57 = vld [vmem:[%s19481_s3 + $0xa0] sm:$0xff]   ;;  %2259 = vst [vmem:[#allocation3 + $0x18] sm:$0x80] %v2258_v42 }
 0x30c   : > { %13866 = vmatprep.mubr.msk.bf16.mxu0 %vm1978_vm12, %v1920_v9  ;;  %3441 = vmatprep.subr.bf16.mxu0 %v16879_v55 }
 0x30d   : > { %v1923_v62 = vrot.slane %v1921_v8, 7 }
 0x30f   : > { %v1930_v14 = vsel %vm693_vm2, %v1923_v62, %v1929_v11  ;;  %3442 = vmatpush1.bf16.msra.mxu0 %v14518_v54  ;;  %v2260_v11 = vld [vmem:[#allocation3 + $0x30] sm:$0x80] }
 0x310   : > { %13867 = vmatmul.mubr.msk.bf16.gmra.mrb[24].mxu0 %vm1978_vm12, %v1930_v14  ;;  %3443 = vmatprep.subr.bf16.mxu0 %v16879_v55 }
 0x313   : > { %3444 = vmatpush1.bf16.msra.mxu0 %v14519_v19 }
 0x314   : > { %3445 = vmatprep.subr.bf16.mxu0 %v16879_v55 }
 0x317   : > { %3446 = vmatpush1.bf16.msra.mxu0 %v14520_v37 }
 0x318   : > { %3447 = vmatprep.subr.bf16.mxu0 %v16879_v55 }
 0x31b   : > { %v1592_v15 = vpop.permute.xlu1 %1591  ;;  %v1656_v16 = vpop.permute.xlu0 %1655  ;;  %3448 = vmatpush1.bf16.msra.mxu0 %v14521_v44 }
 0x31c   : > { %v1786_v1 = vsel %vm1726_vm11, %v1721_v13, %v1656_v16  ;;  %v1725_v46 = vsel %vm1661_vm10, %v16799_v59, %v1592_v15  ;;  %3449 = vmatprep.subr.bf16.mxu0 %v16879_v55  ;;  %v2261_v13 = vsel %vm17029_vm1, 0, %v2260_v11 }
 0x31d   : > { %v1934_v36 = vshrl.u32 %v1786_v1, 16  ;;  %v1937_v24 = vshll.u32 %v1786_v1, 16  ;;  %2262 = vst [vmem:[#allocation3 + $0x30] sm:$0x80] %v2261_v13 }
 0x31f   : > { %v1586_v40 = vpop.permute.xlu1 %1585  ;;  %v1660_v20 = vpop.permute.xlu0 %1659  ;;  %v1936_v5 = vrot.slane %v1934_v36, 7  ;;  %3450 = vmatpush1.bf16.msra.mxu0 %v14522_v57 }
 0x320   : > { %v1790_v3 = vsel %vm1726_vm11, %v1725_v46, %v1660_v20  ;;  %v1719_v21 = vsel %vm1661_vm10, %v16808_v50, %v1586_v40  ;;  %v2335_v50 = vsel %vm16931_vm15, 0, %v2334_v25  ;;  %3451 = vmatprep.subr.bf16.mxu0 %v16879_v55  ;;  %v2263_v40 = vld [vmem:[#allocation3 + $0x48] sm:$0x80]  ;;  %v14525_v25 = vld [vmem:[%s19481_s3 + $0xb8] sm:$0xff]  }
 0x321   : > { %v1944_v41 = vshrl.u32 %v1790_v3, 16  ;;  %v1939_v10 = vor.u32 %v1937_v24, %v1936_v5  ;;  %v1947_v39 = vshll.u32 %v1790_v3, 16  ;;  %2336 = vst [vmem:[#allocation3 + $0x130] sm:$0x1] %v2335_v50  ;;  %v2264_v5 = vsel %vm17029_vm1, 0, %v2263_v40 }
 0x322   : > { %2265 = vst [vmem:[#allocation3 + $0x48] sm:$0x80] %v2264_v5 }
 0x323   : > { %v1590_v22 = vpop.permute.xlu1 %1589  ;;  %v1654_v0 = vpop.permute.xlu0 %1653  ;;  %v1946_v12 = vrot.slane %v1944_v41, 7  ;;  %3452 = vmatpush1.bf16.msra.mxu0 %v14523_v28 }
 0x324   : > { %v1784_v35 = vsel %vm1726_vm11, %v1719_v21, %v1654_v0  ;;  %v1723_v59 = vsel %vm1661_vm10, %v16816_v6, %v1590_v22  ;;  %3453 = vmatprep.subr.bf16.mxu0 %v16879_v55 }
 0x325   : > { %v1931_v26 = vshrl.u32 %v1784_v35, 16  ;;  %v1949_v6 = vor.u32 %v1947_v39, %v1946_v12  ;;  %v14524_v35 = vld [vmem:[%s19481_s3 + $0xb0] sm:$0xff]   ;;  %v2412_v12 = vld [vmem:[#allocation3 + $0x28] sm:$0x1] }
 0x327   : > { %v1933_v32 = vrot.slane %v1931_v26, 7  ;;  %v1658_v17 = vpop.permute.xlu1 %1657  ;;  %3454 = vmatpush1.bf16.msra.mxu0 %v14524_v35 }
 0x328   : > { %v1788_v38 = vsel %vm1726_vm11, %v1723_v59, %v1658_v17  ;;  %3455 = vmatprep.subr.bf16.mxu0 %v16879_v55 }
 0x329   : > { %v1941_v45 = vshrl.u32 %v1788_v38, 16  ;;  %v1940_v30 = vsel %vm693_vm2, %v1933_v32, %v1939_v10  ;;  %v2266_v38 = vld [vmem:[#allocation3 + $0x60] sm:$0x80] }
 0x32a   : > { %13870 = vmatprep.mubr.msk.bf16.mxu0 %vm1978_vm12, %v1940_v30  ;;  %v2267_v30 = vsel %vm17029_vm1, 0, %v2266_v38 }
 0x32b   : > { %v1943_v33 = vrot.slane %v1941_v45, 7  ;;  %v2695_v45 = vrot.slane %v2412_v12, 1  ;;  %3456 = vmatpush1.bf16.msra.mxu0 %v14525_v25  ;;  %2268 = vst [vmem:[#allocation3 + $0x60] sm:$0x80] %v2267_v30  ;;  %v2343_v12 = vld [vmem:[#allocation3 + $0x178] sm:$0x1] }
 0x32c   : > { %3672 = vmatprep.subr.bf16.mxu0 %v16879_v55  ;;  %v2346_v25 = vld [vmem:[#allocation3 + $0x190] sm:$0x1] }
 0x32d   : > { %v1950_v48 = vsel %vm693_vm2, %v1943_v33, %v1949_v6 }
 0x32e   : > { %13871 = vmatmul.mubr.msk.bf16.gmra.mrb[28].mxu0 %vm1978_vm12, %v1950_v48 }
 0x349   : > { %v13844_v34 = vpop.f32.mrb[0].mxu0 }
 0x34a   : > { %v2074_v60 = vadd.f32 %v13844_v34, %v17033_v63  ;;  %v2065_v2 = vpop.f32.mrb[1].mxu0  ;;  %v2269_v34 = vld [vmem:[#allocation3 + $0x78] sm:$0x80] }
 0x34b   : > { %v2066_v27 = vadd.f32 %v17033_v63, %v2065_v2  ;;  %v13845_v51 = vpop.f32.mrb[2].mxu0 }
 0x34c   : > { %v2077_v7 = vadd.f32 %v13845_v51, %v17033_v63  ;;  %v2068_v8 = vpop.f32.mrb[3].mxu0  ;;  %v2194_v62 = vmax.f32 %v2074_v60, 0.0 }
 0x34d   : > { %v2069_v9 = vadd.f32 %v17033_v63, %v2068_v8  ;;  %v2192_v15 = vmax.f32 %v2066_v27, 0.0 }
 0x34e   : > { %v2195_v14 = vmax.f32 %v2077_v7, 0.0  ;;  %v2270_v7 = vsel %vm17029_vm1, 0, %v2269_v34  ;;  %v2278_v34 = vld [vmem:[#allocation3 + $0xc0] sm:$0x80] }
 0x34f   : > { %v2193_v16 = vmax.f32 %v2069_v9, 0.0  ;;  %2271 = vst [vmem:[#allocation3 + $0x78] sm:$0x80] %v2270_v7  ;;  %v2349_v7 = vld [vmem:[#allocation3 + $0x1a8] sm:$0x1] }
 0x350   : > { %v2225_v1 = vpack.c.bf16 %v2195_v14, %v2194_v62 }
 0x351   : > { %v2224_v46 = vpack.c.bf16 %v2193_v16, %v2192_v15  ;;  %v13848_v36 = vpop.f32.mrb[4].mxu0 }
 0x352   : > { %2356 = vst.msk [vmem:[#allocation3 + $0x38] sm:$0xff] %vm2240_vm13, %v2225_v1  ;;  %v2090_v20 = vadd.f32 %v13848_v36, %v17033_v63  ;;  %v2081_v3 = vpop.f32.mrb[5].mxu0  ;;  %v2272_v1 = vld [vmem:[#allocation3 + $0x90] sm:$0x80] }
 0x353   : > { %2355 = vst.msk [vmem:[#allocation3 + $0x20] sm:$0xff] %vm2240_vm13, %v2224_v46  ;;  %v2082_v21 = vadd.f32 %v17033_v63, %v2081_v3  ;;  %v13849_v41 = vpop.f32.mrb[6].mxu0  ;;  %v2273_v5 = vsel %vm17029_vm1, 0, %v2272_v1 }
 0x354   : > { %v2093_v22 = vadd.f32 %v13849_v41, %v17033_v63  ;;  %v2084_v0 = vpop.f32.mrb[7].mxu0  ;;  %v2198_v26 = vmax.f32 %v2090_v20, 0.0  ;;  %2274 = vst [vmem:[#allocation3 + $0x90] sm:$0x80] %v2273_v5  ;;  %v14530_v5 = vld [vmem:[%s19481_s3 + $0xe0] sm:$0xff]  }
 0x355   : > { %v2085_v24 = vadd.f32 %v17033_v63, %v2084_v0  ;;  %v2196_v59 = vmax.f32 %v2082_v21, 0.0 }
 0x356   : > { %v2199_v10 = vmax.f32 %v2093_v22, 0.0 }
 0x357   : > { %v2197_v32 = vmax.f32 %v2085_v24, 0.0 }
 0x358   : > { %v2227_v17 = vpack.c.bf16 %v2199_v10, %v2198_v26 }
 0x359   : > { %v2226_v50 = vpack.c.bf16 %v2197_v32, %v2196_v59  ;;  %v17071_v39 = vld [vmem:[#allocation3 + $0x38] sm:$0xff]  ;;  %v2344_v59 = vsel %vm16931_vm15, 0, %v2343_v12 }
 0x35a   : > { %2358 = vst.msk [vmem:[#allocation3 + $0x68] sm:$0xff] %vm2240_vm13, %v2227_v17  ;;  %v17076_v43 = vld [vmem:[#allocation3 + $0x20] sm:$0xff]  ;;  %v2446_v6 = vshll.u32 %v17071_v39, 16  ;;  %v2449_v44 = vshrl.u32 %v17071_v39, 16  ;;  %2345 = vst [vmem:[#allocation3 + $0x178] sm:$0x1] %v2344_v59 }
 0x35b   : > { %2357 = vst.msk [vmem:[#allocation3 + $0x50] sm:$0xff] %vm2240_vm13, %v2226_v50  ;;  %v2439_v33 = vshll.u32 %v17076_v43, 16  ;;  %v2694_v23 = vrot.slane %v17076_v43, 1  ;;  %v2442_v49 = vshrl.u32 %v17076_v43, 16  ;;  %v2281_v59 = vld [vmem:[#allocation3 + $0x108] sm:$0x80] }
 0x35c   : > { %v2448_v18 = vrot.slane %v2446_v6, 1 }
 0x35d   : > { %v13852_v53 = vpop.f32.mrb[8].mxu0  ;;  %v2441_v48 = vrot.slane %v2439_v33, 1  ;;  %v2696_v52 = vsel %vm1175_vm4, %v2694_v23, %v2695_v45  ;;  %v2884_v56 = vshrl.u32 %v2694_v23, 16  ;;  %v2347_v45 = vsel %vm16931_vm15, 0, %v2346_v25 }
 0x35e   : > { %v2106_v31 = vadd.f32 %v13852_v53, %v17033_v63  ;;  %v2097_v54 = vpop.f32.mrb[9].mxu0  ;;  %v2888_v58 = vshrl.u32 %v2696_v52, 16  ;;  %v2891_v42 = vshll.u32 %v2696_v52, 16  ;;  %v2451_v51 = vor.u32 %v2449_v44, %v2448_v18  ;;  %2348 = vst [vmem:[#allocation3 + $0x190] sm:$0x1] %v2347_v45 }
 0x35f   : > { %v2098_v61 = vadd.f32 %v17033_v63, %v2097_v54  ;;  %v13853_v19 = vpop.f32.mrb[10].mxu0  ;;  %2575 = vrot.lane.b32.xlu1 %v2441_v48, %s15763_s25  ;;  %v2444_v37 = vor.u32 %v2442_v49, %v2441_v48  ;;  %v2886_v11 = vrot.slane %v2884_v56, 7  ;;  %v2282_v25 = vsel %vm17029_vm1, 0, %v2281_v59 }
 0x360   : > { %v2109_v4 = vadd.f32 %v13853_v19, %v17033_v63  ;;  %v2100_v60 = vpop.f32.mrb[11].mxu0  ;;  %v2890_v2 = vrot.slane %v2888_v58, 7  ;;  %v2202_v8 = vmax.f32 %v2106_v31, 0.0  ;;  %v2275_v31 = vld [vmem:[#allocation3 + $0xa8] sm:$0x80] }
 0x361   : > { %v2101_v27 = vadd.f32 %v17033_v63, %v2100_v60  ;;  %2577 = vrot.lane.b32.xlu0 %v2444_v37, %s15763_s25  ;;  %v17092_v57 = vld [vmem:[#allocation3 + $0x68] sm:$0xff]  ;;  %v2200_v28 = vmax.f32 %v2098_v61, 0.0  ;;  %v2276_v56 = vsel %vm17029_vm1, 0, %v2275_v31  ;;  %v2279_v60 = vsel %vm17029_vm1, 0, %v2278_v34  ;;  %2283 = vst [vmem:[#allocation3 + $0x108] sm:$0x80] %v2282_v25 }
 0x362   : > { %v2203_v9 = vmax.f32 %v2109_v4, 0.0  ;;  %v2893_v62 = vor.u32 %v2891_v42, %v2890_v2  ;;  %v17096_v14 = vld [vmem:[#allocation3 + $0x50] sm:$0xff]  ;;  %v2460_v16 = vshll.u32 %v17092_v57, 16  ;;  %v2463_v22 = vshrl.u32 %v17092_v57, 16  ;;  %2277 = vst [vmem:[#allocation3 + $0xa8] sm:$0x80] %v2276_v56 }
 0x363   : > { %v2201_v13 = vmax.f32 %v2101_v27, 0.0  ;;  %2579 = vrot.lane.b32.xlu1 %v2448_v18, %s15763_s25  ;;  %v2453_v15 = vshll.u32 %v17096_v14, 16  ;;  %v2456_v3 = vshrl.u32 %v17096_v14, 16  ;;  %2280 = vst [vmem:[#allocation3 + $0xc0] sm:$0x80] %v2279_v60  ;;  %v14526_v2 = vld [vmem:[%s19481_s3 + $0xc0] sm:$0xff]  }
 0x364   : > { %v2229_v46 = vpack.c.bf16 %v2203_v9, %v2202_v8  ;;  %v17102_v36 = vsel %vm693_vm2, %v2886_v11, %v2893_v62  ;;  %v2462_v41 = vrot.slane %v2460_v16, 1  ;;  %13982 = vmatpush1.bf16.msra.mxu1 %v14526_v2  ;;  %v2352_v27 = vld [vmem:[#allocation3 + $0x1c0] sm:$0x1]  ;;  %v14527_v11 = vld [vmem:[%s19481_s3 + $0xc8] sm:$0xff]   ;;  %v2350_v62 = vsel %vm16931_vm15, 0, %v2349_v7  ;;  %v14528_v16 = vld [vmem:[%s19481_s3 + $0xd0] sm:$0xff]  }
 0x365   : > { %v2228_v40 = vpack.c.bf16 %v2201_v13, %v2200_v28  ;;  %2581 = vrot.lane.b32.xlu0 %v2451_v51, %s15763_s25  ;;  %12929 = vmatprep.mubr.msk.bf16.mxu0 %vm2240_vm13, %v17102_v36  ;;  %v2455_v20 = vrot.slane %v2453_v15, 1  ;;  %2351 = vst [vmem:[#allocation3 + $0x1a8] sm:$0x1] %v2350_v62  ;;  %v2353_v28 = vsel %vm16931_vm15, 0, %v2352_v27  ;;  %v14536_v31 = vld [vmem:[%s19481_s3 + $0x108] sm:$0xff]   ;;  %v14538_v27 = vld [vmem:[%s19481_s3 + $0x110] sm:$0xff]  }
 0x366   : > { %2360 = vst.msk [vmem:[#allocation3 + $0x98] sm:$0xff] %vm2240_vm13, %v2229_v46  ;;  %v2465_v0 = vor.u32 %v2463_v22, %v2462_v41  ;;  %13971 = vmatprep.subr.bf16.mxu1 %v16879_v55  ;;  %2354 = vst [vmem:[#allocation3 + $0x1c0] sm:$0x1] %v2353_v28  ;;  %v14532_v22 = vld [vmem:[%s19481_s3 + $0xf0] sm:$0xff]  }
 0x367   : > { %2359 = vst.msk [vmem:[#allocation3 + $0x80] sm:$0xff] %vm2240_vm13, %v2228_v40  ;;  %2583 = vrot.lane.b32.xlu1 %v2455_v20, %s15763_s25  ;;  %v2458_v21 = vor.u32 %v2456_v3, %v2455_v20  ;;  %v14529_v20 = vld [vmem:[%s19481_s3 + $0xd8] sm:$0xff]  }
 0x368   : > { %13983 = vmatpush1.bf16.msra.mxu1 %v14527_v11 }
 0x369   : > { %2585 = vrot.lane.b32.xlu0 %v2458_v21, %s15763_s25  ;;  %13972 = vmatprep.subr.bf16.mxu1 %v16879_v55  ;;  %v14531_v21 = vld [vmem:[%s19481_s3 + $0xe8] sm:$0xff]  }
 0x36b   : > { %2587 = vrot.lane.b32.xlu1 %v2462_v41, %s15763_s25 }
 0x36c   : > { %13984 = vmatpush1.bf16.msra.mxu1 %v14528_v16 }
 0x36d   : > { %2589 = vrot.lane.b32.xlu0 %v2465_v0, %s15763_s25  ;;  %v17117_v35 = vld [vmem:[#allocation3 + $0x98] sm:$0xff]  ;;  %13973 = vmatprep.subr.bf16.mxu1 %v16879_v55 }
 0x36e   : > { %v17119_v24 = vld [vmem:[#allocation3 + $0x80] sm:$0xff]  ;;  %v2474_v10 = vshll.u32 %v17117_v35, 16  ;;  %v2477_v30 = vshrl.u32 %v17117_v35, 16 }
 0x36f   : > { %v2467_v26 = vshll.u32 %v17119_v24, 16  ;;  %v2470_v17 = vshrl.u32 %v17119_v24, 16 }
 0x370   : > { %v2476_v50 = vrot.slane %v2474_v10, 1  ;;  %13985 = vmatpush1.bf16.msra.mxu1 %v14529_v20 }
 0x371   : > { %v2469_v32 = vrot.slane %v2467_v26, 1  ;;  %13974 = vmatprep.subr.bf16.mxu1 %v16879_v55 }
 0x372   : > { %v2479_v6 = vor.u32 %v2477_v30, %v2476_v50 }
 0x373   : > { %2591 = vrot.lane.b32.xlu1 %v2469_v32, %s15763_s25  ;;  %v2472_v38 = vor.u32 %v2470_v17, %v2469_v32 }
 0x374   : > { %13986 = vmatpush1.bf16.msra.mxu1 %v14530_v5 }
 0x375   : > { %2593 = vrot.lane.b32.xlu0 %v2472_v38, %s15763_s25  ;;  %13975 = vmatprep.subr.bf16.mxu1 %v16879_v55 }
 0x377   : > { %2595 = vrot.lane.b32.xlu1 %v2476_v50, %s15763_s25  ;;  %v14533_v50 = vld [vmem:[%s19481_s3 + $0xf8] sm:$0xff]  }
 0x378   : > { %13987 = vmatpush1.bf16.msra.mxu1 %v14531_v21 }
 0x379   : > { %2597 = vrot.lane.b32.xlu0 %v2479_v6, %s15763_s25  ;;  %13976 = vmatprep.subr.bf16.mxu1 %v16879_v55 }
 0x37b   : > { %v13856_v33 = vpop.f32.mrb[12].mxu0 }
 0x37c   : > { %v2122_v23 = vadd.f32 %v13856_v33, %v17033_v63  ;;  %v2113_v53 = vpop.f32.mrb[13].mxu0  ;;  %13988 = vmatpush1.bf16.msra.mxu1 %v14532_v22 }
 0x37d   : > { %v2114_v48 = vadd.f32 %v17033_v63, %v2113_v53  ;;  %v13857_v49 = vpop.f32.mrb[14].mxu0  ;;  %13977 = vmatprep.subr.bf16.mxu1 %v16879_v55  ;;  %v2284_v53 = vld [vmem:[#allocation3 + $0x120] sm:$0x80] }
 0x37e   : > { %v2125_v18 = vadd.f32 %v13857_v49, %v17033_v63  ;;  %v2116_v52 = vpop.f32.mrb[15].mxu0  ;;  %v2206_v58 = vmax.f32 %v2122_v23, 0.0  ;;  %v14535_v49 = vld [vmem:[%s19481_s3 + $0x100] sm:$0xff]  }
 0x37f   : > { %v2117_v54 = vadd.f32 %v17033_v63, %v2116_v52  ;;  %v2204_v19 = vmax.f32 %v2114_v48, 0.0  ;;  %v2423_v52 = vld [vmem:[#allocation3 + $0x130] sm:$0x1] }
 0x380   : > { %v2207_v61 = vmax.f32 %v2125_v18, 0.0  ;;  %13989 = vmatpush1.bf16.msra.mxu1 %v14533_v50  ;;  %v2285_v18 = vsel %vm17029_vm1, 0, %v2284_v53 }
 0x381   : > { %v2205_v37 = vmax.f32 %v2117_v54, 0.0  ;;  %13978 = vmatprep.subr.bf16.mxu1 %v16879_v55  ;;  %2286 = vst [vmem:[#allocation3 + $0x120] sm:$0x80] %v2285_v18  ;;  %v2728_v54 = vrot.slane %v2423_v52, 1 }
 0x382   : > { %v2231_v44 = vpack.c.bf16 %v2207_v61, %v2206_v58 }
 0x383   : > { %v2230_v4 = vpack.c.bf16 %v2205_v37, %v2204_v19 }
 0x384   : > { %2362 = vst.msk [vmem:[#allocation3 + $0xc8] sm:$0xff] %vm2240_vm13, %v2231_v44  ;;  %13990 = vmatpush1.bf16.msra.mxu1 %v14535_v49  ;;  %v2413_v49 = vld [vmem:[#allocation3 + $0x40] sm:$0x1] }
 0x385   : > { %2361 = vst.msk [vmem:[#allocation3 + $0xb0] sm:$0xff] %vm2240_vm13, %v2230_v4  ;;  %13979 = vmatprep.subr.bf16.mxu1 %v16879_v55 }
 0x388   : > { %13991 = vmatpush1.bf16.msra.mxu1 %v14536_v31  ;;  %v2697_v31 = vrot.slane %v17071_v39, 1 }
 0x389   : > { %13980 = vmatprep.subr.bf16.mxu1 %v16879_v55 }
 0x38b   : > { %v17146_v42 = vld [vmem:[#allocation3 + $0xc8] sm:$0xff] }
 0x38c   : > { %v17148_v51 = vld [vmem:[#allocation3 + $0xb0] sm:$0xff]  ;;  %v2488_v9 = vshll.u32 %v17146_v42, 16  ;;  %v2491_v40 = vshrl.u32 %v17146_v42, 16  ;;  %13992 = vmatpush1.bf16.msra.mxu1 %v14538_v27 }
 0x38d   : > { %v2481_v8 = vshll.u32 %v17148_v51, 16  ;;  %v2484_v15 = vshrl.u32 %v17148_v51, 16  ;;  %13981 = vmatprep.subr.bf16.mxu1 %v16879_v55 }
 0x38e   : > { %v2490_v46 = vrot.slane %v2488_v9, 1 }
 0x38f   : > { %v2483_v13 = vrot.slane %v2481_v8, 1 }
 0x390   : > { %v2493_v3 = vor.u32 %v2491_v40, %v2490_v46  ;;  %v2287_v40 = vld [vmem:[#allocation3 + $0x138] sm:$0x80] }
 0x391   : > { %2599 = vrot.lane.b32.xlu1 %v2483_v13, %s15763_s25  ;;  %v2486_v1 = vor.u32 %v2484_v15, %v2483_v13  ;;  %v14539_v13 = vld [vmem:[%s19481_s3 + $0x118] sm:$0xff]   ;;  %v2288_v59 = vsel %vm17029_vm1, 0, %v2287_v40 }
 0x392   : > { %13993 = vmatpush1.bf16.msra.mxu1 %v14539_v13  ;;  %2289 = vst [vmem:[#allocation3 + $0x138] sm:$0x80] %v2288_v59  ;;  %v14534_v59 = vld [vmem:[%s19481_s3] sm:$0xff]  }
 0x393   : > { %2601 = vrot.lane.b32.xlu0 %v2486_v1, %s15763_s25  ;;  %5453 = vmatprep.subr.bf16.mxu1 %v16879_v55 }
 0x395   : > { %2603 = vrot.lane.b32.xlu1 %v2490_v46, %s15763_s25 }
 0x397   : > { %2605 = vrot.lane.b32.xlu0 %v2493_v3, %s15763_s25 }
 0x39f   : > { %v13860_v41 = vpop.f32.mrb[16].mxu0 }
 0x3a0   : > { %v2138_v0 = vadd.f32 %v13860_v41, %v17033_v63  ;;  %v2129_v26 = vpop.f32.mrb[17].mxu0 }
 0x3a1   : > { %v2130_v10 = vadd.f32 %v17033_v63, %v2129_v26  ;;  %v13861_v12 = vpop.f32.mrb[18].mxu0  ;;  %v2290_v26 = vld [vmem:[#allocation3 + $0x150] sm:$0x80] }
 0x3a2   : > { %v2141_v32 = vadd.f32 %v13861_v12, %v17033_v63  ;;  %v2132_v17 = vpop.f32.mrb[19].mxu0  ;;  %v2210_v45 = vmax.f32 %v2138_v0, 0.0 }
 0x3a3   : > { %v2133_v38 = vadd.f32 %v17033_v63, %v2132_v17  ;;  %v2208_v6 = vmax.f32 %v2130_v10, 0.0 }
 0x3a4   : > { %v2211_v30 = vmax.f32 %v2141_v32, 0.0  ;;  %v2291_v32 = vsel %vm17029_vm1, 0, %v2290_v26 }
 0x3a5   : > { %v2209_v33 = vmax.f32 %v2133_v38, 0.0  ;;  %2292 = vst [vmem:[#allocation3 + $0x150] sm:$0x80] %v2291_v32 }
 0x3a6   : > { %v2233_v23 = vpack.c.bf16 %v2211_v30, %v2210_v45 }
 0x3a7   : > { %v2232_v48 = vpack.c.bf16 %v2209_v33, %v2208_v6 }
 0x3a8   : > { %2364 = vst.msk [vmem:[#allocation3 + $0x128] sm:$0xff] %vm2240_vm13, %v2233_v23 }
 0x3a9   : > { %2363 = vst.msk [vmem:[#allocation3 + $0x110] sm:$0xff] %vm2240_vm13, %v2232_v48 }
 0x3af   : > { %v13864_v56 = vpop.f32.mrb[20].mxu0  ;;  %v17208_v58 = vld [vmem:[#allocation3 + $0x128] sm:$0xff] }
 0x3b0   : > { %v2154_v61 = vadd.f32 %v13864_v56, %v17033_v63  ;;  %v2145_v19 = vpop.f32.mrb[21].mxu0  ;;  %v17211_v37 = vld [vmem:[#allocation3 + $0x110] sm:$0xff]  ;;  %v2727_v44 = vrot.slane %v17208_v58, 1  ;;  %v2516_v2 = vshll.u32 %v17208_v58, 16  ;;  %v2519_v12 = vshrl.u32 %v17208_v58, 16 }
 0x3b1   : > { %v2146_v34 = vadd.f32 %v17033_v63, %v2145_v19  ;;  %v13865_v4 = vpop.f32.mrb[22].mxu0  ;;  %v2509_v60 = vshll.u32 %v17211_v37, 16  ;;  %v2512_v28 = vshrl.u32 %v17211_v37, 16  ;;  %v2293_v56 = vld [vmem:[#allocation3 + $0x168] sm:$0x80] }
 0x3b2   : > { %v2157_v7 = vadd.f32 %v13865_v4, %v17033_v63  ;;  %v2148_v8 = vpop.f32.mrb[23].mxu0  ;;  %v2729_v9 = vsel %vm1175_vm4, %v2727_v44, %v2728_v54  ;;  %v2214_v15 = vmax.f32 %v2154_v61, 0.0  ;;  %v3082_v1 = vshrl.u32 %v2727_v44, 16  ;;  %v2414_v44 = vld [vmem:[#allocation3 + $0x58] sm:$0x1] }
 0x3b3   : > { %v2149_v11 = vadd.f32 %v17033_v63, %v2148_v8  ;;  %v2511_v62 = vrot.slane %v2509_v60, 1  ;;  %v3086_v46 = vshrl.u32 %v2729_v9, 16  ;;  %v2212_v20 = vmax.f32 %v2146_v34, 0.0  ;;  %v2373_v34 = vld [vmem:[#allocation3 + $0x18] sm:$0x80] }
 0x3b4   : > { %v2215_v16 = vmax.f32 %v2157_v7, 0.0  ;;  %v2518_v21 = vrot.slane %v2516_v2, 1  ;;  %v3089_v0 = vshll.u32 %v2729_v9, 16  ;;  %v3084_v17 = vrot.slane %v3082_v1, 7 }
 0x3b5   : > { %v2213_v3 = vmax.f32 %v2149_v11, 0.0  ;;  %2615 = vrot.lane.b32.xlu1 %v2511_v62, %s15763_s25  ;;  %v2514_v5 = vor.u32 %v2512_v28, %v2511_v62  ;;  %v3088_v22 = vrot.slane %v3086_v46, 7  ;;  %v2698_v54 = vrot.slane %v2413_v49, 1  ;;  %v14537_v49 = vld [vmem:[%s19481_s3 + $0x8] sm:$0xff]  }
 0x3b6   : > { %v2235_v41 = vpack.c.bf16 %v2215_v16, %v2214_v15  ;;  %v2521_v38 = vor.u32 %v2519_v12, %v2518_v21  ;;  %v2294_v19 = vsel %vm17029_vm1, 0, %v2293_v56  ;;  %v2700_v2 = vrot.slane %v17096_v14, 1  ;;  %v2415_v15 = vld [vmem:[#allocation3 + $0x70] sm:$0x1]  ;;  %v2377_v56 = vld [vmem:[#allocation3 + $0x48] sm:$0x80] }
 0x3b7   : > { %v2234_v10 = vpack.c.bf16 %v2213_v3, %v2212_v20  ;;  %2617 = vrot.lane.b32.xlu0 %v2514_v5, %s15763_s25  ;;  %v3091_v25 = vor.u32 %v3089_v0, %v3088_v22  ;;  %v2699_v61 = vsel %vm1175_vm4, %v2697_v31, %v2698_v54  ;;  %2295 = vst [vmem:[#allocation3 + $0x168] sm:$0x80] %v2294_v19  ;;  %v2701_v27 = vrot.slane %v2414_v44, 1  ;;  %v2375_v20 = vld [vmem:[#allocation3 + $0x30] sm:$0x80] }
 0x3b8   : > { %2366 = vst.msk [vmem:[#allocation3 + $0x158] sm:$0xff] %vm2240_vm13, %v2235_v41  ;;  %v2910_v4 = vshrl.u32 %v2699_v61, 16  ;;  %v2906_v16 = vshrl.u32 %v2697_v31, 16  ;;  %v2913_v1 = vshll.u32 %v2699_v61, 16  ;;  %v2704_v0 = vrot.slane %v2415_v15, 1  ;;  %v17289_v31 = vld [vmem:[#allocation5] sm:$0xff] }
 0x3b9   : > { %2365 = vst.msk [vmem:[#allocation3 + $0x140] sm:$0xff] %vm2240_vm13, %v2234_v10  ;;  %2619 = vrot.lane.b32.xlu1 %v2518_v21, %s15763_s25  ;;  %v17241_v50 = vsel %vm693_vm2, %v3084_v17, %v3091_v25  ;;  %v2702_v13 = vsel %vm1175_vm4, %v2700_v2, %v2701_v27  ;;  %v2703_v12 = vrot.slane %v17092_v57, 1  ;;  %v2706_v27 = vrot.slane %v17119_v24, 1 }
 0x3ba   : > { %12993 = vmatprep.mubr.msk.bf16.mxu1 %vm2240_vm13, %v17241_v50  ;;  %v2912_v11 = vrot.slane %v2910_v4, 7  ;;  %v2932_v22 = vshrl.u32 %v2702_v13, 16  ;;  %v2908_v17 = vrot.slane %v2906_v16, 7 }
 0x3bb   : > { %2621 = vrot.lane.b32.xlu0 %v2521_v38, %s15763_s25 }
 0x3bc   : > { %v2915_v41 = vor.u32 %v2913_v1, %v2912_v11 }
 0x3bf   : > { %v17246_v45 = vld [vmem:[#allocation3 + $0x158] sm:$0xff] }
 0x3c0   : > { %v17248_v30 = vld [vmem:[#allocation3 + $0x140] sm:$0xff]  ;;  %v2530_v55 = vshll.u32 %v17246_v45, 16  ;;  %v2533_v18 = vshrl.u32 %v17246_v45, 16 }
 0x3c1   : > { %v2523_v6 = vshll.u32 %v17248_v30, 16  ;;  %v2526_v23 = vshrl.u32 %v17248_v30, 16 }
 0x3c2   : > { %v2532_v48 = vrot.slane %v2530_v55, 1  ;;  %v17281_v55 = vsel %vm693_vm2, %v2908_v17, %v2915_v41  ;;  %v14541_v41 = vld [vmem:[%s19481_s3 + $0x18] sm:$0xff]  }
 0x3c3   : > { %v2525_v33 = vrot.slane %v2523_v6, 1 }
 0x3c4   : > { %v2535_v52 = vor.u32 %v2533_v18, %v2532_v48  ;;  %v2928_v18 = vshrl.u32 %v2700_v2, 16  ;;  %v14540_v2 = vld [vmem:[%s19481_s3 + $0x10] sm:$0xff]  }
 0x3c5   : > { %2623 = vrot.lane.b32.xlu1 %v2525_v33, %s15763_s25  ;;  %v2528_v53 = vor.u32 %v2526_v23, %v2525_v33  ;;  %v2934_v33 = vrot.slane %v2932_v22, 7 }
 0x3c7   : > { %2625 = vrot.lane.b32.xlu0 %v2528_v53, %s15763_s25 }
 0x3c9   : > { %2627 = vrot.lane.b32.xlu1 %v2532_v48, %s15763_s25  ;;  %v2705_v48 = vsel %vm1175_vm4, %v2703_v12, %v2704_v0 }
 0x3cb   : > { %2629 = vrot.lane.b32.xlu0 %v2535_v52, %s15763_s25  ;;  %v2416_v52 = vld [vmem:[#allocation3 + $0x88] sm:$0x1] }
 0x3d1   : > { %v2576_v60 = vpop.permute.xlu1 %2575 }
 0x3d2   : > { %v2758_v7 = vsel %vm2240_vm13, %v2373_v34, %v2576_v60  ;;  %v2954_v34 = vshrl.u32 %v2705_v48, 16 }
 0x3d3   : > { %v2578_v8 = vpop.permute.xlu0 %2577  ;;  %v2873_v62 = vshrl.u32 %v2758_v7, 16  ;;  %v2707_v7 = vrot.slane %v2416_v52, 1 }
 0x3d4   : > { %v2760_v9 = vsel %vm2240_vm13, %v17076_v43, %v2578_v8 }
 0x3d5   : > { %v2876_v28 = vshrl.u32 %v2760_v9, 16  ;;  %v2879_v40 = vshll.u32 %v2760_v9, 16  ;;  %v2580_v3 = vpop.permute.xlu1 %2579  ;;  %v2875_v43 = vrot.slane %v2873_v62, 7  ;;  %v2930_v9 = vrot.slane %v2928_v18, 7 }
 0x3d6   : > { %v2763_v32 = vsel %vm2240_vm13, %v2375_v20, %v2580_v3 }
 0x3d7   : > { %v2878_v46 = vrot.slane %v2876_v28, 7  ;;  %v2582_v5 = vpop.permute.xlu0 %2581  ;;  %v2895_v23 = vshrl.u32 %v2763_v32, 16 }
 0x3d8   : > { %v2765_v21 = vsel %vm2240_vm13, %v17071_v39, %v2582_v5 }
 0x3d9   : > { %v2881_v26 = vor.u32 %v2879_v40, %v2878_v46  ;;  %v2898_v10 = vshrl.u32 %v2765_v21, 16  ;;  %v2901_v53 = vshll.u32 %v2765_v21, 16  ;;  %v2584_v61 = vpop.permute.xlu1 %2583  ;;  %v2897_v4 = vrot.slane %v2895_v23, 7  ;;  %v2417_v40 = vld [vmem:[#allocation3 + $0xa0] sm:$0x1] }
 0x3da   : > { %v2768_v8 = vsel %vm2240_vm13, %v2377_v56, %v2584_v61  ;;  %v2956_v46 = vrot.slane %v2954_v34, 7  ;;  %v2296_v61 = vld [vmem:[#allocation3 + $0x180] sm:$0x80] }
 0x3db   : > { %v2900_v25 = vrot.slane %v2898_v10, 7  ;;  %v2586_v38 = vpop.permute.xlu0 %2585  ;;  %v17275_v6 = vsel %vm693_vm2, %v2875_v43, %v2881_v26  ;;  %v2917_v20 = vshrl.u32 %v2768_v8, 16  ;;  %v2950_v43 = vshrl.u32 %v2703_v12, 16 }
 0x3dc   : > { %v2770_v39 = vsel %vm2240_vm13, %v17096_v14, %v2586_v38  ;;  %3466 = vmatmul.mubr.bf16.vlgmr.msra.gmra.mrb[32].mxu0 %v17275_v6  ;;  %v2935_v14 = vshll.u32 %v2702_v13, 16  ;;  %v2957_v26 = vshll.u32 %v2705_v48, 16  ;;  %v2710_v38 = vrot.slane %v2417_v40, 1  ;;  %v14542_v48 = vld [vmem:[%s19481_s3 + $0x20] sm:$0xff]   ;;  %v2381_v40 = vld [vmem:[#allocation3 + $0x78] sm:$0x80] }
 0x3dd   : > { %12930 = vmatprep.mubr.msk.bf16.mxu0 %vm2240_vm13, %v17281_v55  ;;  %3673 = vmatpush1.bf16.msra.mxu0 %v14534_v59  ;;  %v2903_v54 = vor.u32 %v2901_v53, %v2900_v25  ;;  %v2920_v19 = vshrl.u32 %v2770_v39, 16  ;;  %v2923_v3 = vshll.u32 %v2770_v39, 16  ;;  %v2379_v59 = vld [vmem:[#allocation3 + $0x60] sm:$0x80]  ;;  %v2588_v32 = vpop.permute.xlu1 %2587  ;;  %v2709_v12 = vrot.slane %v17117_v35, 1 }
 0x3de   : > { %3674 = vmatprep.subr.bf16.mxu0 %v17289_v31  ;;  %v2937_v44 = vor.u32 %v2935_v14, %v2934_v33  ;;  %v2959_v23 = vor.u32 %v2957_v26, %v2956_v46 }
 0x3df   : > { %v2590_v60 = vpop.permute.xlu0 %2589  ;;  %v2922_v11 = vrot.slane %v2920_v19, 7  ;;  %v17299_v28 = vsel %vm693_vm2, %v2897_v4, %v2903_v54  ;;  %v2773_v54 = vsel %vm2240_vm13, %v2379_v59, %v2588_v32  ;;  %v2297_v4 = vsel %vm17029_vm1, 0, %v2296_v61 }
 0x3e0   : > { %v17303_v13 = vsel %vm2240_vm13, %v17092_v57, %v2590_v60  ;;  %v17308_v1 = vsel %vm693_vm2, %v2930_v9, %v2937_v44  ;;  %v2708_v57 = vsel %vm1175_vm4, %v2706_v27, %v2707_v7  ;;  %2298 = vst [vmem:[#allocation3 + $0x180] sm:$0x80] %v2297_v4  ;;  %v2939_v8 = vshrl.u32 %v2773_v54, 16  ;;  %v2383_v54 = vld [vmem:[#allocation3 + $0x90] sm:$0x80] }
 0x3e1   : > { %3675 = vmatpush1.bf16.msra.mxu0 %v14537_v49  ;;  %v2925_v10 = vor.u32 %v2923_v3, %v2922_v11  ;;  %v2942_v17 = vshrl.u32 %v17303_v13, 16  ;;  %v2976_v53 = vshrl.u32 %v2708_v57, 16  ;;  %v2919_v49 = vrot.slane %v2917_v20, 7 }
 0x3e2   : > { %3676 = vmatprep.subr.bf16.mxu0 %v17289_v31  ;;  %v2945_v9 = vshll.u32 %v17303_v13, 16  ;;  %v2711_v11 = vsel %vm1175_vm4, %v2709_v12, %v2710_v38  ;;  %v2979_v46 = vshll.u32 %v2708_v57, 16 }
 0x3e3   : > { %v13868_v62 = vpop.f32.mrb[24].mxu0  ;;  %v2944_v19 = vrot.slane %v2942_v17, 7  ;;  %v17330_v34 = vsel %vm693_vm2, %v2919_v49, %v2925_v10 }
 0x3e4   : > { %v2170_v15 = vadd.f32 %v13868_v62, %v17033_v63  ;;  %v2161_v16 = vpop.f32.mrb[25].mxu0  ;;  %3474 = vmatmul.mubr.bf16.gmra.mrb[36].mxu0 %v17299_v28  ;;  %v2418_v62 = vld [vmem:[#allocation3 + $0xb8] sm:$0x1] }
 0x3e5   : > { %v2162_v5 = vadd.f32 %v17033_v63, %v2161_v16  ;;  %v13869_v21 = vpop.f32.mrb[26].mxu0  ;;  %12931 = vmatprep.mubr.msk.bf16.mxu0 %vm2240_vm13, %v17308_v1  ;;  %3677 = vmatpush1.bf16.msra.mxu0 %v14540_v2  ;;  %v2978_v2 = vrot.slane %v2976_v53, 7  ;;  %v2972_v16 = vshrl.u32 %v2706_v27, 16  ;;  %v2947_v13 = vor.u32 %v2945_v9, %v2944_v19  ;;  %v2592_v20 = vpop.permute.xlu1 %2591 }
 0x3e6   : > { %v2173_v22 = vadd.f32 %v13869_v21, %v17033_v63  ;;  %v2164_v0 = vpop.f32.mrb[27].mxu0  ;;  %3678 = vmatprep.subr.bf16.mxu0 %v17289_v31  ;;  %v2218_v39 = vmax.f32 %v2170_v15, 0.0  ;;  %v14543_v15 = vld [vmem:[%s19481_s3 + $0x28] sm:$0xff]   ;;  %v2998_v21 = vshrl.u32 %v2711_v11, 16  ;;  %v2778_v27 = vsel %vm2240_vm13, %v2381_v40, %v2592_v20 }
 0x3e7   : > { %v2165_v25 = vadd.f32 %v17033_v63, %v2164_v0  ;;  %v2216_v18 = vmax.f32 %v2162_v5, 0.0  ;;  %v2594_v14 = vpop.permute.xlu0 %2593  ;;  %v2952_v63 = vrot.slane %v2950_v43, 7  ;;  %v2981_v5 = vor.u32 %v2979_v46, %v2978_v2 }
 0x3e8   : > { %v2219_v33 = vmax.f32 %v2173_v22, 0.0  ;;  %v2780_v60 = vsel %vm2240_vm13, %v17119_v24, %v2594_v14  ;;  %v2713_v22 = vrot.slane %v2418_v62, 1  ;;  %v2941_v0 = vrot.slane %v2939_v8, 7  ;;  %v14544_v24 = vld [vmem:[%s19481_s3 + $0x30] sm:$0xff]  }
 0x3e9   : > { %v2217_v52 = vmax.f32 %v2165_v25, 0.0  ;;  %3679 = vmatpush1.bf16.msra.mxu0 %v14541_v41  ;;  %v17339_v7 = vsel %vm693_vm2, %v2952_v63, %v2959_v23  ;;  %v2964_v3 = vshrl.u32 %v2780_v60, 16  ;;  %v2712_v41 = vrot.slane %v17148_v51, 1 }
 0x3ea   : > { %v2237_v56 = vpack.c.bf16 %v2219_v33, %v2218_v39  ;;  %3680 = vmatprep.subr.bf16.mxu0 %v17289_v31  ;;  %v2974_v57 = vrot.slane %v2972_v16, 7  ;;  %v17359_v10 = vsel %vm693_vm2, %v2941_v0, %v2947_v13  ;;  %v3000_v38 = vrot.slane %v2998_v21, 7 }
 0x3eb   : > { %v2236_v44 = vpack.c.bf16 %v2217_v52, %v2216_v18  ;;  %v2598_v43 = vpop.permute.xlu0 %2597  ;;  %v2966_v26 = vrot.slane %v2964_v3, 7  ;;  %v2714_v39 = vsel %vm1175_vm4, %v2712_v41, %v2713_v22  ;;  %v2961_v33 = vshrl.u32 %v2778_v27, 16  ;;  %v2419_v52 = vld [vmem:[#allocation3 + $0xd0] sm:$0x1]  ;;  %v2422_v27 = vld [vmem:[#allocation3 + $0x118] sm:$0x1] }
 0x3ec   : > { %2368 = vst.msk [vmem:[#allocation3 + $0x188] sm:$0xff] %vm2240_vm13, %v2237_v56  ;;  %3482 = vmatmul.mubr.bf16.gmra.mrb[40].mxu0 %v17330_v34  ;;  %v2785_v32 = vsel %vm2240_vm13, %v17117_v35, %v2598_v43  ;;  %v17367_v17 = vsel %vm693_vm2, %v2974_v57, %v2981_v5  ;;  %v2967_v23 = vshll.u32 %v2780_v60, 16  ;;  %v14545_v35 = vld [vmem:[%s19481_s3 + $0x38] sm:$0xff]   ;;  %v2994_v18 = vshrl.u32 %v2709_v12, 16  ;;  %v2596_v56 = vpop.permute.xlu1 %2595  ;;  %v14547_v57 = vld [vmem:[%s19481_s3 + $0x48] sm:$0xff]  }
 0x3ed   : > { %2367 = vst.msk [vmem:[#allocation3 + $0x170] sm:$0xff] %vm2240_vm13, %v2236_v44  ;;  %12932 = vmatprep.mubr.msk.bf16.mxu0 %vm2240_vm13, %v17339_v7  ;;  %3681 = vmatpush1.bf16.msra.mxu0 %v14542_v48  ;;  %v3001_v14 = vshll.u32 %v2711_v11, 16  ;;  %v2986_v63 = vshrl.u32 %v2785_v32, 16  ;;  %v3020_v4 = vshrl.u32 %v2714_v39, 16  ;;  %v2963_v60 = vrot.slane %v2961_v33, 7 }
 0x3ee   : > { %3682 = vmatprep.subr.bf16.mxu0 %v17289_v31  ;;  %v2969_v48 = vor.u32 %v2967_v23, %v2966_v26  ;;  %v2783_v12 = vsel %vm2240_vm13, %v2383_v54, %v2596_v56  ;;  %v2996_v9 = vrot.slane %v2994_v18, 7  ;;  %v2715_v11 = vrot.slane %v17146_v42, 1  ;;  %v2299_v26 = vld [vmem:[#allocation3 + $0x198] sm:$0x80]  ;;  %v2385_v33 = vld [vmem:[#allocation3 + $0xa8] sm:$0x80] }
 0x3ef   : > { %v3003_v44 = vor.u32 %v3001_v14, %v3000_v38  ;;  %v2716_v62 = vrot.slane %v2419_v52, 1  ;;  %v2988_v16 = vrot.slane %v2986_v63, 7  ;;  %v3022_v20 = vrot.slane %v3020_v4, 7 }
 0x3f0   : > { %v17390_v46 = vsel %vm693_vm2, %v2963_v60, %v2969_v48  ;;  %v2983_v3 = vshrl.u32 %v2783_v12, 16  ;;  %v2989_v5 = vshll.u32 %v2785_v32, 16  ;;  %v3016_v22 = vshrl.u32 %v2712_v41, 16 }
 0x3f1   : > { %3683 = vmatpush1.bf16.msra.mxu0 %v14543_v15  ;;  %v14546_v15 = vld [vmem:[%s19481_s3 + $0x40] sm:$0xff]   ;;  %v17395_v40 = vsel %vm693_vm2, %v2996_v9, %v3003_v44  ;;  %v3023_v0 = vshll.u32 %v2714_v39, 16  ;;  %v2717_v43 = vsel %vm1175_vm4, %v2715_v11, %v2716_v62  ;;  %v2300_v41 = vsel %vm17029_vm1, 0, %v2299_v26 }
 0x3f2   : > { %3684 = vmatprep.subr.bf16.mxu0 %v17289_v31  ;;  %v2985_v38 = vrot.slane %v2983_v3, 7  ;;  %v3258_v23 = vshrl.u32 %v2717_v43, 16  ;;  %2301 = vst [vmem:[#allocation3 + $0x198] sm:$0x80] %v2300_v41  ;;  %v3018_v18 = vrot.slane %v3016_v22, 7  ;;  %v2724_v14 = vrot.slane %v17211_v37, 1 }
 0x3f3   : > { %v17361_v59 = vld [vmem:[#allocation3 + $0x188] sm:$0xff]  ;;  %v3025_v32 = vor.u32 %v3023_v0, %v3022_v20  ;;  %v2725_v52 = vrot.slane %v2422_v27, 1  ;;  %v3254_v22 = vshrl.u32 %v2715_v11, 16  ;;  %v3261_v0 = vshll.u32 %v2717_v43, 16 }
 0x3f4   : > { %3490 = vmatmul.mubr.bf16.gmra.mrb[44].mxu0 %v17359_v10  ;;  %v17369_v25 = vld [vmem:[#allocation3 + $0x170] sm:$0xff]  ;;  %v2544_v49 = vshll.u32 %v17361_v59, 16  ;;  %v2547_v13 = vshrl.u32 %v17361_v59, 16 }
 0x3f5   : > { %12933 = vmatprep.mubr.msk.bf16.mxu0 %vm2240_vm13, %v17367_v17  ;;  %v2537_v53 = vshll.u32 %v17369_v25, 16  ;;  %3685 = vmatpush1.bf16.msra.mxu0 %v14544_v24  ;;  %v2540_v19 = vshrl.u32 %v17369_v25, 16  ;;  %v2991_v24 = vor.u32 %v2989_v5, %v2988_v16  ;;  %v17418_v4 = vsel %vm693_vm2, %v3018_v18, %v3025_v32  ;;  %v2302_v5 = vld [vmem:[#allocation3 + $0x1b0] sm:$0x80]  ;;  %v2387_v32 = vld [vmem:[#allocation3 + $0xc0] sm:$0x80] }
 0x3f6   : > { %3686 = vmatprep.subr.bf16.mxu0 %v17289_v31  ;;  %v2546_v8 = vrot.slane %v2544_v49, 1 }
 0x3f7   : > { %v2539_v61 = vrot.slane %v2537_v53, 1  ;;  %v15329_v53 = vld [vmem:[#allocation11] ss:$0 sm:$0xff]  ;;  %v17412_v63 = vsel %vm693_vm2, %v2985_v38, %v2991_v24  ;;  %v2303_v24 = vsel %vm17029_vm1, 0, %v2302_v5 }
 0x3f8   : > { %v2549_v21 = vor.u32 %v2547_v13, %v2546_v8  ;;  %2304 = vst [vmem:[#allocation3 + $0x1b0] sm:$0x80] %v2303_v24 }
 0x3f9   : > { %2631 = vrot.lane.b32.xlu1 %v2539_v61, %s15763_s25  ;;  %v2542_v2 = vor.u32 %v2540_v19, %v2539_v61  ;;  %3687 = vmatpush1.bf16.msra.mxu0 %v14545_v35 }
 0x3fa   : > { %3688 = vmatprep.subr.bf16.mxu0 %v17289_v31 }
 0x3fb   : > { %2633 = vrot.lane.b32.xlu0 %v2542_v2, %s15763_s25 }
 0x3fc   : > { %3498 = vmatmul.mubr.bf16.gmra.mrb[48].mxu0 %v17390_v46 }
 0x3fd   : > { %2635 = vrot.lane.b32.xlu1 %v2546_v8, %s15763_s25  ;;  %12934 = vmatprep.mubr.msk.bf16.mxu0 %vm2240_vm13, %v17395_v40  ;;  %v3260_v8 = vrot.slane %v3258_v23, 7 }
 0x3fe   : > { %3689 = vmatpush1.bf16.msra.mxu0 %v14546_v15  ;;  %v2726_v15 = vsel %vm1175_vm4, %v2724_v14, %v2725_v52 }
 0x3ff   : > { %2637 = vrot.lane.b32.xlu0 %v2549_v21, %s15763_s25  ;;  %3690 = vmatprep.subr.bf16.mxu0 %v17289_v31 }
 0x401   : > { %v13872_v39 = vpop.f32.mrb[28].mxu0 }
 0x402   : > { %v2186_v49 = vadd.f32 %v15329_v53, %v13872_v39  ;;  %v2177_v35 = vpop.f32.mrb[29].mxu0  ;;  %3691 = vmatpush1.bf16.msra.mxu0 %v14547_v57  ;;  %v3263_v39 = vor.u32 %v3261_v0, %v3260_v8  ;;  %v17447_v8 = vld [vmem:[#allocation3 + $0x8] sm:$0xff] }
 0x403   : > { %v2178_v48 = vadd.f32 %v15329_v53, %v2177_v35  ;;  %v13873_v54 = vpop.f32.mrb[30].mxu0  ;;  %v2600_v56 = vpop.permute.xlu1 %2599  ;;  %3692 = vmatprep.subr.bf16.mxu0 %v17289_v31 }
 0x404   : > { %v2189_v61 = vadd.f32 %v15329_v53, %v13873_v54  ;;  %v2180_v19 = vpop.f32.mrb[31].mxu0  ;;  %v2788_v44 = vsel %vm2240_vm13, %v2385_v33, %v2600_v56  ;;  %3506 = vmatmul.mubr.bf16.gmra.mrb[52].mxu0 %v17412_v63  ;;  %v2222_v12 = vmax.f32 %v2186_v49, 0.0  ;;  %v3064_v33 = vshrl.u32 %v2726_v15, 16 }
 0x405   : > { %v2181_v60 = vadd.f32 %v15329_v53, %v2180_v19  ;;  %v2602_v2 = vpop.permute.xlu0 %2601  ;;  %12935 = vmatprep.mubr.msk.bf16.mxu0 %vm2240_vm13, %v17418_v4  ;;  %v2220_v16 = vmax.f32 %v2178_v48, 0.0  ;;  %v3005_v20 = vshrl.u32 %v2788_v44, 16  ;;  %v3256_v49 = vrot.slane %v3254_v22, 7 }
 0x406   : > { %v2223_v9 = vmax.f32 %v2189_v61, 0.0  ;;  %v2790_v62 = vsel %vm2240_vm13, %v17148_v51, %v2602_v2  ;;  %v3060_v56 = vshrl.u32 %v2724_v14, 16  ;;  %v3067_v61 = vshll.u32 %v2726_v15, 16 }
 0x407   : > { %v2221_v13 = vmax.f32 %v2181_v60, 0.0  ;;  %v3008_v3 = vshrl.u32 %v2790_v62, 16  ;;  %v3011_v26 = vshll.u32 %v2790_v62, 16  ;;  %v2604_v51 = vpop.permute.xlu1 %2603  ;;  %v3007_v11 = vrot.slane %v3005_v20, 7 }
 0x408   : > { %v2239_v21 = vpack.c.bf16 %v2223_v9, %v2222_v12  ;;  %v2793_v53 = vsel %vm2240_vm13, %v2387_v32, %v2604_v51  ;;  %v17439_v52 = vsel %vm693_vm2, %v3256_v49, %v3263_v39  ;;  %v2432_v15 = vshll.u32 %v17447_v8, 16  ;;  %v14549_v32 = vld [vmem:[%s19481_s3 + $0x58] sm:$0xff]  }
 0x409   : > { %v2238_v27 = vpack.c.bf16 %v2221_v13, %v2220_v16  ;;  %v3010_v57 = vrot.slane %v3008_v3, 7  ;;  %v2606_v41 = vpop.permute.xlu0 %2605  ;;  %v3243_v48 = vshrl.u32 %v2793_v53, 16  ;;  %v3062_v16 = vrot.slane %v3060_v56, 7  ;;  %v14548_v3 = vld [vmem:[%s19481_s3 + $0x50] sm:$0xff]   ;;  %v2393_v56 = vld [vmem:[#allocation3 + $0x108] sm:$0x80] }
 0x40a   : > { %2370 = vst.msk [vmem:[#allocation3 + $0x1b8] sm:$0xff] %vm2240_vm13, %v2239_v21  ;;  %v2795_v38 = vsel %vm2240_vm13, %v17146_v42, %v2606_v41  ;;  %v3066_v42 = vrot.slane %v3064_v33, 7  ;;  %v17463_v21 = vld [vmem:[#allocation3 + $0xf8] sm:$0xff]  ;;  %3693 = vmatpush1.bf16.msra.mxu0 %v14548_v3  ;;  %v17477_v41 = vld [vmem:[#allocation3 + $0xe0] sm:$0xff] }
 0x40b   : > { %2369 = vst.msk [vmem:[#allocation3 + $0x1a0] sm:$0xff] %vm2240_vm13, %v2238_v27  ;;  %v3013_v43 = vor.u32 %v3011_v26, %v3010_v57  ;;  %v3246_v23 = vshrl.u32 %v2795_v38, 16  ;;  %v3249_v54 = vshll.u32 %v2795_v38, 16  ;;  %v3245_v12 = vrot.slane %v3243_v48, 7  ;;  %3694 = vmatprep.subr.bf16.mxu0 %v17289_v31 }
 0x40c   : > { %v3069_v2 = vor.u32 %v3067_v61, %v3066_v42  ;;  %v2434_v27 = vrot.slane %v2432_v15, 1  ;;  %v2435_v57 = vshrl.u32 %v17447_v8, 16  ;;  %v2502_v26 = vshll.u32 %v17463_v21, 16 }
 0x40d   : > { %v3248_v35 = vrot.slane %v3246_v23, 7  ;;  %v17435_v18 = vsel %vm693_vm2, %v3007_v11, %v3013_v43  ;;  %v2505_v33 = vshrl.u32 %v17463_v21, 16  ;;  %v2495_v11 = vshll.u32 %v17477_v41, 16  ;;  %v17483_v43 = vld [vmem:[#allocation3 + $0x1d0] sm:$0xff]  ;;  %v2424_v23 = vld [vmem:[#allocation3 + $0x148] sm:$0x1] }
 0x40e   : > { %3514 = vmatmul.mubr.bf16.gmra.mrb[56].mxu0 %v17435_v18  ;;  %v17461_v5 = vsel %vm693_vm2, %v3062_v16, %v3069_v2  ;;  %v2437_v38 = vor.u32 %v2435_v57, %v2434_v27  ;;  %v2504_v39 = vrot.slane %v2502_v26, 1  ;;  %v2565_v42 = vshll.u32 %v17483_v43, 16  ;;  %v2395_v16 = vld [vmem:[#allocation3 + $0x120] sm:$0x80] }
 0x40f   : > { %12936 = vmatprep.mubr.msk.bf16.mxu0 %vm2240_vm13, %v17439_v52  ;;  %v3251_v19 = vor.u32 %v3249_v54, %v3248_v35  ;;  %3695 = vmatpush1.bf16.msra.mxu0 %v14549_v32  ;;  %v2497_v49 = vrot.slane %v2495_v11, 1  ;;  %v2498_v35 = vshrl.u32 %v17477_v41, 16  ;;  %v2730_v48 = vrot.slane %v17248_v30, 1 }
 0x410   : > { %3981 = vmatprep.subr.bf16.mxu0 %v17289_v31  ;;  %v2507_v53 = vor.u32 %v2505_v33, %v2504_v39  ;;  %v2731_v54 = vrot.slane %v2424_v23, 1  ;;  %v2567_v61 = vrot.slane %v2565_v42, 1 }
 0x411   : > { %v17443_v44 = vld [vmem:[#allocation3 + $0x1b8] sm:$0xff]  ;;  %v17452_v20 = vsel %vm693_vm2, %v3245_v12, %v3251_v19  ;;  %v2500_v31 = vor.u32 %v2498_v35, %v2497_v49  ;;  %v2568_v19 = vshrl.u32 %v17483_v43, 16 }
 0x412   : > { %v17445_v60 = vld [vmem:[#allocation3 + $0x1a0] sm:$0xff]  ;;  %v2558_v62 = vshll.u32 %v17443_v44, 16  ;;  %v2561_v24 = vshrl.u32 %v17443_v44, 16  ;;  %v2732_v12 = vsel %vm1175_vm4, %v2730_v48, %v2731_v54 }
 0x413   : > { %v2551_v9 = vshll.u32 %v17445_v60, 16  ;;  %v2554_v14 = vshrl.u32 %v17445_v60, 16  ;;  %v3108_v15 = vshrl.u32 %v2732_v12, 16  ;;  %v3111_v35 = vshll.u32 %v2732_v12, 16  ;;  %v2397_v12 = vld [vmem:[#allocation3 + $0x138] sm:$0x80] }
 0x414   : > { %v2560_v0 = vrot.slane %v2558_v62, 1 }
 0x415   : > { %v2553_v13 = vrot.slane %v2551_v9, 1 }
 0x416   : > { %3522 = vmatmul.mubr.bf16.gmra.mrb[60].mxu0 %v17452_v20  ;;  %v2563_v51 = vor.u32 %v2561_v24, %v2560_v0  ;;  %v2425_v24 = vld [vmem:[#allocation3 + $0x160] sm:$0x1] }
 0x417   : > { %2639 = vrot.lane.b32.xlu1 %v2553_v13, %s15763_s25  ;;  %12937 = vmatprep.mubr.msk.bf16.mxu0 %vm2240_vm13, %v17461_v5  ;;  %v2556_v22 = vor.u32 %v2554_v14, %v2553_v13  ;;  %v2570_v13 = vor.u32 %v2568_v19, %v2567_v61 }
 0x419   : > { %2641 = vrot.lane.b32.xlu0 %v2556_v22, %s15763_s25 }
 0x41b   : > { %2643 = vrot.lane.b32.xlu1 %v2560_v0, %s15763_s25 }
 0x41d   : > { %2645 = vrot.lane.b32.xlu0 %v2563_v51, %s15763_s25 }
 0x41f   : > { %2571 = vrot.lane.b32.xlu1 %v2434_v27, %s15763_s25 }
 0x421   : > { %2573 = vrot.lane.b32.xlu0 %v2437_v38, %s15763_s25  ;;  %v3110_v38 = vrot.slane %v3108_v15, 7 }
 0x423   : > { %2611 = vrot.lane.b32.xlu1 %v2504_v39, %s15763_s25  ;;  %v2734_v39 = vrot.slane %v2425_v24, 1 }
 0x425   : > { %2613 = vrot.lane.b32.xlu0 %v2507_v53, %s15763_s25 }
 0x427   : > { %v2616_v2 = vpop.permute.xlu1 %2615  ;;  %2607 = vrot.lane.b32.xlu1 %v2497_v49, %s15763_s25  ;;  %v3104_v49 = vshrl.u32 %v2730_v48, 16 }
 0x428   : > { %v2808_v9 = vsel %vm2240_vm13, %v2393_v56, %v2616_v2 }
 0x429   : > { %v2618_v62 = vpop.permute.xlu0 %2617  ;;  %2609 = vrot.lane.b32.xlu0 %v2500_v31, %s15763_s25  ;;  %v3049_v3 = vshrl.u32 %v2808_v9, 16  ;;  %v3113_v31 = vor.u32 %v3111_v35, %v3110_v38  ;;  %v3106_v2 = vrot.slane %v3104_v49, 7  ;;  %v2426_v9 = vld [vmem:[#allocation3 + $0x178] sm:$0x1] }
 0x42a   : > { %v2810_v14 = vsel %vm2240_vm13, %v17211_v37, %v2618_v62  ;;  %v2733_v37 = vrot.slane %v17246_v45, 1  ;;  %v2737_v15 = vrot.slane %v2426_v9, 1 }
 0x42b   : > { %v3052_v22 = vshrl.u32 %v2810_v14, 16  ;;  %v2620_v0 = vpop.permute.xlu1 %2619  ;;  %2647 = vrot.lane.b32.xlu1 %v2567_v61, %s15763_s25  ;;  %v3055_v26 = vshll.u32 %v2810_v14, 16  ;;  %v3051_v33 = vrot.slane %v3049_v3, 7  ;;  %v17517_v62 = vsel %vm693_vm2, %v3106_v2, %v3113_v31 }
 0x42c   : > { %v2813_v27 = vsel %vm2240_vm13, %v2395_v16, %v2620_v0  ;;  %v2735_v19 = vsel %vm1175_vm4, %v2733_v37, %v2734_v39  ;;  %v2736_v14 = vrot.slane %v17369_v25, 1 }
 0x42d   : > { %v3054_v57 = vrot.slane %v3052_v22, 7  ;;  %v2622_v32 = vpop.permute.xlu0 %2621  ;;  %2649 = vrot.lane.b32.xlu0 %v2570_v13, %s15763_s25  ;;  %v3071_v23 = vshrl.u32 %v2813_v27, 16  ;;  %v3130_v16 = vshrl.u32 %v2735_v19, 16 }
 0x42e   : > { %v2815_v51 = vsel %vm2240_vm13, %v17208_v58, %v2622_v32  ;;  %v3126_v32 = vshrl.u32 %v2733_v37, 16 }
 0x42f   : > { %v3057_v11 = vor.u32 %v3055_v26, %v3054_v57  ;;  %v3074_v53 = vshrl.u32 %v2815_v51, 16  ;;  %v3077_v54 = vshll.u32 %v2815_v51, 16  ;;  %v3073_v61 = vrot.slane %v3071_v23, 7 }
 0x430   : > { %v3132_v24 = vrot.slane %v3130_v16, 7  ;;  %v2738_v26 = vsel %vm1175_vm4, %v2736_v14, %v2737_v15  ;;  %v3133_v51 = vshll.u32 %v2735_v19, 16 }
 0x431   : > { %v3076_v42 = vrot.slane %v3074_v53, 7  ;;  %v17506_v56 = vsel %vm693_vm2, %v3051_v33, %v3057_v11  ;;  %v2399_v33 = vld [vmem:[#allocation3 + $0x150] sm:$0x80]  ;;  %v3152_v49 = vshrl.u32 %v2738_v26, 16  ;;  %v3155_v16 = vshll.u32 %v2738_v26, 16 }
 0x432   : > { %3530 = vmatmul.mubr.bf16.gmra.mrb[64].mxu0 %v17506_v56  ;;  %v3135_v53 = vor.u32 %v3133_v51, %v3132_v24  ;;  %v2401_v51 = vld [vmem:[#allocation3 + $0x168] sm:$0x80] }
 0x433   : > { %v3079_v58 = vor.u32 %v3077_v54, %v3076_v42  ;;  %12938 = vmatprep.mubr.msk.bf16.mxu0 %vm2240_vm13, %v17241_v50 }
 0x435   : > { %v17513_v48 = vsel %vm693_vm2, %v3073_v61, %v3079_v58  ;;  %v3128_v61 = vrot.slane %v3126_v32, 7  ;;  %v2428_v32 = vld [vmem:[#allocation3 + $0x1a8] sm:$0x1] }
 0x436   : > { %4078 = vmatmul.mubr.bf16.vlgmr.msra.gmra.mrb[0].mxu1 %v17513_v48 }
 0x437   : > { %12994 = vmatprep.mubr.msk.bf16.mxu1 %vm2240_vm13, %v17517_v62  ;;  %v2624_v13 = vpop.permute.xlu1 %2623  ;;  %v17538_v19 = vsel %vm693_vm2, %v3128_v61, %v3135_v53 }
 0x438   : > { %v2818_v3 = vsel %vm2240_vm13, %v2397_v12, %v2624_v13  ;;  %v3148_v12 = vshrl.u32 %v2736_v14, 16  ;;  %v2427_v14 = vld [vmem:[#allocation3 + $0x190] sm:$0x1] }
 0x439   : > { %v2626_v22 = vpop.permute.xlu0 %2625  ;;  %v3093_v27 = vshrl.u32 %v2818_v3, 16 }
 0x43a   : > { %v2820_v0 = vsel %vm2240_vm13, %v17248_v30, %v2626_v22  ;;  %3538 = vmatmul.mubr.bf16.gmra.mrb[68].mxu0 %v17513_v48  ;;  %v3150_v22 = vrot.slane %v3148_v12, 7 }
 0x43b   : > { %v3096_v57 = vshrl.u32 %v2820_v0, 16  ;;  %12939 = vmatprep.mubr.msk.bf16.mxu0 %vm2240_vm13, %v17517_v62  ;;  %v3099_v39 = vshll.u32 %v2820_v0, 16  ;;  %v2628_v11 = vpop.permute.xlu1 %2627  ;;  %v3095_v35 = vrot.slane %v3093_v27, 7  ;;  %v2739_v27 = vrot.slane %v17361_v59, 1 }
 0x43c   : > { %v2823_v31 = vsel %vm2240_vm13, %v2399_v33, %v2628_v11  ;;  %v2742_v33 = vrot.slane %v17445_v60, 1  ;;  %v2743_v11 = vrot.slane %v2428_v32, 1 }
 0x43d   : > { %v3098_v38 = vrot.slane %v3096_v57, 7  ;;  %v2630_v23 = vpop.permute.xlu0 %2629  ;;  %v3115_v2 = vshrl.u32 %v2823_v31, 16  ;;  %v2740_v57 = vrot.slane %v2427_v14, 1  ;;  %v3170_v31 = vshrl.u32 %v2739_v27, 16 }
 0x43e   : > { %v2825_v30 = vsel %vm2240_vm13, %v17246_v45, %v2630_v23  ;;  %v3154_v45 = vrot.slane %v3152_v49, 7 }
 0x43f   : > { %v3101_v42 = vor.u32 %v3099_v39, %v3098_v38  ;;  %v3118_v54 = vshrl.u32 %v2825_v30, 16  ;;  %v3121_v9 = vshll.u32 %v2825_v30, 16  ;;  %v3117_v3 = vrot.slane %v3115_v2, 7  ;;  %v2403_v2 = vld [vmem:[#allocation3 + $0x180] sm:$0x80] }
 0x440   : > { %v3157_v15 = vor.u32 %v3155_v16, %v3154_v45  ;;  %v2741_v26 = vsel %vm1175_vm4, %v2739_v27, %v2740_v57  ;;  %v3172_v57 = vrot.slane %v3170_v31, 7  ;;  %v2429_v31 = vld [vmem:[#allocation3 + $0x1c0] sm:$0x1] }
 0x441   : > { %v3120_v58 = vrot.slane %v3118_v54, 7  ;;  %v17533_v37 = vsel %vm693_vm2, %v3095_v35, %v3101_v42  ;;  %v3174_v38 = vshrl.u32 %v2741_v26, 16  ;;  %v2744_v54 = vsel %vm1175_vm4, %v2742_v33, %v2743_v11 }
 0x442   : > { %3546 = vmatmul.mubr.bf16.gmra.mrb[72].mxu0 %v17533_v37  ;;  %4086 = vmatmul.mubr.bf16.gmra.mrb[4].mxu1 %v17533_v37  ;;  %v17550_v24 = vsel %vm693_vm2, %v3150_v22, %v3157_v15  ;;  %v3177_v61 = vshll.u32 %v2741_v26, 16  ;;  %v3196_v15 = vshrl.u32 %v2744_v54, 16  ;;  %v3199_v11 = vshll.u32 %v2744_v54, 16 }
 0x443   : > { %12940 = vmatprep.mubr.msk.bf16.mxu0 %vm2240_vm13, %v17538_v19  ;;  %12995 = vmatprep.mubr.msk.bf16.mxu1 %vm2240_vm13, %v17538_v19  ;;  %v3123_v13 = vor.u32 %v3121_v9, %v3120_v58  ;;  %v3176_v49 = vrot.slane %v3174_v38, 7  ;;  %v2746_v54 = vrot.slane %v2429_v31, 1 }
 0x445   : > { %v17545_v0 = vsel %vm693_vm2, %v3117_v3, %v3123_v13  ;;  %v3179_v13 = vor.u32 %v3177_v61, %v3176_v49  ;;  %v2411_v61 = vld [vmem:[#allocation3 + $0x10] sm:$0x1] }
 0x447   : > { %v17572_v26 = vsel %vm693_vm2, %v3172_v57, %v3179_v13 }
 0x44a   : > { %3554 = vmatmul.mubr.bf16.gmra.mrb[76].mxu0 %v17545_v0  ;;  %4094 = vmatmul.mubr.bf16.gmra.mrb[8].mxu1 %v17545_v0 }
 0x44b   : > { %12941 = vmatprep.mubr.msk.bf16.mxu0 %vm2240_vm13, %v17550_v24  ;;  %12996 = vmatprep.mubr.msk.bf16.mxu1 %vm2240_vm13, %v17550_v24 }
 0x46b   : > { %v2632_v39 = vpop.permute.xlu1 %2631 }
 0x46c   : > { %v2828_v23 = vsel %vm2240_vm13, %v2401_v51, %v2632_v39  ;;  %v3192_v39 = vshrl.u32 %v2742_v33, 16  ;;  %v2745_v33 = vrot.slane %v17443_v44, 1 }
 0x46d   : > { %v2634_v30 = vpop.permute.xlu0 %2633  ;;  %v3137_v35 = vshrl.u32 %v2828_v23, 16 }
 0x46e   : > { %v2830_v53 = vsel %vm2240_vm13, %v17369_v25, %v2634_v30  ;;  %v3194_v49 = vrot.slane %v3192_v39, 7 }
 0x46f   : > { %v3140_v42 = vshrl.u32 %v2830_v53, 16  ;;  %v3143_v45 = vshll.u32 %v2830_v53, 16  ;;  %v2636_v9 = vpop.permute.xlu1 %2635  ;;  %v3139_v3 = vrot.slane %v3137_v35, 7 }
 0x470   : > { %v2833_v14 = vsel %vm2240_vm13, %v2403_v2, %v2636_v9  ;;  %v2692_v2 = vrot.slane %v2411_v61, 1  ;;  %v2405_v9 = vld [vmem:[#allocation3 + $0x198] sm:$0x80] }
 0x471   : > { %v3142_v58 = vrot.slane %v3140_v42, 7  ;;  %v2638_v12 = vpop.permute.xlu0 %2637  ;;  %v3159_v51 = vshrl.u32 %v2833_v14, 16 }
 0x472   : > { %v2835_v16 = vsel %vm2240_vm13, %v17361_v59, %v2638_v12  ;;  %v3198_v59 = vrot.slane %v3196_v15, 7 }
 0x473   : > { %v3145_v22 = vor.u32 %v3143_v45, %v3142_v58  ;;  %v3162_v25 = vshrl.u32 %v2835_v16, 16  ;;  %v3165_v38 = vshll.u32 %v2835_v16, 16  ;;  %v3161_v53 = vrot.slane %v3159_v51, 7 }
 0x474   : > { %v3201_v30 = vor.u32 %v3199_v11, %v3198_v59  ;;  %v2747_v58 = vsel %vm1175_vm4, %v2745_v33, %v2746_v54  ;;  %v2691_v45 = vrot.slane %v17447_v8, 1  ;;  %v3276_v51 = vshrl.u32 %v2745_v33, 16 }
 0x475   : > { %v3164_v32 = vrot.slane %v3162_v25, 7  ;;  %v17567_v27 = vsel %vm693_vm2, %v3139_v3, %v3145_v22  ;;  %v3280_v12 = vshrl.u32 %v2747_v58, 16 }
 0x476   : > { %3562 = vmatmul.mubr.bf16.gmra.mrb[80].mxu0 %v17567_v27  ;;  %4102 = vmatmul.mubr.bf16.gmra.mrb[12].mxu1 %v17567_v27  ;;  %v17584_v42 = vsel %vm693_vm2, %v3194_v49, %v3201_v30  ;;  %v2693_v15 = vsel %vm1175_vm4, %v2691_v45, %v2692_v2  ;;  %v2862_v31 = vshrl.u32 %v2691_v45, 16 }
 0x477   : > { %12942 = vmatprep.mubr.msk.bf16.mxu0 %vm2240_vm13, %v17572_v26  ;;  %12997 = vmatprep.mubr.msk.bf16.mxu1 %vm2240_vm13, %v17572_v26  ;;  %v3167_v23 = vor.u32 %v3165_v38, %v3164_v32  ;;  %v3282_v25 = vrot.slane %v3280_v12, 7  ;;  %v2866_v59 = vshrl.u32 %v2693_v15, 16  ;;  %v3283_v38 = vshll.u32 %v2747_v58, 16 }
 0x478   : > { %v2869_v54 = vshll.u32 %v2693_v15, 16  ;;  %v2371_v15 = vld [vmem:[#allocation3] sm:$0x80] }
 0x479   : > { %v17579_v35 = vsel %vm693_vm2, %v3161_v53, %v3167_v23  ;;  %v2407_v23 = vld [vmem:[#allocation3 + $0x1b0] sm:$0x80]  ;;  %v3285_v49 = vor.u32 %v3283_v38, %v3282_v25  ;;  %v2868_v12 = vrot.slane %v2866_v59, 7 }
 0x47e   : > { %3570 = vmatmul.mubr.bf16.gmra.mrb[84].mxu0 %v17579_v35  ;;  %4110 = vmatmul.mubr.bf16.gmra.mrb[16].mxu1 %v17579_v35 }
 0x47f   : > { %12943 = vmatprep.mubr.msk.bf16.mxu0 %vm2240_vm13, %v17584_v42  ;;  %12998 = vmatprep.mubr.msk.bf16.mxu1 %vm2240_vm13, %v17584_v42 }
 0x489   : > { %v2640_v16 = vpop.permute.xlu1 %2639 }
 0x48a   : > { %v2838_v13 = vsel %vm2240_vm13, %v2405_v9, %v2640_v16 }
 0x48b   : > { %v2642_v3 = vpop.permute.xlu0 %2641  ;;  %v3181_v14 = vshrl.u32 %v2838_v13, 16  ;;  %v3278_v13 = vrot.slane %v3276_v51, 7  ;;  %v2430_v51 = vld [vmem:[#allocation3 + $0x1d8] sm:$0x1] }
 0x48c   : > { %v2840_v22 = vsel %vm2240_vm13, %v17445_v60, %v2642_v3 }
 0x48d   : > { %v3184_v57 = vshrl.u32 %v2840_v22, 16  ;;  %v2644_v32 = vpop.permute.xlu1 %2643  ;;  %v3187_v11 = vshll.u32 %v2840_v22, 16  ;;  %v3183_v61 = vrot.slane %v3181_v14, 7  ;;  %v2391_v22 = vld [vmem:[#allocation3 + $0xf0] sm:$0x80] }
 0x48e   : > { %v2843_v16 = vsel %vm2240_vm13, %v2407_v23, %v2644_v32  ;;  %v2871_v32 = vor.u32 %v2869_v54, %v2868_v12  ;;  %v2749_v23 = vrot.slane %v2430_v51, 1 }
 0x48f   : > { %v3186_v39 = vrot.slane %v3184_v57, 7  ;;  %v2646_v30 = vpop.permute.xlu0 %2645  ;;  %v3265_v25 = vshrl.u32 %v2843_v16, 16  ;;  %v2864_v57 = vrot.slane %v2862_v31, 7 }
 0x490   : > { %v2845_v53 = vsel %vm2240_vm13, %v17443_v44, %v2646_v30  ;;  %v3286_v44 = vsel %vm693_vm2, %v3278_v13, %v3285_v49 }
 0x491   : > { %v3189_v2 = vor.u32 %v3187_v11, %v3186_v39  ;;  %v3268_v60 = vshrl.u32 %v2845_v53, 16  ;;  %v2572_v9 = vpop.permute.xlu1 %2571  ;;  %v3271_v14 = vshll.u32 %v2845_v53, 16  ;;  %v2748_v11 = vrot.slane %v17483_v43, 1 }
 0x492   : > { %v3267_v31 = vrot.slane %v3265_v25, 7  ;;  %v2872_v54 = vsel %vm693_vm2, %v2864_v57, %v2871_v32 }
 0x493   : > { %v3270_v33 = vrot.slane %v3268_v60, 7  ;;  %v17601_v58 = vsel %vm693_vm2, %v3183_v61, %v3189_v2  ;;  %v2574_v3 = vpop.permute.xlu0 %2573  ;;  %v2750_v2 = vsel %vm1175_vm4, %v2748_v11, %v2749_v23  ;;  %v3866_v51 = vshrl.u32 %v2748_v11, 16 }
 0x494   : > { %3578 = vmatmul.mubr.bf16.gmra.mrb[88].mxu0 %v17601_v58  ;;  %4118 = vmatmul.mubr.bf16.gmra.mrb[20].mxu1 %v17601_v58  ;;  %v2755_v45 = vsel %vm2240_vm13, %v17447_v8, %v2574_v3  ;;  %v2753_v8 = vsel %vm2240_vm13, %v2371_v15, %v2572_v9  ;;  %v3873_v57 = vshll.u32 %v2750_v2, 16 }
 0x495   : > { %12944 = vmatprep.mubr.msk.bf16.mxu0 %vm2240_vm13, %v3286_v44  ;;  %12999 = vmatprep.mubr.msk.bf16.mxu1 %vm2240_vm13, %v3286_v44  ;;  %v2612_v59 = vpop.permute.xlu1 %2611  ;;  %v2854_v38 = vshrl.u32 %v2755_v45, 16  ;;  %v3273_v30 = vor.u32 %v3271_v14, %v3270_v33  ;;  %v2857_v3 = vshll.u32 %v2755_v45, 16  ;;  %v3870_v33 = vshrl.u32 %v2750_v2, 16 }
 0x496   : > { %v2803_v39 = vsel %vm2240_vm13, %v2391_v22, %v2612_v59  ;;  %v2851_v22 = vshrl.u32 %v2753_v8, 16  ;;  %v2409_v59 = vld [vmem:[#allocation3 + $0x1c8] sm:$0x80] }
 0x497   : > { %v2614_v49 = vpop.permute.xlu0 %2613  ;;  %v3027_v61 = vshrl.u32 %v2803_v39, 16  ;;  %v2856_v13 = vrot.slane %v2854_v38, 7  ;;  %v3274_v9 = vsel %vm693_vm2, %v3267_v31, %v3273_v30  ;;  %v3872_v25 = vrot.slane %v3870_v33, 7 }
 0x498   : > { %v2805_v53 = vsel %vm2240_vm13, %v17463_v21, %v2614_v49  ;;  %v3868_v38 = vrot.slane %v3866_v51, 7  ;;  %v2853_v30 = vrot.slane %v2851_v22, 7  ;;  %v15334_v51 = vld [vmem:[%s19481_s3 + $0xd8] sm:$0xff]  }
 0x499   : > { %v3030_v60 = vshrl.u32 %v2805_v53, 16  ;;  %v3033_v12 = vshll.u32 %v2805_v53, 16  ;;  %v17617_v16 = vpop.permute.xlu1 %2607  ;;  %v3029_v15 = vrot.slane %v3027_v61, 7  ;;  %v3875_v23 = vor.u32 %v3873_v57, %v3872_v25  ;;  %v15335_v25 = vld [vmem:[%s19481_s3 + $0xe0] sm:$0xff]  }
 0x49a   : > { %v2859_v8 = vor.u32 %v2857_v3, %v2856_v13  ;;  %v15330_v13 = vld [vmem:[%s19481_s3 + $0xc0] sm:$0xff]  }
 0x49b   : > { %v3032_v44 = vrot.slane %v3030_v60, 7  ;;  %v17620_v14 = vpop.permute.xlu0 %2609  ;;  %v3876_v2 = vsel %vm693_vm2, %v3868_v38, %v3875_v23  ;;  %v17637_v3 = vld [vmem:[#allocation5] sm:$0xff]  ;;  %v15337_v23 = vld [vmem:[%s19481_s3 + $0xf0] sm:$0xff]  }
 0x49c   : > { %3586 = vmatmul.mubr.bf16.gmra.mrb[92].mxu0 %v3274_v9  ;;  %4126 = vmatmul.mubr.bf16.gmra.mrb[24].mxu1 %v3274_v9  ;;  %v2860_v60 = vsel %vm693_vm2, %v2853_v30, %v2859_v8  ;;  %v15332_v9 = vld [vmem:[%s19481_s3 + $0xc8] sm:$0xff]  }
 0x49d   : > { %12957 = vmatprep.mubr.msk.bf16.mxu0 %vm2240_vm13, %v2872_v54  ;;  %v3035_v32 = vor.u32 %v3033_v12, %v3032_v44  ;;  %v2648_v39 = vpop.permute.xlu1 %2647  ;;  %13000 = vmatprep.mubr.msk.bf16.mxu1 %vm2240_vm13, %v3876_v2  ;;  %v2421_v2 = vld [vmem:[#allocation3 + $0x100] sm:$0x1] }
 0x49e   : > { %v2848_v45 = vsel %vm2240_vm13, %v2409_v59, %v2648_v39 }
 0x49f   : > { %v17625_v49 = vsel %vm693_vm2, %v3029_v15, %v3035_v32  ;;  %v2650_v61 = vpop.permute.xlu0 %2649  ;;  %v3855_v53 = vshrl.u32 %v2848_v45, 16  ;;  %v15336_v45 = vld [vmem:[%s19481_s3 + $0xe8] sm:$0xff]  }
 0x4a0   : > { %v2850_v11 = vsel %vm2240_vm13, %v17483_v43, %v2650_v61 }
 0x4a1   : > { %v3858_v31 = vshrl.u32 %v2850_v11, 16  ;;  %v3861_v54 = vshll.u32 %v2850_v11, 16  ;;  %v3857_v33 = vrot.slane %v3855_v53, 7  ;;  %v15338_v53 = vld [vmem:[%s19481_s3 + $0xf8] sm:$0xff]  }
 0x4a3   : > { %v3860_v12 = vrot.slane %v3858_v31, 7  ;;  %v15339_v31 = vld [vmem:[%s19481_s3 + $0x100] sm:$0xff]  }
 0x4a4   : > { %3705 = vmatmul.mubr.bf16.vlgmr.msra.gmra.mrb[96].mxu0 %v2860_v60 }
 0x4a5   : > { %12958 = vmatprep.mubr.msk.bf16.mxu0 %vm2240_vm13, %v17102_v36  ;;  %3982 = vmatpush1.bf16.msra.mxu0 %v15330_v13  ;;  %v3863_v43 = vor.u32 %v3861_v54, %v3860_v12  ;;  %v15333_v36 = vld [vmem:[%s19481_s3 + $0xd0] sm:$0xff]   ;;  %v2800_v54 = vsel %vm2240_vm13, %v17477_v41, %v17620_v14  ;;  %v2721_v12 = vrot.slane %v17463_v21, 1  ;;  %v2389_v13 = vld [vmem:[#allocation3 + $0xd8] sm:$0x80] }
 0x4a6   : > { %3983 = vmatprep.subr.bf16.mxu0 %v17637_v3  ;;  %v2798_v14 = vsel %vm2240_vm13, %v2389_v13, %v17617_v16  ;;  %v15341_v21 = vld [vmem:[%s19481_s3 + $0x110] sm:$0xff]  }
 0x4a7   : > { %v3864_v22 = vsel %vm693_vm2, %v3857_v33, %v3863_v43  ;;  %v2722_v33 = vrot.slane %v2421_v2, 1 }
 0x4a8   : > { %4134 = vmatmul.mubr.bf16.gmra.mrb[28].mxu1 %v3864_v22 }
 0x4a9   : > { %3984 = vmatpush1.bf16.msra.mxu0 %v15332_v9  ;;  %v15340_v9 = vld [vmem:[%s19481_s3 + $0x108] sm:$0xff]  }
 0x4aa   : > { %3985 = vmatprep.subr.bf16.mxu0 %v17637_v3 }
 0x4ac   : > { %3713 = vmatmul.mubr.bf16.gmra.mrb[100].mxu0 %v17275_v6 }
 0x4ad   : > { %12959 = vmatprep.mubr.msk.bf16.mxu0 %vm2240_vm13, %v17281_v55  ;;  %3986 = vmatpush1.bf16.msra.mxu0 %v15333_v36  ;;  %v3836_v36 = vshrl.u32 %v2800_v54, 16 }
 0x4ae   : > { %3987 = vmatprep.subr.bf16.mxu0 %v17637_v3 }
 0x4af   : > { %v17652_v44 = vpop.f32.mrb[32].mxu0 }
 0x4b0   : > { %v3469_v15 = vpop.f32.mrb[33].mxu0 }
 0x4b1   : > { %v17654_v59 = vpop.f32.mrb[34].mxu0  ;;  %3988 = vmatpush1.bf16.msra.mxu0 %v15334_v51  ;;  %v2723_v51 = vsel %vm1175_vm4, %v2721_v12, %v2722_v33 }
 0x4b2   : > { %v3472_v6 = vpop.f32.mrb[35].mxu0  ;;  %3989 = vmatprep.subr.bf16.mxu0 %v17637_v3 }
 0x4b3   : > { %v3838_v6 = vrot.slane %v3836_v36, 7 }
 0x4b4   : > { %3721 = vmatmul.mubr.bf16.gmra.mrb[104].mxu0 %v17299_v28 }
 0x4b5   : > { %12960 = vmatprep.mubr.msk.bf16.mxu0 %vm2240_vm13, %v17308_v1  ;;  %3990 = vmatpush1.bf16.msra.mxu0 %v15335_v25  ;;  %v3839_v25 = vshll.u32 %v2800_v54, 16  ;;  %v3045_v54 = vshll.u32 %v2723_v51, 16 }
 0x4b6   : > { %3991 = vmatprep.subr.bf16.mxu0 %v17637_v3 }
 0x4b7   : > { %v17667_v57 = vpop.f32.mrb[36].mxu0 }
 0x4b8   : > { %v3477_v32 = vpop.f32.mrb[37].mxu0 }
 0x4b9   : > { %v17669_v39 = vpop.f32.mrb[38].mxu0  ;;  %3992 = vmatpush1.bf16.msra.mxu0 %v15336_v45  ;;  %v3833_v32 = vshrl.u32 %v2798_v14, 16  ;;  %v3042_v45 = vshrl.u32 %v2723_v51, 16 }
 0x4ba   : > { %v3480_v38 = vpop.f32.mrb[39].mxu0  ;;  %3993 = vmatprep.subr.bf16.mxu0 %v17637_v3 }
 0x4bb   : > { %v3044_v33 = vrot.slane %v3042_v45, 7 }
 0x4bc   : > { %3729 = vmatmul.mubr.bf16.gmra.mrb[108].mxu0 %v17330_v34 }
 0x4bd   : > { %12961 = vmatprep.mubr.msk.bf16.mxu0 %vm2240_vm13, %v17339_v7  ;;  %3994 = vmatpush1.bf16.msra.mxu0 %v15337_v23 }
 0x4be   : > { %3995 = vmatprep.subr.bf16.mxu0 %v17637_v3 }
 0x4bf   : > { %v17682_v8 = vpop.f32.mrb[40].mxu0 }
 0x4c0   : > { %v3485_v30 = vpop.f32.mrb[41].mxu0 }
 0x4c1   : > { %v17684_v61 = vpop.f32.mrb[42].mxu0  ;;  %3996 = vmatpush1.bf16.msra.mxu0 %v15338_v53  ;;  %v3841_v30 = vor.u32 %v3839_v25, %v3838_v6  ;;  %v3835_v53 = vrot.slane %v3833_v32, 7 }
 0x4c2   : > { %v3488_v11 = vpop.f32.mrb[43].mxu0  ;;  %3997 = vmatprep.subr.bf16.mxu0 %v17637_v3 }
 0x4c3   : > { %v15342_v11 = vld [vmem:[%s19481_s3 + $0x118] sm:$0xff]   ;;  %v17731_v13 = vsel %vm693_vm2, %v3835_v53, %v3841_v30 }
 0x4c4   : > { %3737 = vmatmul.mubr.bf16.gmra.mrb[112].mxu0 %v17359_v10 }
 0x4c5   : > { %12962 = vmatprep.mubr.msk.bf16.mxu0 %vm2240_vm13, %v17367_v17  ;;  %3998 = vmatpush1.bf16.msra.mxu0 %v15339_v31  ;;  %v3038_v31 = vshrl.u32 %v2721_v12, 16 }
 0x4c6   : > { %3999 = vmatprep.subr.bf16.mxu0 %v17637_v3 }
 0x4c7   : > { %v17700_v60 = vpop.f32.mrb[44].mxu0 }
 0x4c8   : > { %v3493_v43 = vpop.f32.mrb[45].mxu0 }
 0x4c9   : > { %v17703_v22 = vpop.f32.mrb[46].mxu0  ;;  %4000 = vmatpush1.bf16.msra.mxu0 %v15340_v9  ;;  %v3040_v43 = vrot.slane %v3038_v31, 7  ;;  %v3047_v9 = vor.u32 %v3045_v54, %v3044_v33 }
 0x4ca   : > { %v3496_v15 = vpop.f32.mrb[47].mxu0  ;;  %4001 = vmatprep.subr.bf16.mxu0 %v17637_v3 }
 0x4cb   : > { %v3048_v51 = vsel %vm693_vm2, %v3040_v43, %v3047_v9 }
 0x4cc   : > { %3745 = vmatmul.mubr.bf16.gmra.mrb[116].mxu0 %v17390_v46 }
 0x4cd   : > { %12963 = vmatprep.mubr.msk.bf16.mxu0 %vm2240_vm13, %v17395_v40  ;;  %4002 = vmatpush1.bf16.msra.mxu0 %v15341_v21 }
 0x4ce   : > { %4003 = vmatprep.subr.bf16.mxu0 %v17637_v3 }
 0x4cf   : > { %v17719_v38 = vpop.f32.mrb[48].mxu0 }
 0x4d0   : > { %v3501_v16 = vpop.f32.mrb[49].mxu0 }
 0x4d1   : > { %v17721_v23 = vpop.f32.mrb[50].mxu0  ;;  %4004 = vmatpush1.bf16.msra.mxu0 %v15342_v11 }
 0x4d2   : > { %v3504_v2 = vpop.f32.mrb[51].mxu0  ;;  %5033 = vmatprep.subr.bf16.mxu0 %v17637_v3 }
 0x4d4   : > { %3753 = vmatmul.mubr.bf16.gmra.mrb[120].mxu0 %v17412_v63 }
 0x4d5   : > { %12964 = vmatprep.mubr.msk.bf16.mxu0 %vm2240_vm13, %v17418_v4 }
 0x4d7   : > { %v17733_v36 = vpop.f32.mrb[52].mxu0 }
 0x4d8   : > { %v3509_v15 = vpop.f32.mrb[53].mxu0 }
 0x4d9   : > { %v17735_v14 = vpop.f32.mrb[54].mxu0 }
 0x4da   : > { %v3512_v12 = vpop.f32.mrb[55].mxu0 }
 0x4dc   : > { %3761 = vmatmul.mubr.bf16.gmra.mrb[124].mxu0 %v17435_v18 }
 0x4dd   : > { %12965 = vmatprep.mubr.msk.bf16.mxu0 %vm2240_vm13, %v3048_v51 }
 0x4e1   : > { %v17740_v21 = vpop.f32.mrb[56].mxu0 }
 0x4e2   : > { %v3517_v6 = vpop.f32.mrb[57].mxu0 }
 0x4e3   : > { %v17742_v25 = vpop.f32.mrb[58].mxu0 }
 0x4e4   : > { %3769 = vmatmul.mubr.bf16.gmra.mrb[128].mxu0 %v17625_v49  ;;  %v3520_v32 = vpop.f32.mrb[59].mxu0 }
 0x4e5   : > { %12966 = vmatprep.mubr.msk.bf16.mxu0 %vm2240_vm13, %v17461_v5 }
 0x4e9   : > { %v17747_v45 = vpop.f32.mrb[60].mxu0 }
 0x4ea   : > { %v3525_v16 = vpop.f32.mrb[61].mxu0 }
 0x4eb   : > { %v17749_v30 = vpop.f32.mrb[62].mxu0 }
 0x4ec   : > { %3777 = vmatmul.mubr.bf16.gmra.mrb[132].mxu0 %v17506_v56  ;;  %v3528_v53 = vpop.f32.mrb[63].mxu0 }
 0x4ed   : > { %12967 = vmatprep.mubr.msk.bf16.mxu0 %vm2240_vm13, %v17241_v50 }
 0x4f4   : > { %3785 = vmatmul.mubr.bf16.gmra.mrb[136].mxu0 %v17513_v48 }
 0x4f5   : > { %12968 = vmatprep.mubr.msk.bf16.mxu0 %vm2240_vm13, %v17517_v62 }
 0x4fc   : > { %3793 = vmatmul.mubr.bf16.gmra.mrb[140].mxu0 %v17533_v37 }
 0x4fd   : > { %12969 = vmatprep.mubr.msk.bf16.mxu0 %vm2240_vm13, %v17538_v19 }
 0x504   : > { %3801 = vmatmul.mubr.bf16.gmra.mrb[144].mxu0 %v17545_v0 }
 0x505   : > { %12970 = vmatprep.mubr.msk.bf16.mxu0 %vm2240_vm13, %v17550_v24  ;;  %v17763_v5 = vpop.f32.mrb[64].mxu0 }
 0x506   : > { %v3533_v56 = vpop.f32.mrb[65].mxu0 }
 0x507   : > { %v17765_v49 = vpop.f32.mrb[66].mxu0 }
 0x508   : > { %v3536_v50 = vpop.f32.mrb[67].mxu0 }
 0x509   : > { %v17767_v48 = vpop.f32.mrb[0].mxu1 }
 0x50a   : > { %v4081_v11 = vpop.f32.mrb[1].mxu1 }
 0x50b   : > { %v17769_v62 = vpop.f32.mrb[2].mxu1 }
 0x50c   : > { %3809 = vmatmul.mubr.bf16.gmra.mrb[148].mxu0 %v17567_v27  ;;  %v4084_v37 = vpop.f32.mrb[3].mxu1 }
 0x50d   : > { %12971 = vmatprep.mubr.msk.bf16.mxu0 %vm2240_vm13, %v17572_v26  ;;  %v17774_v19 = vpop.f32.mrb[68].mxu0 }
 0x50e   : > { %v3541_v0 = vpop.f32.mrb[69].mxu0 }
 0x50f   : > { %v17776_v24 = vpop.f32.mrb[70].mxu0 }
 0x510   : > { %v3544_v2 = vpop.f32.mrb[71].mxu0 }
 0x511   : > { %v4351_v2 = vld [vmem:[#allocation4 + $0xb8] sm:$0x1] }
 0x514   : > { %3817 = vmatmul.mubr.bf16.gmra.mrb[152].mxu0 %v17579_v35 }
 0x515   : > { %12972 = vmatprep.mubr.msk.bf16.mxu0 %vm2240_vm13, %v17584_v42  ;;  %v17781_v31 = vpop.f32.mrb[72].mxu0  ;;  %v17783_v33 = vpop.f32.mrb[4].mxu1 }
 0x516   : > { %v3549_v27 = vpop.f32.mrb[73].mxu0  ;;  %v4089_v54 = vpop.f32.mrb[5].mxu1 }
 0x517   : > { %v17785_v43 = vpop.f32.mrb[74].mxu0  ;;  %v17787_v26 = vpop.f32.mrb[6].mxu1 }
 0x518   : > { %v3552_v9 = vpop.f32.mrb[75].mxu0  ;;  %v4092_v15 = vpop.f32.mrb[7].mxu1 }
 0x519   : > { %v4352_v9 = vsel %vm16931_vm15, 0, %v4351_v2 }
 0x51a   : > { %4353 = vst [vmem:[#allocation4 + $0xb8] sm:$0x1] %v4352_v9 }
 0x51c   : > { %3825 = vmatmul.mubr.bf16.gmra.mrb[156].mxu0 %v17601_v58 }
 0x51d   : > { %12985 = vmatprep.mubr.msk.bf16.mxu0 %vm2240_vm13, %v17281_v55  ;;  %v17792_v35 = vpop.f32.mrb[76].mxu0  ;;  %v17794_v42 = vpop.f32.mrb[8].mxu1  ;;  %v2420_v55 = vld [vmem:[#allocation3 + $0xe8] sm:$0x1] }
 0x51e   : > { %v3557_v12 = vpop.f32.mrb[77].mxu0  ;;  %v4097_v51 = vpop.f32.mrb[9].mxu1  ;;  %v2719_v58 = vrot.slane %v2420_v55, 1  ;;  %v4354_v55 = vld [vmem:[#allocation4 + $0xd0] sm:$0x1] }
 0x51f   : > { %v17796_v6 = vpop.f32.mrb[78].mxu0  ;;  %v17798_v32 = vpop.f32.mrb[10].mxu1 }
 0x520   : > { %v3560_v16 = vpop.f32.mrb[79].mxu0  ;;  %v4100_v53 = vpop.f32.mrb[11].mxu1 }
 0x524   : > { %4014 = vmatmul.mubr.bf16.vlgmr.msra.gmra.mrb[160].mxu0 %v17299_v28  ;;  %v2718_v28 = vrot.slane %v17477_v41, 1 }
 0x525   : > { %12986 = vmatprep.mubr.msk.bf16.mxu0 %vm2240_vm13, %v17308_v1 }
 0x526   : > { %v2720_v1 = vsel %vm1175_vm4, %v2718_v28, %v2719_v58  ;;  %v3844_v56 = vshrl.u32 %v2718_v28, 16  ;;  %v4355_v28 = vsel %vm16931_vm15, 0, %v4354_v55 }
 0x527   : > { %4356 = vst [vmem:[#allocation4 + $0xd0] sm:$0x1] %v4355_v28 }
 0x52c   : > { %4022 = vmatmul.mubr.bf16.gmra.mrb[164].mxu0 %v17330_v34  ;;  %v3848_v34 = vshrl.u32 %v2720_v1, 16 }
 0x52d   : > { %12987 = vmatprep.mubr.msk.bf16.mxu0 %vm2240_vm13, %v17339_v7 }
 0x52e   : > { %v3850_v50 = vrot.slane %v3848_v34, 7 }
 0x534   : > { %4030 = vmatmul.mubr.bf16.gmra.mrb[168].mxu0 %v17359_v10 }
 0x535   : > { %12988 = vmatprep.mubr.msk.bf16.mxu0 %vm2240_vm13, %v17367_v17 }
 0x53c   : > { %4038 = vmatmul.mubr.bf16.gmra.mrb[172].mxu0 %v17390_v46 }
 0x53d   : > { %12989 = vmatprep.mubr.msk.bf16.mxu0 %vm2240_vm13, %v17395_v40  ;;  %v3851_v40 = vshll.u32 %v2720_v1, 16 }
 0x53f   : > { %v3853_v0 = vor.u32 %v3851_v40, %v3850_v50 }
 0x544   : > { %4046 = vmatmul.mubr.bf16.gmra.mrb[176].mxu0 %v17412_v63 }
 0x545   : > { %12990 = vmatprep.mubr.msk.bf16.mxu0 %vm2240_vm13, %v17418_v4  ;;  %v3846_v4 = vrot.slane %v3844_v56, 7 }
 0x547   : > { %v3854_v51 = vsel %vm693_vm2, %v3846_v4, %v3853_v0  ;;  %v4357_v4 = vld [vmem:[#allocation4 + $0xe8] sm:$0x1] }
 0x548   : > { %v4358_v9 = vsel %vm16931_vm15, 0, %v4357_v4 }
 0x549   : > { %v17817_v7 = vpop.f32.mrb[80].mxu0  ;;  %v17819_v10 = vpop.f32.mrb[12].mxu1  ;;  %4359 = vst [vmem:[#allocation4 + $0xe8] sm:$0x1] %v4358_v9 }
 0x54a   : > { %v3565_v17 = vpop.f32.mrb[81].mxu0  ;;  %v4105_v46 = vpop.f32.mrb[13].mxu1 }
 0x54b   : > { %v17821_v11 = vpop.f32.mrb[82].mxu0  ;;  %v17823_v41 = vpop.f32.mrb[14].mxu1 }
 0x54c   : > { %4054 = vmatmul.mubr.bf16.gmra.mrb[180].mxu0 %v17435_v18  ;;  %v3568_v63 = vpop.f32.mrb[83].mxu0  ;;  %v4108_v37 = vpop.f32.mrb[15].mxu1 }
 0x54d   : > { %12991 = vmatprep.mubr.msk.bf16.mxu0 %vm2240_vm13, %v17439_v52 }
 0x551   : > { %v17828_v27 = vpop.f32.mrb[84].mxu0  ;;  %v17830_v54 = vpop.f32.mrb[16].mxu1 }
 0x552   : > { %v3573_v15 = vpop.f32.mrb[85].mxu0  ;;  %v4113_v12 = vpop.f32.mrb[17].mxu1 }
 0x553   : > { %v17835_v18 = vpop.f32.mrb[86].mxu0  ;;  %v17837_v16 = vpop.f32.mrb[18].mxu1 }
 0x554   : > { %4062 = vmatmul.mubr.bf16.gmra.mrb[184].mxu0 %v17452_v20  ;;  %v3576_v52 = vpop.f32.mrb[87].mxu0  ;;  %v4116_v53 = vpop.f32.mrb[19].mxu1 }
 0x555   : > { %12992 = vmatprep.mubr.msk.bf16.mxu0 %vm2240_vm13, %v3854_v51 }
 0x55c   : > { %4070 = vmatmul.mubr.bf16.gmra.mrb[188].mxu0 %v17731_v13 }
 0x567   : > { %v17844_v58 = vpop.f32.mrb[88].mxu0  ;;  %v17846_v1 = vpop.f32.mrb[20].mxu1 }
 0x568   : > { %v3581_v34 = vpop.f32.mrb[89].mxu0  ;;  %v4121_v17 = vpop.f32.mrb[21].mxu1 }
 0x569   : > { %v17848_v46 = vpop.f32.mrb[90].mxu0  ;;  %v17850_v20 = vpop.f32.mrb[22].mxu1 }
 0x56a   : > { %v3584_v56 = vpop.f32.mrb[91].mxu0  ;;  %v4124_v50 = vpop.f32.mrb[23].mxu1 }
 0x56f   : > { %v17852_v40 = vpop.f32.mrb[92].mxu0  ;;  %v17854_v13 = vpop.f32.mrb[24].mxu1 }
 0x570   : > { %v3589_v63 = vpop.f32.mrb[93].mxu0  ;;  %v4129_v37 = vpop.f32.mrb[25].mxu1 }
 0x571   : > { %v17856_v0 = vpop.f32.mrb[94].mxu0  ;;  %v17858_v2 = vpop.f32.mrb[26].mxu1 }
 0x572   : > { %v3592_v15 = vpop.f32.mrb[95].mxu0  ;;  %v4132_v12 = vpop.f32.mrb[27].mxu1 }
 0x573   : > { %v4360_v15 = vld [vmem:[#allocation4 + $0x100] sm:$0x1] }
 0x574   : > { %v4361_v12 = vsel %vm16931_vm15, 0, %v4360_v15 }
 0x575   : > { %4362 = vst [vmem:[#allocation4 + $0x100] sm:$0x1] %v4361_v12 }
 0x577   : > { %v3706_v51 = vpop.f32.mrb[96].mxu0 }
 0x578   : > { %v17863_v52 = vadd.f32 %v3706_v51, %v17652_v44  ;;  %v3708_v53 = vpop.f32.mrb[97].mxu0 }
 0x579   : > { %v3709_v55 = vpop.f32.mrb[98].mxu0 }
 0x57a   : > { %v17866_v28 = vadd.f32 %v3709_v55, %v17654_v59  ;;  %v3711_v34 = vpop.f32.mrb[99].mxu0 }
 0x57b   : > { %v17868_v17 = vpop.f32.mrb[28].mxu1 }
 0x57c   : > { %v4137_v56 = vpop.f32.mrb[29].mxu1 }
 0x57d   : > { %v17870_v50 = vpop.f32.mrb[30].mxu1 }
 0x57e   : > { %v4140_v63 = vpop.f32.mrb[31].mxu1 }
 0x57f   : > { %v3714_v37 = vpop.f32.mrb[100].mxu0 }
 0x580   : > { %v17873_v4 = vadd.f32 %v3714_v37, %v17667_v57  ;;  %v3716_v9 = vpop.f32.mrb[101].mxu0  ;;  %v4339_v37 = vld [vmem:[#allocation4 + $0x28] sm:$0x1] }
 0x581   : > { %v3717_v44 = vpop.f32.mrb[102].mxu0  ;;  %v4340_v15 = vsel %vm16931_vm15, 0, %v4339_v37 }
 0x582   : > { %v17878_v59 = vadd.f32 %v3717_v44, %v17669_v39  ;;  %v3719_v51 = vpop.f32.mrb[103].mxu0  ;;  %4341 = vst [vmem:[#allocation4 + $0x28] sm:$0x1] %v4340_v15 }
 0x587   : > { %v3722_v53 = vpop.f32.mrb[104].mxu0 }
 0x588   : > { %v17881_v55 = vadd.f32 %v3722_v53, %v17682_v8  ;;  %v3724_v34 = vpop.f32.mrb[105].mxu0 }
 0x589   : > { %v3725_v56 = vpop.f32.mrb[106].mxu0 }
 0x58a   : > { %v17884_v57 = vadd.f32 %v3725_v56, %v17684_v61  ;;  %v3727_v63 = vpop.f32.mrb[107].mxu0 }
 0x58c   : > { %19552 = vst [vmem:[#allocation40_spill] sm:$0xff] %v17884_v57  ;;  %v4342_v57 = vld [vmem:[#allocation4 + $0x40] sm:$0x1] }
 0x58f   : > { %v3730_v9 = vpop.f32.mrb[108].mxu0 }
 0x590   : > { %v17889_v39 = vadd.f32 %v3730_v9, %v17700_v60  ;;  %v3732_v44 = vpop.f32.mrb[109].mxu0  ;;  %v4343_v9 = vsel %vm16931_vm15, 0, %v4342_v57 }
 0x591   : > { %v3733_v12 = vpop.f32.mrb[110].mxu0  ;;  %4344 = vst [vmem:[#allocation4 + $0x40] sm:$0x1] %v4343_v9 }
 0x592   : > { %v17892_v8 = vadd.f32 %v3733_v12, %v17703_v22  ;;  %v3735_v51 = vpop.f32.mrb[111].mxu0 }
 0x597   : > { %v3738_v53 = vpop.f32.mrb[112].mxu0 }
 0x598   : > { %v17895_v61 = vadd.f32 %v3738_v53, %v17719_v38  ;;  %v3740_v34 = vpop.f32.mrb[113].mxu0 }
 0x599   : > { %v3741_v56 = vpop.f32.mrb[114].mxu0 }
 0x59a   : > { %v17898_v63 = vadd.f32 %v3741_v56, %v17721_v23  ;;  %v3743_v37 = vpop.f32.mrb[115].mxu0 }
 0x59b   : > { %v4345_v37 = vld [vmem:[#allocation4 + $0x58] sm:$0x1] }
 0x59f   : > { %v3746_v60 = vpop.f32.mrb[116].mxu0 }
 0x5a0   : > { %v17903_v15 = vadd.f32 %v3746_v60, %v17733_v36  ;;  %v3748_v22 = vpop.f32.mrb[117].mxu0  ;;  %v4346_v60 = vsel %vm16931_vm15, 0, %v4345_v37 }
 0x5a1   : > { %v3749_v44 = vpop.f32.mrb[118].mxu0  ;;  %4347 = vst [vmem:[#allocation4 + $0x58] sm:$0x1] %v4346_v60  ;;  %v4348_v60 = vld [vmem:[#allocation4 + $0x70] sm:$0x1] }
 0x5a2   : > { %v17906_v38 = vadd.f32 %v3749_v44, %v17735_v14  ;;  %v3751_v12 = vpop.f32.mrb[119].mxu0 }
 0x5a7   : > { %v3754_v51 = vpop.f32.mrb[120].mxu0 }
 0x5a8   : > { %v17909_v23 = vadd.f32 %v3754_v51, %v17740_v21  ;;  %v3756_v53 = vpop.f32.mrb[121].mxu0 }
 0x5a9   : > { %v3757_v34 = vpop.f32.mrb[122].mxu0 }
 0x5aa   : > { %v17912_v56 = vadd.f32 %v3757_v34, %v17742_v25  ;;  %v3759_v57 = vpop.f32.mrb[123].mxu0 }
 0x5af   : > { %v3762_v36 = vpop.f32.mrb[124].mxu0 }
 0x5b0   : > { %v17917_v9 = vadd.f32 %v3762_v36, %v17747_v45  ;;  %v3764_v14 = vpop.f32.mrb[125].mxu0  ;;  %v17926_v36 = vld [vmem:[#allocation13] ss:$0 sm:$0xff] }
 0x5b1   : > { %v3765_v22 = vpop.f32.mrb[126].mxu0 }
 0x5b2   : > { %v17920_v21 = vadd.f32 %v3765_v22, %v17749_v30  ;;  %v3767_v44 = vpop.f32.mrb[127].mxu0  ;;  %v4349_v30 = vsel %vm16931_vm15, 0, %v4348_v60 }
 0x5b3   : > { %4350 = vst [vmem:[#allocation4 + $0x70] sm:$0x1] %v4349_v30 }
 0x5b7   : > { %v3770_v12 = vpop.f32.mrb[128].mxu0 }
 0x5b8   : > { %v3771_v25 = vadd.f32 %v3770_v12, %v17763_v5  ;;  %v3772_v51 = vpop.f32.mrb[129].mxu0 }
 0x5b9   : > { %v3773_v53 = vpop.f32.mrb[130].mxu0 }
 0x5ba   : > { %v4158_v34 = vadd.f32 %v17767_v48, %v3771_v25  ;;  %v3774_v57 = vadd.f32 %v3773_v53, %v17765_v49  ;;  %v3775_v37 = vpop.f32.mrb[131].mxu0 }
 0x5bc   : > { %v4159_v45 = vadd.f32 %v17769_v62, %v3774_v57  ;;  %v4197_v22 = vadd.f32 %v17926_v36, %v4158_v34 }
 0x5be   : > { %v4198_v48 = vadd.f32 %v17926_v36, %v4159_v45  ;;  %v4229_v51 = vmax.f32 %v4197_v22, 0.0 }
 0x5bf   : > { %v3778_v14 = vpop.f32.mrb[132].mxu0 }
 0x5c0   : > { %v3779_v5 = vadd.f32 %v3778_v14, %v17774_v19  ;;  %v3780_v44 = vpop.f32.mrb[133].mxu0  ;;  %v4230_v57 = vmax.f32 %v4198_v48, 0.0  ;;  %v4269_v60 = vsel %vm2240_vm13, %v4229_v51, -inf }
 0x5c1   : > { %v3781_v12 = vpop.f32.mrb[134].mxu0 }
 0x5c2   : > { %v4160_v49 = vadd.f32 %v17783_v33, %v3779_v5  ;;  %v3782_v62 = vadd.f32 %v3781_v12, %v17776_v24  ;;  %v3783_v25 = vpop.f32.mrb[135].mxu0  ;;  %v4272_v22 = vsel %vm2240_vm13, %v4230_v57, -inf }
 0x5c4   : > { %v4199_v53 = vadd.f32 %v17926_v36, %v4160_v49  ;;  %v4161_v47 = vadd.f32 %v17787_v26, %v3782_v62 }
 0x5c6   : > { %v4231_v37 = vmax.f32 %v4199_v53, 0.0  ;;  %v4200_v34 = vadd.f32 %v17926_v36, %v4161_v47 }
 0x5c7   : > { %v3786_v19 = vpop.f32.mrb[136].mxu0 }
 0x5c8   : > { %v4270_v14 = vsel %vm2240_vm13, %v4231_v37, -inf  ;;  %v4232_v45 = vmax.f32 %v4200_v34, 0.0  ;;  %v3787_v33 = vadd.f32 %v3786_v19, %v17781_v31  ;;  %v3788_v30 = vpop.f32.mrb[137].mxu0 }
 0x5c9   : > { %v4271_v24 = vmax.f32 %v4269_v60, %v4270_v14  ;;  %v3789_v5 = vpop.f32.mrb[138].mxu0 }
 0x5ca   : > { %v4273_v44 = vsel %vm2240_vm13, %v4232_v45, -inf  ;;  %v4162_v26 = vadd.f32 %v17794_v42, %v3787_v33  ;;  %v3790_v12 = vadd.f32 %v3789_v5, %v17785_v43  ;;  %v3791_v48 = vpop.f32.mrb[139].mxu0 }
 0x5cb   : > { %v4274_v49 = vmax.f32 %v4272_v22, %v4273_v44 }
 0x5cc   : > { %v4163_v62 = vadd.f32 %v17798_v32, %v3790_v12  ;;  %v4201_v31 = vadd.f32 %v17926_v36, %v4162_v26 }
 0x5cd   : > { %v4297_v25 = vpack.c.bf16 %v4274_v49, %v4271_v24 }
 0x5ce   : > { %v4202_v37 = vadd.f32 %v17926_v36, %v4163_v62  ;;  %v4233_v19 = vmax.f32 %v4201_v31, 0.0 }
 0x5cf   : > { %4367 = vst.msk [vmem:[#allocation4 + $0xb0] sm:$0xff] %vm2240_vm13, %v4297_v25  ;;  %v3794_v51 = vpop.f32.mrb[140].mxu0 }
 0x5d0   : > { %v3795_v53 = vadd.f32 %v3794_v51, %v17792_v35  ;;  %v3796_v47 = vpop.f32.mrb[141].mxu0  ;;  %v4234_v14 = vmax.f32 %v4202_v37, 0.0  ;;  %v4275_v35 = vsel %vm2240_vm13, %v4233_v19, -inf }
 0x5d1   : > { %v3797_v57 = vpop.f32.mrb[142].mxu0 }
 0x5d2   : > { %v4164_v42 = vadd.f32 %v17819_v10, %v3795_v53  ;;  %v3798_v43 = vadd.f32 %v3797_v57, %v17796_v6  ;;  %v3799_v34 = vpop.f32.mrb[143].mxu0  ;;  %v4278_v26 = vsel %vm2240_vm13, %v4234_v14, -inf  ;;  %v14551_v14 = vld [vmem:[#allocation14 + $0x68] sm:$0xff]  }
 0x5d4   : > { %v4203_v32 = vadd.f32 %v17926_v36, %v4164_v42  ;;  %v4165_v60 = vadd.f32 %v17823_v41, %v3798_v43  ;;  %v14550_v43 = vld [vmem:[#allocation14 + $0x60] sm:$0xff]  }
 0x5d5   : > { %5034 = vmatpush1.bf16.msra.mxu0 %v14550_v43  ;;  %v14563_v43 = vld [vmem:[#allocation14 + $0xe0] sm:$0xff]  }
 0x5d6   : > { %v4235_v45 = vmax.f32 %v4203_v32, 0.0  ;;  %v4204_v33 = vadd.f32 %v17926_v36, %v4165_v60  ;;  %v14555_v32 = vld [vmem:[#allocation14 + $0xc0] sm:$0xff]   ;;  %5035 = vmatprep.subr.bf16.mxu0 %v17637_v3 }
 0x5d7   : > { %v3802_v30 = vpop.f32.mrb[144].mxu0  ;;  %5454 = vmatpush1.bf16.msra.mxu1 %v14555_v32 }
 0x5d8   : > { %v4276_v24 = vsel %vm2240_vm13, %v4235_v45, -inf  ;;  %v4236_v5 = vmax.f32 %v4204_v33, 0.0  ;;  %v3803_v10 = vadd.f32 %v3802_v30, %v17817_v7  ;;  %v3804_v22 = vpop.f32.mrb[145].mxu0  ;;  %5455 = vmatprep.subr.bf16.mxu1 %v17637_v3 }
 0x5d9   : > { %v4277_v6 = vmax.f32 %v4275_v35, %v4276_v24  ;;  %v3805_v44 = vpop.f32.mrb[146].mxu0  ;;  %5036 = vmatpush1.bf16.msra.mxu0 %v14551_v14 }
 0x5da   : > { %v4279_v12 = vsel %vm2240_vm13, %v4236_v5, -inf  ;;  %v4166_v41 = vadd.f32 %v17830_v54, %v3803_v10  ;;  %v3806_v48 = vadd.f32 %v3805_v44, %v17821_v11  ;;  %v3807_v49 = vpop.f32.mrb[147].mxu0  ;;  %v4315_v44 = vld [vmem:[#allocation4 + $0x18] sm:$0x80]  ;;  %5037 = vmatprep.subr.bf16.mxu0 %v17637_v3 }
 0x5db   : > { %v4280_v62 = vmax.f32 %v4278_v26, %v4279_v12  ;;  %v14559_v49 = vld [vmem:[#allocation14 + $0xd0] sm:$0xff]  }
 0x5dc   : > { %v4167_v25 = vadd.f32 %v17837_v16, %v3806_v48  ;;  %v4205_v7 = vadd.f32 %v17926_v36, %v4166_v41 }
 0x5dd   : > { %v4298_v51 = vpack.c.bf16 %v4280_v62, %v4277_v6  ;;  %v14552_v6 = vld [vmem:[#allocation14 + $0x70] sm:$0xff]  }
 0x5de   : > { %v4206_v57 = vadd.f32 %v17926_v36, %v4167_v25  ;;  %v4237_v34 = vmax.f32 %v4205_v7, 0.0  ;;  %5038 = vmatpush1.bf16.msra.mxu0 %v14552_v6 }
 0x5df   : > { %4368 = vst.msk [vmem:[#allocation4 + $0xc8] sm:$0xff] %vm2240_vm13, %v4298_v51  ;;  %v3810_v31 = vpop.f32.mrb[148].mxu0  ;;  %5039 = vmatprep.subr.bf16.mxu0 %v17637_v3 }
 0x5e0   : > { %v3811_v53 = vadd.f32 %v3810_v31, %v17828_v27  ;;  %v3812_v47 = vpop.f32.mrb[149].mxu0  ;;  %v4238_v60 = vmax.f32 %v4206_v57, 0.0  ;;  %v14553_v31 = vld [vmem:[#allocation14 + $0x78] sm:$0xff]  }
 0x5e1   : > { %v3813_v37 = vpop.f32.mrb[150].mxu0 }
 0x5e2   : > { %v4168_v54 = vadd.f32 %v17846_v1, %v3811_v53  ;;  %v3814_v11 = vadd.f32 %v3813_v37, %v17835_v18  ;;  %v3815_v42 = vpop.f32.mrb[151].mxu0  ;;  %v14557_v1 = vld [vmem:[#allocation14 + $0xc8] sm:$0xff]   ;;  %v4281_v18 = vsel %vm2240_vm13, %v4237_v34, -inf  ;;  %v4284_v5 = vsel %vm2240_vm13, %v4238_v60, -inf  ;;  %5040 = vmatpush1.bf16.msra.mxu0 %v14553_v31 }
 0x5e3   : > { %5456 = vmatpush1.bf16.msra.mxu1 %v14557_v1  ;;  %5041 = vmatprep.subr.bf16.mxu0 %v17637_v3 }
 0x5e4   : > { %v4207_v16 = vadd.f32 %v17926_v36, %v4168_v54  ;;  %v4169_v19 = vadd.f32 %v17850_v20, %v3814_v11  ;;  %5457 = vmatprep.subr.bf16.mxu1 %v17637_v3 }
 0x5e6   : > { %v4239_v27 = vmax.f32 %v4207_v16, 0.0  ;;  %v4208_v45 = vadd.f32 %v17926_v36, %v4169_v19  ;;  %v14556_v19 = vld [vmem:[#allocation14 + $0x88] sm:$0xff]  }
 0x5e7   : > { %v3818_v33 = vpop.f32.mrb[152].mxu0  ;;  %5458 = vmatpush1.bf16.msra.mxu1 %v14559_v49  ;;  %v14562_v49 = vld [vmem:[#allocation14 + $0xa0] sm:$0xff]  }
 0x5e8   : > { %v4282_v30 = vsel %vm2240_vm13, %v4239_v27, -inf  ;;  %v4240_v35 = vmax.f32 %v4208_v45, 0.0  ;;  %v3819_v20 = vadd.f32 %v3818_v33, %v17844_v58  ;;  %v3820_v24 = vpop.f32.mrb[153].mxu0  ;;  %v4316_v58 = vsel %vm17029_vm1, 0, %v4315_v44  ;;  %5459 = vmatprep.subr.bf16.mxu1 %v17637_v3 }
 0x5e9   : > { %v4283_v10 = vmax.f32 %v4281_v18, %v4282_v30  ;;  %v3821_v22 = vpop.f32.mrb[154].mxu0  ;;  %4317 = vst [vmem:[#allocation4 + $0x18] sm:$0x80] %v4316_v58 }
 0x5ea   : > { %v4285_v26 = vsel %vm2240_vm13, %v4240_v35, -inf  ;;  %v4170_v12 = vadd.f32 %v17854_v13, %v3819_v20  ;;  %v3822_v41 = vadd.f32 %v3821_v22, %v17848_v46  ;;  %v3823_v48 = vpop.f32.mrb[155].mxu0  ;;  %v14561_v46 = vld [vmem:[#allocation14 + $0xd8] sm:$0xff]   ;;  %v14558_v35 = vld [vmem:[#allocation14 + $0x90] sm:$0xff]  }
 0x5eb   : > { %v4286_v62 = vmax.f32 %v4284_v5, %v4285_v26  ;;  %5460 = vmatpush1.bf16.msra.mxu1 %v14561_v46 }
 0x5ec   : > { %v4171_v25 = vadd.f32 %v17858_v2, %v3822_v41  ;;  %v4209_v7 = vadd.f32 %v17926_v36, %v4170_v12  ;;  %v14554_v2 = vld [vmem:[#allocation14 + $0x80] sm:$0xff]   ;;  %5461 = vmatprep.subr.bf16.mxu1 %v17637_v3 }
 0x5ed   : > { %v4299_v51 = vpack.c.bf16 %v4286_v62, %v4283_v10  ;;  %5042 = vmatpush1.bf16.msra.mxu0 %v14554_v2 }
 0x5ee   : > { %v4210_v37 = vadd.f32 %v17926_v36, %v4171_v25  ;;  %v4241_v34 = vmax.f32 %v4209_v7, 0.0  ;;  %5043 = vmatprep.subr.bf16.mxu0 %v17637_v3  ;;  %v14564_v7 = vld [vmem:[#allocation14 + $0xa8] sm:$0xff]  }
 0x5ef   : > { %4369 = vst.msk [vmem:[#allocation4 + $0xe0] sm:$0xff] %vm2240_vm13, %v4299_v51  ;;  %v3826_v13 = vpop.f32.mrb[156].mxu0  ;;  %5462 = vmatpush1.bf16.msra.mxu1 %v14563_v43 }
 0x5f0   : > { %v3827_v53 = vadd.f32 %v3826_v13, %v17852_v40  ;;  %v3828_v47 = vpop.f32.mrb[157].mxu0  ;;  %v4242_v32 = vmax.f32 %v4210_v37, 0.0  ;;  %5463 = vmatprep.subr.bf16.mxu1 %v17637_v3  ;;  %v4287_v27 = vsel %vm2240_vm13, %v4241_v34, -inf  ;;  %v19553_v34 = vld [vmem:[#allocation40_spill] sm:$0xff] }
 0x5f1   : > { %v3829_v57 = vpop.f32.mrb[158].mxu0  ;;  %5044 = vmatpush1.bf16.msra.mxu0 %v14556_v19 }
 0x5f2   : > { %v3830_v54 = vadd.f32 %v3829_v57, %v17856_v0  ;;  %v4172_v11 = vadd.f32 %v17868_v17, %v3827_v53  ;;  %v3831_v42 = vpop.f32.mrb[159].mxu0  ;;  %v14565_v17 = vld [vmem:[#allocation14 + $0xe8] sm:$0xff]   ;;  %v4290_v20 = vsel %vm2240_vm13, %v4242_v32, -inf  ;;  %5045 = vmatprep.subr.bf16.mxu0 %v17637_v3 }
 0x5f3   : > { %5464 = vmatpush1.bf16.msra.mxu1 %v14565_v17 }
 0x5f4   : > { %v4211_v40 = vadd.f32 %v17926_v36, %v4172_v11  ;;  %v4173_v16 = vadd.f32 %v17870_v50, %v3830_v54  ;;  %5465 = vmatprep.subr.bf16.mxu1 %v17637_v3 }
 0x5f5   : > { %5046 = vmatpush1.bf16.msra.mxu0 %v14558_v35 }
 0x5f6   : > { %v4243_v60 = vmax.f32 %v4211_v40, 0.0  ;;  %v4212_v0 = vadd.f32 %v17926_v36, %v4173_v16  ;;  %5047 = vmatprep.subr.bf16.mxu0 %v17637_v3 }
 0x5f7   : > { %v4015_v14 = vpop.f32.mrb[160].mxu0 }
 0x5f8   : > { %v4288_v45 = vsel %vm2240_vm13, %v4243_v60, -inf  ;;  %v4244_v1 = vmax.f32 %v4212_v0, 0.0  ;;  %v4142_v50 = vadd.f32 %v4015_v14, %v17863_v52  ;;  %v4017_v33 = vpop.f32.mrb[161].mxu0  ;;  %v14560_v52 = vld [vmem:[#allocation14 + $0x98] sm:$0xff]   ;;  %v4396_v14 = vld [vmem:[#allocation4 + $0x28] sm:$0x1] }
 0x5f9   : > { %v4289_v18 = vmax.f32 %v4287_v27, %v4288_v45  ;;  %v4018_v30 = vpop.f32.mrb[162].mxu0  ;;  %5048 = vmatpush1.bf16.msra.mxu0 %v14560_v52  ;;  %v14566_v27 = vld [vmem:[#allocation14 + $0xb0] sm:$0xff]  }
 0x5fa   : > { %v4291_v24 = vsel %vm2240_vm13, %v4244_v1, -inf  ;;  %v4143_v5 = vadd.f32 %v4018_v30, %v17866_v28  ;;  %v4020_v10 = vpop.f32.mrb[163].mxu0  ;;  %v4181_v44 = vadd.f32 %v17926_v36, %v4142_v50  ;;  %5049 = vmatprep.subr.bf16.mxu0 %v17637_v3  ;;  %v14567_v45 = vld [vmem:[#allocation14 + $0xf0] sm:$0xff]  }
 0x5fb   : > { %v4292_v22 = vmax.f32 %v4290_v20, %v4291_v24  ;;  %5466 = vmatpush1.bf16.msra.mxu1 %v14567_v45  ;;  %v4567_v20 = vrot.slane %v4396_v14, 1  ;;  %v14569_v24 = vld [vmem:[#allocation14 + $0xf8] sm:$0xff]  }
 0x5fc   : > { %v4182_v12 = vadd.f32 %v17926_v36, %v4143_v5  ;;  %v4213_v58 = vmax.f32 %v4181_v44, 0.0  ;;  %5467 = vmatprep.subr.bf16.mxu1 %v17637_v3  ;;  %v4318_v44 = vld [vmem:[#allocation4 + $0x30] sm:$0x80] }
 0x5fd   : > { %v4300_v6 = vpack.c.bf16 %v4292_v22, %v4289_v18  ;;  %5050 = vmatpush1.bf16.msra.mxu0 %v14562_v49 }
 0x5fe   : > { %v4214_v31 = vmax.f32 %v4182_v12, 0.0  ;;  %5051 = vmatprep.subr.bf16.mxu0 %v17637_v3 }
 0x5ff   : > { %4370 = vst.msk [vmem:[#allocation4 + $0xf8] sm:$0xff] %vm2240_vm13, %v4300_v6  ;;  %v4023_v26 = vpop.f32.mrb[164].mxu0  ;;  %5468 = vmatpush1.bf16.msra.mxu1 %v14569_v24  ;;  %v4321_v24 = vld [vmem:[#allocation4 + $0x48] sm:$0x80] }
 0x600   : > { %v4144_v28 = vadd.f32 %v4023_v26, %v17873_v4  ;;  %v4025_v41 = vpop.f32.mrb[165].mxu0  ;;  %v4245_v4 = vsel %vm2240_vm13, %v4213_v58, -inf }
 0x601   : > { %v4026_v48 = vpop.f32.mrb[166].mxu0  ;;  %5052 = vmatpush1.bf16.msra.mxu0 %v14564_v7 }
 0x602   : > { %v4183_v62 = vadd.f32 %v17926_v36, %v4144_v28  ;;  %v4145_v25 = vadd.f32 %v4026_v48, %v17878_v59  ;;  %v4028_v51 = vpop.f32.mrb[167].mxu0  ;;  %v4248_v59 = vsel %vm2240_vm13, %v4214_v31, -inf  ;;  %5053 = vmatprep.subr.bf16.mxu0 %v17637_v3 }
 0x603   : > { %v14570_v51 = vld [vmem:[#allocation14 + $0x100] sm:$0xff]  }
 0x604   : > { %v4215_v46 = vmax.f32 %v4183_v62, 0.0  ;;  %v4184_v13 = vadd.f32 %v17926_v36, %v4145_v25  ;;  %v18046_v25 = vld [vmem:[#allocation5] sm:$0xff] }
 0x605   : > { %5054 = vmatpush1.bf16.msra.mxu0 %v14566_v27  ;;  %5469 = vmatprep.subr.bf16.mxu1 %v18046_v25 }
 0x606   : > { %v4246_v53 = vsel %vm2240_vm13, %v4215_v46, -inf  ;;  %v4216_v47 = vmax.f32 %v4184_v13, 0.0  ;;  %5055 = vmatprep.subr.bf16.mxu0 %v17637_v3  ;;  %v4319_v3 = vsel %vm17029_vm1, 0, %v4318_v44  ;;  %5470 = vmatpush1.bf16.msra.mxu1 %v14570_v51 }
 0x607   : > { %v4247_v57 = vmax.f32 %v4245_v4, %v4246_v53  ;;  %v4031_v2 = vpop.f32.mrb[168].mxu0  ;;  %4320 = vst [vmem:[#allocation4 + $0x30] sm:$0x80] %v4319_v3  ;;  %5471 = vmatprep.subr.bf16.mxu1 %v18046_v25 }
 0x608   : > { %v4249_v37 = vsel %vm2240_vm13, %v4216_v47, -inf  ;;  %v4146_v54 = vadd.f32 %v4031_v2, %v17881_v55  ;;  %v4033_v11 = vpop.f32.mrb[169].mxu0 }
 0x609   : > { %v4250_v42 = vmax.f32 %v4248_v59, %v4249_v37  ;;  %v4034_v43 = vpop.f32.mrb[170].mxu0  ;;  %v14571_v11 = vld [vmem:[#allocation14 + $0x108] sm:$0xff]  }
 0x60a   : > { %v4147_v40 = vadd.f32 %v4034_v43, %v19553_v34  ;;  %v4036_v16 = vpop.f32.mrb[171].mxu0  ;;  %v4185_v32 = vadd.f32 %v17926_v36, %v4146_v54  ;;  %5472 = vmatpush1.bf16.msra.mxu1 %v14571_v11 }
 0x60b   : > { %v4293_v19 = vpack.c.bf16 %v4250_v42, %v4247_v57  ;;  %5473 = vmatprep.subr.bf16.mxu1 %v18046_v25 }
 0x60c   : > { %v4186_v60 = vadd.f32 %v17926_v36, %v4147_v40  ;;  %v4217_v1 = vmax.f32 %v4185_v32, 0.0 }
 0x60d   : > { %4363 = vst.msk [vmem:[#allocation4 + $0x20] sm:$0xff] %vm2240_vm13, %v4293_v19 }
 0x60e   : > { %v4218_v33 = vmax.f32 %v4186_v60, 0.0  ;;  %v4251_v6 = vsel %vm2240_vm13, %v4217_v1, -inf  ;;  %v4397_v60 = vld [vmem:[#allocation4 + $0x40] sm:$0x1] }
 0x60f   : > { %v4039_v0 = vpop.f32.mrb[172].mxu0 }
 0x610   : > { %v4148_v17 = vadd.f32 %v4039_v0, %v17889_v39  ;;  %v4041_v55 = vpop.f32.mrb[173].mxu0  ;;  %v14568_v39 = vld [vmem:[#allocation14 + $0xb8] sm:$0xff]   ;;  %v4254_v26 = vsel %vm2240_vm13, %v4218_v33, -inf  ;;  %v14572_v0 = vld [vmem:[#allocation14 + $0x110] sm:$0xff]  }
 0x611   : > { %v4042_v50 = vpop.f32.mrb[174].mxu0  ;;  %5056 = vmatpush1.bf16.msra.mxu0 %v14568_v39  ;;  %5474 = vmatpush1.bf16.msra.mxu1 %v14572_v0  ;;  %v14573_v33 = vld [vmem:[#allocation14 + $0x118] sm:$0xff]  }
 0x612   : > { %v4187_v18 = vadd.f32 %v17926_v36, %v4148_v17  ;;  %v4149_v30 = vadd.f32 %v4042_v50, %v17892_v8  ;;  %v4044_v35 = vpop.f32.mrb[175].mxu0  ;;  %5208 = vmatprep.subr.bf16.mxu0 %v18046_v25  ;;  %v4570_v50 = vrot.slane %v4397_v60, 1  ;;  %5475 = vmatprep.subr.bf16.mxu1 %v18046_v25  ;;  %v4324_v60 = vld [vmem:[#allocation4 + $0x60] sm:$0x80] }
 0x614   : > { %v4219_v5 = vmax.f32 %v4187_v18, 0.0  ;;  %v4188_v10 = vadd.f32 %v17926_v36, %v4149_v30  ;;  %v18035_v22 = vld [vmem:[#allocation4 + $0x20] sm:$0xff] }
 0x615   : > { %v4415_v52 = vshll.u32 %v18035_v22, 16  ;;  %v4566_v8 = vrot.slane %v18035_v22, 1  ;;  %v4418_v58 = vshrl.u32 %v18035_v22, 16  ;;  %5476 = vmatpush1.bf16.msra.mxu1 %v14573_v33  ;;  %v4327_v33 = vld [vmem:[#allocation4 + $0xa8] sm:$0x80] }
 0x616   : > { %v4252_v12 = vsel %vm2240_vm13, %v4219_v5, -inf  ;;  %v4220_v28 = vmax.f32 %v4188_v10, 0.0 }
 0x617   : > { %v4253_v41 = vmax.f32 %v4251_v6, %v4252_v12  ;;  %v4047_v48 = vpop.f32.mrb[176].mxu0  ;;  %v4417_v49 = vrot.slane %v4415_v52, 1  ;;  %v4568_v62 = vsel %vm1175_vm4, %v4566_v8, %v4567_v20  ;;  %v4692_v7 = vshrl.u32 %v4566_v8, 16 }
 0x618   : > { %v4255_v31 = vsel %vm2240_vm13, %v4220_v28, -inf  ;;  %v4150_v46 = vadd.f32 %v4047_v48, %v17895_v61  ;;  %v4049_v13 = vpop.f32.mrb[177].mxu0  ;;  %v4696_v4 = vshrl.u32 %v4568_v62, 16  ;;  %v4699_v54 = vshll.u32 %v4568_v62, 16 }
 0x619   : > { %v4256_v53 = vmax.f32 %v4254_v26, %v4255_v31  ;;  %4495 = vrot.lane.b32.xlu1 %v4417_v49, %s15763_s25  ;;  %v4050_v47 = vpop.f32.mrb[178].mxu0  ;;  %v4420_v57 = vor.u32 %v4418_v58, %v4417_v49  ;;  %v4694_v61 = vrot.slane %v4692_v7, 7  ;;  %v4322_v6 = vsel %vm17029_vm1, 0, %v4321_v24  ;;  %v18115_v24 = vld [vmem:[#allocation4 + $0xb0] sm:$0xff] }
 0x61a   : > { %v4151_v2 = vadd.f32 %v4050_v47, %v17898_v63  ;;  %v4052_v59 = vpop.f32.mrb[179].mxu0  ;;  %v4698_v37 = vrot.slane %v4696_v4, 7  ;;  %v4189_v34 = vadd.f32 %v17926_v36, %v4150_v46  ;;  %4323 = vst [vmem:[#allocation4 + $0x48] sm:$0x80] %v4322_v6  ;;  %v4457_v6 = vshll.u32 %v18115_v24, 16 }
 0x61b   : > { %v4294_v42 = vpack.c.bf16 %v4256_v53, %v4253_v41  ;;  %4497 = vrot.lane.b32.xlu0 %v4420_v57, %s15763_s25 }
 0x61c   : > { %v4701_v43 = vor.u32 %v4699_v54, %v4698_v37  ;;  %v4190_v40 = vadd.f32 %v17926_v36, %v4151_v2  ;;  %v4221_v17 = vmax.f32 %v4189_v34, 0.0 }
 0x61d   : > { %4364 = vst.msk [vmem:[#allocation4 + $0x38] sm:$0xff] %vm2240_vm13, %v4294_v42 }
 0x61e   : > { %v18060_v63 = vsel %vm693_vm2, %v4694_v61, %v4701_v43  ;;  %v4222_v14 = vmax.f32 %v4190_v40, 0.0  ;;  %v4257_v35 = vsel %vm2240_vm13, %v4221_v17, -inf }
 0x61f   : > { %v4055_v16 = vpop.f32.mrb[180].mxu0  ;;  %13014 = vmatprep.mubr.msk.bf16.mxu0 %vm2240_vm13, %v18060_v63 }
 0x620   : > { %v4152_v19 = vadd.f32 %v4055_v16, %v17903_v15  ;;  %v4057_v32 = vpop.f32.mrb[181].mxu0 }
 0x621   : > { %v4058_v55 = vpop.f32.mrb[182].mxu0 }
 0x622   : > { %v4191_v27 = vadd.f32 %v17926_v36, %v4152_v19  ;;  %v4153_v45 = vadd.f32 %v4058_v55, %v17906_v38  ;;  %v4060_v1 = vpop.f32.mrb[183].mxu0  ;;  %v4260_v38 = vsel %vm2240_vm13, %v4222_v14, -inf  ;;  %v4325_v55 = vsel %vm17029_vm1, 0, %v4324_v60 }
 0x623   : > { %4326 = vst [vmem:[#allocation4 + $0x60] sm:$0x80] %v4325_v55 }
 0x624   : > { %v4223_v18 = vmax.f32 %v4191_v27, 0.0  ;;  %v4192_v30 = vadd.f32 %v17926_v36, %v4153_v45  ;;  %v18070_v15 = vld [vmem:[#allocation4 + $0x38] sm:$0xff] }
 0x625   : > { %v4422_v20 = vshll.u32 %v18070_v15, 16  ;;  %v4569_v39 = vrot.slane %v18070_v15, 1  ;;  %v4425_v26 = vshrl.u32 %v18070_v15, 16 }
 0x626   : > { %v4258_v5 = vsel %vm2240_vm13, %v4223_v18, -inf  ;;  %v4224_v10 = vmax.f32 %v4192_v30, 0.0  ;;  %v4328_v18 = vsel %vm17029_vm1, 0, %v4327_v33 }
 0x627   : > { %v4259_v52 = vmax.f32 %v4257_v35, %v4258_v5  ;;  %v4063_v8 = vpop.f32.mrb[184].mxu0  ;;  %v4424_v44 = vrot.slane %v4422_v20, 1  ;;  %v4571_v12 = vsel %vm1175_vm4, %v4569_v39, %v4570_v50  ;;  %v4714_v48 = vshrl.u32 %v4569_v39, 16  ;;  %4329 = vst [vmem:[#allocation4 + $0xa8] sm:$0x80] %v4328_v18 }
 0x628   : > { %v4261_v28 = vsel %vm2240_vm13, %v4224_v10, -inf  ;;  %v4154_v3 = vadd.f32 %v4063_v8, %v17909_v23  ;;  %v4065_v41 = vpop.f32.mrb[185].mxu0  ;;  %v4718_v49 = vshrl.u32 %v4571_v12, 16  ;;  %v4721_v7 = vshll.u32 %v4571_v12, 16  ;;  %v4330_v35 = vld [vmem:[#allocation4 + $0xc0] sm:$0x80] }
 0x629   : > { %v4262_v58 = vmax.f32 %v4260_v38, %v4261_v28  ;;  %4499 = vrot.lane.b32.xlu1 %v4424_v44, %s15763_s25  ;;  %v4066_v62 = vpop.f32.mrb[186].mxu0  ;;  %v4427_v51 = vor.u32 %v4425_v26, %v4424_v44  ;;  %v4716_v53 = vrot.slane %v4714_v48, 7  ;;  %v4331_v20 = vsel %vm17029_vm1, 0, %v4330_v35  ;;  %v4333_v39 = vld [vmem:[#allocation4 + $0xd8] sm:$0x80]  ;;  %v18123_v8 = vld [vmem:[#allocation4 + $0xc8] sm:$0xff] }
 0x62a   : > { %v4155_v31 = vadd.f32 %v4066_v62, %v17912_v56  ;;  %v4068_v46 = vpop.f32.mrb[187].mxu0  ;;  %v4720_v13 = vrot.slane %v4718_v49, 7  ;;  %v4193_v23 = vadd.f32 %v17926_v36, %v4154_v3  ;;  %4332 = vst [vmem:[#allocation4 + $0xc0] sm:$0x80] %v4331_v20  ;;  %v4334_v38 = vsel %vm17029_vm1, 0, %v4333_v39  ;;  %v18130_v48 = vld [vmem:[#allocation4 + $0xe0] sm:$0xff] }
 0x62b   : > { %v4295_v4 = vpack.c.bf16 %v4262_v58, %v4259_v52  ;;  %4501 = vrot.lane.b32.xlu0 %v4427_v51, %s15763_s25  ;;  %4335 = vst [vmem:[#allocation4 + $0xd8] sm:$0x80] %v4334_v38  ;;  %v4336_v52 = vld [vmem:[#allocation4 + $0xf0] sm:$0x80]  ;;  %v4459_v3 = vrot.slane %v4457_v6, 1  ;;  %v4464_v41 = vshll.u32 %v18123_v8, 16 }
 0x62c   : > { %v4723_v47 = vor.u32 %v4721_v7, %v4720_v13  ;;  %v4194_v56 = vadd.f32 %v17926_v36, %v4155_v31  ;;  %v4225_v11 = vmax.f32 %v4193_v23, 0.0  ;;  %v4337_v44 = vsel %vm17029_vm1, 0, %v4336_v52  ;;  %v18136_v51 = vld [vmem:[#allocation4 + $0xf8] sm:$0xff]  ;;  %v18140_v46 = vld [vmem:[#allocation4 + $0x8] sm:$0xff]  ;;  %v18147_v23 = vld [vmem:[#allocation4 + $0x80] sm:$0xff] }
 0x62d   : > { %4365 = vst.msk [vmem:[#allocation4 + $0x50] sm:$0xff] %vm2240_vm13, %v4295_v4  ;;  %4338 = vst [vmem:[#allocation4 + $0xf0] sm:$0x80] %v4337_v44  ;;  %v4460_v49 = vshrl.u32 %v18115_v24, 16  ;;  %v4466_v58 = vrot.slane %v4464_v41, 1  ;;  %v4471_v62 = vshll.u32 %v18130_v48, 16 }
 0x62e   : > { %v18089_v57 = vsel %vm693_vm2, %v4716_v53, %v4723_v47  ;;  %v4226_v34 = vmax.f32 %v4194_v56, 0.0  ;;  %v4263_v0 = vsel %vm2240_vm13, %v4225_v11, -inf  ;;  %v4467_v31 = vshrl.u32 %v18123_v8, 16  ;;  %v4398_v35 = vld [vmem:[#allocation4 + $0x58] sm:$0x1] }
 0x62f   : > { %v4071_v2 = vpop.f32.mrb[188].mxu0  ;;  %13054 = vmatprep.mubr.msk.bf16.mxu1 %vm2240_vm13, %v18089_v57  ;;  %v4462_v29 = vor.u32 %v4460_v49, %v4459_v3  ;;  %v4473_v7 = vrot.slane %v4471_v62, 1  ;;  %v4478_v4 = vshll.u32 %v18136_v51, 16  ;;  %v4474_v53 = vshrl.u32 %v18130_v48, 16  ;;  %v14574_v44 = vld [vmem:[#allocation14] sm:$0xff]   ;;  %v14576_v49 = vld [vmem:[#allocation14 + $0x10] sm:$0xff]  }
 0x630   : > { %v4156_v59 = vadd.f32 %v4071_v2, %v17917_v9  ;;  %v4073_v37 = vpop.f32.mrb[189].mxu0  ;;  %v4469_v13 = vor.u32 %v4467_v31, %v4466_v58  ;;  %v4408_v47 = vshll.u32 %v18140_v46, 16  ;;  %v4443_v11 = vshll.u32 %v18147_v23, 16 }
 0x631   : > { %v4074_v54 = vpop.f32.mrb[190].mxu0  ;;  %v4476_v2 = vor.u32 %v4474_v53, %v4473_v7  ;;  %v4480_v56 = vrot.slane %v4478_v4, 1  ;;  %v4573_v52 = vrot.slane %v4398_v35, 1  ;;  %v14577_v4 = vld [vmem:[#allocation14 + $0x18] sm:$0xff]   ;;  %v4402_v35 = vld [vmem:[#allocation4 + $0xb8] sm:$0x1] }
 0x632   : > { %v4195_v42 = vadd.f32 %v17926_v36, %v4156_v59  ;;  %v4157_v61 = vadd.f32 %v4074_v54, %v17920_v21  ;;  %v4076_v43 = vpop.f32.mrb[191].mxu0  ;;  %v4481_v59 = vshrl.u32 %v18136_v51, 16  ;;  %v4410_v37 = vrot.slane %v4408_v47, 1 }
 0x633   : > { %v4411_v54 = vshrl.u32 %v18140_v46, 16 }
 0x634   : > { %v4227_v40 = vmax.f32 %v4195_v42, 0.0  ;;  %v4196_v16 = vadd.f32 %v17926_v36, %v4157_v61  ;;  %v18098_v19 = vld [vmem:[#allocation4 + $0x50] sm:$0xff]  ;;  %v4266_v36 = vsel %vm2240_vm13, %v4226_v34, -inf  ;;  %v18154_v42 = vld [vmem:[#allocation4 + $0x98] sm:$0xff]  ;;  %v4483_v61 = vor.u32 %v4481_v59, %v4480_v56 }
 0x635   : > { %v4429_v32 = vshll.u32 %v18098_v19, 16  ;;  %v4432_v27 = vshrl.u32 %v18098_v19, 16  ;;  %v4413_v43 = vor.u32 %v4411_v54, %v4410_v37  ;;  %v4445_v34 = vrot.slane %v4443_v11, 1 }
 0x636   : > { %v4264_v9 = vsel %vm2240_vm13, %v4227_v40, -inf  ;;  %v4228_v17 = vmax.f32 %v4196_v16, 0.0  ;;  %v4446_v40 = vshrl.u32 %v18147_v23, 16  ;;  %v4450_v16 = vshll.u32 %v18154_v42, 16 }
 0x637   : > { %v4265_v14 = vmax.f32 %v4263_v0, %v4264_v9  ;;  %v4431_v21 = vrot.slane %v4429_v32, 1  ;;  %v18160_v32 = vld [vmem:[#allocation4 + $0x110] sm:$0xff]  ;;  %v4453_v9 = vshrl.u32 %v18154_v42, 16  ;;  %v4572_v6 = vrot.slane %v18098_v19, 1 }
 0x638   : > { %v4267_v45 = vsel %vm2240_vm13, %v4228_v17, -inf  ;;  %v4448_v60 = vor.u32 %v4446_v40, %v4445_v34  ;;  %v4452_v0 = vrot.slane %v4450_v16, 1  ;;  %v4485_v17 = vshll.u32 %v18160_v32, 16 }
 0x639   : > { %v4268_v1 = vmax.f32 %v4266_v36, %v4267_v45  ;;  %4503 = vrot.lane.b32.xlu1 %v4431_v21, %s15763_s25  ;;  %v4434_v50 = vor.u32 %v4432_v27, %v4431_v21  ;;  %v4488_v21 = vshrl.u32 %v18160_v32, 16  ;;  %v4373_v36 = vld [vmem:[#allocation4 + $0x18] sm:$0x80]  ;;  %v4736_v53 = vshrl.u32 %v4572_v6, 16 }
 0x63a   : > { %v4455_v55 = vor.u32 %v4453_v9, %v4452_v0  ;;  %v4377_v9 = vld [vmem:[#allocation4 + $0x48] sm:$0x80] }
 0x63b   : > { %v4296_v30 = vpack.c.bf16 %v4268_v1, %v4265_v14  ;;  %4505 = vrot.lane.b32.xlu0 %v4434_v50, %s15763_s25  ;;  %v4487_v14 = vrot.slane %v4485_v17, 1 }
 0x63d   : > { %4366 = vst.msk [vmem:[#allocation4 + $0x68] sm:$0xff] %vm2240_vm13, %v4296_v30  ;;  %v4490_v27 = vor.u32 %v4488_v21, %v4487_v14  ;;  %v14580_v21 = vld [vmem:[#allocation14 + $0x30] sm:$0xff]  }
 0x644   : > { %v18119_v5 = vld [vmem:[#allocation4 + $0x68] sm:$0xff] }
 0x645   : > { %v4436_v10 = vshll.u32 %v18119_v5, 16  ;;  %v4439_v12 = vshrl.u32 %v18119_v5, 16 }
 0x647   : > { %v4438_v26 = vrot.slane %v4436_v10, 1 }
 0x649   : > { %4507 = vrot.lane.b32.xlu1 %v4438_v26, %s15763_s25  ;;  %v4441_v28 = vor.u32 %v4439_v12, %v4438_v26  ;;  %v14575_v12 = vld [vmem:[#allocation14 + $0x8] sm:$0xff]  }
 0x64b   : > { %4509 = vrot.lane.b32.xlu0 %v4441_v28, %s15763_s25  ;;  %v4375_v28 = vld [vmem:[#allocation4 + $0x30] sm:$0x80] }
 0x64d   : > { %4519 = vrot.lane.b32.xlu1 %v4459_v3, %s15763_s25 }
 0x64f   : > { %4521 = vrot.lane.b32.xlu0 %v4462_v29, %s15763_s25 }
 0x651   : > { %4523 = vrot.lane.b32.xlu1 %v4466_v58, %s15763_s25 }
 0x653   : > { %4525 = vrot.lane.b32.xlu0 %v4469_v13, %s15763_s25 }
 0x655   : > { %4527 = vrot.lane.b32.xlu1 %v4473_v7, %s15763_s25 }
 0x657   : > { %4529 = vrot.lane.b32.xlu0 %v4476_v2, %s15763_s25  ;;  %v4399_v2 = vld [vmem:[#allocation4 + $0x70] sm:$0x1] }
 0x659   : > { %4531 = vrot.lane.b32.xlu1 %v4480_v56, %s15763_s25 }
 0x65b   : > { %4533 = vrot.lane.b32.xlu0 %v4483_v61, %s15763_s25  ;;  %v4575_v61 = vrot.slane %v18119_v5, 1 }
 0x65d   : > { %4491 = vrot.lane.b32.xlu1 %v4410_v37, %s15763_s25 }
 0x65f   : > { %4493 = vrot.lane.b32.xlu0 %v4413_v43, %s15763_s25  ;;  %v4576_v43 = vrot.slane %v4399_v2, 1 }
 0x661   : > { %4511 = vrot.lane.b32.xlu1 %v4445_v34, %s15763_s25  ;;  %v14578_v34 = vld [vmem:[#allocation14 + $0x20] sm:$0xff]  }
 0x663   : > { %4513 = vrot.lane.b32.xlu0 %v4448_v60, %s15763_s25  ;;  %v4577_v60 = vsel %vm1175_vm4, %v4575_v61, %v4576_v43 }
 0x664   : > { %v4882_v17 = vshrl.u32 %v4577_v60, 16 }
 0x665   : > { %4515 = vrot.lane.b32.xlu1 %v4452_v0, %s15763_s25  ;;  %v14579_v0 = vld [vmem:[#allocation14 + $0x28] sm:$0xff]  }
 0x667   : > { %4517 = vrot.lane.b32.xlu0 %v4455_v55, %s15763_s25 }
 0x669   : > { %4535 = vrot.lane.b32.xlu1 %v4487_v14, %s15763_s25 }
 0x66b   : > { %4537 = vrot.lane.b32.xlu0 %v4490_v27, %s15763_s25  ;;  %s582_s25 = sand.u32 1, %s15733_s26  }
 0x66c   : > { %s12877_s16 = sshll.u32 %s582_s25, 6  ;;  %s19437_s29 = scalar_lea.sflag [#allocation10], %s582_s25 }
 0x66d   : > { %s19416_s5 = scalar_lea.vmem [#allocation26], %s12877_s16 }
 0x66e   : > { %s12682_s21 = sshll.u32 %s19416_s5, 4  ;;  %s19424_s21 = int_to_ptr.vmem [resolvable:$true] %s12682_s21 }
 0x66f   : > { %s15655_s20 = scalar_lea.vmem %s19424_s21, 1024  ;;  %p15662_p5 = scmp.lt.s32.totalorder %s19424_s21, %s15660_s22 }
 0x670   : > { %p15656_p13 = scmp.ne.s32.totalorder %s19424_s21, %s15655_s20  ;;  %p15663_p9 = scmp.lt.s32.totalorder %s15661_s14, %s15655_s20 }
 0x672   : > { %p15657_p0 = pnand %p15656_p13, %p19582_p1  ;;  %p15664_p12 = por %p15663_p9, %p15662_p5 }
 0x674   : > { %p15658_p6 = pneg %p15657_p0 }
 0x676   : > { %p15665_p10 = pnand %p15664_p12, %p15658_p6 }
 0x68b   : > { %v4496_v45 = vpop.permute.xlu1 %4495 }
 0x68c   : > { %v4606_v1 = vsel %vm2240_vm13, %v4373_v36, %v4496_v45  ;;  %v4884_v45 = vrot.slane %v4882_v17, 7 }
 0x68d   : > { %v4498_v50 = vpop.permute.xlu0 %4497  ;;  %v4681_v18 = vshrl.u32 %v4606_v1, 16  ;;  %v4400_v1 = vld [vmem:[#allocation4 + $0x88] sm:$0x1] }
 0x68e   : > { %v4608_v33 = vsel %vm2240_vm13, %v18035_v22, %v4498_v50  ;;  %v4574_v22 = vsel %vm1175_vm4, %v4572_v6, %v4573_v52  ;;  %v4579_v6 = vrot.slane %v4400_v1, 1 }
 0x68f   : > { %v4684_v30 = vshrl.u32 %v4608_v33, 16  ;;  %v4687_v39 = vshll.u32 %v4608_v33, 16  ;;  %v4683_v38 = vrot.slane %v4681_v18, 7  ;;  %v4740_v3 = vshrl.u32 %v4574_v22, 16 }
 0x690   : > { %v4743_v47 = vshll.u32 %v4574_v22, 16  ;;  %v4878_v18 = vshrl.u32 %v4575_v61, 16 }
 0x691   : > { %v4686_v20 = vrot.slane %v4684_v30, 7  ;;  %v4742_v31 = vrot.slane %v4740_v3, 7  ;;  %v4885_v30 = vshll.u32 %v4577_v60, 16  ;;  %v14582_v3 = vld [vmem:[#allocation14 + $0x40] sm:$0xff]  }
 0x693   : > { %v4689_v10 = vor.u32 %v4687_v39, %v4686_v20  ;;  %v4745_v37 = vor.u32 %v4743_v47, %v4742_v31  ;;  %v14581_v20 = vld [vmem:[#allocation14 + $0x38] sm:$0xff]   ;;  %v4887_v52 = vor.u32 %v4885_v30, %v4884_v45  ;;  %v4587_v47 = vrot.slane %v18123_v8, 1 }
 0x695   : > { %v18178_v26 = vsel %vm693_vm2, %v4683_v38, %v4689_v10  ;;  %v4578_v10 = vrot.slane %v18147_v23, 1 }
 0x696   : > { %5066 = vmatmul.mubr.bf16.vlgmr.msra.gmra.mrb[192].mxu0 %v18178_v26 }
 0x697   : > { %13015 = vmatprep.mubr.msk.bf16.mxu0 %vm2240_vm13, %v18089_v57  ;;  %5209 = vmatpush1.bf16.msra.mxu0 %v14574_v44 }
 0x698   : > { %5210 = vmatprep.subr.bf16.mxu0 %v18046_v25 }
 0x69b   : > { %v4500_v41 = vpop.permute.xlu1 %4499  ;;  %5211 = vmatpush1.bf16.msra.mxu0 %v14575_v12  ;;  %v4585_v12 = vrot.slane %v4402_v35, 1 }
 0x69c   : > { %v4611_v29 = vsel %vm2240_vm13, %v4375_v28, %v4500_v41  ;;  %5212 = vmatprep.subr.bf16.mxu0 %v18046_v25  ;;  %v4880_v28 = vrot.slane %v4878_v18, 7  ;;  %v4590_v18 = vrot.slane %v18130_v48, 1 }
 0x69d   : > { %v4502_v58 = vpop.permute.xlu0 %4501  ;;  %v4703_v13 = vshrl.u32 %v4611_v29, 16 }
 0x69e   : > { %v4613_v62 = vsel %vm2240_vm13, %v18070_v15, %v4502_v58  ;;  %v4738_v15 = vrot.slane %v4736_v53, 7  ;;  %v4888_v29 = vsel %vm693_vm2, %v4880_v28, %v4887_v52 }
 0x69f   : > { %v4706_v7 = vshrl.u32 %v4613_v62, 16  ;;  %5213 = vmatpush1.bf16.msra.mxu0 %v14576_v49  ;;  %v4709_v59 = vshll.u32 %v4613_v62, 16  ;;  %v4705_v54 = vrot.slane %v4703_v13, 7  ;;  %v4580_v49 = vsel %vm1175_vm4, %v4578_v10, %v4579_v6  ;;  %v4403_v62 = vld [vmem:[#allocation4 + $0xd0] sm:$0x1]  ;;  %v14583_v13 = vld [vmem:[#allocation14 + $0x48] sm:$0xff]  }
 0x6a0   : > { %5214 = vmatprep.subr.bf16.mxu0 %v18046_v25  ;;  %v18198_v16 = vsel %vm693_vm2, %v4738_v15, %v4745_v37  ;;  %v5320_v31 = vshrl.u32 %v4580_v49, 16  ;;  %v4588_v2 = vrot.slane %v4403_v62, 1 }
 0x6a1   : > { %v4708_v56 = vrot.slane %v4706_v7, 7  ;;  %v4379_v7 = vld [vmem:[#allocation4 + $0x60] sm:$0x80] }
 0x6a2   : > { %v5322_v37 = vrot.slane %v5320_v31, 7  ;;  %v4589_v17 = vsel %vm1175_vm4, %v4587_v47, %v4588_v2  ;;  %v4802_v31 = vshrl.u32 %v4587_v47, 16 }
 0x6a3   : > { %v4711_v11 = vor.u32 %v4709_v59, %v4708_v56  ;;  %5215 = vmatpush1.bf16.msra.mxu0 %v14577_v4  ;;  %v5316_v59 = vshrl.u32 %v4578_v10, 16 }
 0x6a4   : > { %5216 = vmatprep.subr.bf16.mxu0 %v18046_v25 }
 0x6a5   : > { %v18193_v40 = vsel %vm693_vm2, %v4705_v54, %v4711_v11  ;;  %v5323_v54 = vshll.u32 %v4580_v49, 16  ;;  %v14584_v11 = vld [vmem:[#allocation14 + $0x50] sm:$0xff]  }
 0x6a6   : > { %5074 = vmatmul.mubr.bf16.gmra.mrb[196].mxu0 %v18193_v40  ;;  %5486 = vmatmul.mubr.bf16.vlgmr.msra.gmra.mrb[32].mxu1 %v18193_v40 }
 0x6a7   : > { %13016 = vmatprep.mubr.msk.bf16.mxu0 %vm2240_vm13, %v18198_v16  ;;  %13055 = vmatprep.mubr.msk.bf16.mxu1 %vm2240_vm13, %v18198_v16 }
 0x6a8   : > { %5217 = vmatpush1.bf16.msra.mxu0 %v14578_v34  ;;  %v4404_v34 = vld [vmem:[#allocation4 + $0xe8] sm:$0x1] }
 0x6a9   : > { %5218 = vmatprep.subr.bf16.mxu0 %v18046_v25 }
 0x6ab   : > { %v4504_v55 = vpop.permute.xlu1 %4503 }
 0x6ac   : > { %v4616_v14 = vsel %vm2240_vm13, %v4377_v9, %v4504_v55  ;;  %5219 = vmatpush1.bf16.msra.mxu0 %v14579_v0 }
 0x6ad   : > { %v4506_v27 = vpop.permute.xlu0 %4505  ;;  %5220 = vmatprep.subr.bf16.mxu0 %v18046_v25  ;;  %v4725_v50 = vshrl.u32 %v4616_v14, 16 }
 0x6ae   : > { %v4618_v36 = vsel %vm2240_vm13, %v18098_v19, %v4506_v27  ;;  %v4584_v19 = vrot.slane %v18115_v24, 1  ;;  %v5325_v27 = vor.u32 %v5323_v54, %v5322_v37 }
 0x6af   : > { %v4728_v33 = vshrl.u32 %v4618_v36, 16  ;;  %v4731_v38 = vshll.u32 %v4618_v36, 16  ;;  %v4727_v44 = vrot.slane %v4725_v50, 7  ;;  %v14585_v36 = vld [vmem:[#allocation14 + $0x58] sm:$0xff]   ;;  %v4385_v50 = vld [vmem:[#allocation4 + $0xa8] sm:$0x80] }
 0x6b0   : > { %5221 = vmatpush1.bf16.msra.mxu0 %v14580_v21  ;;  %v4586_v58 = vsel %vm1175_vm4, %v4584_v19, %v4585_v12  ;;  %v4780_v55 = vshrl.u32 %v4584_v19, 16  ;;  %v5318_v21 = vrot.slane %v5316_v59, 7 }
 0x6b1   : > { %v4730_v39 = vrot.slane %v4728_v33, 7  ;;  %5222 = vmatprep.subr.bf16.mxu0 %v18046_v25  ;;  %v4784_v4 = vshrl.u32 %v4586_v58, 16  ;;  %v4787_v14 = vshll.u32 %v4586_v58, 16 }
 0x6b3   : > { %v4733_v22 = vor.u32 %v4731_v38, %v4730_v39  ;;  %v4786_v15 = vrot.slane %v4784_v4, 7  ;;  %v4405_v4 = vld [vmem:[#allocation4 + $0x100] sm:$0x1] }
 0x6b4   : > { %5223 = vmatpush1.bf16.msra.mxu0 %v14581_v20  ;;  %v4806_v20 = vshrl.u32 %v4589_v17, 16 }
 0x6b5   : > { %v18214_v41 = vsel %vm693_vm2, %v4727_v44, %v4733_v22  ;;  %5224 = vmatprep.subr.bf16.mxu0 %v18046_v25  ;;  %v4789_v35 = vor.u32 %v4787_v14, %v4786_v15  ;;  %v4782_v44 = vrot.slane %v4780_v55, 7  ;;  %v5326_v22 = vsel %vm693_vm2, %v5318_v21, %v5325_v27  ;;  %v4395_v21 = vld [vmem:[#allocation4 + $0x10] sm:$0x1] }
 0x6b6   : > { %5082 = vmatmul.mubr.bf16.gmra.mrb[200].mxu0 %v18214_v41  ;;  %5494 = vmatmul.mubr.bf16.gmra.mrb[36].mxu1 %v18214_v41  ;;  %v4808_v49 = vrot.slane %v4806_v20, 7  ;;  %v4804_v15 = vrot.slane %v4802_v31, 7  ;;  %v4824_v55 = vshrl.u32 %v4590_v18, 16  ;;  %v4563_v20 = vrot.slane %v18140_v46, 1 }
 0x6b7   : > { %13017 = vmatprep.mubr.msk.bf16.mxu0 %vm2240_vm13, %v4888_v29  ;;  %13056 = vmatprep.mubr.msk.bf16.mxu1 %vm2240_vm13, %v4888_v29 }
 0x6b8   : > { %5225 = vmatpush1.bf16.msra.mxu0 %v14582_v3  ;;  %v18242_v3 = vsel %vm693_vm2, %v4782_v44, %v4789_v35  ;;  %v4381_v35 = vld [vmem:[#allocation4 + $0x78] sm:$0x80] }
 0x6b9   : > { %5226 = vmatprep.subr.bf16.mxu0 %v18046_v25 }
 0x6bb   : > { %v4508_v53 = vpop.permute.xlu1 %4507 }
 0x6bc   : > { %v4621_v56 = vsel %vm2240_vm13, %v4379_v7, %v4508_v53  ;;  %5227 = vmatpush1.bf16.msra.mxu0 %v14583_v13  ;;  %v4809_v13 = vshll.u32 %v4589_v17, 16 }
 0x6bd   : > { %v4510_v61 = vpop.permute.xlu0 %4509  ;;  %5228 = vmatprep.subr.bf16.mxu0 %v18046_v25  ;;  %v4867_v60 = vshrl.u32 %v4621_v56, 16 }
 0x6be   : > { %v4623_v43 = vsel %vm2240_vm13, %v18119_v5, %v4510_v61  ;;  %v4591_v5 = vrot.slane %v4404_v34, 1  ;;  %v4811_v59 = vor.u32 %v4809_v13, %v4808_v49  ;;  %v4594_v61 = vrot.slane %v4405_v4, 1 }
 0x6bf   : > { %v4870_v0 = vshrl.u32 %v4623_v43, 16  ;;  %v4520_v9 = vpop.permute.xlu1 %4519  ;;  %v4873_v1 = vshll.u32 %v4623_v43, 16  ;;  %v4869_v39 = vrot.slane %v4867_v60, 7 }
 0x6c0   : > { %5229 = vmatpush1.bf16.msra.mxu0 %v14584_v11  ;;  %v4636_v52 = vsel %vm2240_vm13, %v4385_v50, %v4520_v9  ;;  %v4593_v11 = vrot.slane %v18136_v51, 1  ;;  %v18256_v17 = vsel %vm693_vm2, %v4804_v15, %v4811_v59  ;;  %v4389_v50 = vld [vmem:[#allocation4 + $0xd8] sm:$0x80] }
 0x6c1   : > { %v4872_v45 = vrot.slane %v4870_v0, 7  ;;  %v4522_v33 = vpop.permute.xlu0 %4521  ;;  %5230 = vmatprep.subr.bf16.mxu0 %v18046_v25  ;;  %v4592_v25 = vsel %vm1175_vm4, %v4590_v18, %v4591_v5  ;;  %v4769_v29 = vshrl.u32 %v4636_v52, 16  ;;  %v4564_v18 = vrot.slane %v4395_v21, 1  ;;  %v4406_v21 = vld [vmem:[#allocation4 + $0x118] sm:$0x1] }
 0x6c2   : > { %v4638_v30 = vsel %vm2240_vm13, %v18115_v24, %v4522_v33  ;;  %v4828_v7 = vshrl.u32 %v4592_v25, 16  ;;  %v4831_v14 = vshll.u32 %v4592_v25, 16 }
 0x6c3   : > { %v4875_v38 = vor.u32 %v4873_v1, %v4872_v45  ;;  %v4772_v10 = vshrl.u32 %v4638_v30, 16  ;;  %v4524_v6 = vpop.permute.xlu1 %4523  ;;  %v4775_v58 = vshll.u32 %v4638_v30, 16  ;;  %v4771_v37 = vrot.slane %v4769_v29, 7 }
 0x6c4   : > { %5231 = vmatpush1.bf16.msra.mxu0 %v14585_v36  ;;  %v4830_v34 = vrot.slane %v4828_v7, 7  ;;  %v4595_v1 = vsel %vm1175_vm4, %v4593_v11, %v4594_v61 }
 0x6c5   : > { %v4774_v19 = vrot.slane %v4772_v10, 7  ;;  %v4526_v12 = vpop.permute.xlu0 %4525  ;;  %v4876_v28 = vsel %vm693_vm2, %v4869_v39, %v4875_v38  ;;  %v4826_v39 = vrot.slane %v4824_v55, 7  ;;  %v4904_v38 = vshrl.u32 %v4595_v1, 16 }
 0x6c6   : > { %v4643_v24 = vsel %vm2240_vm13, %v18123_v8, %v4526_v12  ;;  %5090 = vmatmul.mubr.bf16.gmra.mrb[204].mxu0 %v4876_v28  ;;  %5502 = vmatmul.mubr.bf16.gmra.mrb[40].mxu1 %v4876_v28  ;;  %v4387_v8 = vld [vmem:[#allocation4 + $0xc0] sm:$0x80]  ;;  %v4833_v33 = vor.u32 %v4831_v14, %v4830_v34  ;;  %v4670_v34 = vshrl.u32 %v4563_v20, 16 }
 0x6c7   : > { %13018 = vmatprep.mubr.msk.bf16.mxu0 %vm2240_vm13, %v18242_v3  ;;  %v4528_v62 = vpop.permute.xlu1 %4527  ;;  %13057 = vmatprep.mubr.msk.bf16.mxu1 %vm2240_vm13, %v5326_v22  ;;  %v4777_v53 = vor.u32 %v4775_v58, %v4774_v19  ;;  %v4794_v2 = vshrl.u32 %v4643_v24, 16  ;;  %v4641_v43 = vsel %vm2240_vm13, %v4387_v8, %v4524_v6  ;;  %v4797_v36 = vshll.u32 %v4643_v24, 16 }
 0x6c8   : > { %v4791_v27 = vshrl.u32 %v4641_v43, 16  ;;  %v4646_v52 = vsel %vm2240_vm13, %v4389_v50, %v4528_v62  ;;  %v18266_v44 = vsel %vm693_vm2, %v4826_v39, %v4833_v33  ;;  %v4565_v24 = vsel %vm1175_vm4, %v4563_v20, %v4564_v18  ;;  %v4371_v50 = vld [vmem:[#allocation4] sm:$0x80] }
 0x6c9   : > { %v4530_v56 = vpop.permute.xlu0 %4529  ;;  %v4796_v60 = vrot.slane %v4794_v2, 7  ;;  %v18250_v47 = vsel %vm693_vm2, %v4771_v37, %v4777_v53  ;;  %v4900_v58 = vshrl.u32 %v4593_v11, 16  ;;  %v4906_v62 = vrot.slane %v4904_v38, 7 }
 0x6ca   : > { %v4648_v9 = vsel %vm2240_vm13, %v18130_v48, %v4530_v56  ;;  %v4793_v10 = vrot.slane %v4791_v27, 7  ;;  %v4813_v31 = vshrl.u32 %v4646_v52, 16  ;;  %v4907_v53 = vshll.u32 %v4595_v1, 16  ;;  %v4391_v56 = vld [vmem:[#allocation4 + $0xf0] sm:$0x80] }
 0x6cb   : > { %v4532_v54 = vpop.permute.xlu1 %4531  ;;  %v4799_v48 = vor.u32 %v4797_v36, %v4796_v60  ;;  %v4816_v5 = vshrl.u32 %v4648_v9, 16  ;;  %v4819_v13 = vshll.u32 %v4648_v9, 16  ;;  %v4674_v8 = vshrl.u32 %v4565_v24, 16 }
 0x6cc   : > { %v4909_v61 = vor.u32 %v4907_v53, %v4906_v62  ;;  %v4902_v15 = vrot.slane %v4900_v58, 7  ;;  %v4651_v11 = vsel %vm2240_vm13, %v4391_v56, %v4532_v54  ;;  %v4672_v33 = vrot.slane %v4670_v34, 7  ;;  %v4401_v53 = vld [vmem:[#allocation4 + $0xa0] sm:$0x1] }
 0x6cd   : > { %v4534_v0 = vpop.permute.xlu0 %4533  ;;  %v4818_v19 = vrot.slane %v4816_v5, 7  ;;  %v18270_v28 = vsel %vm693_vm2, %v4793_v10, %v4799_v48  ;;  %v4676_v60 = vrot.slane %v4674_v8, 7  ;;  %v4889_v1 = vshrl.u32 %v4651_v11, 16 }
 0x6ce   : > { %5098 = vmatmul.mubr.bf16.gmra.mrb[208].mxu0 %v18250_v47  ;;  %v4653_v49 = vsel %vm2240_vm13, %v18136_v51, %v4534_v0  ;;  %v4677_v0 = vshll.u32 %v4565_v24, 16  ;;  %v4910_v36 = vsel %vm693_vm2, %v4902_v15, %v4909_v61  ;;  %v4596_v5 = vrot.slane %v18160_v32, 1 }
 0x6cf   : > { %13019 = vmatprep.mubr.msk.bf16.mxu0 %vm2240_vm13, %v18256_v17  ;;  %v18260_v45 = vpop.permute.xlu1 %4491  ;;  %v4821_v2 = vor.u32 %v4819_v13, %v4818_v19  ;;  %v4892_v59 = vshrl.u32 %v4653_v49, 16  ;;  %v4895_v54 = vshll.u32 %v4653_v49, 16  ;;  %v4891_v18 = vrot.slane %v4889_v1, 7 }
 0x6d0   : > { %v4679_v48 = vor.u32 %v4677_v0, %v4676_v60  ;;  %v5338_v58 = vshrl.u32 %v4596_v5, 16 }
 0x6d1   : > { %v4494_v30 = vpop.permute.xlu0 %4493  ;;  %v4894_v9 = vrot.slane %v4892_v59, 7  ;;  %v4581_v59 = vrot.slane %v18154_v42, 1 }
 0x6d2   : > { %v4603_v27 = vsel %vm2240_vm13, %v18140_v46, %v4494_v30  ;;  %v4601_v30 = vsel %vm2240_vm13, %v4371_v50, %v18260_v45  ;;  %v4680_v39 = vsel %vm693_vm2, %v4672_v33, %v4679_v48 }
 0x6d3   : > { %v4512_v6 = vpop.permute.xlu1 %4511  ;;  %v4897_v20 = vor.u32 %v4895_v54, %v4894_v9  ;;  %v4662_v46 = vshrl.u32 %v4603_v27, 16  ;;  %v4659_v52 = vshrl.u32 %v4601_v30, 16  ;;  %v4758_v0 = vshrl.u32 %v4581_v59, 16 }
 0x6d4   : > { %v4626_v22 = vsel %vm2240_vm13, %v4381_v35, %v4512_v6  ;;  %v4597_v35 = vrot.slane %v4406_v21, 1  ;;  %v4665_v6 = vshll.u32 %v4603_v27, 16 }
 0x6d5   : > { %v4514_v12 = vpop.permute.xlu0 %4513  ;;  %v5305_v25 = vshrl.u32 %v4626_v22, 16  ;;  %v4664_v10 = vrot.slane %v4662_v46, 7  ;;  %v4898_v22 = vsel %vm693_vm2, %v4891_v18, %v4897_v20  ;;  %v14591_v20 = vld [vmem:[#allocation17 + $0xc8] sm:$0xff]   ;;  %v14594_v18 = vld [vmem:[#allocation17 + $0x118] sm:$0xff]  }
 0x6d6   : > { %v4628_v29 = vsel %vm2240_vm13, %v18147_v23, %v4514_v12  ;;  %5106 = vmatmul.mubr.bf16.gmra.mrb[212].mxu0 %v18270_v28  ;;  %v4815_v23 = vrot.slane %v4813_v31, 7  ;;  %v4598_v38 = vsel %vm1175_vm4, %v4596_v5, %v4597_v35  ;;  %v14588_v35 = vld [vmem:[#allocation17 + $0xc0] sm:$0xff]   ;;  %v5655_v46 = vld [vmem:[#allocation5 + $0x28] sm:$0x1] }
 0x6d7   : > { %v5308_v7 = vshrl.u32 %v4628_v29, 16  ;;  %v5311_v4 = vshll.u32 %v4628_v29, 16  ;;  %13020 = vmatprep.mubr.msk.bf16.mxu0 %vm2240_vm13, %v18266_v44  ;;  %v5307_v37 = vrot.slane %v5305_v25, 7  ;;  %v5342_v45 = vshrl.u32 %v4598_v38, 16  ;;  %v4516_v24 = vpop.permute.xlu1 %4515 }
 0x6d8   : > { %v18282_v55 = vsel %vm693_vm2, %v4815_v23, %v4821_v2  ;;  %v4667_v12 = vor.u32 %v4665_v6, %v4664_v10  ;;  %v4661_v25 = vrot.slane %v4659_v52, 7  ;;  %v5345_v31 = vshll.u32 %v4598_v38, 16  ;;  %v5629_v38 = vld [vmem:[#allocation5 + $0x18] sm:$0x80]  ;;  %v14596_v10 = vld [vmem:[#allocation17 + $0xd8] sm:$0xff]  }
 0x6d9   : > { %v5310_v51 = vrot.slane %v5308_v7, 7  ;;  %v4518_v19 = vpop.permute.xlu0 %4517  ;;  %v5344_v62 = vrot.slane %v5342_v45, 7  ;;  %v4393_v7 = vld [vmem:[#allocation4 + $0x108] sm:$0x80]  ;;  %v5656_v30 = vsel %vm18343_vm8, 0, %v5655_v46  ;;  %v5630_v6 = vsel %vm18338_vm5, 0, %v5629_v38 }
 0x6da   : > { %v4668_v13 = vsel %vm693_vm2, %v4661_v25, %v4667_v12  ;;  %v4633_v21 = vsel %vm2240_vm13, %v18154_v42, %v4518_v19  ;;  %5657 = vst [vmem:[#allocation5 + $0x28] sm:$0x1] %v5656_v30  ;;  %5631 = vst [vmem:[#allocation5 + $0x18] sm:$0x80] %v5630_v6  ;;  %v14597_v52 = vld [vmem:[#allocation17 + $0x120] sm:$0xff]   ;;  %v14600_v25 = vld [vmem:[#allocation17 + $0x128] sm:$0xff]  }
 0x6db   : > { %v5313_v43 = vor.u32 %v5311_v4, %v5310_v51  ;;  %v4536_v4 = vpop.permute.xlu1 %4535  ;;  %v5347_v56 = vor.u32 %v5345_v31, %v5344_v62  ;;  %v4582_v51 = vrot.slane %v4401_v53, 1  ;;  %v4753_v33 = vshll.u32 %v4633_v21, 16  ;;  %v14599_v19 = vld [vmem:[#allocation17 + $0xe0] sm:$0xff]   ;;  %v14603_v62 = vld [vmem:[#allocation17 + $0x130] sm:$0xff]   ;;  %v14604_v31 = vld [vmem:[#allocation17 + $0x168] sm:$0xff]  }
 0x6dc   : > { %v4656_v2 = vsel %vm2240_vm13, %v4393_v7, %v4536_v4  ;;  %v5658_v45 = vld [vmem:[#allocation5 + $0x40] sm:$0x1]  ;;  %v5661_v7 = vld [vmem:[#allocation5 + $0x58] sm:$0x1] }
 0x6dd   : > { %v5314_v14 = vsel %vm693_vm2, %v5307_v37, %v5313_v43  ;;  %v4538_v49 = vpop.permute.xlu0 %4537  ;;  %v5327_v23 = vshrl.u32 %v4656_v2, 16  ;;  %v4583_v15 = vsel %vm1175_vm4, %v4581_v59, %v4582_v51  ;;  %v5659_v12 = vsel %vm18343_vm8, 0, %v5658_v45  ;;  %v14606_v53 = vld [vmem:[#allocation17 + $0x138] sm:$0xff]   ;;  %v5635_v2 = vld [vmem:[#allocation5 + $0x48] sm:$0x80] }
 0x6de   : > { %5114 = vmatmul.mubr.bf16.gmra.mrb[216].mxu0 %v18282_v55  ;;  %5510 = vmatmul.mubr.bf16.gmra.mrb[44].mxu1 %v5314_v14  ;;  %v4658_v29 = vsel %vm2240_vm13, %v18160_v32, %v4538_v49  ;;  %v5340_v32 = vrot.slane %v5338_v58, 7  ;;  %v4762_v34 = vshrl.u32 %v4583_v15, 16  ;;  %v4765_v14 = vshll.u32 %v4583_v15, 16  ;;  %5660 = vst [vmem:[#allocation5 + $0x40] sm:$0x1] %v5659_v12  ;;  %v14609_v59 = vld [vmem:[#allocation17 + $0x178] sm:$0xff]  }
 0x6df   : > { %13021 = vmatprep.mubr.msk.bf16.mxu0 %vm2240_vm13, %v4910_v36  ;;  %13058 = vmatprep.mubr.msk.bf16.mxu1 %vm2240_vm13, %v18256_v17  ;;  %v5330_v8 = vshrl.u32 %v4658_v29, 16  ;;  %v5333_v61 = vshll.u32 %v4658_v29, 16  ;;  %v5329_v11 = vrot.slane %v5327_v23, 7  ;;  %v5632_v49 = vld [vmem:[#allocation5 + $0x30] sm:$0x80]  ;;  %v14602_v29 = vld [vmem:[#allocation17 + $0xe8] sm:$0xff]  }
 0x6e0   : > { %v5348_v43 = vsel %vm693_vm2, %v5340_v32, %v5347_v56  ;;  %v4764_v9 = vrot.slane %v4762_v34, 7  ;;  %v5633_v58 = vsel %vm18338_vm5, 0, %v5632_v49  ;;  %v5662_v4 = vsel %vm18343_vm8, 0, %v5661_v7  ;;  %v14608_v32 = vld [vmem:[#allocation17 + $0xf8] sm:$0xff]   ;;  %v5664_v51 = vld [vmem:[#allocation5 + $0x70] sm:$0x1] }
 0x6e1   : > { %v5332_v37 = vrot.slane %v5330_v8, 7  ;;  %5634 = vst [vmem:[#allocation5 + $0x30] sm:$0x80] %v5633_v58  ;;  %v14607_v8 = vld [vmem:[#allocation17 + $0x170] sm:$0xff]   ;;  %5663 = vst [vmem:[#allocation5 + $0x58] sm:$0x1] %v5662_v4 }
 0x6e2   : > { %v4767_v27 = vor.u32 %v4765_v14, %v4764_v9  ;;  %v5636_v56 = vsel %vm18338_vm5, 0, %v5635_v2  ;;  %v5670_v14 = vld [vmem:[#allocation5 + $0xd0] sm:$0x1] }
 0x6e3   : > { %5637 = vst [vmem:[#allocation5 + $0x48] sm:$0x80] %v5636_v56 }
 0x6e6   : > { %5122 = vmatmul.mubr.bf16.gmra.mrb[220].mxu0 %v4898_v22  ;;  %5518 = vmatmul.mubr.bf16.gmra.mrb[48].mxu1 %v18270_v28 }
 0x6e7   : > { %13059 = vmatprep.mubr.msk.bf16.mxu1 %vm2240_vm13, %v18266_v44  ;;  %13034 = vmatprep.mubr.msk.bf16.mxu0 %vm2240_vm13, %v4680_v39  ;;  %v14595_v39 = vld [vmem:[#allocation17 + $0x150] sm:$0xff]  }
 0x6ee   : > { %5241 = vmatmul.mubr.bf16.vlgmr.msra.gmra.mrb[224].mxu0 %v4668_v13  ;;  %5526 = vmatmul.mubr.bf16.gmra.mrb[52].mxu1 %v18282_v55  ;;  %v14605_v13 = vld [vmem:[#allocation17 + $0xf0] sm:$0xff]  }
 0x6ef   : > { %13035 = vmatprep.mubr.msk.bf16.mxu0 %vm2240_vm13, %v18060_v63  ;;  %13060 = vmatprep.mubr.msk.bf16.mxu1 %vm2240_vm13, %v4910_v36  ;;  %v5335_v63 = vor.u32 %v5333_v61, %v5332_v37  ;;  %v4750_v36 = vshrl.u32 %v4633_v21, 16  ;;  %v5665_v37 = vsel %vm18343_vm8, 0, %v5664_v51  ;;  %v5638_v61 = vld [vmem:[#allocation5 + $0x60] sm:$0x80]  ;;  %v5671_v21 = vsel %vm18343_vm8, 0, %v5670_v14 }
 0x6f0   : > { %5666 = vst [vmem:[#allocation5 + $0x70] sm:$0x1] %v5665_v37  ;;  %v5639_v23 = vsel %vm18338_vm5, 0, %v5638_v61  ;;  %5672 = vst [vmem:[#allocation5 + $0xd0] sm:$0x1] %v5671_v21 }
 0x6f1   : > { %v5336_v60 = vsel %vm693_vm2, %v5329_v11, %v5335_v63  ;;  %v4752_v50 = vrot.slane %v4750_v36, 7  ;;  %5640 = vst [vmem:[#allocation5 + $0x60] sm:$0x80] %v5639_v23  ;;  %v5641_v11 = vld [vmem:[#allocation5 + $0xa8] sm:$0x80] }
 0x6f3   : > { %v4755_v42 = vor.u32 %v4753_v33, %v4752_v50  ;;  %v18381_v50 = vld [vmem:[#allocation17 + $0x80] sm:$0xff]  }
 0x6f4   : > { %v5647_v33 = vld [vmem:[#allocation5 + $0xd8] sm:$0x80] }
 0x6f6   : > { %5249 = vmatmul.mubr.bf16.gmra.mrb[228].mxu0 %v18178_v26  ;;  %5534 = vmatmul.mubr.bf16.gmra.mrb[56].mxu1 %v4898_v22  ;;  %v4760_v26 = vrot.slane %v4758_v0, 7  ;;  %v14598_v22 = vld [vmem:[#allocation17 + $0x158] sm:$0xff]  }
 0x6f7   : > { %13036 = vmatprep.mubr.msk.bf16.mxu0 %vm2240_vm13, %v18089_v57  ;;  %13061 = vmatprep.mubr.msk.bf16.mxu1 %vm2240_vm13, %v5348_v43  ;;  %v4383_v57 = vld [vmem:[#allocation4 + $0x90] sm:$0x80]  ;;  %v5667_v43 = vld [vmem:[#allocation5 + $0xb8] sm:$0x1] }
 0x6f8   : > { %v4631_v1 = vsel %vm2240_vm13, %v4383_v57, %v4516_v24  ;;  %v4768_v54 = vsel %vm693_vm2, %v4760_v26, %v4767_v27  ;;  %v14601_v24 = vld [vmem:[#allocation17 + $0x160] sm:$0xff]   ;;  %v5668_v15 = vsel %vm18343_vm8, 0, %v5667_v43  ;;  %v5644_v57 = vld [vmem:[#allocation5 + $0xc0] sm:$0x80]  ;;  %v5673_v27 = vld [vmem:[#allocation5 + $0xe8] sm:$0x1] }
 0x6f9   : > { %v4747_v48 = vshrl.u32 %v4631_v1, 16  ;;  %5669 = vst [vmem:[#allocation5 + $0xb8] sm:$0x1] %v5668_v15  ;;  %v5645_v26 = vsel %vm18338_vm5, 0, %v5644_v57  ;;  %v5674_v36 = vsel %vm18343_vm8, 0, %v5673_v27 }
 0x6fa   : > { %5646 = vst [vmem:[#allocation5 + $0xc0] sm:$0x80] %v5645_v26  ;;  %5675 = vst [vmem:[#allocation5 + $0xe8] sm:$0x1] %v5674_v36  ;;  %v5689_v57 = vld [vmem:[#allocation5 + $0x18] sm:$0x80] }
 0x6fb   : > { %v5691_v26 = vld [vmem:[#allocation5 + $0x30] sm:$0x80]  ;;  %v5693_v27 = vld [vmem:[#allocation5 + $0x48] sm:$0x80] }
 0x6fe   : > { %5257 = vmatmul.mubr.bf16.gmra.mrb[232].mxu0 %v18193_v40  ;;  %5542 = vmatmul.mubr.bf16.gmra.mrb[60].mxu1 %v5336_v60  ;;  %v4749_v40 = vrot.slane %v4747_v48, 7  ;;  %v5642_v60 = vsel %vm18338_vm5, 0, %v5641_v11 }
 0x6ff   : > { %13037 = vmatprep.mubr.msk.bf16.mxu0 %vm2240_vm13, %v18198_v16  ;;  %v14586_v16 = vld [vmem:[#allocation17 + $0x140] sm:$0xff]   ;;  %5643 = vst [vmem:[#allocation5 + $0xa8] sm:$0x80] %v5642_v60 }
 0x700   : > { %v4756_v5 = vsel %vm693_vm2, %v4749_v40, %v4755_v42  ;;  %13874 = vmatprep.subr.bf16.mxu1 %v14586_v16  ;;  %v5648_v40 = vsel %vm18338_vm5, 0, %v5647_v33 }
 0x701   : > { %13875 = vmatpush3.bf16.msra.mxu1 %v14586_v16  ;;  %5649 = vst [vmem:[#allocation5 + $0xd8] sm:$0x80] %v5648_v40 }
 0x706   : > { %5265 = vmatmul.mubr.bf16.gmra.mrb[236].mxu0 %v18214_v41  ;;  %v14587_v41 = vld [vmem:[#allocation17 + $0x100] sm:$0xff]  }
 0x707   : > { %13038 = vmatprep.mubr.msk.bf16.mxu0 %vm2240_vm13, %v4768_v54  ;;  %13596 = vmatprep.subr.bf16.mxu0 %v14587_v41 }
 0x708   : > { %13597 = vmatpush3.bf16.msra.mxu0 %v14588_v35 }
 0x70e   : > { %5273 = vmatmul.mubr.bf16.gmra.mrb[240].mxu0 %v4756_v5 }
 0x70f   : > { %13039 = vmatprep.mubr.msk.bf16.mxu0 %vm2240_vm13, %v18242_v3  ;;  %v14589_v3 = vld [vmem:[#allocation17 + $0x108] sm:$0xff]  }
 0x710   : > { %13598 = vmatprep.subr.bf16.mxu0 %v14589_v3  ;;  %v14611_v3 = vld [vmem:[#allocation17 + $0x40] sm:$0xff]  }
 0x711   : > { %13599 = vmatpush3.bf16.msra.mxu0 %v14591_v20  ;;  %v5676_v20 = vld [vmem:[#allocation5 + $0x100] sm:$0x1] }
 0x716   : > { %5281 = vmatmul.mubr.bf16.gmra.mrb[244].mxu0 %v18250_v47  ;;  %v14590_v47 = vld [vmem:[#allocation17 + $0x148] sm:$0xff]  }
 0x717   : > { %13040 = vmatprep.mubr.msk.bf16.mxu0 %vm2240_vm13, %v18256_v17  ;;  %v14592_v17 = vld [vmem:[#allocation17 + $0x110] sm:$0xff]   ;;  %13876 = vmatprep.subr.bf16.mxu1 %v14590_v47 }
 0x718   : > { %13600 = vmatprep.subr.bf16.mxu0 %v14592_v17  ;;  %13877 = vmatpush3.bf16.msra.mxu1 %v14590_v47  ;;  %v5677_v47 = vsel %vm18343_vm8, 0, %v5676_v20  ;;  %v5650_v17 = vld [vmem:[#allocation5 + $0xf0] sm:$0x80]  ;;  %v18439_v20 = vld [vmem:[#allocation5 + $0x28] sm:$0x1] }
 0x719   : > { %13878 = vmatprep.subr.bf16.mxu1 %v14595_v39  ;;  %5678 = vst [vmem:[#allocation5 + $0x100] sm:$0x1] %v5677_v47 }
 0x71c   : > { %13879 = vmatpush3.bf16.msra.mxu1 %v14595_v39 }
 0x71d   : > { %13880 = vmatprep.subr.bf16.mxu1 %v14598_v22 }
 0x71e   : > { %5289 = vmatmul.mubr.bf16.gmra.mrb[248].mxu0 %v18270_v28  ;;  %v19554_v28 = vmov 0 }
 0x71f   : > { %13041 = vmatprep.mubr.msk.bf16.mxu0 %vm2240_vm13, %v18266_v44  ;;  %v19555_v28 = vsel %vm18338_vm5, 4294967295, %v19554_v28  ;;  %v14593_v44 = vld [vmem:[#allocation17 + $0xd0] sm:$0xff]  }
 0x720   : > { %19556 = vst [vmem:[#allocation40_spill] sm:$0xff] %v19555_v28  ;;  %13601 = vmatpush3.bf16.msra.mxu0 %v14593_v44  ;;  %13881 = vmatpush3.bf16.msra.mxu1 %v14598_v22  ;;  %v5651_v44 = vsel %vm18338_vm5, 0, %v5650_v17 }
 0x721   : > { %13602 = vmatprep.subr.bf16.mxu0 %v14594_v18  ;;  %13882 = vmatprep.subr.bf16.mxu1 %v14601_v24  ;;  %5652 = vst [vmem:[#allocation5 + $0xf0] sm:$0x80] %v5651_v44  ;;  %v18443_v44 = vld [vmem:[#allocation5 + $0x40] sm:$0x1] }
 0x724   : > { %13603 = vmatpush3.bf16.msra.mxu0 %v14596_v10  ;;  %13883 = vmatpush3.bf16.msra.mxu1 %v14601_v24 }
 0x725   : > { %13604 = vmatprep.subr.bf16.mxu0 %v14597_v52  ;;  %13884 = vmatprep.subr.bf16.mxu1 %v14604_v31 }
 0x726   : > { %5297 = vmatmul.mubr.bf16.gmra.mrb[252].mxu0 %v18282_v55  ;;  %v19557_v55 = vmov 0 }
 0x727   : > { %v19558_v55 = vsel %vm18343_vm8, 4294967295, %v19557_v55 }
 0x728   : > { %19559 = vst [vmem:[#allocation41_spill] sm:$0xff] %v19558_v55  ;;  %13605 = vmatpush3.bf16.msra.mxu0 %v14599_v19  ;;  %13885 = vmatpush3.bf16.msra.mxu1 %v14604_v31 }
 0x729   : > { %13606 = vmatprep.subr.bf16.mxu0 %v14600_v25  ;;  %13886 = vmatprep.subr.bf16.mxu1 %v14607_v8 }
 0x72c   : > { %13607 = vmatpush3.bf16.msra.mxu0 %v14602_v29  ;;  %13887 = vmatpush3.bf16.msra.mxu1 %v14607_v8 }
 0x72d   : > { %13608 = vmatprep.subr.bf16.mxu0 %v14603_v62  ;;  %13888 = vmatprep.subr.bf16.mxu1 %v14609_v59 }
 0x730   : > { %13609 = vmatpush3.bf16.msra.mxu0 %v14605_v13  ;;  %13889 = vmatpush3.bf16.msra.mxu1 %v14609_v59 }
 0x731   : > { %13610 = vmatprep.subr.bf16.mxu0 %v14606_v53  ;;  %13906 = vmatprep.subr.bf16.mxu1 %v18381_v50 }
 0x734   : > { %13611 = vmatpush3.bf16.msra.mxu0 %v14608_v32 }
 0x735   : > { %13676 = vmatprep.subr.bf16.mxu0 %v14611_v3 }
 0x769   : > { %v18365_v63 = vpop.f32.mrb[192].mxu0 }
 0x76a   : > { %v5069_v34 = vpop.f32.mrb[193].mxu0 }
 0x76b   : > { %v18369_v0 = vpop.f32.mrb[194].mxu0 }
 0x76c   : > { %v5072_v9 = vpop.f32.mrb[195].mxu0 }
 0x779   : > { %v18377_v1 = vpop.f32.mrb[196].mxu0  ;;  %v18379_v54 = vpop.f32.mrb[32].mxu1 }
 0x77a   : > { %v5077_v48 = vpop.f32.mrb[197].mxu0  ;;  %v5489_v42 = vpop.f32.mrb[33].mxu1 }
 0x77b   : > { %v18385_v5 = vpop.f32.mrb[198].mxu0  ;;  %v18387_v16 = vpop.f32.mrb[34].mxu1  ;;  %v5911_v48 = vshrl.u32 %v5689_v57, 16  ;;  %v5695_v42 = vld [vmem:[#allocation5 + $0x60] sm:$0x80] }
 0x77c   : > { %v5080_v41 = vpop.f32.mrb[199].mxu0  ;;  %v5492_v35 = vpop.f32.mrb[35].mxu1  ;;  %v18466_v57 = vld [vmem:[#allocation5 + $0xb8] sm:$0x1] }
 0x77d   : > { %v18437_v41 = vld [vmem:[#allocation16] ss:$0 sm:$0xff] }
 0x789   : > { %v18394_v46 = vpop.f32.mrb[200].mxu0  ;;  %v18396_v30 = vpop.f32.mrb[36].mxu1 }
 0x78a   : > { %v5085_v18 = vpop.f32.mrb[201].mxu0  ;;  %v5497_v39 = vpop.f32.mrb[37].mxu1 }
 0x78b   : > { %v18398_v38 = vpop.f32.mrb[202].mxu0  ;;  %v18400_v10 = vpop.f32.mrb[38].mxu1  ;;  %v5942_v18 = vshrl.u32 %v5691_v26, 16  ;;  %v5973_v39 = vshrl.u32 %v5693_v27, 16 }
 0x78c   : > { %v5088_v6 = vpop.f32.mrb[203].mxu0  ;;  %v5500_v52 = vpop.f32.mrb[39].mxu1 }
 0x799   : > { %v18402_v22 = vpop.f32.mrb[204].mxu0  ;;  %v18404_v19 = vpop.f32.mrb[40].mxu1 }
 0x79a   : > { %v5093_v45 = vpop.f32.mrb[205].mxu0  ;;  %v5505_v12 = vpop.f32.mrb[41].mxu1 }
 0x79b   : > { %v18406_v25 = vpop.f32.mrb[206].mxu0  ;;  %v18408_v24 = vpop.f32.mrb[42].mxu1 }
 0x79c   : > { %v5096_v49 = vpop.f32.mrb[207].mxu0  ;;  %v5508_v29 = vpop.f32.mrb[43].mxu1 }
 0x79d   : > { %v6200_v49 = vshrl.u32 %v5695_v42, 16  ;;  %v5847_v29 = vrot.slane %v18439_v20, 1  ;;  %v18470_v42 = vld [vmem:[#allocation5] sm:$0xff] }
 0x7a1   : > { %v18410_v58 = vpop.f32.mrb[208].mxu0 }
 0x7a2   : > { %v5101_v62 = vpop.f32.mrb[209].mxu0 }
 0x7a3   : > { %v18412_v31 = vpop.f32.mrb[210].mxu0  ;;  %v18450_v62 = vrot.slane %v5911_v48, 7 }
 0x7a4   : > { %v5104_v13 = vpop.f32.mrb[211].mxu0 }
 0x7a5   : > { %v18452_v13 = vld [vmem:[#allocation5 + $0x70] sm:$0x1] }
 0x7a9   : > { %v18414_v7 = vpop.f32.mrb[212].mxu0 }
 0x7aa   : > { %v5109_v4 = vpop.f32.mrb[213].mxu0 }
 0x7ab   : > { %v18416_v53 = vpop.f32.mrb[214].mxu0 }
 0x7ac   : > { %v5112_v8 = vpop.f32.mrb[215].mxu0 }
 0x7b1   : > { %v18418_v2 = vpop.f32.mrb[216].mxu0  ;;  %v18420_v32 = vpop.f32.mrb[44].mxu1 }
 0x7b2   : > { %v5117_v56 = vpop.f32.mrb[217].mxu0  ;;  %v5513_v59 = vpop.f32.mrb[45].mxu1 }
 0x7b3   : > { %v18422_v51 = vpop.f32.mrb[218].mxu0  ;;  %v18424_v37 = vpop.f32.mrb[46].mxu1  ;;  %v5701_v56 = vld [vmem:[#allocation5 + $0xa8] sm:$0x80]  ;;  %v5703_v59 = vld [vmem:[#allocation5 + $0xc0] sm:$0x80] }
 0x7b4   : > { %v5120_v61 = vpop.f32.mrb[219].mxu0  ;;  %v5516_v23 = vpop.f32.mrb[47].mxu1  ;;  %v6066_v48 = vshrl.u32 %v5703_v59, 16 }
 0x7b5   : > { %v18457_v61 = vrot.slane %v5942_v18, 7 }
 0x7b9   : > { %v18426_v43 = vpop.f32.mrb[220].mxu0  ;;  %v18428_v15 = vpop.f32.mrb[48].mxu1 }
 0x7ba   : > { %v5125_v11 = vpop.f32.mrb[221].mxu0  ;;  %v5521_v34 = vpop.f32.mrb[49].mxu1 }
 0x7bb   : > { %v18430_v60 = vpop.f32.mrb[222].mxu0  ;;  %v18432_v9 = vpop.f32.mrb[50].mxu1  ;;  %v18460_v11 = vrot.slane %v5973_v39, 7 }
 0x7bc   : > { %v5128_v14 = vpop.f32.mrb[223].mxu0  ;;  %v5524_v21 = vpop.f32.mrb[51].mxu1 }
 0x7bd   : > { %v18464_v21 = vrot.slane %v6200_v49, 7  ;;  %v18481_v49 = vld [vmem:[#allocation5 + $0xe8] sm:$0x1]  ;;  %v18491_v14 = vrot.slane %v6066_v48, 7 }
 0x7be   : > { %19560 = vst [vmem:[#allocation42_spill] sm:$0xff] %v18481_v49 }
 0x7bf   : > { %19562 = vst [vmem:[#allocation44_spill] sm:$0xff] %v18491_v14 }
 0x7c1   : > { %v5242_v36 = vpop.f32.mrb[224].mxu0  ;;  %v18434_v33 = vpop.f32.mrb[52].mxu1 }
 0x7c2   : > { %v5243_v40 = vadd.f32 %v5242_v36, %v18365_v63  ;;  %v5244_v35 = vpop.f32.mrb[225].mxu0  ;;  %v5529_v3 = vpop.f32.mrb[53].mxu1  ;;  %v18447_v63 = vld [vmem:[#allocation5 + $0x58] sm:$0x1]  ;;  %v6035_v36 = vshrl.u32 %v5701_v56, 16 }
 0x7c3   : > { %v5245_v47 = vpop.f32.mrb[226].mxu0  ;;  %v18441_v17 = vpop.f32.mrb[54].mxu1 }
 0x7c4   : > { %v5550_v6 = vadd.f32 %v18379_v54, %v5243_v40  ;;  %v5246_v52 = vadd.f32 %v5245_v47, %v18369_v0  ;;  %v5247_v45 = vpop.f32.mrb[227].mxu0  ;;  %v5532_v12 = vpop.f32.mrb[55].mxu1  ;;  %v5712_v54 = vld [vmem:[#allocation5 + $0x10] sm:$0x1]  ;;  %v18473_v40 = vrot.slane %v18470_v42, 1 }
 0x7c5   : > { %v5844_v35 = vrot.slane %v5712_v54, 1 }
 0x7c6   : > { %v5573_v4 = vadd.f32 %v18437_v41, %v5550_v6  ;;  %v5551_v8 = vadd.f32 %v18387_v16, %v5246_v52  ;;  %v5705_v16 = vld [vmem:[#allocation5 + $0xd8] sm:$0x80]  ;;  %v18476_v6 = vld [vmem:[#allocation5 + $0xd0] sm:$0x1] }
 0x7c8   : > { %v5574_v34 = vadd.f32 %v18437_v41, %v5551_v8  ;;  %v5589_v3 = vmax.f32 %v5573_v4, 0.0  ;;  %v6097_v8 = vshrl.u32 %v5705_v16, 16  ;;  %v18495_v16 = vsel %vm1175_vm4, %v18473_v40, %v5844_v35 }
 0x7c9   : > { %v5250_v26 = vpop.f32.mrb[228].mxu0  ;;  %v18468_v27 = vpop.f32.mrb[56].mxu1 }
 0x7ca   : > { %v5590_v20 = vmax.f32 %v5574_v34, 0.0  ;;  %v5251_v47 = vadd.f32 %v5250_v26, %v18377_v1  ;;  %v5252_v18 = vpop.f32.mrb[229].mxu0  ;;  %v5537_v39 = vpop.f32.mrb[57].mxu1  ;;  %v18485_v1 = vld [vmem:[#allocation5 + $0x100] sm:$0x1]  ;;  %v19508_v26 = vshll.u32 %v18470_v42, 16 }
 0x7cb   : > { %v5253_v52 = vpop.f32.mrb[230].mxu0  ;;  %v18478_v45 = vpop.f32.mrb[58].mxu1  ;;  %19561 = vst [vmem:[#allocation43_spill] sm:$0xff] %v18485_v1  ;;  %v18488_v18 = vrot.slane %v6035_v36, 7 }
 0x7cc   : > { %v5605_v56 = vpack.c.bf16 %v5590_v20, %v5589_v3  ;;  %v5552_v59 = vadd.f32 %v18396_v30, %v5251_v47  ;;  %v5254_v4 = vadd.f32 %v5253_v52, %v18385_v5  ;;  %v5255_v54 = vpop.f32.mrb[231].mxu0  ;;  %v5540_v34 = vpop.f32.mrb[59].mxu1 }
 0x7cd   : > { %v18500_v54 = vrot.slane %v6097_v8, 7 }
 0x7ce   : > { %v5575_v30 = vadd.f32 %v18437_v41, %v5552_v59  ;;  %v5553_v5 = vadd.f32 %v18400_v10, %v5254_v4  ;;  %v5846_v3 = vrot.slane %v5605_v56, 1  ;;  %v5743_v20 = vshll.u32 %v5605_v56, 16 }
 0x7cf   : > { %v5746_v47 = vshrl.u32 %v5605_v56, 16  ;;  %19563 = vst [vmem:[#allocation45_spill] sm:$0xff] %v18500_v54  ;;  %v18508_v59 = vrot.slane %v19508_v26, 1 }
 0x7d0   : > { %v5576_v48 = vadd.f32 %v18437_v41, %v5553_v5  ;;  %v5848_v34 = vsel %vm1175_vm4, %v5846_v3, %v5847_v29  ;;  %v5930_v4 = vshrl.u32 %v5846_v3, 16  ;;  %v5745_v56 = vrot.slane %v5743_v20, 1 }
 0x7d1   : > { %19564 = vst [vmem:[#allocation46_spill] sm:$0xff] %v18508_v59  ;;  %v5258_v10 = vpop.f32.mrb[232].mxu0  ;;  %v5934_v39 = vshrl.u32 %v5848_v34, 16  ;;  %v5914_v12 = vrot.slane %v5746_v47, 7  ;;  %v18510_v52 = vpop.f32.mrb[60].mxu1  ;;  %v5591_v8 = vmax.f32 %v5575_v30, 0.0 }
 0x7d2   : > { %v5592_v23 = vmax.f32 %v5576_v48, 0.0  ;;  %v5259_v36 = vadd.f32 %v5258_v10, %v18394_v46  ;;  %v5260_v5 = vpop.f32.mrb[233].mxu0  ;;  %v5545_v0 = vpop.f32.mrb[61].mxu1  ;;  %v5739_v29 = vshrl.u32 %v18470_v42, 16  ;;  %v5937_v55 = vshll.u32 %v5848_v34, 16 }
 0x7d3   : > { %v5261_v35 = vpop.f32.mrb[234].mxu0  ;;  %v5936_v28 = vrot.slane %v5934_v39, 7  ;;  %v5748_v26 = vor.u32 %v5746_v47, %v5745_v56  ;;  %v5915_v54 = vor.u32 %v5914_v12, %v5743_v20  ;;  %v18514_v1 = vpop.f32.mrb[62].mxu1  ;;  %v5918_v48 = vshrl.u32 %v5745_v56, 16 }
 0x7d4   : > { %v5606_v3 = vpack.c.bf16 %v5592_v23, %v5591_v8  ;;  %v5554_v14 = vadd.f32 %v18404_v19, %v5259_v36  ;;  %v5262_v59 = vadd.f32 %v5261_v35, %v18398_v38  ;;  %v5263_v30 = vpop.f32.mrb[235].mxu0  ;;  %v5548_v49 = vpop.f32.mrb[63].mxu1  ;;  %v5932_v46 = vrot.slane %v5930_v4, 7 }
 0x7d5   : > { %v5939_v10 = vor.u32 %v5937_v55, %v5936_v28  ;;  %v18520_v0 = vsel %vm693_vm2, %v18450_v62, %v5915_v54  ;;  %v5922_v39 = vshrl.u32 %v5748_v26, 16  ;;  %v5925_v20 = vshll.u32 %v5748_v26, 16  ;;  %v14613_v30 = vld [vmem:[#allocation17] sm:$0xff]  }
 0x7d6   : > { %v5577_v47 = vadd.f32 %v18437_v41, %v5554_v14  ;;  %v5555_v12 = vadd.f32 %v18408_v24, %v5262_v59  ;;  %v5849_v23 = vrot.slane %v5606_v3, 1  ;;  %v5750_v36 = vshll.u32 %v5606_v3, 16 }
 0x7d7   : > { %v18525_v19 = vsel %vm693_vm2, %v5932_v46, %v5939_v10  ;;  %v5924_v38 = vrot.slane %v5922_v39, 7  ;;  %v5753_v34 = vshrl.u32 %v5606_v3, 16  ;;  %v5920_v55 = vrot.slane %v5918_v48, 7 }
 0x7d8   : > { %v5593_v49 = vmax.f32 %v5577_v47, 0.0  ;;  %v5578_v28 = vadd.f32 %v18437_v41, %v5555_v12  ;;  %13890 = vmatprep.mubr.bf16.mxu1 %v18525_v19  ;;  %v19565_v62 = vrot.slane %v18443_v44, 1  ;;  %v5961_v26 = vshrl.u32 %v5849_v23, 16  ;;  %v14614_v47 = vld [vmem:[#allocation17 + $0x48] sm:$0xff]  }
 0x7d9   : > { %v5266_v54 = vpop.f32.mrb[236].mxu0  ;;  %v5927_v24 = vor.u32 %v5925_v20, %v5924_v38  ;;  %v5752_v59 = vrot.slane %v5750_v36, 1  ;;  %v5945_v3 = vrot.slane %v5753_v34, 7 }
 0x7da   : > { %v5851_v14 = vsel %vm1175_vm4, %v5849_v23, %v19565_v62  ;;  %v5594_v4 = vmax.f32 %v5578_v28, 0.0  ;;  %v5267_v56 = vadd.f32 %v5266_v54, %v18402_v22  ;;  %v5268_v8 = vpop.f32.mrb[237].mxu0  ;;  %v5963_v28 = vrot.slane %v5961_v26, 7  ;;  %v14617_v26 = vld [vmem:[#allocation17 + $0x50] sm:$0xff]  }
 0x7db   : > { %v5965_v35 = vshrl.u32 %v5851_v14, 16  ;;  %v5968_v5 = vshll.u32 %v5851_v14, 16  ;;  %v5269_v46 = vpop.f32.mrb[238].mxu0  ;;  %v18534_v10 = vsel %vm693_vm2, %v5920_v55, %v5927_v24  ;;  %v5755_v44 = vor.u32 %v5753_v34, %v5752_v59 }
 0x7dc   : > { %v5949_v39 = vshrl.u32 %v5752_v59, 16  ;;  %v5607_v12 = vpack.c.bf16 %v5594_v4, %v5593_v49  ;;  %v5556_v20 = vadd.f32 %v18420_v32, %v5267_v56  ;;  %v5270_v23 = vadd.f32 %v5269_v46, %v18406_v25  ;;  %v5271_v38 = vpop.f32.mrb[239].mxu0  ;;  %6491 = vmatprep.mubr.bf16.mxu0 %v18534_v10  ;;  %v14616_v32 = vld [vmem:[#allocation17 + $0x8] sm:$0xff]  }
 0x7dd   : > { %v5967_v48 = vrot.slane %v5965_v35, 7  ;;  %v5946_v22 = vor.u32 %v5945_v3, %v5750_v36  ;;  %6492 = vmatmul.mubr.bf16.vlgmr.msra.gmra.mrb[0].mxu0 %v18520_v0  ;;  %v5953_v55 = vshrl.u32 %v5755_v44, 16  ;;  %v5956_v24 = vshll.u32 %v5755_v44, 16  ;;  %v14612_v35 = vld [vmem:[#allocation17 + $0x88] sm:$0xff]  }
 0x7de   : > { %v5951_v14 = vrot.slane %v5949_v39, 7  ;;  %v5579_v54 = vadd.f32 %v18437_v41, %v5556_v20  ;;  %v5557_v34 = vadd.f32 %v18424_v37, %v5270_v23  ;;  %v5852_v49 = vrot.slane %v5607_v12, 1  ;;  %13677 = vmatpush3.bf16.msra.mxu0 %v14613_v30 }
 0x7df   : > { %v5970_v62 = vor.u32 %v5968_v5, %v5967_v48  ;;  %v5955_v59 = vrot.slane %v5953_v55, 7  ;;  %v5757_v36 = vshll.u32 %v5607_v12, 16  ;;  %v5760_v4 = vshrl.u32 %v5607_v12, 16  ;;  %13678 = vmatprep.subr.bf16.mxu0 %v14614_v47 }
 0x7e0   : > { %v5595_v56 = vmax.f32 %v5579_v54, 0.0  ;;  %v5580_v8 = vadd.f32 %v18437_v41, %v5557_v34  ;;  %v18549_v37 = vsel %vm693_vm2, %v18457_v61, %v5946_v22  ;;  %v19566_v5 = vrot.slane %v18447_v63, 1  ;;  %v14615_v61 = vld [vmem:[#allocation17 + $0x90] sm:$0xff]   ;;  %v14620_v34 = vld [vmem:[#allocation17 + $0x58] sm:$0xff]  }
 0x7e1   : > { %v18543_v25 = vsel %vm693_vm2, %v5963_v28, %v5970_v62  ;;  %v5274_v30 = vpop.f32.mrb[240].mxu0  ;;  %v5958_v46 = vor.u32 %v5956_v24, %v5955_v59  ;;  %v5992_v48 = vshrl.u32 %v5852_v49, 16  ;;  %v5759_v39 = vrot.slane %v5757_v36, 1  ;;  %v14619_v22 = vld [vmem:[#allocation17 + $0x10] sm:$0xff]  }
 0x7e2   : > { %13891 = vmatmul.mubr.bf16.vlgmr.msra.gmra.mrb[64].mxu1 %v18543_v25  ;;  %v5854_v3 = vsel %vm1175_vm4, %v5852_v49, %v19566_v5  ;;  %v5596_v47 = vmax.f32 %v5580_v8, 0.0  ;;  %v5275_v12 = vadd.f32 %v5274_v30, %v18410_v58  ;;  %v5276_v20 = vpop.f32.mrb[241].mxu0  ;;  %v5976_v38 = vrot.slane %v5760_v4, 7  ;;  %13679 = vmatpush3.bf16.msra.mxu0 %v14616_v32 }
 0x7e3   : > { %v5996_v44 = vshrl.u32 %v5854_v3, 16  ;;  %13907 = vmatpush3.bf16.msra.mxu1 %v18381_v50  ;;  %v5999_v23 = vshll.u32 %v5854_v3, 16  ;;  %v5277_v63 = vpop.f32.mrb[242].mxu0  ;;  %v18557_v28 = vsel %vm693_vm2, %v5951_v14, %v5958_v46  ;;  %v5762_v55 = vor.u32 %v5760_v4, %v5759_v39  ;;  %13680 = vmatprep.subr.bf16.mxu0 %v14617_v26 }
 0x7e4   : > { %13908 = vmatprep.subr.bf16.mxu1 %v14612_v35  ;;  %v5980_v54 = vshrl.u32 %v5759_v39, 16  ;;  %v5608_v50 = vpack.c.bf16 %v5596_v47, %v5595_v56  ;;  %v5558_v24 = vadd.f32 %v18428_v15, %v5275_v12  ;;  %v5278_v58 = vadd.f32 %v5277_v63, %v18412_v31  ;;  %v5279_v49 = vpop.f32.mrb[243].mxu0  ;;  %6499 = vmatprep.mubr.bf16.mxu0 %v18557_v28  ;;  %v14618_v15 = vld [vmem:[#allocation17 + $0x98] sm:$0xff]  }
 0x7e5   : > { %v5998_v62 = vrot.slane %v5996_v44, 7  ;;  %v5977_v59 = vor.u32 %v5976_v38, %v5757_v36  ;;  %6500 = vmatmul.mubr.bf16.gmra.mrb[4].mxu0 %v18549_v37  ;;  %v5994_v32 = vrot.slane %v5992_v48, 7  ;;  %v5984_v5 = vshrl.u32 %v5762_v55, 16  ;;  %v14622_v31 = vld [vmem:[#allocation17 + $0x18] sm:$0xff]   ;;  %v14623_v44 = vld [vmem:[#allocation17 + $0x60] sm:$0xff]  }
 0x7e6   : > { %v5982_v14 = vrot.slane %v5980_v54, 7  ;;  %v5581_v4 = vadd.f32 %v18437_v41, %v5558_v24  ;;  %v5559_v26 = vadd.f32 %v18432_v9, %v5278_v58  ;;  %v5987_v56 = vshll.u32 %v5762_v55, 16  ;;  %13681 = vmatpush3.bf16.msra.mxu0 %v14619_v22  ;;  %v14621_v24 = vld [vmem:[#allocation17 + $0xa0] sm:$0xff]  }
 0x7e7   : > { %v6001_v8 = vor.u32 %v5999_v23, %v5998_v62  ;;  %13909 = vmatpush3.bf16.msra.mxu1 %v14612_v35  ;;  %v5855_v3 = vrot.slane %v5608_v50, 1  ;;  %v5986_v36 = vrot.slane %v5984_v5, 7  ;;  %v5764_v46 = vshll.u32 %v5608_v50, 16  ;;  %13682 = vmatprep.subr.bf16.mxu0 %v14620_v34 }
 0x7e8   : > { %13910 = vmatprep.subr.bf16.mxu1 %v14615_v61  ;;  %v5767_v48 = vshrl.u32 %v5608_v50, 16  ;;  %v5597_v39 = vmax.f32 %v5581_v4, 0.0  ;;  %v5582_v35 = vadd.f32 %v18437_v41, %v5559_v26  ;;  %v18572_v9 = vsel %vm693_vm2, %v18460_v11, %v5977_v59  ;;  %v14625_v11 = vld [vmem:[#allocation17 + $0x20] sm:$0xff]  }
 0x7e9   : > { %v18566_v30 = vsel %vm693_vm2, %v5994_v32, %v6001_v8  ;;  %v19567_v47 = vrot.slane %v18452_v13, 1  ;;  %v5282_v20 = vpop.f32.mrb[244].mxu0  ;;  %v5989_v23 = vor.u32 %v5987_v56, %v5986_v36  ;;  %v6219_v38 = vshrl.u32 %v5855_v3, 16  ;;  %v14626_v8 = vld [vmem:[#allocation17 + $0x68] sm:$0xff]  }
 0x7ea   : > { %13894 = vmatprep.mubr.bf16.mxu1 %v18566_v30  ;;  %v5766_v63 = vrot.slane %v5764_v46, 1  ;;  %v5598_v62 = vmax.f32 %v5582_v35, 0.0  ;;  %v5283_v55 = vadd.f32 %v5282_v20, %v18414_v7  ;;  %v5284_v54 = vpop.f32.mrb[245].mxu0  ;;  %v6203_v50 = vrot.slane %v5767_v48, 7  ;;  %13683 = vmatpush3.bf16.msra.mxu0 %v14622_v31  ;;  %v14629_v20 = vld [vmem:[#allocation17 + $0x70] sm:$0xff]  }
 0x7eb   : > { %v5857_v12 = vsel %vm1175_vm4, %v5855_v3, %v19567_v47  ;;  %13911 = vmatpush3.bf16.msra.mxu1 %v14615_v61  ;;  %v5285_v58 = vpop.f32.mrb[246].mxu0  ;;  %v18579_v13 = vsel %vm693_vm2, %v5982_v14, %v5989_v23  ;;  %13684 = vmatprep.subr.bf16.mxu0 %v14623_v44  ;;  %v6221_v56 = vrot.slane %v6219_v38, 7  ;;  %v19568_v38 = vrot.slane %v18466_v57, 1 }
 0x7ec   : > { %v6223_v22 = vshrl.u32 %v5857_v12, 16  ;;  %v6226_v34 = vshll.u32 %v5857_v12, 16  ;;  %13912 = vmatprep.subr.bf16.mxu1 %v14618_v15  ;;  %v5769_v59 = vor.u32 %v5767_v48, %v5766_v63  ;;  %v6207_v32 = vshrl.u32 %v5766_v63, 16  ;;  %v5287_v4 = vpop.f32.mrb[247].mxu0  ;;  %6507 = vmatprep.mubr.bf16.mxu0 %v18579_v13 }
 0x7ed   : > { %v5609_v61 = vpack.c.bf16 %v5598_v62, %v5597_v39  ;;  %v5560_v5 = vadd.f32 %v18434_v33, %v5283_v55  ;;  %v5286_v7 = vadd.f32 %v5285_v58, %v18416_v53  ;;  %v6204_v26 = vor.u32 %v6203_v50, %v5764_v46  ;;  %6508 = vmatmul.mubr.bf16.gmra.mrb[8].mxu0 %v18572_v9  ;;  %v14624_v33 = vld [vmem:[#allocation17 + $0xa8] sm:$0xff]   ;;  %v14632_v4 = vld [vmem:[#allocation17 + $0x78] sm:$0xff]  }
 0x7ee   : > { %v6225_v49 = vrot.slane %v6223_v22, 7  ;;  %v6209_v14 = vrot.slane %v6207_v32, 7  ;;  %v6211_v31 = vshrl.u32 %v5769_v59, 16  ;;  %v6214_v44 = vshll.u32 %v5769_v59, 16  ;;  %13685 = vmatpush3.bf16.msra.mxu0 %v14625_v11  ;;  %v14628_v53 = vld [vmem:[#allocation17 + $0x28] sm:$0xff]   ;;  %v14627_v32 = vld [vmem:[#allocation17 + $0xb0] sm:$0xff]  }
 0x7ef   : > { %13913 = vmatpush3.bf16.msra.mxu1 %v14618_v15  ;;  %v5583_v36 = vadd.f32 %v18437_v41, %v5560_v5  ;;  %v5561_v48 = vadd.f32 %v18441_v17, %v5286_v7  ;;  %v5864_v39 = vrot.slane %v5609_v61, 1  ;;  %v5785_v47 = vshll.u32 %v5609_v61, 16  ;;  %13686 = vmatprep.subr.bf16.mxu0 %v14626_v8 }
 0x7f0   : > { %v6228_v3 = vor.u32 %v6226_v34, %v6225_v49  ;;  %13914 = vmatprep.subr.bf16.mxu1 %v14621_v24  ;;  %v6213_v46 = vrot.slane %v6211_v31, 7  ;;  %v5788_v12 = vshrl.u32 %v5609_v61, 16  ;;  %v18594_v17 = vsel %vm693_vm2, %v18464_v21, %v6204_v26  ;;  %v14631_v21 = vld [vmem:[#allocation17 + $0x30] sm:$0xff]  }
 0x7f1   : > { %v5599_v23 = vmax.f32 %v5583_v36, 0.0  ;;  %v5584_v15 = vadd.f32 %v18437_v41, %v5561_v48  ;;  %v5866_v22 = vsel %vm1175_vm4, %v5864_v39, %v19568_v38  ;;  %v5290_v63 = vpop.f32.mrb[248].mxu0  ;;  %v6054_v55 = vshrl.u32 %v5864_v39, 16 }
 0x7f2   : > { %v18588_v35 = vsel %vm693_vm2, %v6221_v56, %v6228_v3  ;;  %v6216_v62 = vor.u32 %v6214_v44, %v6213_v46  ;;  %v6058_v54 = vshrl.u32 %v5866_v22, 16  ;;  %v5787_v34 = vrot.slane %v5785_v47, 1  ;;  %v5292_v58 = vpop.f32.mrb[249].mxu0  ;;  %13687 = vmatpush3.bf16.msra.mxu0 %v14628_v53  ;;  %v14634_v46 = vld [vmem:[#allocation17 + $0x38] sm:$0xff]  }
 0x7f3   : > { %13895 = vmatmul.mubr.bf16.gmra.mrb[68].mxu1 %v18588_v35  ;;  %v5600_v50 = vmax.f32 %v5584_v15, 0.0  ;;  %v5291_v11 = vadd.f32 %v5290_v63, %v18418_v2  ;;  %v6061_v49 = vshll.u32 %v5866_v22, 16  ;;  %v6038_v59 = vrot.slane %v5788_v12, 7  ;;  %v5293_v8 = vpop.f32.mrb[250].mxu0  ;;  %13688 = vmatprep.subr.bf16.mxu0 %v14629_v20 }
 0x7f4   : > { %13915 = vmatpush3.bf16.msra.mxu1 %v14621_v24  ;;  %v18601_v57 = vsel %vm693_vm2, %v6209_v14, %v6216_v62  ;;  %v6060_v61 = vrot.slane %v6058_v54, 7  ;;  %v5790_v5 = vor.u32 %v5788_v12, %v5787_v34  ;;  %v6042_v7 = vshrl.u32 %v5787_v34, 16  ;;  %v5295_v56 = vpop.f32.mrb[251].mxu0 }
 0x7f5   : > { %13916 = vmatprep.subr.bf16.mxu1 %v14624_v33  ;;  %v18603_v24 = vpack.c.bf16 %v5600_v50, %v5599_v23  ;;  %v5562_v2 = vadd.f32 %v18468_v27, %v5291_v11  ;;  %v5294_v26 = vadd.f32 %v5293_v8, %v18422_v51  ;;  %6515 = vmatprep.mubr.bf16.mxu0 %v18601_v57  ;;  %v6056_v31 = vrot.slane %v6054_v55, 7  ;;  %v14630_v51 = vld [vmem:[#allocation17 + $0xb8] sm:$0xff]  }
 0x7f6   : > { %v6039_v3 = vor.u32 %v6038_v59, %v5785_v47  ;;  %6516 = vmatmul.mubr.bf16.gmra.mrb[12].mxu0 %v18594_v17  ;;  %v6063_v14 = vor.u32 %v6061_v49, %v6060_v61  ;;  %v6046_v36 = vshrl.u32 %v5790_v5, 16  ;;  %v5899_v48 = vshrl.u32 %v18473_v40, 16 }
 0x7f7   : > { %v5585_v44 = vadd.f32 %v18437_v41, %v5562_v2  ;;  %v5563_v39 = vadd.f32 %v18478_v45, %v5294_v26  ;;  %v6049_v53 = vshll.u32 %v5790_v5, 16  ;;  %v5867_v27 = vrot.slane %v18603_v24, 1  ;;  %13689 = vmatpush3.bf16.msra.mxu0 %v14631_v21  ;;  %v14633_v21 = vld [vmem:[#allocation17 + $0x1c0] sm:$0xff]  }
 0x7f8   : > { %13917 = vmatpush3.bf16.msra.mxu1 %v14624_v33  ;;  %v18614_v47 = vsel %vm693_vm2, %v6056_v31, %v6063_v14  ;;  %v6048_v12 = vrot.slane %v6046_v36, 7  ;;  %v5792_v20 = vshll.u32 %v18603_v24, 16  ;;  %v5795_v33 = vshrl.u32 %v18603_v24, 16  ;;  %13690 = vmatprep.subr.bf16.mxu0 %v14632_v4 }
 0x7f9   : > { %13918 = vmatprep.subr.bf16.mxu1 %v14627_v32  ;;  %v5586_v23 = vadd.f32 %v18437_v41, %v5563_v39  ;;  %13898 = vmatprep.mubr.bf16.mxu1 %v18614_v47  ;;  %v6044_v45 = vrot.slane %v6042_v7, 7  ;;  %v18622_v15 = vsel %vm693_vm2, %v18488_v18, %v6039_v3  ;;  %v19569_v38 = vrot.slane %v18476_v6, 1  ;;  %v5298_v63 = vpop.f32.mrb[252].mxu0 }
 0x7fa   : > { %v6051_v62 = vor.u32 %v6049_v53, %v6048_v12  ;;  %v6085_v55 = vshrl.u32 %v5867_v27, 16  ;;  %v5794_v34 = vrot.slane %v5792_v20, 1  ;;  %v5601_v50 = vmax.f32 %v5585_v44, 0.0  ;;  %v5300_v49 = vpop.f32.mrb[253].mxu0  ;;  %v19571_v12 = vld [vmem:[#allocation42_spill] sm:$0xff] }
 0x7fb   : > { %v5869_v22 = vsel %vm1175_vm4, %v5867_v27, %v19569_v38  ;;  %v5602_v11 = vmax.f32 %v5586_v23, 0.0  ;;  %v5299_v58 = vadd.f32 %v5298_v63, %v18426_v43  ;;  %v6069_v59 = vrot.slane %v5795_v33, 7  ;;  %13691 = vmatpush3.bf16.msra.mxu0 %v14634_v46  ;;  %v5301_v18 = vpop.f32.mrb[254].mxu0  ;;  %v18647_v63 = vld [vmem:[#allocation5 + $0xf0] sm:$0x80] }
 0x7fc   : > { %v6089_v54 = vshrl.u32 %v5869_v22, 16  ;;  %13919 = vmatpush3.bf16.msra.mxu1 %v14627_v32  ;;  %v18629_v6 = vsel %vm693_vm2, %v6044_v45, %v6051_v62  ;;  %v6092_v61 = vshll.u32 %v5869_v22, 16  ;;  %v5797_v5 = vor.u32 %v5795_v33, %v5794_v34  ;;  %v5303_v24 = vpop.f32.mrb[255].mxu0 }
 0x7fd   : > { %13920 = vmatprep.subr.bf16.mxu1 %v14630_v51  ;;  %v5611_v7 = vpack.c.bf16 %v5602_v11, %v5601_v50  ;;  %v5564_v4 = vadd.f32 %v18510_v52, %v5299_v58  ;;  %v5302_v32 = vadd.f32 %v5301_v18, %v18430_v60  ;;  %6523 = vmatprep.mubr.bf16.mxu0 %v18629_v6  ;;  %v6073_v43 = vshrl.u32 %v5794_v34, 16  ;;  %v19573_v34 = vld [vmem:[#allocation46_spill] sm:$0xff] }
 0x7fe   : > { %v6091_v8 = vrot.slane %v6089_v54, 7  ;;  %6524 = vmatmul.mubr.bf16.gmra.mrb[16].mxu0 %v18622_v15  ;;  %v6087_v2 = vrot.slane %v6085_v55, 7  ;;  %v6077_v56 = vshrl.u32 %v5797_v5, 16  ;;  %v19570_v3 = vshrl.u32 %v18495_v16, 16 }
 0x7ff   : > { %v5587_v14 = vadd.f32 %v18437_v41, %v5564_v4  ;;  %v5565_v36 = vadd.f32 %v18514_v1, %v5302_v32  ;;  %v6070_v52 = vor.u32 %v6069_v59, %v5792_v20  ;;  %v5870_v44 = vrot.slane %v5611_v7, 1 }
 0x800   : > { %v6094_v26 = vor.u32 %v6092_v61, %v6091_v8  ;;  %13921 = vmatpush3.bf16.msra.mxu1 %v14630_v51  ;;  %v5905_v31 = vrot.slane %v19570_v3, 7  ;;  %v6079_v39 = vrot.slane %v6077_v56, 7  ;;  %v6080_v53 = vshll.u32 %v5797_v5, 16 }
 0x801   : > { %13756 = vmatprep.subr.bf16.mxu1 %v14633_v21  ;;  %v5799_v27 = vshll.u32 %v5611_v7, 16  ;;  %v5588_v46 = vadd.f32 %v18437_v41, %v5565_v36  ;;  %v6075_v51 = vrot.slane %v6073_v43, 7  ;;  %v19572_v33 = vrot.slane %v19571_v12, 1  ;;  %v19574_v21 = vld [vmem:[#allocation44_spill] sm:$0xff] }
 0x802   : > { %v18640_v60 = vsel %vm693_vm2, %v6087_v2, %v6094_v26  ;;  %v5802_v45 = vshrl.u32 %v5611_v7, 16  ;;  %v6082_v1 = vor.u32 %v6080_v53, %v6079_v39  ;;  %v6116_v20 = vshrl.u32 %v5870_v44, 16 }
 0x803   : > { %13899 = vmatmul.mubr.bf16.gmra.mrb[72].mxu1 %v18640_v60  ;;  %v5872_v23 = vsel %vm1175_vm4, %v5870_v44, %v19572_v33  ;;  %v5801_v22 = vrot.slane %v5799_v27, 1  ;;  %v5603_v62 = vmax.f32 %v5587_v14, 0.0  ;;  %v5604_v55 = vmax.f32 %v5588_v46, 0.0 }
 0x804   : > { %v6120_v38 = vshrl.u32 %v5872_v23, 16  ;;  %v5906_v54 = vshll.u32 %v18495_v16, 16  ;;  %v5741_v41 = vor.u32 %v5739_v29, %v19573_v34  ;;  %v18654_v50 = vsel %vm693_vm2, %v6075_v51, %v6082_v1  ;;  %v5724_v51 = vld [vmem:[#allocation5 + $0xa0] sm:$0x1] }
 0x805   : > { %v6123_v58 = vshll.u32 %v5872_v23, 16  ;;  %v5804_v49 = vor.u32 %v5802_v45, %v5801_v22  ;;  %v5612_v59 = vpack.c.bf16 %v5604_v55, %v5603_v62  ;;  %6531 = vmatprep.mubr.bf16.mxu0 %v18654_v50  ;;  %v18659_v18 = vsel %vm693_vm2, %v19574_v21, %v6070_v52  ;;  %v19575_v52 = vld [vmem:[#allocation43_spill] sm:$0xff]  ;;  %v19577_v62 = vld [vmem:[#allocation45_spill] sm:$0xff] }
 0x806   : > { %v6122_v11 = vrot.slane %v6120_v38, 7  ;;  %v6100_v8 = vrot.slane %v5802_v45, 7  ;;  %v6231_v16 = vshrl.u32 %v18647_v63, 16  ;;  %6532 = vmatmul.mubr.bf16.gmra.mrb[20].mxu0 %v18659_v18  ;;  %v6118_v61 = vrot.slane %v6116_v20, 7 }
 0x807   : > { %v6104_v7 = vshrl.u32 %v5801_v22, 16  ;;  %v6108_v4 = vshrl.u32 %v5804_v49, 16  ;;  %v5873_v32 = vrot.slane %v5612_v59, 1  ;;  %v5806_v24 = vshll.u32 %v5612_v59, 16 }
 0x808   : > { %v6125_v5 = vor.u32 %v6123_v58, %v6122_v11  ;;  %v18665_v43 = vrot.slane %v5899_v48, 7  ;;  %v5891_v2 = vshrl.u32 %v5741_v41, 16  ;;  %v6111_v3 = vshll.u32 %v5804_v49, 16 }
 0x809   : > { %v6110_v56 = vrot.slane %v6108_v4, 7  ;;  %v5908_v14 = vor.u32 %v5906_v54, %v5905_v31  ;;  %v6101_v36 = vor.u32 %v6100_v8, %v5799_v27  ;;  %v19576_v44 = vrot.slane %v19575_v52, 1 }
 0x80a   : > { %v18668_v26 = vsel %vm693_vm2, %v6118_v61, %v6125_v5  ;;  %v5808_v53 = vrot.slane %v5806_v24, 1  ;;  %v5809_v46 = vshrl.u32 %v5612_v59, 16  ;;  %v6106_v12 = vrot.slane %v6104_v7, 7  ;;  %v5687_v61 = vld [vmem:[#allocation5] sm:$0x80] }
 0x80b   : > { %13902 = vmatprep.mubr.bf16.mxu1 %v18668_v26  ;;  %v5875_v39 = vsel %vm1175_vm4, %v5873_v32, %v19576_v44  ;;  %v6113_v48 = vor.u32 %v6111_v3, %v6110_v56  ;;  %v6250_v33 = vshrl.u32 %v5873_v32, 16  ;;  %v5887_v1 = vshrl.u32 %v19573_v34, 16 }
 0x80c   : > { %v6254_v23 = vshrl.u32 %v5875_v39, 16  ;;  %v5811_v45 = vor.u32 %v5809_v46, %v5808_v53  ;;  %v5893_v20 = vrot.slane %v5891_v2, 7  ;;  %v5894_v38 = vshll.u32 %v5741_v41, 16 }
 0x80d   : > { %v18676_v31 = vsel %vm693_vm2, %v6106_v12, %v6113_v48  ;;  %v6257_v22 = vshll.u32 %v5875_v39, 16  ;;  %v5862_v63 = vrot.slane %v5724_v51, 1  ;;  %v18681_v55 = vsel %vm693_vm2, %v19577_v62, %v6101_v36  ;;  %v14646_v62 = vld [vmem:[#allocation17 + $0x1f0] sm:$0xff]  }
 0x80e   : > { %v6256_v27 = vrot.slane %v6254_v23, 7  ;;  %6539 = vmatprep.mubr.bf16.mxu0 %v18676_v31  ;;  %v6234_v54 = vrot.slane %v5809_v46, 7  ;;  %v6238_v11 = vshrl.u32 %v5808_v53, 16  ;;  %v6242_v58 = vshrl.u32 %v5811_v45, 16 }
 0x80f   : > { %6540 = vmatmul.mubr.bf16.gmra.mrb[24].mxu0 %v18681_v55  ;;  %v6252_v34 = vrot.slane %v6250_v33, 7  ;;  %v6245_v59 = vshll.u32 %v5811_v45, 16  ;;  %v5909_v21 = vsel %vm693_vm2, %v18665_v43, %v5908_v14  ;;  %v5889_v5 = vrot.slane %v5887_v1, 7  ;;  %v14637_v33 = vld [vmem:[#allocation17 + $0x188] sm:$0xff]   ;;  %v14638_v45 = vld [vmem:[#allocation17 + $0x1d0] sm:$0xff]  }
 0x810   : > { %v6259_v49 = vor.u32 %v6257_v22, %v6256_v27  ;;  %v6244_v41 = vrot.slane %v6242_v58, 7  ;;  %v5896_v7 = vor.u32 %v5894_v38, %v5893_v20  ;;  %v5863_v4 = vsel %vm1175_vm4, %v18473_v40, %v5862_v63  ;;  %v14640_v20 = vld [vmem:[#allocation17 + $0x1d8] sm:$0xff]   ;;  %v14642_v27 = vld [vmem:[#allocation17 + $0x1e0] sm:$0xff]   ;;  %v14645_v63 = vld [vmem:[#allocation17 + $0x1a8] sm:$0xff]  }
 0x811   : > { %v6235_v32 = vor.u32 %v6234_v54, %v5806_v24  ;;  %v6240_v2 = vrot.slane %v6238_v11, 7  ;;  %v6233_v3 = vrot.slane %v6231_v16, 7  ;;  %v5880_v14 = vshrl.u32 %v5687_v61, 16  ;;  %v14635_v16 = vld [vmem:[#allocation17 + $0x180] sm:$0xff]   ;;  %v14641_v38 = vld [vmem:[#allocation17 + $0x198] sm:$0xff]   ;;  %v14647_v54 = vld [vmem:[#allocation17 + $0x1b0] sm:$0xff]  }
 0x812   : > { %v18687_v8 = vsel %vm693_vm2, %v6252_v34, %v6259_v49  ;;  %v6247_v56 = vor.u32 %v6245_v59, %v6244_v41  ;;  %v5883_v52 = vrot.slane %v5739_v29, 7  ;;  %v6027_v44 = vshrl.u32 %v5863_v4, 16  ;;  %v14636_v29 = vld [vmem:[#allocation17 + $0x1c8] sm:$0xff]   ;;  %v14643_v22 = vld [vmem:[#allocation17 + $0x1a0] sm:$0xff]   ;;  %v5699_v11 = vld [vmem:[#allocation5 + $0x90] sm:$0x80] }
 0x813   : > { %13903 = vmatmul.mubr.bf16.gmra.mrb[76].mxu1 %v18687_v8  ;;  %v18699_v39 = vsel %vm693_vm2, %v5889_v5, %v5896_v7  ;;  %v18702_v53 = vsel %vm693_vm2, %v6233_v3, %v6235_v32  ;;  %v5882_v24 = vrot.slane %v5880_v14, 7  ;;  %v19578_v46 = vshll.u32 %v18470_v42, 16  ;;  %v14639_v42 = vld [vmem:[#allocation17 + $0x190] sm:$0xff]   ;;  %v14650_v58 = vld [vmem:[#allocation17 + $0x200] sm:$0xff]   ;;  %v14651_v41 = vld [vmem:[#allocation17 + $0x208] sm:$0xff]  }
 0x814   : > { %13922 = vmatprep.mubr.bf16.mxu1 %v5909_v21  ;;  %v18693_v36 = vsel %vm693_vm2, %v6240_v2, %v6247_v56  ;;  %v6029_v12 = vrot.slane %v6027_v44, 7  ;;  %v6030_v48 = vshll.u32 %v5863_v4, 16  ;;  %v6004_v34 = vshrl.u32 %v5699_v11, 16  ;;  %v14652_v59 = vld [vmem:[#allocation17 + $0x210] sm:$0xff]   ;;  %v14653_v21 = vld [vmem:[#allocation17 + $0x218] sm:$0xff]   ;;  %v14655_v5 = vld [vmem:[#allocation17 + $0x228] sm:$0xff]  }
 0x815   : > { %6547 = vmatprep.mubr.bf16.mxu0 %v18693_v36  ;;  %v18707_v51 = vor.u32 %v5883_v52, %v19578_v46  ;;  %v5722_v4 = vld [vmem:[#allocation5 + $0x88] sm:$0x1]  ;;  %v5734_v3 = vld [vmem:[#allocation5 + $0x118] sm:$0x1]  ;;  %v14661_v46 = vld [vmem:[#allocation20 + $0x190] ss:$8 sps:$4 sm:$0xff]  }
 0x816   : > { %v6032_v1 = vor.u32 %v6030_v48, %v6029_v12  ;;  %v6006_v49 = vrot.slane %v6004_v34, 7  ;;  %v5859_v32 = vrot.slane %v5722_v4, 1  ;;  %v5877_v14 = vrot.slane %v5734_v3, 1  ;;  %v14688_v4 = vld [vmem:[#allocation20 + $0x220] ss:$8 sps:$4 sm:$0xff]  }
 0x817   : > { %6548 = vmatmul.mubr.bf16.gmra.mrb[28].mxu0 %v18702_v53  ;;  %v5885_v23 = vsel %vm693_vm2, %v5882_v24, %v18707_v51  ;;  %v14658_v24 = vld [vmem:[#allocation20 + $0x180] ss:$8 sps:$4 sm:$0xff]  }
 0x818   : > { %6829 = vmatprep.mubr.bf16.mxu0 %v18699_v39  ;;  %v5878_v44 = vsel %vm1175_vm4, %v18473_v40, %v5877_v14  ;;  %v14691_v14 = vld [vmem:[#allocation20 + $0x230] ss:$8 sps:$4 sm:$0xff]  }
 0x81b   : > { %13923 = vmatmul.mubr.bf16.vlgmr.msra.gmra.mrb[64].mxu1 %v18525_v19  ;;  %v6033_v19 = vsel %vm693_vm2, %v18665_v43, %v6032_v1 }
 0x81c   : > { %13926 = vmatprep.mubr.bf16.mxu1 %v18543_v25  ;;  %13757 = vmatpush3.bf16.msra.mxu1 %v14635_v16  ;;  %v14660_v16 = vld [vmem:[#allocation20 + $0x184] ss:$8 sps:$4 sm:$0xff]  }
 0x81d   : > { %13758 = vmatprep.subr.bf16.mxu1 %v14636_v29  ;;  %8222 = vmatprep.subr.bf16.mxu0 %v14660_v16  ;;  %v14664_v29 = vld [vmem:[#allocation20 + $0x1a0] ss:$8 sps:$4 sm:$0xff]  }
 0x81f   : > { %6830 = vmatmul.mubr.bf16.vlgmr.msra.gmra.mrb[32].mxu0 %v5885_v23  ;;  %v14667_v23 = vld [vmem:[#allocation20 + $0x1b0] ss:$8 sps:$4 sm:$0xff]  }
 0x820   : > { %13759 = vmatpush3.bf16.msra.mxu1 %v14637_v33  ;;  %6837 = vmatprep.mubr.bf16.mxu0 %v18534_v10  ;;  %v14644_v10 = vld [vmem:[#allocation17 + $0x1e8] sm:$0xff]  }
 0x821   : > { %13760 = vmatprep.subr.bf16.mxu1 %v14638_v45  ;;  %8223 = vmatpush1.bf16.msra.mxu0 %v14658_v24  ;;  %v14672_v45 = vld [vmem:[#allocation20 + $0x1c4] ss:$8 sps:$4 sm:$0xff]  }
 0x823   : > { %13927 = vmatmul.mubr.bf16.gmra.mrb[68].mxu1 %v18566_v30 }
 0x824   : > { %13761 = vmatpush3.bf16.msra.mxu1 %v14639_v42  ;;  %13930 = vmatprep.mubr.bf16.mxu1 %v6033_v19  ;;  %v14670_v42 = vld [vmem:[#allocation20 + $0x1c0] ss:$8 sps:$4 sm:$0xff]  }
 0x825   : > { %13762 = vmatprep.subr.bf16.mxu1 %v14640_v20 }
 0x827   : > { %6838 = vmatmul.mubr.bf16.gmra.mrb[36].mxu0 %v18520_v0  ;;  %v14648_v0 = vld [vmem:[#allocation17 + $0x1f8] sm:$0xff]  }
 0x828   : > { %13763 = vmatpush3.bf16.msra.mxu1 %v14641_v38  ;;  %6845 = vmatprep.mubr.bf16.mxu0 %v18557_v28 }
 0x829   : > { %13764 = vmatprep.subr.bf16.mxu1 %v14642_v27 }
 0x82b   : > { %13931 = vmatmul.mubr.bf16.gmra.mrb[72].mxu1 %v18614_v47  ;;  %v14649_v47 = vld [vmem:[#allocation17 + $0x1b8] sm:$0xff]  }
 0x82c   : > { %13934 = vmatprep.mubr.bf16.mxu1 %v18640_v60  ;;  %13765 = vmatpush3.bf16.msra.mxu1 %v14643_v22  ;;  %v14675_v22 = vld [vmem:[#allocation20 + $0x1d4] ss:$8 sps:$4 sm:$0xff]  }
 0x82d   : > { %13766 = vmatprep.subr.bf16.mxu1 %v14644_v10 }
 0x82f   : > { %6846 = vmatmul.mubr.bf16.gmra.mrb[40].mxu0 %v18549_v37 }
 0x830   : > { %13767 = vmatpush3.bf16.msra.mxu1 %v14645_v63  ;;  %6853 = vmatprep.mubr.bf16.mxu0 %v18579_v13  ;;  %v14673_v63 = vld [vmem:[#allocation20 + $0x1d0] ss:$8 sps:$4 sm:$0xff]  }
 0x831   : > { %13768 = vmatprep.subr.bf16.mxu1 %v14646_v62  ;;  %v14678_v62 = vld [vmem:[#allocation20 + $0x1e4] ss:$8 sps:$4 sm:$0xff]  }
 0x833   : > { %13935 = vmatmul.mubr.bf16.gmra.mrb[76].mxu1 %v18668_v26 }
 0x834   : > { %13769 = vmatpush3.bf16.msra.mxu1 %v14647_v54  ;;  %7283 = vmatprep.mubr.bf16.mxu1 %v18557_v28  ;;  %v6009_v28 = vsel %vm693_vm2, %v6006_v49, %v18707_v51  ;;  %v14681_v49 = vld [vmem:[#allocation20 + $0x1f4] ss:$8 sps:$4 sm:$0xff]  }
 0x835   : > { %13770 = vmatprep.subr.bf16.mxu1 %v14648_v0  ;;  %v14676_v0 = vld [vmem:[#allocation20 + $0x1e0] ss:$8 sps:$4 sm:$0xff]  }
 0x837   : > { %6854 = vmatmul.mubr.bf16.gmra.mrb[44].mxu0 %v18572_v9 }
 0x838   : > { %13771 = vmatpush3.bf16.msra.mxu1 %v14649_v47  ;;  %6861 = vmatprep.mubr.bf16.mxu0 %v18699_v39 }
 0x839   : > { %13938 = vmatprep.subr.bf16.mxu1 %v14650_v58 }
 0x83b   : > { %7284 = vmatmul.mubr.bf16.vlgmr.msra.gmra.mrb[80].mxu1 %v18549_v37  ;;  %v5697_v37 = vld [vmem:[#allocation5 + $0x78] sm:$0x80] }
 0x83c   : > { %7291 = vmatprep.mubr.bf16.mxu1 %v18579_v13  ;;  %13939 = vmatpush3.bf16.msra.mxu1 %v14650_v58  ;;  %v14654_v13 = vld [vmem:[#allocation17 + $0x220] sm:$0xff]   ;;  %v6992_v61 = vshrl.u32 %v5697_v37, 16 }
 0x83d   : > { %13940 = vmatprep.subr.bf16.mxu1 %v14651_v41  ;;  %v14682_v37 = vld [vmem:[#allocation20 + $0x200] ss:$8 sps:$4 sm:$0xff]  }
 0x83f   : > { %6862 = vmatmul.mubr.bf16.gmra.mrb[48].mxu0 %v6009_v28  ;;  %v14679_v28 = vld [vmem:[#allocation20 + $0x1f0] ss:$8 sps:$4 sm:$0xff]  }
 0x840   : > { %13941 = vmatpush3.bf16.msra.mxu1 %v14651_v41  ;;  %6869 = vmatprep.mubr.bf16.mxu0 %v18629_v6  ;;  %v6994_v6 = vrot.slane %v6992_v61, 7 }
 0x841   : > { %13942 = vmatprep.subr.bf16.mxu1 %v14652_v59 }
 0x843   : > { %7292 = vmatmul.mubr.bf16.gmra.mrb[84].mxu1 %v18572_v9  ;;  %v14656_v9 = vld [vmem:[#allocation17 + $0x230] sm:$0xff]  }
 0x844   : > { %7299 = vmatprep.mubr.bf16.mxu1 %v18601_v57  ;;  %13943 = vmatpush3.bf16.msra.mxu1 %v14652_v59  ;;  %v6997_v57 = vsel %vm693_vm2, %v6994_v6, %v18707_v51  ;;  %v14684_v59 = vld [vmem:[#allocation20 + $0x204] ss:$8 sps:$4 sm:$0xff]  }
 0x845   : > { %13944 = vmatprep.subr.bf16.mxu1 %v14653_v21 }
 0x847   : > { %6870 = vmatmul.mubr.bf16.gmra.mrb[52].mxu0 %v18622_v15  ;;  %v14657_v15 = vld [vmem:[#allocation17 + $0x238] sm:$0xff]  }
 0x848   : > { %13945 = vmatpush3.bf16.msra.mxu1 %v14653_v21  ;;  %6877 = vmatprep.mubr.bf16.mxu0 %v18654_v50 }
 0x849   : > { %13946 = vmatprep.subr.bf16.mxu1 %v14654_v13 }
 0x84b   : > { %7300 = vmatmul.mubr.bf16.gmra.mrb[88].mxu1 %v18594_v17  ;;  %v5709_v17 = vld [vmem:[#allocation5 + $0x108] sm:$0x80] }
 0x84c   : > { %7307 = vmatprep.mubr.bf16.mxu1 %v18699_v39  ;;  %13947 = vmatpush3.bf16.msra.mxu1 %v14654_v13  ;;  %v7023_v7 = vshrl.u32 %v5709_v17, 16  ;;  %v14690_v17 = vld [vmem:[#allocation20 + $0x224] ss:$8 sps:$4 sm:$0xff]  }
 0x84d   : > { %13948 = vmatprep.subr.bf16.mxu1 %v14655_v5 }
 0x84f   : > { %6878 = vmatmul.mubr.bf16.gmra.mrb[56].mxu0 %v18659_v18 }
 0x850   : > { %13949 = vmatpush3.bf16.msra.mxu1 %v14655_v5  ;;  %6885 = vmatprep.mubr.bf16.mxu0 %v18676_v31 }
 0x851   : > { %13950 = vmatprep.subr.bf16.mxu1 %v14656_v9 }
 0x853   : > { %7308 = vmatmul.mubr.bf16.gmra.mrb[92].mxu1 %v6997_v57 }
 0x854   : > { %7315 = vmatprep.mubr.bf16.mxu1 %v18654_v50  ;;  %13951 = vmatpush3.bf16.msra.mxu1 %v14656_v9  ;;  %v7025_v50 = vrot.slane %v7023_v7, 7  ;;  %v14687_v9 = vld [vmem:[#allocation20 + $0x214] ss:$8 sps:$4 sm:$0xff]  }
 0x855   : > { %13952 = vmatprep.subr.bf16.mxu1 %v14657_v15 }
 0x856   : > { %v7028_v2 = vsel %vm693_vm2, %v7025_v50, %v18707_v51 }
 0x857   : > { %6886 = vmatmul.mubr.bf16.gmra.mrb[60].mxu0 %v18681_v55 }
 0x858   : > { %13953 = vmatpush3.bf16.msra.mxu1 %v14657_v15  ;;  %v14685_v15 = vld [vmem:[#allocation20 + $0x210] ss:$8 sps:$4 sm:$0xff]  }
 0x85b   : > { %7316 = vmatmul.mubr.bf16.gmra.mrb[96].mxu1 %v18659_v18  ;;  %v5860_v18 = vsel %vm1175_vm4, %v18473_v40, %v5859_v32  ;;  %v14663_v40 = vld [vmem:[#allocation20 + $0x194] ss:$8 sps:$4 sm:$0xff]  }
 0x85c   : > { %7323 = vmatprep.mubr.bf16.mxu1 %v18676_v31  ;;  %v7015_v31 = vshrl.u32 %v5860_v18, 16  ;;  %v7018_v56 = vshll.u32 %v5860_v18, 16  ;;  %8224 = vmatprep.subr.bf16.mxu0 %v14663_v40  ;;  %v7538_v18 = vld [vmem:[#allocation6 + $0x28] sm:$0x1] }
 0x85d   : > { %8225 = vmatpush1.bf16.msra.mxu0 %v14661_v46  ;;  %v7539_v3 = vsel %vm18343_vm8, 0, %v7538_v18  ;;  %v14699_v46 = vld [vmem:[#allocation20 + $0x254] ss:$8 sps:$4 sm:$0xff]  }
 0x85e   : > { %7540 = vst [vmem:[#allocation6 + $0x28] sm:$0x1] %v7539_v3 }
 0x863   : > { %7324 = vmatmul.mubr.bf16.gmra.mrb[100].mxu1 %v18681_v55  ;;  %v7017_v55 = vrot.slane %v7015_v31, 7 }
 0x864   : > { %7331 = vmatprep.mubr.bf16.mxu1 %v18693_v36 }
 0x865   : > { %v7020_v36 = vor.u32 %v7018_v56, %v7017_v55  ;;  %v14693_v55 = vld [vmem:[#allocation20 + $0x234] ss:$8 sps:$4 sm:$0xff]  }
 0x867   : > { %v7021_v52 = vsel %vm693_vm2, %v18665_v43, %v7020_v36 }
 0x86b   : > { %7332 = vmatmul.mubr.bf16.gmra.mrb[104].mxu1 %v18702_v53  ;;  %v7049_v53 = vshll.u32 %v5878_v44, 16 }
 0x86c   : > { %7339 = vmatprep.mubr.bf16.mxu1 %v18699_v39 }
 0x873   : > { %7340 = vmatmul.mubr.bf16.gmra.mrb[108].mxu1 %v7028_v2 }
 0x874   : > { %13954 = vmatprep.mubr.bf16.mxu1 %v18543_v25  ;;  %v7046_v25 = vshrl.u32 %v5878_v44, 16 }
 0x876   : > { %v7048_v39 = vrot.slane %v7046_v25, 7 }
 0x87b   : > { %13955 = vmatmul.mubr.bf16.vlgmr.msra.gmra.mrb[64].mxu1 %v18566_v30  ;;  %v7051_v30 = vor.u32 %v7049_v53, %v7048_v39  ;;  %v14696_v39 = vld [vmem:[#allocation20 + $0x244] ss:$8 sps:$4 sm:$0xff]  }
 0x87c   : > { %13958 = vmatprep.mubr.bf16.mxu1 %v18588_v35 }
 0x87d   : > { %v7052_v35 = vsel %vm693_vm2, %v18665_v43, %v7051_v30  ;;  %v14669_v43 = vld [vmem:[#allocation20 + $0x1b4] ss:$8 sps:$4 sm:$0xff]   ;;  %v14694_v30 = vld [vmem:[#allocation20 + $0x240] ss:$8 sps:$4 sm:$0xff]  }
 0x883   : > { %13959 = vmatmul.mubr.bf16.gmra.mrb[68].mxu1 %v7021_v52  ;;  %v7526_v52 = vld [vmem:[#allocation6 + $0x18] sm:$0x80] }
 0x884   : > { %13962 = vmatprep.mubr.bf16.mxu1 %v18640_v60  ;;  %v14666_v60 = vld [vmem:[#allocation20 + $0x1a4] ss:$8 sps:$4 sm:$0xff]   ;;  %v7527_v25 = vsel %vm18338_vm5, 0, %v7526_v52 }
 0x885   : > { %8226 = vmatprep.subr.bf16.mxu0 %v14666_v60  ;;  %7528 = vst [vmem:[#allocation6 + $0x18] sm:$0x80] %v7527_v25 }
 0x886   : > { %8227 = vmatpush1.bf16.msra.mxu0 %v14664_v29  ;;  %v7529_v29 = vld [vmem:[#allocation6 + $0x30] sm:$0x80] }
 0x887   : > { %8228 = vmatprep.subr.bf16.mxu0 %v14669_v43  ;;  %v14700_v43 = vld [vmem:[#allocation20 + $0x260] ss:$8 sps:$4 sm:$0xff]  }
 0x88a   : > { %8229 = vmatpush1.bf16.msra.mxu0 %v14667_v23 }
 0x88b   : > { %13963 = vmatmul.mubr.bf16.gmra.mrb[72].mxu1 %v18668_v26  ;;  %8230 = vmatprep.subr.bf16.mxu0 %v14672_v45  ;;  %v7541_v45 = vld [vmem:[#allocation6 + $0x40] sm:$0x1] }
 0x88c   : > { %13966 = vmatprep.mubr.bf16.mxu1 %v18687_v8 }
 0x88e   : > { %8231 = vmatpush1.bf16.msra.mxu0 %v14670_v42 }
 0x88f   : > { %8232 = vmatprep.subr.bf16.mxu0 %v14675_v22 }
 0x892   : > { %8233 = vmatpush1.bf16.msra.mxu0 %v14673_v63  ;;  %v14703_v63 = vld [vmem:[#allocation20 + $0x270] ss:$8 sps:$4 sm:$0xff]  }
 0x893   : > { %13967 = vmatmul.mubr.bf16.gmra.mrb[76].mxu1 %v7052_v35  ;;  %8234 = vmatprep.subr.bf16.mxu0 %v14678_v62  ;;  %v7532_v62 = vld [vmem:[#allocation6 + $0x78] sm:$0x80] }
 0x896   : > { %8235 = vmatpush1.bf16.msra.mxu0 %v14676_v0  ;;  %v14708_v0 = vld [vmem:[#allocation20 + $0x284] ss:$8 sps:$4 sm:$0xff]  }
 0x897   : > { %8236 = vmatprep.subr.bf16.mxu0 %v14681_v49 }
 0x89a   : > { %8237 = vmatpush1.bf16.msra.mxu0 %v14679_v28 }
 0x89b   : > { %8238 = vmatprep.subr.bf16.mxu0 %v14684_v59  ;;  %v7544_v59 = vld [vmem:[#allocation6 + $0x88] sm:$0x1] }
 0x89e   : > { %8239 = vmatpush1.bf16.msra.mxu0 %v14682_v37  ;;  %v7535_v37 = vld [vmem:[#allocation6 + $0x90] sm:$0x80] }
 0x89f   : > { %8240 = vmatprep.subr.bf16.mxu0 %v14687_v9 }
 0x8a2   : > { %8241 = vmatpush1.bf16.msra.mxu0 %v14685_v15 }
 0x8a3   : > { %8242 = vmatprep.subr.bf16.mxu0 %v14690_v17 }
 0x8a6   : > { %8243 = vmatpush1.bf16.msra.mxu0 %v14688_v4  ;;  %v7547_v4 = vld [vmem:[#allocation6 + $0xa0] sm:$0x1] }
 0x8a7   : > { %8244 = vmatprep.subr.bf16.mxu0 %v14693_v55  ;;  %v7548_v18 = vsel %vm18343_vm8, 0, %v7547_v4 }
 0x8a8   : > { %7549 = vst [vmem:[#allocation6 + $0xa0] sm:$0x1] %v7548_v18 }
 0x8aa   : > { %8245 = vmatpush1.bf16.msra.mxu0 %v14691_v14 }
 0x8ab   : > { %8246 = vmatprep.subr.bf16.mxu0 %v14696_v39 }
 0x8ae   : > { %8247 = vmatpush1.bf16.msra.mxu0 %v14694_v30 }
 0x8af   : > { %8248 = vmatprep.subr.bf16.mxu0 %v14699_v46 }
 0x8b0   : > { %v13612_v51 = vpop.f32.mrb[0].mxu0 }
 0x8b1   : > { %v13613_v12 = vpop.f32.mrb[1].mxu0 }
 0x8b2   : > { %v18767_v26 = vadd.f32 %v13613_v12, %v13612_v51  ;;  %v13615_v8 = vpop.f32.mrb[2].mxu0  ;;  %v14697_v51 = vld [vmem:[#allocation20 + $0x250] ss:$8 sps:$4 sm:$0xff]   ;;  %v7530_v12 = vsel %vm18338_vm5, 0, %v7529_v29 }
 0x8b3   : > { %v13616_v48 = vpop.f32.mrb[3].mxu0  ;;  %8249 = vmatpush1.bf16.msra.mxu0 %v14697_v51  ;;  %7531 = vst [vmem:[#allocation6 + $0x30] sm:$0x80] %v7530_v12 }
 0x8b4   : > { %v18769_v33 = vadd.f32 %v13616_v48, %v13615_v8  ;;  %v14702_v8 = vld [vmem:[#allocation20 + $0x264] ss:$8 sps:$4 sm:$0xff]  }
 0x8b5   : > { %8250 = vmatprep.subr.bf16.mxu0 %v14702_v8 }
 0x8b7   : > { %8251 = vmatpush1.bf16.msra.mxu0 %v14700_v43 }
 0x8b8   : > { %v13618_v1 = vpop.f32.mrb[4].mxu0 }
 0x8b9   : > { %v13619_v20 = vpop.f32.mrb[5].mxu0 }
 0x8ba   : > { %v18771_v19 = vadd.f32 %v13619_v20, %v13618_v1  ;;  %v13621_v38 = vpop.f32.mrb[6].mxu0  ;;  %v7542_v20 = vsel %vm18343_vm8, 0, %v7541_v45 }
 0x8bb   : > { %v13622_v27 = vpop.f32.mrb[7].mxu0  ;;  %7543 = vst [vmem:[#allocation6 + $0x40] sm:$0x1] %v7542_v20 }
 0x8bc   : > { %v18773_v10 = vadd.f32 %v13622_v27, %v13621_v38  ;;  %v14705_v27 = vld [vmem:[#allocation20 + $0x274] ss:$8 sps:$4 sm:$0xff]  }
 0x8bd   : > { %8252 = vmatprep.subr.bf16.mxu0 %v14705_v27 }
 0x8be   : > { %8253 = vmatpush1.bf16.msra.mxu0 %v14703_v63 }
 0x8bf   : > { %8295 = vmatprep.subr.bf16.mxu0 %v14708_v0 }
 0x8c0   : > { %v13624_v54 = vpop.f32.mrb[8].mxu0 }
 0x8c1   : > { %v13625_v11 = vpop.f32.mrb[9].mxu0 }
 0x8c2   : > { %v18775_v47 = vadd.f32 %v13625_v11, %v13624_v54  ;;  %v13627_v58 = vpop.f32.mrb[10].mxu0  ;;  %v7533_v54 = vsel %vm18338_vm5, 0, %v7532_v62 }
 0x8c3   : > { %v13628_v34 = vpop.f32.mrb[11].mxu0  ;;  %7534 = vst [vmem:[#allocation6 + $0x78] sm:$0x80] %v7533_v54 }
 0x8c4   : > { %v18777_v41 = vadd.f32 %v13628_v34, %v13627_v58 }
 0x8c9   : > { %v13630_v21 = vpop.f32.mrb[12].mxu0 }
 0x8ca   : > { %v13631_v13 = vpop.f32.mrb[13].mxu0 }
 0x8cb   : > { %v18779_v61 = vadd.f32 %v13631_v13, %v13630_v21  ;;  %v13633_v5 = vpop.f32.mrb[14].mxu0  ;;  %v7545_v13 = vsel %vm18343_vm8, 0, %v7544_v59 }
 0x8cc   : > { %v13634_v6 = vpop.f32.mrb[15].mxu0  ;;  %7546 = vst [vmem:[#allocation6 + $0x88] sm:$0x1] %v7545_v13 }
 0x8cd   : > { %v18781_v57 = vadd.f32 %v13634_v6, %v13633_v5  ;;  %v7536_v5 = vsel %vm18338_vm5, 0, %v7535_v37 }
 0x8ce   : > { %7537 = vst [vmem:[#allocation6 + $0x90] sm:$0x80] %v7536_v5 }
 0x8d1   : > { %v13636_v7 = vpop.f32.mrb[16].mxu0 }
 0x8d2   : > { %v13637_v50 = vpop.f32.mrb[17].mxu0 }
 0x8d3   : > { %v18783_v32 = vadd.f32 %v13637_v50, %v13636_v7  ;;  %v13639_v2 = vpop.f32.mrb[18].mxu0 }
 0x8d4   : > { %v13640_v31 = vpop.f32.mrb[19].mxu0 }
 0x8d5   : > { %v18787_v36 = vadd.f32 %v13640_v31, %v13639_v2 }
 0x8d9   : > { %v13642_v53 = vpop.f32.mrb[20].mxu0 }
 0x8da   : > { %v13643_v35 = vpop.f32.mrb[21].mxu0 }
 0x8db   : > { %v18791_v16 = vadd.f32 %v13643_v35, %v13642_v53  ;;  %v13645_v24 = vpop.f32.mrb[22].mxu0 }
 0x8dc   : > { %v13646_v40 = vpop.f32.mrb[23].mxu0 }
 0x8dd   : > { %v18793_v60 = vadd.f32 %v13646_v40, %v13645_v24 }
 0x8e2   : > { %v13648_v48 = vpop.f32.mrb[24].mxu0 }
 0x8e3   : > { %v13649_v23 = vpop.f32.mrb[25].mxu0 }
 0x8e4   : > { %v18797_v1 = vadd.f32 %v13649_v23, %v13648_v48  ;;  %v13651_v42 = vpop.f32.mrb[26].mxu0 }
 0x8e5   : > { %v13652_v38 = vpop.f32.mrb[27].mxu0 }
 0x8e6   : > { %v18801_v22 = vadd.f32 %v13652_v38, %v13651_v42 }
 0x8ea   : > { %v13654_v11 = vpop.f32.mrb[28].mxu0 }
 0x8eb   : > { %v13655_v58 = vpop.f32.mrb[29].mxu0 }
 0x8ec   : > { %v18805_v34 = vadd.f32 %v13655_v58, %v13654_v11  ;;  %v13657_v49 = vpop.f32.mrb[30].mxu0 }
 0x8ed   : > { %v13658_v28 = vpop.f32.mrb[31].mxu0 }
 0x8ee   : > { %v18807_v21 = vadd.f32 %v13658_v28, %v13657_v49 }
 0x8f2   : > { %v13692_v6 = vpop.f32.mrb[32].mxu0 }
 0x8f3   : > { %v13693_v9 = vpop.f32.mrb[33].mxu0 }
 0x8f4   : > { %v13694_v15 = vadd.f32 %v13693_v9, %v13692_v6  ;;  %v13695_v17 = vpop.f32.mrb[34].mxu0 }
 0x8f5   : > { %v13696_v7 = vpop.f32.mrb[35].mxu0 }
 0x8f6   : > { %v13997_v50 = vadd.f32 %v13694_v15, %v18767_v26  ;;  %v13697_v2 = vadd.f32 %v13696_v7, %v13695_v17 }
 0x8f8   : > { %v14003_v31 = vadd.f32 %v13697_v2, %v18769_v33 }
 0x8fa   : > { %v13698_v55 = vpop.f32.mrb[36].mxu0 }
 0x8fb   : > { %v13699_v3 = vpop.f32.mrb[37].mxu0 }
 0x8fc   : > { %v13700_v14 = vadd.f32 %v13699_v3, %v13698_v55  ;;  %v13701_v52 = vpop.f32.mrb[38].mxu0 }
 0x8fd   : > { %v13702_v25 = vpop.f32.mrb[39].mxu0 }
 0x8fe   : > { %v13994_v39 = vadd.f32 %v13700_v14, %v18771_v19  ;;  %v13703_v53 = vadd.f32 %v13702_v25, %v13701_v52 }
 0x900   : > { %v14000_v30 = vadd.f32 %v13703_v53, %v18773_v10 }
 0x902   : > { %v13704_v35 = vpop.f32.mrb[40].mxu0 }
 0x903   : > { %v13705_v24 = vpop.f32.mrb[41].mxu0 }
 0x904   : > { %v13706_v26 = vadd.f32 %v13705_v24, %v13704_v35  ;;  %v13707_v40 = vpop.f32.mrb[42].mxu0 }
 0x905   : > { %v13708_v46 = vpop.f32.mrb[43].mxu0 }
 0x906   : > { %v14009_v51 = vadd.f32 %v13706_v26, %v18775_v47  ;;  %v13709_v29 = vadd.f32 %v13708_v46, %v13707_v40 }
 0x908   : > { %v14015_v33 = vadd.f32 %v13709_v29, %v18777_v41 }
 0x90a   : > { %v13710_v12 = vpop.f32.mrb[44].mxu0 }
 0x90b   : > { %v13711_v8 = vpop.f32.mrb[45].mxu0 }
 0x90c   : > { %v13712_v48 = vadd.f32 %v13711_v8, %v13710_v12  ;;  %v13713_v43 = vpop.f32.mrb[46].mxu0 }
 0x90d   : > { %v13714_v23 = vpop.f32.mrb[47].mxu0 }
 0x90e   : > { %v13772_v45 = vpop.f32.mrb[80].mxu1  ;;  %v14006_v19 = vadd.f32 %v13712_v48, %v18779_v61  ;;  %v13715_v42 = vadd.f32 %v13714_v23, %v13713_v43 }
 0x90f   : > { %v13773_v10 = vpop.f32.mrb[81].mxu1 }
 0x910   : > { %v13774_v20 = vadd.f32 %v13773_v10, %v13772_v45  ;;  %v13775_v38 = vpop.f32.mrb[82].mxu1  ;;  %v14012_v27 = vadd.f32 %v13715_v42, %v18781_v57 }
 0x911   : > { %v13776_v63 = vpop.f32.mrb[83].mxu1 }
 0x912   : > { %v13777_v62 = vadd.f32 %v13776_v63, %v13775_v38  ;;  %v18823_v47 = vadd.f32 %v13997_v50, %v13774_v20  ;;  %v13716_v54 = vpop.f32.mrb[48].mxu0 }
 0x913   : > { %v13717_v41 = vpop.f32.mrb[49].mxu0 }
 0x914   : > { %v18825_v0 = vadd.f32 %v14003_v31, %v13777_v62  ;;  %v13718_v11 = vadd.f32 %v13717_v41, %v13716_v54  ;;  %v13719_v58 = vpop.f32.mrb[50].mxu0 }
 0x915   : > { %v13720_v49 = vpop.f32.mrb[51].mxu0 }
 0x916   : > { %v13778_v28 = vpop.f32.mrb[84].mxu1  ;;  %v14021_v61 = vadd.f32 %v13718_v11, %v18783_v32  ;;  %v13721_v59 = vadd.f32 %v13720_v49, %v13719_v58 }
 0x917   : > { %v13779_v37 = vpop.f32.mrb[85].mxu1 }
 0x918   : > { %v13780_v13 = vadd.f32 %v13779_v37, %v13778_v28  ;;  %v13781_v5 = vpop.f32.mrb[86].mxu1  ;;  %v14027_v57 = vadd.f32 %v13721_v59, %v18787_v36 }
 0x919   : > { %v13782_v6 = vpop.f32.mrb[87].mxu1 }
 0x91a   : > { %v13783_v9 = vadd.f32 %v13782_v6, %v13781_v5  ;;  %v18829_v15 = vadd.f32 %v13994_v39, %v13780_v13  ;;  %v13722_v17 = vpop.f32.mrb[52].mxu0 }
 0x91b   : > { %v13723_v7 = vpop.f32.mrb[53].mxu0 }
 0x91c   : > { %v18831_v4 = vadd.f32 %v14000_v30, %v13783_v9  ;;  %v13724_v50 = vadd.f32 %v13723_v7, %v13722_v17  ;;  %v13725_v2 = vpop.f32.mrb[54].mxu0 }
 0x91d   : > { %v13726_v18 = vpop.f32.mrb[55].mxu0 }
 0x91e   : > { %v13784_v31 = vpop.f32.mrb[88].mxu1  ;;  %v14018_v32 = vadd.f32 %v13724_v50, %v18791_v16  ;;  %v13727_v55 = vadd.f32 %v13726_v18, %v13725_v2 }
 0x91f   : > { %v13785_v3 = vpop.f32.mrb[89].mxu1 }
 0x920   : > { %v13786_v14 = vadd.f32 %v13785_v3, %v13784_v31  ;;  %v13787_v52 = vpop.f32.mrb[90].mxu1  ;;  %v14024_v36 = vadd.f32 %v13727_v55, %v18793_v60 }
 0x921   : > { %v13788_v25 = vpop.f32.mrb[91].mxu1 }
 0x922   : > { %v13789_v53 = vadd.f32 %v13788_v25, %v13787_v52  ;;  %v18835_v39 = vadd.f32 %v14009_v51, %v13786_v14  ;;  %v13728_v35 = vpop.f32.mrb[56].mxu0 }
 0x923   : > { %v13729_v24 = vpop.f32.mrb[57].mxu0 }
 0x924   : > { %v18837_v30 = vadd.f32 %v14015_v33, %v13789_v53  ;;  %v13730_v26 = vadd.f32 %v13729_v24, %v13728_v35  ;;  %v13731_v40 = vpop.f32.mrb[58].mxu0  ;;  %v18859_v24 = vld [vmem:[#allocation19] ss:$0 sm:$0xff] }
 0x925   : > { %v13732_v46 = vpop.f32.mrb[59].mxu0 }
 0x926   : > { %v13790_v29 = vpop.f32.mrb[92].mxu1  ;;  %v14033_v16 = vadd.f32 %v13730_v26, %v18797_v1  ;;  %v13733_v12 = vadd.f32 %v13732_v46, %v13731_v40 }
 0x927   : > { %v13791_v8 = vpop.f32.mrb[93].mxu1 }
 0x928   : > { %v13792_v48 = vadd.f32 %v13791_v8, %v13790_v29  ;;  %v13793_v43 = vpop.f32.mrb[94].mxu1  ;;  %v14039_v60 = vadd.f32 %v13733_v12, %v18801_v22 }
 0x929   : > { %v13794_v23 = vpop.f32.mrb[95].mxu1 }
 0x92a   : > { %v13795_v45 = vadd.f32 %v13794_v23, %v13793_v43  ;;  %v14007_v51 = vadd.f32 %v14006_v19, %v13792_v48  ;;  %v13734_v42 = vpop.f32.mrb[60].mxu0 }
 0x92b   : > { %v13735_v10 = vpop.f32.mrb[61].mxu0 }
 0x92c   : > { %v18841_v20 = vadd.f32 %v14012_v27, %v13795_v45  ;;  %v13736_v33 = vadd.f32 %v13735_v10, %v13734_v42  ;;  %v13737_v38 = vpop.f32.mrb[62].mxu0 }
 0x92d   : > { %v13738_v63 = vpop.f32.mrb[63].mxu0 }
 0x92e   : > { %v13796_v62 = vpop.f32.mrb[96].mxu1  ;;  %v14030_v54 = vadd.f32 %v13736_v33, %v18805_v34  ;;  %v13739_v1 = vadd.f32 %v13738_v63, %v13737_v38 }
 0x92f   : > { %v13797_v41 = vpop.f32.mrb[97].mxu1 }
 0x930   : > { %v13798_v11 = vadd.f32 %v13797_v41, %v13796_v62  ;;  %v13799_v58 = vpop.f32.mrb[98].mxu1  ;;  %v14036_v49 = vadd.f32 %v13739_v1, %v18807_v21 }
 0x931   : > { %v13800_v22 = vpop.f32.mrb[99].mxu1 }
 0x932   : > { %v13801_v28 = vadd.f32 %v13800_v22, %v13799_v58  ;;  %v18845_v59 = vadd.f32 %v14021_v61, %v13798_v11 }
 0x934   : > { %v18847_v19 = vadd.f32 %v14027_v57, %v13801_v28 }
 0x936   : > { %v13802_v27 = vpop.f32.mrb[100].mxu1 }
 0x937   : > { %v13803_v37 = vpop.f32.mrb[101].mxu1 }
 0x938   : > { %v13804_v13 = vadd.f32 %v13803_v37, %v13802_v27  ;;  %v13805_v5 = vpop.f32.mrb[102].mxu1 }
 0x939   : > { %v13806_v6 = vpop.f32.mrb[103].mxu1 }
 0x93a   : > { %v13807_v9 = vadd.f32 %v13806_v6, %v13805_v5  ;;  %v14019_v17 = vadd.f32 %v14018_v32, %v13804_v13  ;;  %v7556_v13 = vld [vmem:[#allocation6 + $0x18] sm:$0x80] }
 0x93c   : > { %v18849_v34 = vadd.f32 %v14024_v36, %v13807_v9 }
 0x93e   : > { %v13808_v7 = vpop.f32.mrb[104].mxu1 }
 0x93f   : > { %v13809_v50 = vpop.f32.mrb[105].mxu1 }
 0x940   : > { %v13810_v2 = vadd.f32 %v13809_v50, %v13808_v7  ;;  %v13811_v18 = vpop.f32.mrb[106].mxu1 }
 0x941   : > { %v13812_v21 = vpop.f32.mrb[107].mxu1 }
 0x942   : > { %v13813_v31 = vadd.f32 %v13812_v21, %v13811_v18  ;;  %v18851_v55 = vadd.f32 %v14033_v16, %v13810_v2 }
 0x944   : > { %v18853_v61 = vadd.f32 %v14039_v60, %v13813_v31 }
 0x946   : > { %v13814_v57 = vpop.f32.mrb[108].mxu1 }
 0x947   : > { %v13815_v3 = vpop.f32.mrb[109].mxu1 }
 0x948   : > { %v13816_v14 = vadd.f32 %v13815_v3, %v13814_v57  ;;  %v13817_v52 = vpop.f32.mrb[110].mxu1  ;;  %v7714_v57 = vshrl.u32 %v7556_v13, 16 }
 0x949   : > { %v13818_v25 = vpop.f32.mrb[111].mxu1 }
 0x94a   : > { %v13819_v53 = vadd.f32 %v13818_v25, %v13817_v52  ;;  %v18855_v35 = vadd.f32 %v14030_v54, %v13816_v14 }
 0x94c   : > { %v18857_v32 = vadd.f32 %v14036_v49, %v13819_v53 }
 0x94e   : > { %v13956_v36 = vpop.f32.mrb[64].mxu1 }
 0x94f   : > { %v13996_v26 = vadd.f32 %v18829_v15, %v13956_v36  ;;  %v7382_v40 = vpop.f32.mrb[65].mxu1 }
 0x950   : > { %v13999_v46 = vadd.f32 %v18823_v47, %v7382_v40  ;;  %v13957_v29 = vpop.f32.mrb[66].mxu1 }
 0x951   : > { %v7470_v16 = vadd.f32 %v13996_v26, %v18859_v24  ;;  %v14002_v12 = vadd.f32 %v18831_v4, %v13957_v29  ;;  %v7385_v8 = vpop.f32.mrb[67].mxu1 }
 0x952   : > { %v7468_v48 = vadd.f32 %v13999_v46, %v18859_v24  ;;  %v14005_v43 = vadd.f32 %v18825_v0, %v7385_v8 }
 0x953   : > { %v7486_v60 = vmax.f32 %v7470_v16, 0.0  ;;  %v7471_v23 = vadd.f32 %v14002_v12, %v18859_v24  ;;  %v7716_v12 = vrot.slane %v7714_v57, 7 }
 0x954   : > { %v7484_v45 = vmax.f32 %v7468_v48, 0.0  ;;  %v7469_v42 = vadd.f32 %v14005_v43, %v18859_v24 }
 0x955   : > { %v7487_v15 = vmax.f32 %v7471_v23, 0.0  ;;  %v7558_v23 = vld [vmem:[#allocation6 + $0x30] sm:$0x80] }
 0x956   : > { %v7500_v10 = vmax.f32 %v7484_v45, %v7486_v60  ;;  %v7485_v33 = vmax.f32 %v7469_v42, 0.0  ;;  %v13960_v47 = vpop.f32.mrb[68].mxu1 }
 0x957   : > { %v14008_v38 = vadd.f32 %v14007_v51, %v13960_v47  ;;  %v7398_v63 = vpop.f32.mrb[69].mxu1 }
 0x958   : > { %v7501_v62 = vmax.f32 %v7485_v33, %v7487_v15  ;;  %v14011_v4 = vadd.f32 %v18835_v39, %v7398_v63  ;;  %v13961_v54 = vpop.f32.mrb[70].mxu1 }
 0x959   : > { %v7474_v1 = vadd.f32 %v14008_v38, %v18859_v24  ;;  %v14014_v0 = vadd.f32 %v18841_v20, %v13961_v54  ;;  %v7401_v41 = vpop.f32.mrb[71].mxu1 }
 0x95a   : > { %v18872_v11 = vpack.c.bf16 %v7501_v62, %v7500_v10  ;;  %v7472_v58 = vadd.f32 %v14011_v4, %v18859_v24  ;;  %v14017_v49 = vadd.f32 %v18837_v30, %v7401_v41  ;;  %v7867_v41 = vshrl.u32 %v7558_v23, 16 }
 0x95b   : > { %v7490_v22 = vmax.f32 %v7474_v1, 0.0  ;;  %v7475_v28 = vadd.f32 %v14014_v0, %v18859_v24  ;;  %v14706_v1 = vld [vmem:[#allocation20 + $0x280] ss:$8 sps:$4 sm:$0xff]  }
 0x95c   : > { %v7488_v51 = vmax.f32 %v7472_v58, 0.0  ;;  %v7473_v27 = vadd.f32 %v14017_v49, %v18859_v24  ;;  %v7594_v39 = vshll.u32 %v18872_v11, 16  ;;  %v7597_v5 = vshrl.u32 %v18872_v11, 16 }
 0x95d   : > { %v7491_v37 = vmax.f32 %v7475_v28, 0.0 }
 0x95e   : > { %v7502_v20 = vmax.f32 %v7488_v51, %v7490_v22  ;;  %v7489_v6 = vmax.f32 %v7473_v27, 0.0  ;;  %v13964_v9 = vpop.f32.mrb[72].mxu1  ;;  %v7596_v7 = vrot.slane %v7594_v39, 1  ;;  %v7717_v25 = vrot.slane %v7597_v5, 7  ;;  %v14711_v51 = vld [vmem:[#allocation20 + $0x294] ss:$8 sps:$4 sm:$0xff]  }
 0x95f   : > { %v14020_v50 = vadd.f32 %v14019_v17, %v13964_v9  ;;  %v7414_v2 = vpop.f32.mrb[73].mxu1 }
 0x960   : > { %v7503_v18 = vmax.f32 %v7489_v6, %v7491_v37  ;;  %v14023_v30 = vadd.f32 %v18845_v59, %v7414_v2  ;;  %v13965_v21 = vpop.f32.mrb[74].mxu1  ;;  %v7599_v31 = vor.u32 %v7597_v5, %v7596_v7  ;;  %v7721_v46 = vshrl.u32 %v7596_v7, 16  ;;  %v14709_v7 = vld [vmem:[#allocation20 + $0x290] ss:$8 sps:$4 sm:$0xff]  }
 0x961   : > { %v7478_v3 = vadd.f32 %v14020_v50, %v18859_v24  ;;  %v14026_v14 = vadd.f32 %v18849_v34, %v13965_v21  ;;  %v7417_v52 = vpop.f32.mrb[75].mxu1  ;;  %v7718_v48 = vor.u32 %v7717_v25, %v7594_v39  ;;  %v7869_v50 = vrot.slane %v7867_v41, 7  ;;  %v14714_v21 = vld [vmem:[#allocation20 + $0x2a4] ss:$8 sps:$4 sm:$0xff]   ;;  %v7564_v25 = vld [vmem:[#allocation6 + $0x78] sm:$0x80] }
 0x962   : > { %v18883_v53 = vpack.c.bf16 %v7503_v18, %v7502_v20  ;;  %v7476_v36 = vadd.f32 %v14023_v30, %v18859_v24  ;;  %v14029_v26 = vadd.f32 %v18847_v19, %v7417_v52  ;;  %v7725_v59 = vshrl.u32 %v7599_v31, 16 }
 0x963   : > { %v7494_v17 = vmax.f32 %v7478_v3, 0.0  ;;  %v7479_v40 = vadd.f32 %v14026_v14, %v18859_v24  ;;  %v7728_v60 = vshll.u32 %v7599_v31, 16  ;;  %v7723_v38 = vrot.slane %v7721_v46, 7 }
 0x964   : > { %v7492_v29 = vmax.f32 %v7476_v36, 0.0  ;;  %v7477_v16 = vadd.f32 %v14029_v26, %v18859_v24  ;;  %v7601_v8 = vshll.u32 %v18883_v53, 16  ;;  %v7727_v43 = vrot.slane %v7725_v59, 7  ;;  %v14717_v59 = vld [vmem:[#allocation20 + $0x2b4] ss:$8 sps:$4 sm:$0xff]  }
 0x965   : > { %v7495_v34 = vmax.f32 %v7479_v40, 0.0  ;;  %v7604_v10 = vshrl.u32 %v18883_v53, 16  ;;  %v18896_v28 = vsel %vm693_vm2, %v7716_v12, %v7718_v48 }
 0x966   : > { %v7504_v45 = vmax.f32 %v7492_v29, %v7494_v17  ;;  %v7493_v42 = vmax.f32 %v7477_v16, 0.0  ;;  %v13968_v15 = vpop.f32.mrb[76].mxu1  ;;  %v7603_v19 = vrot.slane %v7601_v8, 1  ;;  %v7730_v63 = vor.u32 %v7728_v60, %v7727_v43  ;;  %v14712_v17 = vld [vmem:[#allocation20 + $0x2a0] ss:$8 sps:$4 sm:$0xff]  }
 0x967   : > { %v14032_v33 = vadd.f32 %v18855_v35, %v13968_v15  ;;  %v7430_v47 = vpop.f32.mrb[77].mxu1  ;;  %v7870_v37 = vrot.slane %v7604_v10, 7  ;;  %v7776_v16 = vshrl.u32 %v7564_v25, 16  ;;  %v7573_v43 = vld [vmem:[#allocation6 + $0x28] sm:$0x1] }
 0x968   : > { %v7505_v62 = vmax.f32 %v7493_v42, %v7495_v34  ;;  %v14035_v4 = vadd.f32 %v18851_v55, %v7430_v47  ;;  %v13969_v54 = vpop.f32.mrb[78].mxu1  ;;  %v7606_v0 = vor.u32 %v7604_v10, %v7603_v19  ;;  %v18899_v35 = vsel %vm693_vm2, %v7723_v38, %v7730_v63  ;;  %v14715_v60 = vld [vmem:[#allocation20 + $0x2b0] ss:$8 sps:$4 sm:$0xff]  }
 0x969   : > { %v7482_v58 = vadd.f32 %v14032_v33, %v18859_v24  ;;  %v14038_v49 = vadd.f32 %v18857_v32, %v13969_v54  ;;  %v7433_v22 = vpop.f32.mrb[79].mxu1  ;;  %8254 = vmatprep.mubr.bf16.mxu0 %v18899_v35  ;;  %v7874_v5 = vshrl.u32 %v7603_v19, 16  ;;  %v7871_v14 = vor.u32 %v7870_v37, %v7601_v8  ;;  %v14720_v19 = vld [vmem:[#allocation20 + $0x2c4] ss:$8 sps:$4 sm:$0xff]   ;;  %v14721_v37 = vld [vmem:[#allocation20 + $0x2d0] ss:$8 sps:$4 sm:$0xff]  }
 0x96a   : > { %v18901_v27 = vpack.c.bf16 %v7505_v62, %v7504_v45  ;;  %v7480_v55 = vadd.f32 %v14035_v4, %v18859_v24  ;;  %v14041_v39 = vadd.f32 %v18853_v61, %v7433_v22  ;;  %8255 = vmatmul.mubr.bf16.vlgmr.msra.gmra.mrb[64].mxu0 %v18896_v28  ;;  %v7878_v20 = vshrl.u32 %v7606_v0, 16  ;;  %v7566_v62 = vld [vmem:[#allocation6 + $0x90] sm:$0x80] }
 0x96b   : > { %v7498_v13 = vmax.f32 %v7482_v58, 0.0  ;;  %v7483_v32 = vadd.f32 %v14038_v49, %v18859_v24  ;;  %8296 = vmatpush1.bf16.msra.mxu0 %v14706_v1  ;;  %v7881_v30 = vshll.u32 %v7606_v0, 16  ;;  %v7876_v36 = vrot.slane %v7874_v5, 7  ;;  %v14718_v0 = vld [vmem:[#allocation20 + $0x2c0] ss:$8 sps:$4 sm:$0xff]  }
 0x96c   : > { %v7496_v6 = vmax.f32 %v7480_v55, 0.0  ;;  %v7481_v9 = vadd.f32 %v14041_v39, %v18859_v24  ;;  %v7622_v2 = vshll.u32 %v18901_v27, 16  ;;  %8297 = vmatprep.subr.bf16.mxu0 %v14711_v51  ;;  %v7880_v61 = vrot.slane %v7878_v20, 7  ;;  %v14723_v58 = vld [vmem:[#allocation20 + $0x2d4] ss:$8 sps:$4 sm:$0xff]  }
 0x96d   : > { %v7499_v18 = vmax.f32 %v7483_v32, 0.0  ;;  %v7625_v31 = vshrl.u32 %v18901_v27, 16  ;;  %v18918_v8 = vsel %vm693_vm2, %v7869_v50, %v7871_v14  ;;  %v7778_v10 = vrot.slane %v7776_v16, 7  ;;  %v7575_v5 = vld [vmem:[#allocation6 + $0x40] sm:$0x1] }
 0x96e   : > { %v7506_v57 = vmax.f32 %v7496_v6, %v7498_v13  ;;  %v7497_v3 = vmax.f32 %v7481_v9, 0.0  ;;  %v7624_v52 = vrot.slane %v7622_v2, 1  ;;  %v7883_v26 = vor.u32 %v7881_v30, %v7880_v61  ;;  %v14726_v20 = vld [vmem:[#allocation20 + $0x2e4] ss:$8 sps:$4 sm:$0xff]   ;;  %v14730_v16 = vld [vmem:[#allocation20] ss:$8 sps:$4 sm:$0xff]  }
 0x96f   : > { %8298 = vmatpush1.bf16.msra.mxu0 %v14709_v7  ;;  %v7779_v29 = vrot.slane %v7625_v31, 7  ;;  %v7661_v4 = vrot.slane %v18872_v11, 1  ;;  %v7662_v54 = vrot.slane %v7573_v43, 1  ;;  %v7898_v49 = vshrl.u32 %v7566_v62, 16 }
 0x970   : > { %v7507_v24 = vmax.f32 %v7497_v3, %v7499_v18  ;;  %v7627_v40 = vor.u32 %v7625_v31, %v7624_v52  ;;  %v18912_v46 = vsel %vm693_vm2, %v7876_v36, %v7883_v26  ;;  %8299 = vmatprep.subr.bf16.mxu0 %v14714_v21  ;;  %v7783_v34 = vshrl.u32 %v7624_v52, 16  ;;  %v14724_v21 = vld [vmem:[#allocation20 + $0x2e0] ss:$8 sps:$4 sm:$0xff]   ;;  %v14729_v31 = vld [vmem:[#allocation20 + $0x2f4] ss:$8 sps:$4 sm:$0xff]  }
 0x971   : > { %8264 = vmatprep.mubr.bf16.mxu0 %v18912_v46  ;;  %v7780_v15 = vor.u32 %v7779_v29, %v7622_v2  ;;  %v7663_v11 = vsel %vm1175_vm4, %v7661_v4, %v7662_v54  ;;  %v7900_v6 = vrot.slane %v7898_v49, 7  ;;  %v7664_v18 = vrot.slane %v18883_v53, 1  ;;  %v14727_v53 = vld [vmem:[#allocation20 + $0x2f0] ss:$8 sps:$4 sm:$0xff]   ;;  %v18943_v52 = vld [vmem:[#allocation5] sm:$0xff] }
 0x972   : > { %v18914_v12 = vpack.c.bf16 %v7507_v24, %v7506_v57  ;;  %v7787_v48 = vshrl.u32 %v7627_v40, 16  ;;  %8265 = vmatmul.mubr.bf16.gmra.mrb[68].mxu0 %v18918_v8  ;;  %v7790_v45 = vshll.u32 %v7627_v40, 16  ;;  %v7785_v33 = vrot.slane %v7783_v34, 7  ;;  %v7581_v26 = vld [vmem:[#allocation6 + $0x88] sm:$0x1] }
 0x973   : > { %8300 = vmatpush1.bf16.msra.mxu0 %v14712_v17  ;;  %v18929_v22 = vsel %vm693_vm2, %v7778_v10, %v7780_v15  ;;  %v7737_v2 = vshrl.u32 %v7663_v11, 16  ;;  %v7665_v61 = vrot.slane %v7575_v5, 1  ;;  %v7733_v25 = vshrl.u32 %v7661_v4, 16  ;;  %v14732_v24 = vld [vmem:[#allocation20 + $0x4] ss:$8 sps:$4 sm:$0xff]  }
 0x974   : > { %v7789_v23 = vrot.slane %v7787_v48, 7  ;;  %v7629_v42 = vshll.u32 %v18914_v12, 16  ;;  %8301 = vmatprep.subr.bf16.mxu0 %v14717_v59  ;;  %v7632_v63 = vshrl.u32 %v18914_v12, 16  ;;  %v7740_v36 = vshll.u32 %v7663_v11, 16  ;;  %v14735_v48 = vld [vmem:[#allocation20 + $0x14] ss:$8 sps:$4 sm:$0xff]  }
 0x975   : > { %v7739_v3 = vrot.slane %v7737_v2, 7  ;;  %v7666_v14 = vsel %vm1175_vm4, %v7664_v18, %v7665_v61  ;;  %v7673_v59 = vrot.slane %v18901_v27, 1  ;;  %v7674_v29 = vrot.slane %v7581_v26, 1  ;;  %v14738_v10 = vld [vmem:[#allocation20 + $0x24] ss:$8 sps:$4 sm:$0xff]  }
 0x976   : > { %v7792_v47 = vor.u32 %v7790_v45, %v7789_v23  ;;  %v7631_v38 = vrot.slane %v7629_v42, 1  ;;  %v7901_v51 = vrot.slane %v7632_v63, 7  ;;  %v7890_v40 = vshrl.u32 %v7666_v14, 16  ;;  %v14736_v54 = vld [vmem:[#allocation20 + $0x20] ss:$8 sps:$4 sm:$0xff]  }
 0x977   : > { %8302 = vmatpush1.bf16.msra.mxu0 %v14715_v60  ;;  %v7742_v17 = vor.u32 %v7740_v36, %v7739_v3  ;;  %v7735_v34 = vrot.slane %v7733_v25, 7  ;;  %v7587_v43 = vshll.u32 %v18943_v52, 16  ;;  %v7675_v45 = vsel %vm1175_vm4, %v7673_v59, %v7674_v29  ;;  %v14748_v26 = vld [vmem:[#allocation20 + $0x60] ss:$8 sps:$4 sm:$0xff]   ;;  %v14751_v29 = vld [vmem:[#allocation20 + $0x70] ss:$8 sps:$4 sm:$0xff]  }
 0x978   : > { %v18925_v1 = vsel %vm693_vm2, %v7785_v33, %v7792_v47  ;;  %v7634_v41 = vor.u32 %v7632_v63, %v7631_v38  ;;  %8303 = vmatprep.subr.bf16.mxu0 %v14720_v19  ;;  %v7905_v55 = vshrl.u32 %v7631_v38, 16  ;;  %v7902_v9 = vor.u32 %v7901_v51, %v7629_v42  ;;  %v14733_v42 = vld [vmem:[#allocation20 + $0x10] ss:$8 sps:$4 sm:$0xff]   ;;  %v7583_v19 = vld [vmem:[#allocation6 + $0xa0] sm:$0x1] }
 0x979   : > { %8274 = vmatprep.mubr.bf16.mxu0 %v18925_v1  ;;  %v18949_v60 = vsel %vm693_vm2, %v7735_v34, %v7742_v17  ;;  %v7892_v23 = vrot.slane %v7890_v40, 7  ;;  %v7886_v27 = vshrl.u32 %v7664_v18, 16  ;;  %v7893_v15 = vshll.u32 %v7666_v14, 16  ;;  %v14750_v14 = vld [vmem:[#allocation20 + $0x64] ss:$8 sps:$4 sm:$0xff]  }
 0x97a   : > { %v7909_v39 = vshrl.u32 %v7634_v41, 16  ;;  %8275 = vmatmul.mubr.bf16.gmra.mrb[72].mxu0 %v18929_v22  ;;  %v7912_v32 = vshll.u32 %v7634_v41, 16  ;;  %v7907_v7 = vrot.slane %v7905_v55, 7  ;;  %v18939_v57 = vsel %vm693_vm2, %v7900_v6, %v7902_v9  ;;  %v14741_v41 = vld [vmem:[#allocation20 + $0x34] ss:$8 sps:$4 sm:$0xff]  }
 0x97b   : > { %8304 = vmatpush1.bf16.msra.mxu0 %v14718_v0  ;;  %v7589_v33 = vrot.slane %v7587_v43, 1  ;;  %v7590_v47 = vshrl.u32 %v18943_v52, 16  ;;  %v7895_v38 = vor.u32 %v7893_v15, %v7892_v23  ;;  %v7799_v63 = vshrl.u32 %v7675_v45, 16  ;;  %v14747_v9 = vld [vmem:[#allocation20 + $0x54] ss:$8 sps:$4 sm:$0xff]  }
 0x97c   : > { %v7911_v13 = vrot.slane %v7909_v39, 7  ;;  %8305 = vmatprep.subr.bf16.mxu0 %v14723_v58  ;;  %v7676_v62 = vrot.slane %v18914_v12, 1  ;;  %v7677_v4 = vrot.slane %v7583_v19, 1  ;;  %v7888_v0 = vrot.slane %v7886_v27, 7  ;;  %v14739_v39 = vld [vmem:[#allocation20 + $0x30] ss:$8 sps:$4 sm:$0xff]  }
 0x97d   : > { %v7592_v58 = vor.u32 %v7590_v47, %v7589_v33  ;;  %v7801_v51 = vrot.slane %v7799_v63, 7  ;;  %v7795_v12 = vshrl.u32 %v7673_v59, 16  ;;  %v7802_v11 = vshll.u32 %v7675_v45, 16  ;;  %v14753_v17 = vld [vmem:[#allocation20 + $0x74] ss:$8 sps:$4 sm:$0xff]  }
 0x97e   : > { %v7914_v50 = vor.u32 %v7912_v32, %v7911_v13  ;;  %v18961_v49 = vsel %vm693_vm2, %v7888_v0, %v7895_v38  ;;  %v7678_v55 = vsel %vm1175_vm4, %v7676_v62, %v7677_v4  ;;  %v14754_v34 = vld [vmem:[#allocation20 + $0x80] ss:$8 sps:$4 sm:$0xff]   ;;  %v14757_v23 = vld [vmem:[#allocation20 + $0x90] ss:$8 sps:$4 sm:$0xff]   ;;  %v14762_v45 = vld [vmem:[#allocation20 + $0xa4] ss:$8 sps:$4 sm:$0xff]  }
 0x97f   : > { %8306 = vmatpush1.bf16.msra.mxu0 %v14721_v37  ;;  %v14744_v37 = vld [vmem:[#allocation20 + $0x44] ss:$8 sps:$4 sm:$0xff]   ;;  %v7694_v13 = vshrl.u32 %v7592_v58, 16  ;;  %v7804_v32 = vor.u32 %v7802_v11, %v7801_v51  ;;  %v7921_v5 = vshrl.u32 %v7678_v55, 16  ;;  %v7797_v6 = vrot.slane %v7795_v12, 7 }
 0x980   : > { %v18935_v30 = vsel %vm693_vm2, %v7907_v7, %v7914_v50  ;;  %8307 = vmatprep.subr.bf16.mxu0 %v14726_v20  ;;  %v14742_v20 = vld [vmem:[#allocation20 + $0x40] ss:$8 sps:$4 sm:$0xff]   ;;  %v7690_v7 = vshrl.u32 %v7589_v33, 16  ;;  %v7697_v2 = vshll.u32 %v7592_v58, 16  ;;  %v7924_v3 = vshll.u32 %v7678_v55, 16 }
 0x981   : > { %8284 = vmatprep.mubr.bf16.mxu0 %v18935_v30  ;;  %v7696_v50 = vrot.slane %v7694_v13, 7  ;;  %v18967_v18 = vsel %vm693_vm2, %v7797_v6, %v7804_v32  ;;  %v7923_v61 = vrot.slane %v7921_v5, 7  ;;  %v14765_v27 = vld [vmem:[#allocation20 + $0xb4] ss:$8 sps:$4 sm:$0xff]   ;;  %v14763_v15 = vld [vmem:[#allocation20 + $0xb0] ss:$8 sps:$4 sm:$0xff]  }
 0x982   : > { %8285 = vmatmul.mubr.bf16.gmra.mrb[76].mxu0 %v18939_v57  ;;  %v14768_v19 = vld [vmem:[#allocation20 + $0xc4] ss:$8 sps:$4 sm:$0xff]   ;;  %v14771_v33 = vld [vmem:[#allocation20 + $0xd4] ss:$8 sps:$4 sm:$0xff]   ;;  %v14769_v38 = vld [vmem:[#allocation20 + $0xd0] ss:$8 sps:$4 sm:$0xff]  }
 0x983   : > { %8308 = vmatpush1.bf16.msra.mxu0 %v14724_v21  ;;  %8327 = vmatprep.mubr.bf16.mxu0 %v18943_v52  ;;  %v14745_v21 = vld [vmem:[#allocation20 + $0x50] ss:$8 sps:$4 sm:$0xff]   ;;  %v7699_v25 = vor.u32 %v7697_v2, %v7696_v50  ;;  %v7926_v36 = vor.u32 %v7924_v3, %v7923_v61  ;;  %v14774_v63 = vld [vmem:[#allocation20 + $0xe4] ss:$8 sps:$4 sm:$0xff]   ;;  %v14772_v4 = vld [vmem:[#allocation20 + $0xe0] ss:$8 sps:$4 sm:$0xff]  }
 0x984   : > { %8309 = vmatprep.subr.bf16.mxu0 %v14729_v31  ;;  %v7917_v31 = vshrl.u32 %v7676_v62, 16  ;;  %v7554_v62 = vld [vmem:[#allocation6] sm:$0x80]  ;;  %v7686_v0 = vrot.slane %v7590_v47, 7  ;;  %v14775_v58 = vld [vmem:[#allocation20 + $0xf0] ss:$8 sps:$4 sm:$0xff]  }
 0x985   : > { %v14778_v11 = vld [vmem:[#allocation20 + $0x100] ss:$8 sps:$4 sm:$0xff]   ;;  %v14781_v47 = vld [vmem:[#allocation20 + $0x110] ss:$8 sps:$4 sm:$0xff]   ;;  %v14786_v13 = vld [vmem:[#allocation20 + $0x124] ss:$8 sps:$4 sm:$0xff]  }
 0x986   : > { %v18983_v55 = vor.u32 %v7686_v0, %v7587_v43  ;;  %v7562_v32 = vld [vmem:[#allocation6 + $0x60] sm:$0x80]  ;;  %v7571_v6 = vld [vmem:[#allocation6 + $0x10] sm:$0x1]  ;;  %v18991_v50 = vrot.slane %v18943_v52, 1 }
 0x987   : > { %8310 = vmatpush1.bf16.msra.mxu0 %v14727_v53  ;;  %v7692_v53 = vrot.slane %v7690_v7, 7  ;;  %v14784_v43 = vld [vmem:[#allocation20 + $0x120] ss:$8 sps:$4 sm:$0xff]   ;;  %v7745_v5 = vshrl.u32 %v7562_v32, 16  ;;  %v7659_v2 = vrot.slane %v7571_v6, 1 }
 0x988   : > { %8608 = vmatprep.subr.bf16.mxu0 %v14732_v24  ;;  %v7919_v24 = vrot.slane %v7917_v31, 7  ;;  %v14795_v31 = vld [vmem:[#allocation20 + $0x154] ss:$8 sps:$4 sm:$0xff]   ;;  %v14793_v3 = vld [vmem:[#allocation20 + $0x150] ss:$8 sps:$4 sm:$0xff]  }
 0x989   : > { %v18972_v40 = vsel %vm693_vm2, %v7692_v53, %v7699_v25  ;;  %v7747_v7 = vrot.slane %v7745_v5, 7  ;;  %v14798_v53 = vld [vmem:[#allocation20 + $0x164] ss:$8 sps:$4 sm:$0xff]   ;;  %v14796_v25 = vld [vmem:[#allocation20 + $0x160] ss:$8 sps:$4 sm:$0xff]  }
 0x98a   : > { %8328 = vmatmul.mubr.bf16.vlgmr.msra.gmra.mrb[64].mxu0 %v18949_v60  ;;  %v18975_v59 = vsel %vm693_vm2, %v7919_v24, %v7926_v36  ;;  %v7702_v36 = vshrl.u32 %v18991_v50, 16  ;;  %v14810_v0 = vld [vmem:[#allocation20 + $0x324] ss:$8 sps:$4 sm:$0xff]   ;;  %v14889_v5 = vld [vmem:[#allocation23 + $0x350] ss:$8 sps:$4 sm:$0xff]  }
 0x98b   : > { %8609 = vmatpush1.bf16.msra.mxu0 %v14730_v16  ;;  %8337 = vmatprep.mubr.bf16.mxu0 %v18943_v52  ;;  %v14756_v16 = vld [vmem:[#allocation20 + $0x84] ss:$8 sps:$4 sm:$0xff]   ;;  %v7750_v61 = vsel %vm693_vm2, %v7747_v7, %v18983_v55 }
 0x98c   : > { %8610 = vmatprep.subr.bf16.mxu0 %v14735_v48  ;;  %v14759_v48 = vld [vmem:[#allocation20 + $0x94] ss:$8 sps:$4 sm:$0xff]   ;;  %v14892_v7 = vld [vmem:[#allocation23 + $0x360] ss:$8 sps:$4 sm:$0xff]  }
 0x98f   : > { %8611 = vmatpush1.bf16.msra.mxu0 %v14733_v42  ;;  %v14760_v42 = vld [vmem:[#allocation20 + $0xa0] ss:$8 sps:$4 sm:$0xff]  }
 0x990   : > { %8612 = vmatprep.subr.bf16.mxu0 %v14738_v10  ;;  %v14766_v10 = vld [vmem:[#allocation20 + $0xc0] ss:$8 sps:$4 sm:$0xff]  }
 0x992   : > { %8338 = vmatmul.mubr.bf16.gmra.mrb[68].mxu0 %v18961_v49 }
 0x993   : > { %8613 = vmatpush1.bf16.msra.mxu0 %v14736_v54  ;;  %8347 = vmatprep.mubr.bf16.mxu0 %v18943_v52  ;;  %v7683_v54 = vshrl.u32 %v7554_v62, 16  ;;  %v14885_v62 = vld [vmem:[#allocation23 + $0x334] ss:$8 sps:$4 sm:$0xff]  }
 0x994   : > { %8614 = vmatprep.subr.bf16.mxu0 %v14741_v41  ;;  %v14777_v41 = vld [vmem:[#allocation20 + $0xf4] ss:$8 sps:$4 sm:$0xff]  }
 0x995   : > { %v7685_v51 = vrot.slane %v7683_v54, 7 }
 0x997   : > { %8615 = vmatpush1.bf16.msra.mxu0 %v14739_v39  ;;  %v14780_v39 = vld [vmem:[#allocation20 + $0x104] ss:$8 sps:$4 sm:$0xff]   ;;  %v7688_v12 = vsel %vm693_vm2, %v7685_v51, %v18983_v55  ;;  %v14808_v51 = vld [vmem:[#allocation20 + $0x320] ss:$8 sps:$4 sm:$0xff]  }
 0x998   : > { %8616 = vmatprep.subr.bf16.mxu0 %v14744_v37  ;;  %v14783_v37 = vld [vmem:[#allocation20 + $0x114] ss:$8 sps:$4 sm:$0xff]  }
 0x99a   : > { %8348 = vmatmul.mubr.bf16.gmra.mrb[72].mxu0 %v18967_v18 }
 0x99b   : > { %8617 = vmatpush1.bf16.msra.mxu0 %v14742_v20  ;;  %8357 = vmatprep.mubr.bf16.mxu0 %v18943_v52  ;;  %v14789_v20 = vld [vmem:[#allocation20 + $0x134] ss:$8 sps:$4 sm:$0xff]  }
 0x99c   : > { %8618 = vmatprep.subr.bf16.mxu0 %v14747_v9  ;;  %v14787_v9 = vld [vmem:[#allocation20 + $0x130] ss:$8 sps:$4 sm:$0xff]  }
 0x99f   : > { %8619 = vmatpush1.bf16.msra.mxu0 %v14745_v21  ;;  %v14790_v21 = vld [vmem:[#allocation20 + $0x140] ss:$8 sps:$4 sm:$0xff]  }
 0x9a0   : > { %8620 = vmatprep.subr.bf16.mxu0 %v14750_v14 }
 0x9a2   : > { %8358 = vmatmul.mubr.bf16.gmra.mrb[76].mxu0 %v18975_v59 }
 0x9a3   : > { %8621 = vmatpush1.bf16.msra.mxu0 %v14748_v26  ;;  %8640 = vmatprep.mubr.bf16.mxu0 %v18972_v40 }
 0x9a4   : > { %8622 = vmatprep.subr.bf16.mxu0 %v14753_v17  ;;  %v14801_v17 = vld [vmem:[#allocation20 + $0x174] ss:$8 sps:$4 sm:$0xff]  }
 0x9a7   : > { %8623 = vmatpush1.bf16.msra.mxu0 %v14751_v29  ;;  %v7579_v29 = vld [vmem:[#allocation6 + $0x70] sm:$0x1] }
 0x9a8   : > { %8624 = vmatprep.subr.bf16.mxu0 %v14756_v16  ;;  %v14874_v16 = vld [vmem:[#allocation23 + $0x300] ss:$8 sps:$4 sm:$0xff]  }
 0x9ab   : > { %8625 = vmatpush1.bf16.msra.mxu0 %v14754_v34  ;;  %v14876_v34 = vld [vmem:[#allocation23 + $0x304] ss:$8 sps:$4 sm:$0xff]  }
 0x9ac   : > { %8626 = vmatprep.subr.bf16.mxu0 %v14759_v48  ;;  %v19001_v48 = vrot.slane %v7702_v36, 7  ;;  %10742 = vmatprep.subr.bf16.mxu1 %v14876_v34  ;;  %v14828_v36 = vld [vmem:[#allocation20 + $0x384] ss:$8 sps:$4 sm:$0xff]   ;;  %v14837_v34 = vld [vmem:[#allocation20 + $0x3b4] ss:$8 sps:$4 sm:$0xff]  }
 0x9ad   : > { %10743 = vmatpush1.bf16.msra.mxu1 %v14874_v16  ;;  %v14832_v16 = vld [vmem:[#allocation20 + $0x3a0] ss:$8 sps:$4 sm:$0xff]  }
 0x9af   : > { %8627 = vmatpush1.bf16.msra.mxu0 %v14757_v23 }
 0x9b0   : > { %8628 = vmatprep.subr.bf16.mxu0 %v14762_v45  ;;  %v14879_v45 = vld [vmem:[#allocation23 + $0x314] ss:$8 sps:$4 sm:$0xff]  }
 0x9b1   : > { %10744 = vmatprep.subr.bf16.mxu1 %v14879_v45  ;;  %v14843_v45 = vld [vmem:[#allocation20 + $0x3d4] ss:$8 sps:$4 sm:$0xff]  }
 0x9b3   : > { %8629 = vmatpush1.bf16.msra.mxu0 %v14760_v42  ;;  %v14804_v42 = vld [vmem:[#allocation20 + $0x304] ss:$8 sps:$4 sm:$0xff]  }
 0x9b4   : > { %8630 = vmatprep.subr.bf16.mxu0 %v14765_v27  ;;  %v7671_v27 = vrot.slane %v7579_v29, 1  ;;  %v14829_v29 = vld [vmem:[#allocation20 + $0x390] ss:$8 sps:$4 sm:$0xff]  }
 0x9b7   : > { %8631 = vmatpush1.bf16.msra.mxu0 %v14763_v15  ;;  %v14877_v15 = vld [vmem:[#allocation23 + $0x310] ss:$8 sps:$4 sm:$0xff]  }
 0x9b8   : > { %8632 = vmatprep.subr.bf16.mxu0 %v14768_v19  ;;  %v14882_v19 = vld [vmem:[#allocation23 + $0x324] ss:$8 sps:$4 sm:$0xff]   ;;  %10745 = vmatpush1.bf16.msra.mxu1 %v14877_v15 }
 0x9b9   : > { %10746 = vmatprep.subr.bf16.mxu1 %v14882_v19  ;;  %v14844_v15 = vld [vmem:[#allocation20 + $0x3e0] ss:$8 sps:$4 sm:$0xff]   ;;  %v14849_v19 = vld [vmem:[#allocation20 + $0x3f4] ss:$8 sps:$4 sm:$0xff]  }
 0x9bb   : > { %8633 = vmatpush1.bf16.msra.mxu0 %v14766_v10  ;;  %v14802_v10 = vld [vmem:[#allocation20 + $0x300] ss:$8 sps:$4 sm:$0xff]  }
 0x9bc   : > { %8634 = vmatprep.subr.bf16.mxu0 %v14771_v33  ;;  %v14807_v33 = vld [vmem:[#allocation20 + $0x314] ss:$8 sps:$4 sm:$0xff]  }
 0x9bf   : > { %8635 = vmatpush1.bf16.msra.mxu0 %v14769_v38  ;;  %v7672_v38 = vsel %vm1175_vm4, %v18991_v50, %v7671_v27  ;;  %v14846_v27 = vld [vmem:[#allocation20 + $0x3e4] ss:$8 sps:$4 sm:$0xff]  }
 0x9c0   : > { %8636 = vmatprep.subr.bf16.mxu0 %v14774_v63  ;;  %v14880_v63 = vld [vmem:[#allocation23 + $0x320] ss:$8 sps:$4 sm:$0xff]   ;;  %v7768_v54 = vshrl.u32 %v7672_v38, 16 }
 0x9c1   : > { %10747 = vmatpush1.bf16.msra.mxu1 %v14880_v63 }
 0x9c2   : > { %10748 = vmatprep.subr.bf16.mxu1 %v14885_v62  ;;  %v14855_v62 = vld [vmem:[#allocation20 + $0x414] ss:$8 sps:$4 sm:$0xff]  }
 0x9c3   : > { %8637 = vmatpush1.bf16.msra.mxu0 %v14772_v4  ;;  %v14805_v4 = vld [vmem:[#allocation20 + $0x310] ss:$8 sps:$4 sm:$0xff]  }
 0x9c4   : > { %8638 = vmatprep.subr.bf16.mxu0 %v14777_v41  ;;  %v14883_v41 = vld [vmem:[#allocation23 + $0x330] ss:$8 sps:$4 sm:$0xff]  }
 0x9c5   : > { %10749 = vmatpush1.bf16.msra.mxu1 %v14883_v41 }
 0x9c7   : > { %8639 = vmatpush1.bf16.msra.mxu0 %v14775_v58  ;;  %v14888_v58 = vld [vmem:[#allocation23 + $0x344] ss:$8 sps:$4 sm:$0xff]  }
 0x9c8   : > { %8681 = vmatprep.subr.bf16.mxu0 %v14780_v39  ;;  %v7770_v39 = vrot.slane %v7768_v54, 7  ;;  %10750 = vmatprep.subr.bf16.mxu1 %v14888_v58  ;;  %v14856_v58 = vld [vmem:[#allocation20 + $0x420] ss:$8 sps:$4 sm:$0xff]  }
 0x9ca   : > { %8641 = vmatmul.mubr.bf16.vlgmr.msra.gmra.mrb[64].mxu0 %v7688_v12  ;;  %v7771_v12 = vshll.u32 %v7672_v38, 16  ;;  %v14850_v38 = vld [vmem:[#allocation20 + $0x400] ss:$8 sps:$4 sm:$0xff]  }
 0x9cb   : > { %8650 = vmatprep.mubr.bf16.mxu0 %v18899_v35  ;;  %8682 = vmatpush1.bf16.msra.mxu0 %v14778_v11  ;;  %v14792_v35 = vld [vmem:[#allocation20 + $0x144] ss:$8 sps:$4 sm:$0xff]   ;;  %v14813_v11 = vld [vmem:[#allocation20 + $0x334] ss:$8 sps:$4 sm:$0xff]  }
 0x9cc   : > { %8683 = vmatprep.subr.bf16.mxu0 %v14783_v37  ;;  %v14886_v37 = vld [vmem:[#allocation23 + $0x340] ss:$8 sps:$4 sm:$0xff]   ;;  %v7773_v32 = vor.u32 %v7771_v12, %v7770_v39  ;;  %v14859_v39 = vld [vmem:[#allocation20 + $0x430] ss:$8 sps:$4 sm:$0xff]  }
 0x9cd   : > { %10751 = vmatpush1.bf16.msra.mxu1 %v14886_v37  ;;  %v7568_v12 = vld [vmem:[#allocation6 + $0xa8] sm:$0x80] }
 0x9ce   : > { %v7774_v6 = vsel %vm693_vm2, %v19001_v48, %v7773_v32  ;;  %v8786_v37 = vshrl.u32 %v7568_v12, 16  ;;  %v14865_v32 = vld [vmem:[#allocation20 + $0x450] ss:$8 sps:$4 sm:$0xff]  }
 0x9cf   : > { %8684 = vmatpush1.bf16.msra.mxu0 %v14781_v47  ;;  %v14891_v47 = vld [vmem:[#allocation23 + $0x354] ss:$8 sps:$4 sm:$0xff]  }
 0x9d0   : > { %8685 = vmatprep.subr.bf16.mxu0 %v14786_v13  ;;  %v14811_v13 = vld [vmem:[#allocation20 + $0x330] ss:$8 sps:$4 sm:$0xff]   ;;  %10752 = vmatprep.subr.bf16.mxu1 %v14891_v47  ;;  %v14867_v47 = vld [vmem:[#allocation20 + $0x454] ss:$8 sps:$4 sm:$0xff]  }
 0x9d1   : > { %10753 = vmatpush1.bf16.msra.mxu1 %v14889_v5 }
 0x9d2   : > { %8651 = vmatmul.mubr.bf16.gmra.mrb[68].mxu0 %v18896_v28  ;;  %v7660_v28 = vsel %vm1175_vm4, %v18991_v50, %v7659_v2  ;;  %v14817_v2 = vld [vmem:[#allocation20 + $0x350] ss:$8 sps:$4 sm:$0xff]  }
 0x9d3   : > { %8686 = vmatpush1.bf16.msra.mxu0 %v14784_v43  ;;  %8660 = vmatprep.mubr.bf16.mxu0 %v18972_v40  ;;  %v7706_v14 = vshrl.u32 %v7660_v28, 16  ;;  %v7709_v24 = vshll.u32 %v7660_v28, 16  ;;  %v14816_v43 = vld [vmem:[#allocation20 + $0x344] ss:$8 sps:$4 sm:$0xff]   ;;  %v14820_v28 = vld [vmem:[#allocation20 + $0x360] ss:$8 sps:$4 sm:$0xff]  }
 0x9d4   : > { %8687 = vmatprep.subr.bf16.mxu0 %v14789_v20  ;;  %v14894_v20 = vld [vmem:[#allocation23 + $0x364] ss:$8 sps:$4 sm:$0xff]  }
 0x9d5   : > { %v7708_v26 = vrot.slane %v7706_v14, 7  ;;  %10754 = vmatprep.subr.bf16.mxu1 %v14894_v20  ;;  %v14898_v14 = vld [vmem:[#allocation23 + $0x380] ss:$8 sps:$4 sm:$0xff]  }
 0x9d6   : > { %10755 = vmatpush1.bf16.msra.mxu1 %v14892_v7 }
 0x9d7   : > { %8688 = vmatpush1.bf16.msra.mxu0 %v14787_v9  ;;  %v7711_v23 = vor.u32 %v7709_v24, %v7708_v26  ;;  %v14814_v9 = vld [vmem:[#allocation20 + $0x340] ss:$8 sps:$4 sm:$0xff]   ;;  %v14901_v26 = vld [vmem:[#allocation23 + $0x390] ss:$8 sps:$4 sm:$0xff]  }
 0x9d8   : > { %8689 = vmatprep.subr.bf16.mxu0 %v14792_v35  ;;  %v14897_v35 = vld [vmem:[#allocation23 + $0x374] ss:$8 sps:$4 sm:$0xff]  }
 0x9d9   : > { %10756 = vmatprep.subr.bf16.mxu1 %v14897_v35  ;;  %v14826_v24 = vld [vmem:[#allocation20 + $0x380] ss:$8 sps:$4 sm:$0xff]  }
 0x9da   : > { %8661 = vmatmul.mubr.bf16.gmra.mrb[72].mxu0 %v7750_v61  ;;  %v14822_v61 = vld [vmem:[#allocation20 + $0x364] ss:$8 sps:$4 sm:$0xff]  }
 0x9db   : > { %8670 = vmatprep.mubr.bf16.mxu0 %v18925_v1  ;;  %8690 = vmatpush1.bf16.msra.mxu0 %v14790_v21  ;;  %v14799_v1 = vld [vmem:[#allocation20 + $0x170] ss:$8 sps:$4 sm:$0xff]  }
 0x9dc   : > { %8691 = vmatprep.subr.bf16.mxu0 %v14795_v31  ;;  %v14895_v21 = vld [vmem:[#allocation23 + $0x370] ss:$8 sps:$4 sm:$0xff]   ;;  %v14900_v31 = vld [vmem:[#allocation23 + $0x384] ss:$8 sps:$4 sm:$0xff]  }
 0x9dd   : > { %10757 = vmatpush1.bf16.msra.mxu1 %v14895_v21 }
 0x9de   : > { %10758 = vmatprep.subr.bf16.mxu1 %v14900_v31 }
 0x9df   : > { %8692 = vmatpush1.bf16.msra.mxu0 %v14793_v3  ;;  %v14825_v3 = vld [vmem:[#allocation20 + $0x374] ss:$8 sps:$4 sm:$0xff]  }
 0x9e0   : > { %8693 = vmatprep.subr.bf16.mxu0 %v14798_v53  ;;  %v14903_v53 = vld [vmem:[#allocation23 + $0x394] ss:$8 sps:$4 sm:$0xff]  }
 0x9e1   : > { %10759 = vmatpush1.bf16.msra.mxu1 %v14898_v14 }
 0x9e2   : > { %8671 = vmatmul.mubr.bf16.gmra.mrb[76].mxu0 %v18929_v22  ;;  %v7712_v22 = vsel %vm693_vm2, %v19001_v48, %v7711_v23  ;;  %10760 = vmatprep.subr.bf16.mxu1 %v14903_v53  ;;  %v14838_v23 = vld [vmem:[#allocation20 + $0x3c0] ss:$8 sps:$4 sm:$0xff]  }
 0x9e3   : > { %8694 = vmatpush1.bf16.msra.mxu0 %v14796_v25  ;;  %8713 = vmatprep.mubr.bf16.mxu0 %v18943_v52  ;;  %v14823_v25 = vld [vmem:[#allocation20 + $0x370] ss:$8 sps:$4 sm:$0xff]  }
 0x9e4   : > { %8695 = vmatprep.subr.bf16.mxu0 %v14801_v17  ;;  %v14831_v17 = vld [vmem:[#allocation20 + $0x394] ss:$8 sps:$4 sm:$0xff]  }
 0x9e5   : > { %10761 = vmatpush1.bf16.msra.mxu1 %v14901_v26  ;;  %v14907_v26 = vld [vmem:[#allocation23 + $0x3b0] ss:$8 sps:$4 sm:$0xff]  }
 0x9e7   : > { %8696 = vmatpush1.bf16.msra.mxu0 %v14799_v1  ;;  %v14840_v1 = vld [vmem:[#allocation20 + $0x3c4] ss:$8 sps:$4 sm:$0xff]  }
 0x9e8   : > { %9110 = vmatprep.subr.bf16.mxu0 %v14804_v42  ;;  %v14841_v42 = vld [vmem:[#allocation20 + $0x3d0] ss:$8 sps:$4 sm:$0xff]  }
 0x9ea   : > { %8714 = vmatmul.mubr.bf16.vlgmr.msra.gmra.mrb[64].mxu0 %v7712_v22  ;;  %v14847_v22 = vld [vmem:[#allocation20 + $0x3f0] ss:$8 sps:$4 sm:$0xff]  }
 0x9eb   : > { %9111 = vmatpush1.bf16.msra.mxu0 %v14802_v10  ;;  %8723 = vmatprep.mubr.bf16.mxu0 %v18943_v52  ;;  %v14852_v10 = vld [vmem:[#allocation20 + $0x404] ss:$8 sps:$4 sm:$0xff]  }
 0x9ec   : > { %9112 = vmatprep.subr.bf16.mxu0 %v14807_v33  ;;  %v7560_v33 = vld [vmem:[#allocation6 + $0x48] sm:$0x80] }
 0x9ed   : > { %v8755_v63 = vshrl.u32 %v7560_v33, 16  ;;  %v9362_v33 = vld [vmem:[#allocation7 + $0xf0] sm:$0x80] }
 0x9ef   : > { %9113 = vmatpush1.bf16.msra.mxu0 %v14805_v4  ;;  %v14853_v4 = vld [vmem:[#allocation20 + $0x410] ss:$8 sps:$4 sm:$0xff]   ;;  %v8757_v54 = vrot.slane %v8755_v63, 7  ;;  %v9363_v63 = vsel %vm18338_vm5, 0, %v9362_v33 }
 0x9f0   : > { %9114 = vmatprep.subr.bf16.mxu0 %v14810_v0  ;;  %v14858_v0 = vld [vmem:[#allocation20 + $0x424] ss:$8 sps:$4 sm:$0xff]   ;;  %9364 = vst [vmem:[#allocation7 + $0xf0] sm:$0x80] %v9363_v63 }
 0x9f1   : > { %v8760_v41 = vsel %vm693_vm2, %v8757_v54, %v18983_v55 }
 0x9f2   : > { %8724 = vmatmul.mubr.bf16.gmra.mrb[68].mxu0 %v18949_v60  ;;  %v14819_v60 = vld [vmem:[#allocation20 + $0x354] ss:$8 sps:$4 sm:$0xff]  }
 0x9f3   : > { %9115 = vmatpush1.bf16.msra.mxu0 %v14808_v51  ;;  %8733 = vmatprep.mubr.bf16.mxu0 %v18943_v52  ;;  %v14861_v51 = vld [vmem:[#allocation20 + $0x434] ss:$8 sps:$4 sm:$0xff]  }
 0x9f4   : > { %9116 = vmatprep.subr.bf16.mxu0 %v14813_v11  ;;  %v14862_v11 = vld [vmem:[#allocation20 + $0x440] ss:$8 sps:$4 sm:$0xff]  }
 0x9f7   : > { %9117 = vmatpush1.bf16.msra.mxu0 %v14811_v13  ;;  %v7577_v13 = vld [vmem:[#allocation6 + $0x58] sm:$0x1] }
 0x9f8   : > { %9118 = vmatprep.subr.bf16.mxu0 %v14816_v43  ;;  %v8788_v43 = vrot.slane %v8786_v37, 7  ;;  %v7668_v5 = vrot.slane %v7577_v13, 1  ;;  %v9386_v37 = vld [vmem:[#allocation7 + $0x110] sm:$0x1] }
 0x9f9   : > { %v9387_v13 = vsel %vm18343_vm8, 0, %v9386_v37 }
 0x9fa   : > { %8734 = vmatmul.mubr.bf16.gmra.mrb[72].mxu0 %v7774_v6  ;;  %v8791_v20 = vsel %vm693_vm2, %v8788_v43, %v18983_v55  ;;  %v14868_v6 = vld [vmem:[#allocation20 + $0x460] ss:$8 sps:$4 sm:$0xff]   ;;  %9388 = vst [vmem:[#allocation7 + $0x110] sm:$0x1] %v9387_v13 }
 0x9fb   : > { %9119 = vmatpush1.bf16.msra.mxu0 %v14814_v9  ;;  %8743 = vmatprep.mubr.bf16.mxu0 %v18943_v52  ;;  %v14873_v9 = vld [vmem:[#allocation20 + $0x474] ss:$8 sps:$4 sm:$0xff]  }
 0x9fc   : > { %9120 = vmatprep.subr.bf16.mxu0 %v14819_v60  ;;  %v7669_v60 = vsel %vm1175_vm4, %v18991_v50, %v7668_v5 }
 0x9fd   : > { %v8781_v35 = vshll.u32 %v7669_v60, 16 }
 0x9ff   : > { %9121 = vmatpush1.bf16.msra.mxu0 %v14817_v2  ;;  %v7585_v2 = vld [vmem:[#allocation6 + $0xb8] sm:$0x1] }
 0xa00   : > { %9122 = vmatprep.subr.bf16.mxu0 %v14822_v61  ;;  %v7680_v61 = vrot.slane %v7585_v2, 1 }
 0xa02   : > { %8744 = vmatmul.mubr.bf16.gmra.mrb[76].mxu0 %v18967_v18  ;;  %v14834_v18 = vld [vmem:[#allocation20 + $0x3a4] ss:$8 sps:$4 sm:$0xff]   ;;  %v7681_v31 = vsel %vm1175_vm4, %v18991_v50, %v7680_v61  ;;  %v14909_v50 = vld [vmem:[#allocation23 + $0x3b4] ss:$8 sps:$4 sm:$0xff]  }
 0xa03   : > { %9123 = vmatpush1.bf16.msra.mxu0 %v14820_v28  ;;  %9142 = vmatprep.mubr.bf16.mxu0 %v18912_v46  ;;  %v14835_v46 = vld [vmem:[#allocation20 + $0x3b0] ss:$8 sps:$4 sm:$0xff]   ;;  %v8809_v28 = vshrl.u32 %v7681_v31, 16  ;;  %v8812_v14 = vshll.u32 %v7681_v31, 16 }
 0xa04   : > { %9124 = vmatprep.subr.bf16.mxu0 %v14825_v3 }
 0xa05   : > { %v8811_v3 = vrot.slane %v8809_v28, 7 }
 0xa07   : > { %9125 = vmatpush1.bf16.msra.mxu0 %v14823_v25  ;;  %v14906_v25 = vld [vmem:[#allocation23 + $0x3a4] ss:$8 sps:$4 sm:$0xff]  }
 0xa08   : > { %9126 = vmatprep.subr.bf16.mxu0 %v14828_v36  ;;  %v14904_v36 = vld [vmem:[#allocation23 + $0x3a0] ss:$8 sps:$4 sm:$0xff]   ;;  %10762 = vmatprep.subr.bf16.mxu1 %v14906_v25 }
 0xa09   : > { %10763 = vmatpush1.bf16.msra.mxu1 %v14904_v36 }
 0xa0a   : > { %10764 = vmatprep.subr.bf16.mxu1 %v14909_v50 }
 0xa0b   : > { %9127 = vmatpush1.bf16.msra.mxu0 %v14826_v24  ;;  %v14912_v24 = vld [vmem:[#allocation23 + $0x3c4] ss:$8 sps:$4 sm:$0xff]  }
 0xa0c   : > { %9128 = vmatprep.subr.bf16.mxu0 %v14831_v17  ;;  %v14910_v17 = vld [vmem:[#allocation23 + $0x3c0] ss:$8 sps:$4 sm:$0xff]  }
 0xa0d   : > { %10765 = vmatpush1.bf16.msra.mxu1 %v14907_v26 }
 0xa0e   : > { %10766 = vmatprep.subr.bf16.mxu1 %v14912_v24 }
 0xa0f   : > { %9129 = vmatpush1.bf16.msra.mxu0 %v14829_v29  ;;  %v9377_v29 = vld [vmem:[#allocation7 + $0x58] sm:$0x1] }
 0xa10   : > { %9130 = vmatprep.subr.bf16.mxu0 %v14834_v18  ;;  %v9353_v18 = vld [vmem:[#allocation7 + $0x38] sm:$0x80] }
 0xa11   : > { %10767 = vmatpush1.bf16.msra.mxu1 %v14910_v17 }
 0xa13   : > { %9131 = vmatpush1.bf16.msra.mxu0 %v14832_v16  ;;  %v14915_v16 = vld [vmem:[#allocation23 + $0x3d4] ss:$8 sps:$4 sm:$0xff]  }
 0xa14   : > { %9132 = vmatprep.subr.bf16.mxu0 %v14837_v34  ;;  %v9354_v34 = vsel %vm18338_vm5, 0, %v9353_v18  ;;  %10768 = vmatprep.subr.bf16.mxu1 %v14915_v16 }
 0xa15   : > { %9355 = vst [vmem:[#allocation7 + $0x38] sm:$0x80] %v9354_v34 }
 0xa17   : > { %9133 = vmatpush1.bf16.msra.mxu0 %v14835_v46  ;;  %v14913_v46 = vld [vmem:[#allocation23 + $0x3d0] ss:$8 sps:$4 sm:$0xff]  }
 0xa18   : > { %9134 = vmatprep.subr.bf16.mxu0 %v14840_v1  ;;  %10769 = vmatpush1.bf16.msra.mxu1 %v14913_v46  ;;  %v14918_v1 = vld [vmem:[#allocation23 + $0x3e4] ss:$8 sps:$4 sm:$0xff]  }
 0xa19   : > { %10770 = vmatprep.subr.bf16.mxu1 %v14918_v1 }
 0xa1b   : > { %9135 = vmatpush1.bf16.msra.mxu0 %v14838_v23  ;;  %v14916_v23 = vld [vmem:[#allocation23 + $0x3e0] ss:$8 sps:$4 sm:$0xff]  }
 0xa1c   : > { %9136 = vmatprep.subr.bf16.mxu0 %v14843_v45  ;;  %v9356_v45 = vld [vmem:[#allocation7 + $0x60] sm:$0x80]  ;;  %10771 = vmatpush1.bf16.msra.mxu1 %v14916_v23 }
 0xa1f   : > { %9137 = vmatpush1.bf16.msra.mxu0 %v14841_v42  ;;  %v9359_v42 = vld [vmem:[#allocation7 + $0x68] sm:$0x80] }
 0xa20   : > { %9138 = vmatprep.subr.bf16.mxu0 %v14846_v27  ;;  %v9357_v27 = vsel %vm18338_vm5, 0, %v9356_v45 }
 0xa21   : > { %9358 = vst [vmem:[#allocation7 + $0x60] sm:$0x80] %v9357_v27 }
 0xa23   : > { %9139 = vmatpush1.bf16.msra.mxu0 %v14844_v15  ;;  %v14921_v15 = vld [vmem:[#allocation23 + $0x3f4] ss:$8 sps:$4 sm:$0xff]  }
 0xa24   : > { %9140 = vmatprep.subr.bf16.mxu0 %v14849_v19  ;;  %v9360_v19 = vsel %vm18338_vm5, 0, %v9359_v42  ;;  %10772 = vmatprep.subr.bf16.mxu1 %v14921_v15 }
 0xa25   : > { %9361 = vst [vmem:[#allocation7 + $0x68] sm:$0x80] %v9360_v19 }
 0xa27   : > { %9141 = vmatpush1.bf16.msra.mxu0 %v14847_v22  ;;  %v14919_v22 = vld [vmem:[#allocation23 + $0x3f0] ss:$8 sps:$4 sm:$0xff]  }
 0xa28   : > { %9183 = vmatprep.subr.bf16.mxu0 %v14852_v10  ;;  %10773 = vmatpush1.bf16.msra.mxu1 %v14919_v22  ;;  %v14924_v10 = vld [vmem:[#allocation23 + $0x404] ss:$8 sps:$4 sm:$0xff]  }
 0xa29   : > { %10815 = vmatprep.subr.bf16.mxu1 %v14924_v10 }
 0xa2a   : > { %9143 = vmatmul.mubr.bf16.vlgmr.msra.gmra.mrb[64].mxu0 %v18918_v8  ;;  %v14864_v8 = vld [vmem:[#allocation20 + $0x444] ss:$8 sps:$4 sm:$0xff]  }
 0xa2b   : > { %9184 = vmatpush1.bf16.msra.mxu0 %v14850_v38  ;;  %9152 = vmatprep.mubr.bf16.mxu0 %v18972_v40  ;;  %v9365_v38 = vld [vmem:[#allocation7 + $0xf8] sm:$0x80] }
 0xa2c   : > { %9185 = vmatprep.subr.bf16.mxu0 %v14855_v62  ;;  %v9366_v62 = vsel %vm18338_vm5, 0, %v9365_v38  ;;  %v9415_v63 = vld [vmem:[#allocation7 + $0x68] sm:$0x80] }
 0xa2d   : > { %9367 = vst [vmem:[#allocation7 + $0xf8] sm:$0x80] %v9366_v62 }
 0xa2f   : > { %9186 = vmatpush1.bf16.msra.mxu0 %v14853_v4  ;;  %v9374_v4 = vld [vmem:[#allocation7 + $0x50] sm:$0x1] }
 0xa30   : > { %9187 = vmatprep.subr.bf16.mxu0 %v14858_v0  ;;  %v9375_v54 = vsel %vm18343_vm8, 0, %v9374_v4  ;;  %v9371_v0 = vld [vmem:[#allocation7 + $0x128] sm:$0x80] }
 0xa31   : > { %9376 = vst [vmem:[#allocation7 + $0x50] sm:$0x1] %v9375_v54 }
 0xa32   : > { %9153 = vmatmul.mubr.bf16.gmra.mrb[68].mxu0 %v8760_v41  ;;  %v9372_v41 = vsel %vm18338_vm5, 0, %v9371_v0  ;;  %v9414_v0 = vld [vmem:[#allocation7 + $0x60] sm:$0x80] }
 0xa33   : > { %9162 = vmatprep.mubr.bf16.mxu0 %v18935_v30  ;;  %9188 = vmatpush1.bf16.msra.mxu0 %v14856_v58  ;;  %v14870_v30 = vld [vmem:[#allocation20 + $0x464] ss:$8 sps:$4 sm:$0xff]   ;;  %v9368_v58 = vld [vmem:[#allocation7 + $0x120] sm:$0x80]  ;;  %9373 = vst [vmem:[#allocation7 + $0x128] sm:$0x80] %v9372_v41 }
 0xa34   : > { %9189 = vmatprep.subr.bf16.mxu0 %v14861_v51  ;;  %v9369_v51 = vsel %vm18338_vm5, 0, %v9368_v58  ;;  %v14922_v58 = vld [vmem:[#allocation23 + $0x400] ss:$8 sps:$4 sm:$0xff]  }
 0xa35   : > { %9370 = vst [vmem:[#allocation7 + $0x120] sm:$0x80] %v9369_v51 }
 0xa37   : > { %9190 = vmatpush1.bf16.msra.mxu0 %v14859_v39  ;;  %v9380_v39 = vld [vmem:[#allocation7 + $0x80] sm:$0x1] }
 0xa38   : > { %9191 = vmatprep.subr.bf16.mxu0 %v14864_v8  ;;  %v9383_v8 = vld [vmem:[#allocation7 + $0x88] sm:$0x1]  ;;  %v9381_v12 = vsel %vm18343_vm8, 0, %v9380_v39 }
 0xa39   : > { %9382 = vst [vmem:[#allocation7 + $0x80] sm:$0x1] %v9381_v12  ;;  %v14927_v12 = vld [vmem:[#allocation23 + $0x414] ss:$8 sps:$4 sm:$0xff]  }
 0xa3a   : > { %9163 = vmatmul.mubr.bf16.gmra.mrb[72].mxu0 %v18939_v57  ;;  %v14871_v57 = vld [vmem:[#allocation20 + $0x470] ss:$8 sps:$4 sm:$0xff]  }
 0xa3b   : > { %9192 = vmatpush1.bf16.msra.mxu0 %v14862_v11  ;;  %9172 = vmatprep.mubr.bf16.mxu0 %v18972_v40  ;;  %v8778_v40 = vshrl.u32 %v7669_v60, 16  ;;  %v9384_v11 = vsel %vm18343_vm8, 0, %v9383_v8  ;;  %v9272_v60 = vld [vmem:[#allocation22] sm:$0x3] }
 0xa3c   : > { %9193 = vmatprep.subr.bf16.mxu0 %v14867_v47  ;;  %9385 = vst [vmem:[#allocation7 + $0x88] sm:$0x1] %v9384_v11  ;;  %v9389_v47 = vld [vmem:[#allocation7 + $0x118] sm:$0x1]  ;;  %v10038_v11 = vshrl.u32 %v9415_v63, 16 }
 0xa3d   : > { %v8780_v7 = vrot.slane %v8778_v40, 7  ;;  %v9390_v44 = vsel %vm18343_vm8, 0, %v9389_v47  ;;  %v14931_v63 = vld [vmem:[#allocation23 + $0x430] ss:$8 sps:$4 sm:$0xff]  }
 0xa3e   : > { %9391 = vst [vmem:[#allocation7 + $0x118] sm:$0x1] %v9390_v44 }
 0xa3f   : > { %9194 = vmatpush1.bf16.msra.mxu0 %v14865_v32  ;;  %v8783_v55 = vor.u32 %v8781_v35, %v8780_v7  ;;  %v9395_v32 = vld [vmem:[#allocation7 + $0x148] sm:$0x1] }
 0xa40   : > { %9195 = vmatprep.subr.bf16.mxu0 %v14870_v30  ;;  %v9396_v43 = vsel %vm18343_vm8, 0, %v9395_v32  ;;  %v9392_v30 = vld [vmem:[#allocation7 + $0x140] sm:$0x1]  ;;  %v10031_v32 = vshrl.u32 %v9414_v0, 16 }
 0xa41   : > { %v8784_v21 = vsel %vm693_vm2, %v19001_v48, %v8783_v55  ;;  %9397 = vst [vmem:[#allocation7 + $0x148] sm:$0x1] %v9396_v43  ;;  %v9393_v5 = vsel %vm18343_vm8, 0, %v9392_v30 }
 0xa42   : > { %9173 = vmatmul.mubr.bf16.gmra.mrb[76].mxu0 %v8791_v20  ;;  %9394 = vst [vmem:[#allocation7 + $0x140] sm:$0x1] %v9393_v5  ;;  %v9274_v20 = vlaneseq }
 0xa43   : > { %9196 = vmatpush1.bf16.msra.mxu0 %v14868_v6  ;;  %9215 = vmatprep.mubr.bf16.mxu0 %v18943_v52 }
 0xa44   : > { %9197 = vmatprep.subr.bf16.mxu0 %v14873_v9  ;;  %v19070_v6 = vshrl.u32 %v9274_v20, 7 }
 0xa46   : > { %v9276_v9 = vsub.s32 0, %v19070_v6 }
 0xa47   : > { %9198 = vmatpush1.bf16.msra.mxu0 %v14871_v57  ;;  %v9280_v57 = vsub.s32 1, %v19070_v6 }
 0xa48   : > { %v19076_v40 = vrot.slane %v9272_v60, %v9276_v9 }
 0xa49   : > { %v19080_v7 = vrot.slane %v9272_v60, %v9280_v57 }
 0xa4a   : > { %9216 = vmatmul.mubr.bf16.vlgmr.msra.gmra.mrb[64].mxu0 %v18961_v49  ;;  %v8814_v49 = vor.u32 %v8812_v14, %v8811_v3 }
 0xa4b   : > { %9225 = vmatprep.mubr.bf16.mxu0 %v18943_v52 }
 0xa4c   : > { %v8815_v53 = vsel %vm693_vm2, %v19001_v48, %v8814_v49  ;;  %v9411_v49 = vld [vmem:[#allocation7 + $0x38] sm:$0x80] }
 0xa4d   : > { %v9732_v17 = vshrl.u32 %v9411_v49, 16  ;;  %v10033_v49 = vrot.slane %v10031_v32, 7 }
 0xa4f   : > { %v9734_v15 = vrot.slane %v9732_v17, 7 }
 0xa52   : > { %9226 = vmatmul.mubr.bf16.gmra.mrb[68].mxu0 %v8784_v21 }
 0xa53   : > { %9235 = vmatprep.mubr.bf16.mxu0 %v18943_v52 }
 0xa5a   : > { %9236 = vmatmul.mubr.bf16.gmra.mrb[72].mxu0 %v18975_v59  ;;  %v9350_v59 = vld [vmem:[#allocation7 + $0x30] sm:$0x80] }
 0xa5b   : > { %9245 = vmatprep.mubr.bf16.mxu0 %v18943_v52  ;;  %v9378_v52 = vsel %vm18343_vm8, 0, %v9377_v29  ;;  %v9351_v48 = vsel %vm18338_vm5, 0, %v9350_v59 }
 0xa5c   : > { %9379 = vst [vmem:[#allocation7 + $0x58] sm:$0x1] %v9378_v52  ;;  %9352 = vst [vmem:[#allocation7 + $0x30] sm:$0x80] %v9351_v48 }
 0xa62   : > { %9246 = vmatmul.mubr.bf16.gmra.mrb[76].mxu0 %v8815_v53 }
 0xa63   : > { %v9410_v36 = vld [vmem:[#allocation7 + $0x30] sm:$0x80] }
 0xa64   : > { %v9725_v18 = vshrl.u32 %v9410_v36, 16 }
 0xa66   : > { %v9727_v33 = vrot.slane %v9725_v18, 7 }
 0xb1d   : > { %v9217_v35 = vpop.f32.mrb[64].mxu0 }
 0xb1e   : > { %v9284_v56 = vadd.f32 %v19076_v40, %v9217_v35  ;;  %v9219_v2 = vpop.f32.mrb[65].mxu0  ;;  %v14925_v35 = vld [vmem:[#allocation23 + $0x410] ss:$8 sps:$4 sm:$0xff]  }
 0xb1f   : > { %v9285_v55 = vadd.f32 %v19080_v7, %v9219_v2  ;;  %v9221_v61 = vpop.f32.mrb[66].mxu0 }
 0xb20   : > { %v9286_v21 = vadd.f32 %v19076_v40, %v9221_v61  ;;  %v9223_v31 = vpop.f32.mrb[67].mxu0  ;;  %v9300_v3 = vmax.f32 %v9284_v56, 0.0 }
 0xb21   : > { %v9287_v28 = vadd.f32 %v19080_v7, %v9223_v31  ;;  %v9301_v53 = vmax.f32 %v9285_v55, 0.0 }
 0xb22   : > { %v9302_v14 = vmax.f32 %v9286_v21, 0.0  ;;  %v10040_v21 = vrot.slane %v10038_v11, 7 }
 0xb23   : > { %v9303_v25 = vmax.f32 %v9287_v28, 0.0  ;;  %v14930_v28 = vld [vmem:[#allocation23 + $0x424] ss:$8 sps:$4 sm:$0xff]  }
 0xb24   : > { %v19086_v50 = vpack.c.bf16 %v9302_v14, %v9300_v3 }
 0xb25   : > { %v19088_v26 = vpack.c.bf16 %v9303_v25, %v9301_v53  ;;  %v9227_v24 = vpop.f32.mrb[68].mxu0  ;;  %v9427_v25 = vld [vmem:[#allocation7 + $0xf8] sm:$0x80] }
 0xb26   : > { %v9288_v29 = vadd.f32 %v19076_v40, %v9227_v24  ;;  %v9229_v59 = vpop.f32.mrb[69].mxu0  ;;  %v9492_v52 = vshrl.u32 %v19086_v50, 16  ;;  %v9485_v23 = vshll.u32 %v19086_v50, 16 }
 0xb27   : > { %v9289_v48 = vadd.f32 %v19080_v7, %v9229_v59  ;;  %v9231_v16 = vpop.f32.mrb[70].mxu0  ;;  %v9495_v34 = vshrl.u32 %v19088_v26, 16  ;;  %v9489_v27 = vshll.u32 %v19088_v26, 16 }
 0xb28   : > { %v9290_v46 = vadd.f32 %v19076_v40, %v9231_v16  ;;  %v9233_v1 = vpop.f32.mrb[71].mxu0  ;;  %v9728_v45 = vrot.slane %v9492_v52, 7  ;;  %v9304_v22 = vmax.f32 %v9288_v29, 0.0  ;;  %v9426_v29 = vld [vmem:[#allocation7 + $0xf0] sm:$0x80] }
 0xb29   : > { %v9291_v42 = vadd.f32 %v19080_v7, %v9233_v1  ;;  %v9735_v19 = vrot.slane %v9495_v34, 7  ;;  %v9305_v62 = vmax.f32 %v9289_v48, 0.0  ;;  %v19132_v59 = vrot.slane %v9489_v27, 1  ;;  %v14928_v48 = vld [vmem:[#allocation23 + $0x420] ss:$8 sps:$4 sm:$0xff]  }
 0xb2a   : > { %v9306_v10 = vmax.f32 %v9290_v46, 0.0  ;;  %v9729_v38 = vor.u32 %v9728_v45, %v9485_v23  ;;  %v14933_v45 = vld [vmem:[#allocation23 + $0x434] ss:$8 sps:$4 sm:$0xff]  }
 0xb2b   : > { %v9307_v4 = vmax.f32 %v9291_v42, 0.0  ;;  %v9736_v54 = vor.u32 %v9735_v19, %v9489_v27  ;;  %v9856_v42 = vshrl.u32 %v9427_v25, 16 }
 0xb2c   : > { %v19104_v41 = vpack.c.bf16 %v9306_v10, %v9304_v22  ;;  %v19114_v13 = vsel %vm693_vm2, %v9727_v33, %v9729_v38  ;;  %v9849_v10 = vshrl.u32 %v9426_v29, 16  ;;  %v14937_v29 = vld [vmem:[#allocation23 + $0x450] ss:$8 sps:$4 sm:$0xff]  }
 0xb2d   : > { %v19106_v51 = vpack.c.bf16 %v9307_v4, %v9305_v62  ;;  %v9237_v39 = vpop.f32.mrb[72].mxu0  ;;  %v19109_v8 = vsel %vm693_vm2, %v9734_v15, %v9736_v54  ;;  %v9497_v4 = vor.u32 %v9495_v34, %v19132_v59  ;;  %v9431_v34 = vld [vmem:[#allocation7 + $0x128] sm:$0x80] }
 0xb2e   : > { %v9292_v37 = vadd.f32 %v19076_v40, %v9237_v39  ;;  %v9239_v47 = vpop.f32.mrb[73].mxu0  ;;  %10774 = vmatprep.mubr.bf16.mxu1 %v19109_v8  ;;  %v9506_v44 = vshrl.u32 %v19104_v41, 16  ;;  %v9499_v56 = vshll.u32 %v19104_v41, 16 }
 0xb2f   : > { %v9293_v43 = vadd.f32 %v19080_v7, %v9239_v47  ;;  %v9241_v30 = vpop.f32.mrb[74].mxu0  ;;  %10775 = vmatmul.mubr.bf16.vlgmr.msra.gmra.mrb[112].mxu1 %v19114_v13  ;;  %v9509_v5 = vshrl.u32 %v19106_v51, 16  ;;  %v9503_v61 = vshll.u32 %v19106_v51, 16  ;;  %v9858_v47 = vrot.slane %v9856_v42, 7 }
 0xb30   : > { %v9294_v20 = vadd.f32 %v19076_v40, %v9241_v30  ;;  %v9243_v60 = vpop.f32.mrb[75].mxu0  ;;  %10816 = vmatpush1.bf16.msra.mxu1 %v14922_v58  ;;  %v10034_v2 = vrot.slane %v9506_v44, 7  ;;  %v9308_v3 = vmax.f32 %v9292_v37, 0.0  ;;  %v14936_v58 = vld [vmem:[#allocation23 + $0x444] ss:$8 sps:$4 sm:$0xff]   ;;  %v9851_v30 = vrot.slane %v9849_v10, 7 }
 0xb31   : > { %v9295_v55 = vadd.f32 %v19080_v7, %v9243_v60  ;;  %10817 = vmatprep.subr.bf16.mxu1 %v14927_v12  ;;  %v10041_v31 = vrot.slane %v9509_v5, 7  ;;  %v9309_v36 = vmax.f32 %v9293_v43, 0.0  ;;  %v9751_v10 = vshrl.u32 %v19132_v59, 16 }
 0xb32   : > { %v9310_v14 = vmax.f32 %v9294_v20, 0.0  ;;  %v10035_v53 = vor.u32 %v10034_v2, %v9499_v56 }
 0xb33   : > { %v9311_v24 = vmax.f32 %v9295_v55, 0.0  ;;  %v10042_v17 = vor.u32 %v10041_v31, %v9503_v61  ;;  %v9755_v55 = vshrl.u32 %v9497_v4, 16  ;;  %v14934_v31 = vld [vmem:[#allocation23 + $0x440] ss:$8 sps:$4 sm:$0xff]  }
 0xb34   : > { %v19134_v18 = vpack.c.bf16 %v9310_v14, %v9308_v3  ;;  %10818 = vmatpush1.bf16.msra.mxu1 %v14925_v35  ;;  %v19144_v27 = vsel %vm693_vm2, %v10033_v49, %v10035_v53  ;;  %v14939_v49 = vld [vmem:[#allocation23 + $0x454] ss:$8 sps:$4 sm:$0xff]  }
 0xb35   : > { %v19136_v16 = vpack.c.bf16 %v9311_v24, %v9309_v36  ;;  %v9247_v46 = vpop.f32.mrb[76].mxu0  ;;  %v19139_v1 = vsel %vm693_vm2, %v10040_v21, %v10042_v17  ;;  %10819 = vmatprep.subr.bf16.mxu1 %v14930_v28  ;;  %v10100_v28 = vshrl.u32 %v9431_v34, 16  ;;  %v9757_v17 = vrot.slane %v9755_v55, 7  ;;  %v14948_v34 = vld [vmem:[#allocation23 + $0x484] ss:$8 sps:$4 sm:$0xff]  }
 0xb36   : > { %v9296_v15 = vadd.f32 %v19076_v40, %v9247_v46  ;;  %v9249_v19 = vpop.f32.mrb[77].mxu0  ;;  %10784 = vmatprep.mubr.bf16.mxu1 %v19139_v1  ;;  %v9548_v22 = vshrl.u32 %v19134_v18, 16  ;;  %v9541_v39 = vshll.u32 %v19134_v18, 16  ;;  %v9487_v55 = vrot.slane %v9485_v23, 1 }
 0xb37   : > { %v9297_v33 = vadd.f32 %v19080_v7, %v9249_v19  ;;  %v9251_v38 = vpop.f32.mrb[78].mxu0  ;;  %10785 = vmatmul.mubr.bf16.gmra.mrb[116].mxu1 %v19144_v27  ;;  %v9551_v62 = vshrl.u32 %v19136_v16, 16  ;;  %v9545_v37 = vshll.u32 %v19136_v16, 16  ;;  %v14942_v19 = vld [vmem:[#allocation23 + $0x464] ss:$8 sps:$4 sm:$0xff]   ;;  %v9501_v23 = vrot.slane %v9499_v56, 1 }
 0xb38   : > { %v9298_v54 = vadd.f32 %v19076_v40, %v9251_v38  ;;  %v9253_v0 = vpop.f32.mrb[79].mxu0  ;;  %10820 = vmatpush1.bf16.msra.mxu1 %v14928_v48  ;;  %v9852_v12 = vrot.slane %v9548_v22, 7  ;;  %v9312_v43 = vmax.f32 %v9296_v15, 0.0  ;;  %v10102_v48 = vrot.slane %v10100_v28, 7  ;;  %v14958_v28 = vld [vmem:[#allocation23 + $0x4c0] ss:$8 sps:$4 sm:$0xff]  }
 0xb39   : > { %v9299_v11 = vadd.f32 %v19080_v7, %v9253_v0  ;;  %10821 = vmatprep.subr.bf16.mxu1 %v14933_v45  ;;  %v9859_v32 = vrot.slane %v9551_v62, 7  ;;  %v9313_v60 = vmax.f32 %v9297_v33, 0.0  ;;  %v9430_v7 = vld [vmem:[#allocation7 + $0x120] sm:$0x80]  ;;  %v9758_v33 = vshll.u32 %v9497_v4, 16 }
 0xb3a   : > { %v9314_v40 = vmax.f32 %v9298_v54, 0.0  ;;  %v9853_v20 = vor.u32 %v9852_v12, %v9541_v39  ;;  %v10093_v36 = vshrl.u32 %v9430_v7, 16  ;;  %v14960_v7 = vld [vmem:[#allocation23 + $0x4c4] ss:$8 sps:$4 sm:$0xff]  }
 0xb3b   : > { %v9315_v35 = vmax.f32 %v9299_v11, 0.0  ;;  %v9860_v2 = vor.u32 %v9859_v32, %v9545_v37  ;;  %v9760_v0 = vor.u32 %v9758_v33, %v9757_v17  ;;  %v9753_v11 = vrot.slane %v9751_v10, 7  ;;  %v14943_v32 = vld [vmem:[#allocation23 + $0x470] ss:$8 sps:$4 sm:$0xff]   ;;  %v14969_v10 = vld [vmem:[#allocation23 + $0x4f4] ss:$8 sps:$4 sm:$0xff]  }
 0xb3c   : > { %v19165_v21 = vpack.c.bf16 %v9314_v40, %v9312_v43  ;;  %10822 = vmatpush1.bf16.msra.mxu1 %v14931_v63  ;;  %v19175_v53 = vsel %vm693_vm2, %v9851_v30, %v9853_v20  ;;  %v10095_v38 = vrot.slane %v10093_v36, 7  ;;  %v14946_v43 = vld [vmem:[#allocation23 + $0x480] ss:$8 sps:$4 sm:$0xff]   ;;  %v14951_v40 = vld [vmem:[#allocation23 + $0x494] ss:$8 sps:$4 sm:$0xff]   ;;  %v9494_v36 = vor.u32 %v9492_v52, %v9487_v55 }
 0xb3d   : > { %v19167_v3 = vpack.c.bf16 %v9315_v35, %v9313_v60  ;;  %v19170_v14 = vsel %vm693_vm2, %v9858_v47, %v9860_v2  ;;  %10823 = vmatprep.subr.bf16.mxu1 %v14936_v58  ;;  %v14940_v58 = vld [vmem:[#allocation23 + $0x460] ss:$8 sps:$4 sm:$0xff]   ;;  %v14945_v47 = vld [vmem:[#allocation23 + $0x474] ss:$8 sps:$4 sm:$0xff]   ;;  %v19200_v4 = vsel %vm693_vm2, %v9753_v11, %v9760_v0  ;;  %v14949_v30 = vld [vmem:[#allocation23 + $0x490] ss:$8 sps:$4 sm:$0xff]  }
 0xb3e   : > { %9404 = vst [vmem:[#allocation7 + $0x130] sm:$0xff] %v19165_v21  ;;  %10794 = vmatprep.mubr.bf16.mxu1 %v19170_v14  ;;  %v9562_v25 = vshrl.u32 %v19165_v21, 16  ;;  %v9555_v46 = vshll.u32 %v19165_v21, 16  ;;  %v14954_v20 = vld [vmem:[#allocation23 + $0x4a4] ss:$8 sps:$4 sm:$0xff]   ;;  %v9746_v56 = vshll.u32 %v9494_v36, 16 }
 0xb3f   : > { %10795 = vmatmul.mubr.bf16.gmra.mrb[120].mxu1 %v19175_v53  ;;  %v9565_v24 = vshrl.u32 %v19167_v3, 16  ;;  %v9559_v42 = vshll.u32 %v19167_v3, 16  ;;  %v14952_v60 = vld [vmem:[#allocation23 + $0x4a0] ss:$8 sps:$4 sm:$0xff]   ;;  %v14957_v35 = vld [vmem:[#allocation23 + $0x4b4] ss:$8 sps:$4 sm:$0xff]  }
 0xb40   : > { %10824 = vmatpush1.bf16.msra.mxu1 %v14934_v31  ;;  %v10096_v45 = vrot.slane %v9562_v25, 7  ;;  %v14955_v2 = vld [vmem:[#allocation23 + $0x4b0] ss:$8 sps:$4 sm:$0xff]   ;;  %v9505_v31 = vrot.slane %v9503_v61, 1  ;;  %v9547_v61 = vrot.slane %v9545_v37, 1 }
 0xb41   : > { %10825 = vmatprep.subr.bf16.mxu1 %v14939_v49  ;;  %v10103_v15 = vrot.slane %v9565_v24, 7  ;;  %v14963_v49 = vld [vmem:[#allocation23 + $0x4d4] ss:$8 sps:$4 sm:$0xff]   ;;  %v14972_v0 = vld [vmem:[#allocation23 + $0x504] ss:$8 sps:$4 sm:$0xff]  }
 0xb42   : > { %v10097_v63 = vor.u32 %v10096_v45, %v9555_v46  ;;  %v9511_v17 = vor.u32 %v9509_v5, %v9505_v31  ;;  %v9743_v45 = vshrl.u32 %v9494_v36, 16  ;;  %v9508_v5 = vor.u32 %v9506_v44, %v9501_v23 }
 0xb43   : > { %v10104_v54 = vor.u32 %v10103_v15, %v9559_v42  ;;  %v9561_v44 = vrot.slane %v9559_v42, 1  ;;  %v9875_v36 = vshrl.u32 %v9547_v61, 16 }
 0xb44   : > { %10826 = vmatpush1.bf16.msra.mxu1 %v14937_v29  ;;  %v19196_v59 = vsel %vm693_vm2, %v10095_v38, %v10097_v63  ;;  %v14961_v29 = vld [vmem:[#allocation23 + $0x4d0] ss:$8 sps:$4 sm:$0xff]   ;;  %v10061_v15 = vshrl.u32 %v9511_v17, 16  ;;  %v9745_v52 = vrot.slane %v9743_v45, 7  ;;  %v9553_v38 = vor.u32 %v9551_v62, %v9547_v61 }
 0xb45   : > { %v19192_v12 = vsel %vm693_vm2, %v10102_v48, %v10104_v54  ;;  %10827 = vmatprep.subr.bf16.mxu1 %v14942_v19  ;;  %v14966_v48 = vld [vmem:[#allocation23 + $0x4e4] ss:$8 sps:$4 sm:$0xff]   ;;  %v14964_v19 = vld [vmem:[#allocation23 + $0x4e0] ss:$8 sps:$4 sm:$0xff]   ;;  %v14967_v63 = vld [vmem:[#allocation23 + $0x4f0] ss:$8 sps:$4 sm:$0xff]   ;;  %v9567_v42 = vor.u32 %v9565_v24, %v9561_v44 }
 0xb46   : > { %10804 = vmatprep.mubr.bf16.mxu1 %v19192_v12  ;;  %v10063_v33 = vrot.slane %v10061_v15, 7  ;;  %v9739_v54 = vshrl.u32 %v9487_v55, 16  ;;  %v10064_v37 = vshll.u32 %v9511_v17, 16  ;;  %v9748_v11 = vor.u32 %v9746_v56, %v9745_v52  ;;  %v14973_v55 = vld [vmem:[#allocation23 + $0x510] ss:$8 sps:$4 sm:$0xff]  }
 0xb47   : > { %10805 = vmatmul.mubr.bf16.gmra.mrb[124].mxu1 %v19196_v59  ;;  %v9882_v17 = vshll.u32 %v9553_v38, 16  ;;  %v9557_v45 = vrot.slane %v9555_v46, 1  ;;  %v9621_v52 = vrot.slane %v19088_v26, 1  ;;  %v14979_v26 = vld [vmem:[#allocation23 + $0x530] ss:$8 sps:$4 sm:$0xff]  }
 0xb48   : > { %10828 = vmatpush1.bf16.msra.mxu1 %v14940_v58  ;;  %10847 = vmatprep.mubr.bf16.mxu1 %v19200_v4  ;;  %v10057_v58 = vshrl.u32 %v9505_v31, 16  ;;  %v9741_v62 = vrot.slane %v9739_v54, 7  ;;  %v10045_v31 = vshrl.u32 %v9501_v23, 16  ;;  %v9877_v23 = vrot.slane %v9875_v36, 7 }
 0xb49   : > { %10829 = vmatprep.subr.bf16.mxu1 %v14945_v47  ;;  %v10049_v47 = vshrl.u32 %v9508_v5, 16 }
 0xb4a   : > { %v10047_v24 = vrot.slane %v10045_v31, 7  ;;  %v14990_v31 = vld [vmem:[#allocation23 + $0x564] ss:$8 sps:$4 sm:$0xff]  }
 0xb4c   : > { %10830 = vmatpush1.bf16.msra.mxu1 %v14943_v32  ;;  %v9543_v32 = vrot.slane %v9541_v39, 1 }
 0xb4d   : > { %10831 = vmatprep.subr.bf16.mxu1 %v14948_v34  ;;  %v10066_v34 = vor.u32 %v10064_v37, %v10063_v33  ;;  %v14984_v37 = vld [vmem:[#allocation23 + $0x544] ss:$8 sps:$4 sm:$0xff]  }
 0xb4e   : > { %v9863_v56 = vshrl.u32 %v9543_v32, 16 }
 0xb50   : > { %10832 = vmatpush1.bf16.msra.mxu1 %v14946_v43  ;;  %v9879_v43 = vshrl.u32 %v9553_v38, 16 }
 0xb51   : > { %10833 = vmatprep.subr.bf16.mxu1 %v14951_v40  ;;  %v14970_v40 = vld [vmem:[#allocation23 + $0x500] ss:$8 sps:$4 sm:$0xff]  }
 0xb54   : > { %10834 = vmatpush1.bf16.msra.mxu1 %v14949_v30  ;;  %v10059_v30 = vrot.slane %v10057_v58, 7 }
 0xb55   : > { %10835 = vmatprep.subr.bf16.mxu1 %v14954_v20  ;;  %v14975_v20 = vld [vmem:[#allocation23 + $0x514] ss:$8 sps:$4 sm:$0xff]  }
 0xb56   : > { %v19230_v39 = vsel %vm693_vm2, %v10059_v30, %v10066_v34 }
 0xb58   : > { %10836 = vmatpush1.bf16.msra.mxu1 %v14952_v60  ;;  %v19224_v60 = vsel %vm693_vm2, %v9741_v62, %v9748_v11  ;;  %v10119_v11 = vshrl.u32 %v9561_v44, 16  ;;  %v9865_v62 = vrot.slane %v9863_v56, 7  ;;  %v15008_v56 = vld [vmem:[#allocation23 + $0x5c4] ss:$8 sps:$4 sm:$0xff]  }
 0xb59   : > { %10837 = vmatprep.subr.bf16.mxu1 %v14957_v35  ;;  %v10051_v35 = vrot.slane %v10049_v47, 7  ;;  %v10126_v47 = vshll.u32 %v9567_v42, 16 }
 0xb5a   : > { %v10121_v30 = vrot.slane %v10119_v11, 7  ;;  %v15006_v11 = vld [vmem:[#allocation23 + $0x5c0] ss:$8 sps:$4 sm:$0xff]  }
 0xb5c   : > { %10838 = vmatpush1.bf16.msra.mxu1 %v14955_v2  ;;  %v9550_v2 = vor.u32 %v9548_v22, %v9543_v32  ;;  %v9445_v22 = vld [vmem:[#allocation7 + $0x58] sm:$0x1] }
 0xb5d   : > { %10839 = vmatprep.subr.bf16.mxu1 %v14960_v7  ;;  %v9881_v7 = vrot.slane %v9879_v43, 7  ;;  %v9624_v33 = vrot.slane %v9445_v22, 1 }
 0xb5f   : > { %v9884_v15 = vor.u32 %v9882_v17, %v9881_v7  ;;  %v9625_v58 = vsel %vm1175_vm4, %v9621_v52, %v9624_v33  ;;  %v14985_v7 = vld [vmem:[#allocation23 + $0x550] ss:$8 sps:$4 sm:$0xff]   ;;  %v14999_v33 = vld [vmem:[#allocation23 + $0x594] ss:$8 sps:$4 sm:$0xff]  }
 0xb60   : > { %10840 = vmatpush1.bf16.msra.mxu1 %v14958_v28  ;;  %v10052_v28 = vshll.u32 %v9508_v5, 16  ;;  %v14981_v5 = vld [vmem:[#allocation23 + $0x534] ss:$8 sps:$4 sm:$0xff]   ;;  %v9779_v43 = vshrl.u32 %v9625_v58, 16 }
 0xb61   : > { %10841 = vmatprep.subr.bf16.mxu1 %v14963_v49  ;;  %v14978_v49 = vld [vmem:[#allocation23 + $0x524] ss:$8 sps:$4 sm:$0xff]   ;;  %v19245_v46 = vsel %vm693_vm2, %v9877_v23, %v9884_v15  ;;  %v14993_v15 = vld [vmem:[#allocation23 + $0x574] ss:$8 sps:$4 sm:$0xff]   ;;  %v14997_v23 = vld [vmem:[#allocation23 + $0x590] ss:$8 sps:$4 sm:$0xff]  }
 0xb62   : > { %v9781_v44 = vrot.slane %v9779_v43, 7  ;;  %v15009_v43 = vld [vmem:[#allocation23 + $0x5d0] ss:$8 sps:$4 sm:$0xff]  }
 0xb64   : > { %10842 = vmatpush1.bf16.msra.mxu1 %v14961_v29  ;;  %v10054_v29 = vor.u32 %v10052_v28, %v10051_v35  ;;  %v9775_v28 = vshrl.u32 %v9621_v52, 16  ;;  %v14994_v52 = vld [vmem:[#allocation23 + $0x580] ss:$8 sps:$4 sm:$0xff]  }
 0xb65   : > { %10843 = vmatprep.subr.bf16.mxu1 %v14966_v48  ;;  %v9867_v48 = vshrl.u32 %v9550_v2, 16 }
 0xb66   : > { %v19239_v61 = vsel %vm693_vm2, %v10047_v24, %v10054_v29  ;;  %v14988_v29 = vld [vmem:[#allocation23 + $0x560] ss:$8 sps:$4 sm:$0xff]   ;;  %v14991_v24 = vld [vmem:[#allocation23 + $0x570] ss:$8 sps:$4 sm:$0xff]  }
 0xb67   : > { %v9869_v38 = vrot.slane %v9867_v48, 7  ;;  %v9777_v48 = vrot.slane %v9775_v28, 7 }
 0xb68   : > { %10844 = vmatpush1.bf16.msra.mxu1 %v14964_v19  ;;  %v10123_v19 = vshrl.u32 %v9567_v42, 16  ;;  %v10107_v42 = vshrl.u32 %v9557_v45, 16 }
 0xb69   : > { %10845 = vmatprep.subr.bf16.mxu1 %v14969_v10  ;;  %v14976_v10 = vld [vmem:[#allocation23 + $0x520] ss:$8 sps:$4 sm:$0xff]  }
 0xb6a   : > { %v10125_v54 = vrot.slane %v10123_v19, 7  ;;  %v10109_v22 = vrot.slane %v10107_v42, 7  ;;  %v9645_v42 = vrot.slane %v19136_v16, 1 }
 0xb6c   : > { %10846 = vmatpush1.bf16.msra.mxu1 %v14967_v63  ;;  %v9564_v63 = vor.u32 %v9562_v25, %v9557_v45  ;;  %v10128_v34 = vor.u32 %v10126_v47, %v10125_v54  ;;  %v15003_v54 = vld [vmem:[#allocation23 + $0x5b0] ss:$8 sps:$4 sm:$0xff]   ;;  %v9627_v47 = vrot.slane %v19106_v51, 1  ;;  %v15012_v51 = vld [vmem:[#allocation23 + $0x5e0] ss:$8 sps:$4 sm:$0xff]  }
 0xb6d   : > { %10888 = vmatprep.subr.bf16.mxu1 %v14972_v0  ;;  %v9870_v0 = vshll.u32 %v9550_v2, 16 }
 0xb6e   : > { %v10111_v25 = vshrl.u32 %v9564_v63, 16  ;;  %v19254_v2 = vsel %vm693_vm2, %v10121_v30, %v10128_v34  ;;  %v15014_v30 = vld [vmem:[#allocation23 + $0x5e4] ss:$8 sps:$4 sm:$0xff]  }
 0xb6f   : > { %10848 = vmatmul.mubr.bf16.vlgmr.msra.gmra.mrb[112].mxu1 %v19224_v60  ;;  %v9872_v21 = vor.u32 %v9870_v0, %v9869_v38  ;;  %v15000_v38 = vld [vmem:[#allocation23 + $0x5a0] ss:$8 sps:$4 sm:$0xff]  }
 0xb70   : > { %10857 = vmatprep.mubr.bf16.mxu1 %v19230_v39  ;;  %10889 = vmatpush1.bf16.msra.mxu1 %v14970_v40  ;;  %v14982_v40 = vld [vmem:[#allocation23 + $0x540] ss:$8 sps:$4 sm:$0xff]   ;;  %v10113_v32 = vrot.slane %v10111_v25, 7  ;;  %v15011_v25 = vld [vmem:[#allocation23 + $0x5d4] ss:$8 sps:$4 sm:$0xff]  }
 0xb71   : > { %10890 = vmatprep.subr.bf16.mxu1 %v14975_v20  ;;  %v14987_v20 = vld [vmem:[#allocation23 + $0x554] ss:$8 sps:$4 sm:$0xff]   ;;  %v19250_v35 = vsel %vm693_vm2, %v9865_v62, %v9872_v21  ;;  %v9449_v0 = vld [vmem:[#allocation7 + $0x88] sm:$0x1] }
 0xb72   : > { %v9630_v21 = vrot.slane %v9449_v0, 1 }
 0xb74   : > { %10891 = vmatpush1.bf16.msra.mxu1 %v14973_v55  ;;  %v10114_v55 = vshll.u32 %v9564_v63, 16  ;;  %v15005_v63 = vld [vmem:[#allocation23 + $0x5b4] ss:$8 sps:$4 sm:$0xff]   ;;  %v9631_v62 = vsel %vm1175_vm4, %v9627_v47, %v9630_v21 }
 0xb75   : > { %10892 = vmatprep.subr.bf16.mxu1 %v14978_v49  ;;  %v9782_v49 = vshll.u32 %v9625_v58, 16  ;;  %v9620_v58 = vrot.slane %v19086_v50, 1  ;;  %v10085_v50 = vshrl.u32 %v9631_v62, 16 }
 0xb76   : > { %v10116_v36 = vor.u32 %v10114_v55, %v10113_v32 }
 0xb77   : > { %10858 = vmatmul.mubr.bf16.gmra.mrb[116].mxu1 %v19239_v61  ;;  %v9784_v17 = vor.u32 %v9782_v49, %v9781_v44  ;;  %v9626_v44 = vrot.slane %v19104_v41, 1  ;;  %v10087_v49 = vrot.slane %v10085_v50, 7  ;;  %v15020_v41 = vld [vmem:[#allocation23 + $0x4] ss:$8 sps:$4 sm:$0xff]  }
 0xb78   : > { %10867 = vmatprep.mubr.bf16.mxu1 %v19245_v46  ;;  %10893 = vmatpush1.bf16.msra.mxu1 %v14976_v10  ;;  %v19258_v19 = vsel %vm693_vm2, %v10109_v22, %v10116_v36  ;;  %v14996_v10 = vld [vmem:[#allocation23 + $0x584] ss:$8 sps:$4 sm:$0xff]   ;;  %v9763_v22 = vshrl.u32 %v9620_v58, 16 }
 0xb79   : > { %10894 = vmatprep.subr.bf16.mxu1 %v14981_v5  ;;  %v19262_v45 = vsel %vm693_vm2, %v9777_v48, %v9784_v17  ;;  %v15002_v5 = vld [vmem:[#allocation23 + $0x5a4] ss:$8 sps:$4 sm:$0xff]   ;;  %v15015_v17 = vld [vmem:[#allocation23 + $0x5f0] ss:$8 sps:$4 sm:$0xff]  }
 0xb7c   : > { %10895 = vmatpush1.bf16.msra.mxu1 %v14979_v26  ;;  %v9444_v26 = vld [vmem:[#allocation7 + $0x50] sm:$0x1] }
 0xb7d   : > { %10896 = vmatprep.subr.bf16.mxu1 %v14984_v37  ;;  %v9622_v37 = vrot.slane %v9444_v26, 1  ;;  %v15018_v26 = vld [vmem:[#allocation23] ss:$8 sps:$4 sm:$0xff]  }
 0xb7f   : > { %10868 = vmatmul.mubr.bf16.gmra.mrb[120].mxu1 %v19250_v35  ;;  %v9623_v34 = vsel %vm1175_vm4, %v9620_v58, %v9622_v37  ;;  %v15023_v37 = vld [vmem:[#allocation23 + $0x14] ss:$8 sps:$4 sm:$0xff]  }
 0xb80   : > { %10877 = vmatprep.mubr.bf16.mxu1 %v19254_v2  ;;  %10897 = vmatpush1.bf16.msra.mxu1 %v14982_v40  ;;  %v9448_v40 = vld [vmem:[#allocation7 + $0x80] sm:$0x1]  ;;  %v9767_v32 = vshrl.u32 %v9623_v34, 16 }
 0xb81   : > { %10898 = vmatprep.subr.bf16.mxu1 %v14987_v20  ;;  %v9461_v20 = vld [vmem:[#allocation7 + $0x118] sm:$0x1] }
 0xb82   : > { %v9648_v55 = vrot.slane %v9461_v20, 1  ;;  %v9769_v28 = vrot.slane %v9767_v32, 7  ;;  %v15026_v20 = vld [vmem:[#allocation23 + $0x24] ss:$8 sps:$4 sm:$0xff]   ;;  %v9899_v32 = vshrl.u32 %v9645_v42, 16 }
 0xb84   : > { %10899 = vmatpush1.bf16.msra.mxu1 %v14985_v7  ;;  %v9628_v7 = vrot.slane %v9448_v40, 1  ;;  %v9649_v48 = vsel %vm1175_vm4, %v9645_v42, %v9648_v55 }
 0xb85   : > { %10900 = vmatprep.subr.bf16.mxu1 %v14990_v31  ;;  %v15017_v31 = vld [vmem:[#allocation23 + $0x5f4] ss:$8 sps:$4 sm:$0xff]   ;;  %v9906_v50 = vshll.u32 %v9649_v48, 16 }
 0xb86   : > { %v9629_v36 = vsel %vm1175_vm4, %v9626_v44, %v9628_v7 }
 0xb87   : > { %10878 = vmatmul.mubr.bf16.gmra.mrb[124].mxu1 %v19258_v19 }
 0xb88   : > { %10901 = vmatpush1.bf16.msra.mxu1 %v14988_v29  ;;  %10920 = vmatprep.mubr.bf16.mxu1 %v19262_v45  ;;  %v9770_v29 = vshll.u32 %v9623_v34, 16  ;;  %v9464_v34 = vld [vmem:[#allocation7 + $0x140] sm:$0x1] }
 0xb89   : > { %10902 = vmatprep.subr.bf16.mxu1 %v14993_v15  ;;  %v9460_v15 = vld [vmem:[#allocation7 + $0x110] sm:$0x1] }
 0xb8a   : > { %v9772_v16 = vor.u32 %v9770_v29, %v9769_v28  ;;  %v9901_v29 = vrot.slane %v9899_v32, 7  ;;  %v15038_v32 = vld [vmem:[#allocation23 + $0x64] ss:$8 sps:$4 sm:$0xff]  }
 0xb8c   : > { %10903 = vmatpush1.bf16.msra.mxu1 %v14991_v24  ;;  %v10081_v24 = vshrl.u32 %v9627_v47, 16 }
 0xb8d   : > { %10904 = vmatprep.subr.bf16.mxu1 %v14996_v10  ;;  %v10088_v10 = vshll.u32 %v9631_v62, 16  ;;  %v10076_v62 = vshll.u32 %v9629_v36, 16 }
 0xb8e   : > { %v10083_v58 = vrot.slane %v10081_v24, 7  ;;  %v15027_v24 = vld [vmem:[#allocation23 + $0x30] ss:$8 sps:$4 sm:$0xff]  }
 0xb90   : > { %10905 = vmatpush1.bf16.msra.mxu1 %v14994_v52  ;;  %v9465_v52 = vld [vmem:[#allocation7 + $0x148] sm:$0x1] }
 0xb91   : > { %10906 = vmatprep.subr.bf16.mxu1 %v14999_v33  ;;  %v10073_v33 = vshrl.u32 %v9629_v36, 16  ;;  %v9654_v0 = vrot.slane %v9465_v52, 1 }
 0xb93   : > { %v10075_v47 = vrot.slane %v10073_v33, 7 }
 0xb94   : > { %10907 = vmatpush1.bf16.msra.mxu1 %v14997_v23  ;;  %v10090_v23 = vor.u32 %v10088_v10, %v10087_v49  ;;  %v9652_v49 = vrot.slane %v9464_v34, 1  ;;  %v15035_v34 = vld [vmem:[#allocation23 + $0x54] ss:$8 sps:$4 sm:$0xff]  }
 0xb95   : > { %10908 = vmatprep.subr.bf16.mxu1 %v15002_v5  ;;  %v9903_v5 = vshrl.u32 %v9649_v48, 16  ;;  %v10078_v7 = vor.u32 %v10076_v62, %v10075_v47  ;;  %v15030_v47 = vld [vmem:[#allocation23 + $0x40] ss:$8 sps:$4 sm:$0xff]  }
 0xb96   : > { %v19280_v21 = vsel %vm693_vm2, %v10083_v58, %v10090_v23 }
 0xb98   : > { %10909 = vmatpush1.bf16.msra.mxu1 %v15000_v38  ;;  %v9644_v38 = vrot.slane %v19134_v18, 1  ;;  %v9905_v18 = vrot.slane %v9903_v5, 7  ;;  %v19294_v5 = vld [vmem:[#allocation5] sm:$0xff] }
 0xb99   : > { %10910 = vmatprep.subr.bf16.mxu1 %v15005_v63  ;;  %v9646_v63 = vrot.slane %v9460_v15, 1 }
 0xb9a   : > { %v9908_v55 = vor.u32 %v9906_v50, %v9905_v18  ;;  %v9887_v10 = vshrl.u32 %v9644_v38, 16 }
 0xb9c   : > { %10911 = vmatpush1.bf16.msra.mxu1 %v15003_v54  ;;  %v9765_v54 = vrot.slane %v9763_v22, 7  ;;  %v15024_v22 = vld [vmem:[#allocation23 + $0x20] ss:$8 sps:$4 sm:$0xff]   ;;  %v19290_v42 = vsel %vm693_vm2, %v9901_v29, %v9908_v55  ;;  %v15044_v29 = vld [vmem:[#allocation23 + $0x84] ss:$8 sps:$4 sm:$0xff]  }
 0xb9d   : > { %10912 = vmatprep.subr.bf16.mxu1 %v15008_v56  ;;  %v9651_v56 = vrot.slane %v19167_v3, 1  ;;  %v15021_v3 = vld [vmem:[#allocation23 + $0x10] ss:$8 sps:$4 sm:$0xff]  }
 0xb9f   : > { %v9655_v40 = vsel %vm1175_vm4, %v9651_v56, %v9654_v0  ;;  %v10143_v33 = vshrl.u32 %v9651_v56, 16  ;;  %v9407_v0 = vld [vmem:[#allocation7 + $0x8] sm:$0x80] }
 0xba0   : > { %10913 = vmatpush1.bf16.msra.mxu1 %v15006_v11  ;;  %v19276_v11 = vsel %vm693_vm2, %v9765_v54, %v9772_v16  ;;  %v15032_v16 = vld [vmem:[#allocation23 + $0x44] ss:$8 sps:$4 sm:$0xff]   ;;  %v10150_v23 = vshll.u32 %v9655_v40, 16 }
 0xba1   : > { %10914 = vmatprep.subr.bf16.mxu1 %v15011_v25  ;;  %v9647_v25 = vsel %vm1175_vm4, %v9644_v38, %v9646_v63  ;;  %v9481_v63 = vshrl.u32 %v19294_v5, 16  ;;  %v10145_v18 = vrot.slane %v10143_v33, 7  ;;  %v9475_v38 = vshll.u32 %v19294_v5, 16  ;;  %v15054_v33 = vld [vmem:[#allocation23 + $0xc0] ss:$8 sps:$4 sm:$0xff]  }
 0xba2   : > { %v9894_v52 = vshll.u32 %v9647_v25, 16 }
 0xba3   : > { %v9673_v56 = vrot.slane %v9481_v63, 7 }
 0xba4   : > { %10915 = vmatpush1.bf16.msra.mxu1 %v15009_v43  ;;  %v10069_v43 = vshrl.u32 %v9626_v44, 16  ;;  %v15029_v44 = vld [vmem:[#allocation23 + $0x34] ss:$8 sps:$4 sm:$0xff]  }
 0xba5   : > { %10916 = vmatprep.subr.bf16.mxu1 %v15014_v30  ;;  %v9462_v30 = vld [vmem:[#allocation7 + $0x130] sm:$0xff] }
 0xba6   : > { %v9650_v28 = vrot.slane %v9462_v30, 1 }
 0xba8   : > { %10917 = vmatpush1.bf16.msra.mxu1 %v15012_v51  ;;  %v9891_v51 = vshrl.u32 %v9647_v25, 16  ;;  %v9670_v25 = vshrl.u32 %v9407_v0, 16  ;;  %v10131_v30 = vshrl.u32 %v9650_v28, 16  ;;  %v9406_v0 = vld [vmem:[#allocation7] sm:$0x80] }
 0xba9   : > { %10918 = vmatprep.subr.bf16.mxu1 %v15017_v31  ;;  %v10147_v31 = vshrl.u32 %v9655_v40, 16  ;;  %v15033_v40 = vld [vmem:[#allocation23 + $0x50] ss:$8 sps:$4 sm:$0xff]  }
 0xbaa   : > { %v9893_v15 = vrot.slane %v9891_v51, 7  ;;  %v9672_v50 = vrot.slane %v9670_v25, 7  ;;  %v10133_v55 = vrot.slane %v10131_v30, 7  ;;  %v15068_v25 = vld [vmem:[#allocation23 + $0x104] ss:$8 sps:$4 sm:$0xff]  }
 0xbab   : > { %v10149_v48 = vrot.slane %v10147_v31, 7  ;;  %v15036_v31 = vld [vmem:[#allocation23 + $0x60] ss:$8 sps:$4 sm:$0xff]   ;;  %v15071_v30 = vld [vmem:[#allocation23 + $0x114] ss:$8 sps:$4 sm:$0xff]  }
 0xbac   : > { %10919 = vmatpush1.bf16.msra.mxu1 %v15015_v17  ;;  %v10071_v17 = vrot.slane %v10069_v43, 7  ;;  %v9896_v54 = vor.u32 %v9894_v52, %v9893_v15  ;;  %v15047_v15 = vld [vmem:[#allocation23 + $0x94] ss:$8 sps:$4 sm:$0xff]   ;;  %v15051_v52 = vld [vmem:[#allocation23 + $0xb0] ss:$8 sps:$4 sm:$0xff]  }
 0xbad   : > { %11441 = vmatprep.subr.bf16.mxu1 %v15020_v41  ;;  %v9653_v41 = vsel %vm1175_vm4, %v9650_v28, %v9652_v49  ;;  %v10152_v58 = vor.u32 %v10150_v23, %v10149_v48  ;;  %v15041_v49 = vld [vmem:[#allocation23 + $0x74] ss:$8 sps:$4 sm:$0xff]   ;;  %v15039_v28 = vld [vmem:[#allocation23 + $0x70] ss:$8 sps:$4 sm:$0xff]  }
 0xbae   : > { %v19286_v36 = vsel %vm693_vm2, %v10071_v17, %v10078_v7  ;;  %v19310_v7 = vor.u32 %v9673_v56, %v9475_v38  ;;  %v15045_v48 = vld [vmem:[#allocation23 + $0x90] ss:$8 sps:$4 sm:$0xff]   ;;  %v15059_v23 = vld [vmem:[#allocation23 + $0xd4] ss:$8 sps:$4 sm:$0xff]  }
 0xbaf   : > { %10921 = vmatmul.mubr.bf16.vlgmr.msra.gmra.mrb[112].mxu1 %v19276_v11  ;;  %v19305_v62 = vsel %vm693_vm2, %v10145_v18, %v10152_v58  ;;  %v15060_v58 = vld [vmem:[#allocation23 + $0xe0] ss:$8 sps:$4 sm:$0xff]   ;;  %v15063_v18 = vld [vmem:[#allocation23 + $0xf0] ss:$8 sps:$4 sm:$0xff]  }
 0xbb0   : > { %10930 = vmatprep.mubr.bf16.mxu1 %v19280_v21  ;;  %11442 = vmatpush1.bf16.msra.mxu1 %v15018_v26  ;;  %v10135_v26 = vshrl.u32 %v9653_v41, 16  ;;  %v9675_v17 = vsel %vm693_vm2, %v9672_v50, %v19310_v7  ;;  %v9423_v56 = vld [vmem:[#allocation7 + $0xc8] sm:$0x80]  ;;  %v15074_v50 = vld [vmem:[#allocation23 + $0x124] ss:$8 sps:$4 sm:$0xff]  }
 0xbb1   : > { %11443 = vmatprep.subr.bf16.mxu1 %v15023_v37  ;;  %v9889_v37 = vrot.slane %v9887_v10, 7  ;;  %v15053_v10 = vld [vmem:[#allocation23 + $0xb4] ss:$8 sps:$4 sm:$0xff]  }
 0xbb2   : > { %v10137_v43 = vrot.slane %v10135_v26, 7  ;;  %v15062_v26 = vld [vmem:[#allocation23 + $0xe4] ss:$8 sps:$4 sm:$0xff]  }
 0xbb4   : > { %11444 = vmatpush1.bf16.msra.mxu1 %v15021_v3  ;;  %v19301_v3 = vsel %vm693_vm2, %v9889_v37, %v9896_v54  ;;  %v15057_v54 = vld [vmem:[#allocation23 + $0xd0] ss:$8 sps:$4 sm:$0xff]   ;;  %v9663_v37 = vshrl.u32 %v9406_v0, 16  ;;  %v15089_v0 = vld [vmem:[#allocation23 + $0x174] ss:$8 sps:$4 sm:$0xff]  }
 0xbb5   : > { %11445 = vmatprep.subr.bf16.mxu1 %v15026_v20  ;;  %v10138_v20 = vshll.u32 %v9653_v41, 16  ;;  %v15050_v41 = vld [vmem:[#allocation23 + $0xa4] ss:$8 sps:$4 sm:$0xff]  }
 0xbb7   : > { %10931 = vmatmul.mubr.bf16.gmra.mrb[116].mxu1 %v19286_v36  ;;  %v10140_v51 = vor.u32 %v10138_v20, %v10137_v43  ;;  %v9794_v20 = vshrl.u32 %v9423_v56, 16  ;;  %v15096_v56 = vld [vmem:[#allocation23 + $0x1a0] ss:$8 sps:$4 sm:$0xff]  }
 0xbb8   : > { %10940 = vmatprep.mubr.bf16.mxu1 %v19290_v42  ;;  %11446 = vmatpush1.bf16.msra.mxu1 %v15024_v22 }
 0xbb9   : > { %11447 = vmatprep.subr.bf16.mxu1 %v15029_v44  ;;  %v19315_v22 = vsel %vm693_vm2, %v10133_v55, %v10140_v51  ;;  %v15042_v44 = vld [vmem:[#allocation23 + $0x80] ss:$8 sps:$4 sm:$0xff]   ;;  %v9796_v51 = vrot.slane %v9794_v20, 7  ;;  %v15107_v20 = vld [vmem:[#allocation23 + $0x1d4] ss:$8 sps:$4 sm:$0xff]  }
 0xbba   : > { %v9422_v55 = vld [vmem:[#allocation7 + $0xc0] sm:$0x80] }
 0xbbc   : > { %11448 = vmatpush1.bf16.msra.mxu1 %v15027_v24  ;;  %v15048_v24 = vld [vmem:[#allocation23 + $0xa0] ss:$8 sps:$4 sm:$0xff]  }
 0xbbd   : > { %11449 = vmatprep.subr.bf16.mxu1 %v15032_v16  ;;  %v15056_v16 = vld [vmem:[#allocation23 + $0xc4] ss:$8 sps:$4 sm:$0xff]  }
 0xbbf   : > { %10941 = vmatmul.mubr.bf16.gmra.mrb[120].mxu1 %v19301_v3 }
 0xbc0   : > { %10950 = vmatprep.mubr.bf16.mxu1 %v19305_v62  ;;  %11450 = vmatpush1.bf16.msra.mxu1 %v15030_v47  ;;  %v15065_v47 = vld [vmem:[#allocation23 + $0xf4] ss:$8 sps:$4 sm:$0xff]  }
 0xbc1   : > { %11451 = vmatprep.subr.bf16.mxu1 %v15035_v34  ;;  %v9665_v34 = vrot.slane %v9663_v37, 7  ;;  %v15087_v37 = vld [vmem:[#allocation23 + $0x170] ss:$8 sps:$4 sm:$0xff]  }
 0xbc3   : > { %v9668_v43 = vsel %vm693_vm2, %v9665_v34, %v19310_v7  ;;  %v15093_v34 = vld [vmem:[#allocation23 + $0x190] ss:$8 sps:$4 sm:$0xff]  }
 0xbc4   : > { %11452 = vmatpush1.bf16.msra.mxu1 %v15033_v40  ;;  %v15066_v40 = vld [vmem:[#allocation23 + $0x100] ss:$8 sps:$4 sm:$0xff]  }
 0xbc5   : > { %11453 = vmatprep.subr.bf16.mxu1 %v15038_v32  ;;  %v15069_v32 = vld [vmem:[#allocation23 + $0x110] ss:$8 sps:$4 sm:$0xff]  }
 0xbc7   : > { %10951 = vmatmul.mubr.bf16.gmra.mrb[124].mxu1 %v19315_v22 }
 0xbc8   : > { %11454 = vmatpush1.bf16.msra.mxu1 %v15036_v31  ;;  %11473 = vmatprep.mubr.bf16.mxu1 %v9675_v17  ;;  %v9477_v31 = vrot.slane %v9475_v38, 1  ;;  %v9787_v17 = vshrl.u32 %v9422_v55, 16  ;;  %v15113_v55 = vld [vmem:[#allocation23 + $0x1f4] ss:$8 sps:$4 sm:$0xff]  }
 0xbc9   : > { %11455 = vmatprep.subr.bf16.mxu1 %v15041_v49  ;;  %v15072_v49 = vld [vmem:[#allocation23 + $0x120] ss:$8 sps:$4 sm:$0xff]  }
 0xbcc   : > { %11456 = vmatpush1.bf16.msra.mxu1 %v15039_v28  ;;  %v15077_v28 = vld [vmem:[#allocation23 + $0x134] ss:$8 sps:$4 sm:$0xff]  }
 0xbcd   : > { %11457 = vmatprep.subr.bf16.mxu1 %v15044_v29  ;;  %v9799_v29 = vsel %vm693_vm2, %v9796_v51, %v19310_v7  ;;  %v15108_v51 = vld [vmem:[#allocation23 + $0x1e0] ss:$8 sps:$4 sm:$0xff]  }
 0xbd0   : > { %11458 = vmatpush1.bf16.msra.mxu1 %v15042_v44  ;;  %v15075_v44 = vld [vmem:[#allocation23 + $0x130] ss:$8 sps:$4 sm:$0xff]  }
 0xbd1   : > { %11459 = vmatprep.subr.bf16.mxu1 %v15047_v15  ;;  %v9789_v15 = vrot.slane %v9787_v17, 7  ;;  %v15114_v17 = vld [vmem:[#allocation23 + $0x200] ss:$8 sps:$4 sm:$0xff]  }
 0xbd4   : > { %11460 = vmatpush1.bf16.msra.mxu1 %v15045_v48  ;;  %v15080_v48 = vld [vmem:[#allocation23 + $0x144] ss:$8 sps:$4 sm:$0xff]  }
 0xbd5   : > { %11461 = vmatprep.subr.bf16.mxu1 %v15050_v41  ;;  %v9792_v41 = vsel %vm693_vm2, %v9789_v15, %v19310_v7  ;;  %v19339_v15 = vrot.slane %v19294_v5, 1  ;;  %v15126_v5 = vld [vmem:[#allocation23 + $0x240] ss:$8 sps:$4 sm:$0xff]  }
 0xbd8   : > { %11462 = vmatpush1.bf16.msra.mxu1 %v15048_v24  ;;  %v15078_v24 = vld [vmem:[#allocation23 + $0x140] ss:$8 sps:$4 sm:$0xff]  }
 0xbd9   : > { %11463 = vmatprep.subr.bf16.mxu1 %v15053_v10  ;;  %v15083_v10 = vld [vmem:[#allocation23 + $0x154] ss:$8 sps:$4 sm:$0xff]  }
 0xbdc   : > { %11464 = vmatpush1.bf16.msra.mxu1 %v15051_v52  ;;  %v9689_v52 = vshrl.u32 %v9477_v31, 16 }
 0xbdd   : > { %11465 = vmatprep.subr.bf16.mxu1 %v15056_v16 }
 0xbe0   : > { %11466 = vmatpush1.bf16.msra.mxu1 %v15054_v33 }
 0xbe1   : > { %11467 = vmatprep.subr.bf16.mxu1 %v15059_v23  ;;  %v9691_v23 = vrot.slane %v9689_v52, 7 }
 0xbe4   : > { %11468 = vmatpush1.bf16.msra.mxu1 %v15057_v54 }
 0xbe5   : > { %11469 = vmatprep.subr.bf16.mxu1 %v15062_v26  ;;  %v15084_v26 = vld [vmem:[#allocation23 + $0x160] ss:$8 sps:$4 sm:$0xff]  }
 0xbe8   : > { %11470 = vmatpush1.bf16.msra.mxu1 %v15060_v58 }
 0xbe9   : > { %11471 = vmatprep.subr.bf16.mxu1 %v15065_v47  ;;  %v15090_v47 = vld [vmem:[#allocation23 + $0x180] ss:$8 sps:$4 sm:$0xff]  }
 0xbec   : > { %11472 = vmatpush1.bf16.msra.mxu1 %v15063_v18  ;;  %v15095_v18 = vld [vmem:[#allocation23 + $0x194] ss:$8 sps:$4 sm:$0xff]  }
 0xbed   : > { %11514 = vmatprep.subr.bf16.mxu1 %v15068_v25  ;;  %v15098_v25 = vld [vmem:[#allocation23 + $0x1a4] ss:$8 sps:$4 sm:$0xff]  }
 0xbef   : > { %11474 = vmatmul.mubr.bf16.vlgmr.msra.gmra.mrb[112].mxu1 %v9668_v43  ;;  %v15101_v43 = vld [vmem:[#allocation23 + $0x1b4] ss:$8 sps:$4 sm:$0xff]  }
 0xbf0   : > { %11483 = vmatprep.mubr.bf16.mxu1 %v19109_v8  ;;  %11515 = vmatpush1.bf16.msra.mxu1 %v15066_v40  ;;  %v9483_v8 = vor.u32 %v9481_v63, %v9477_v31  ;;  %v15086_v63 = vld [vmem:[#allocation23 + $0x164] ss:$8 sps:$4 sm:$0xff]   ;;  %v15111_v31 = vld [vmem:[#allocation23 + $0x1f0] ss:$8 sps:$4 sm:$0xff]  }
 0xbf1   : > { %11516 = vmatprep.subr.bf16.mxu1 %v15071_v30  ;;  %v15104_v40 = vld [vmem:[#allocation23 + $0x1c4] ss:$8 sps:$4 sm:$0xff]   ;;  %v15102_v30 = vld [vmem:[#allocation23 + $0x1c0] ss:$8 sps:$4 sm:$0xff]  }
 0xbf2   : > { %v9693_v38 = vshrl.u32 %v9483_v8, 16  ;;  %v9696_v33 = vshll.u32 %v9483_v8, 16  ;;  %v15117_v8 = vld [vmem:[#allocation23 + $0x210] ss:$8 sps:$4 sm:$0xff]  }
 0xbf4   : > { %11517 = vmatpush1.bf16.msra.mxu1 %v15069_v32  ;;  %v9695_v16 = vrot.slane %v9693_v38, 7  ;;  %v15105_v32 = vld [vmem:[#allocation23 + $0x1d0] ss:$8 sps:$4 sm:$0xff]   ;;  %v15120_v38 = vld [vmem:[#allocation23 + $0x220] ss:$8 sps:$4 sm:$0xff]  }
 0xbf5   : > { %11518 = vmatprep.subr.bf16.mxu1 %v15074_v50  ;;  %v15110_v50 = vld [vmem:[#allocation23 + $0x1e4] ss:$8 sps:$4 sm:$0xff]  }
 0xbf6   : > { %v9698_v54 = vor.u32 %v9696_v33, %v9695_v16  ;;  %v15131_v16 = vld [vmem:[#allocation23 + $0x254] ss:$8 sps:$4 sm:$0xff]   ;;  %v9713_v33 = vshrl.u32 %v19339_v15, 16 }
 0xbf7   : > { %11484 = vmatmul.mubr.bf16.gmra.mrb[116].mxu1 %v19114_v13  ;;  %v15081_v13 = vld [vmem:[#allocation23 + $0x150] ss:$8 sps:$4 sm:$0xff]  }
 0xbf8   : > { %11519 = vmatpush1.bf16.msra.mxu1 %v15072_v49  ;;  %11493 = vmatprep.mubr.bf16.mxu1 %v9799_v29  ;;  %v19332_v58 = vsel %vm693_vm2, %v9691_v23, %v9698_v54  ;;  %v15116_v49 = vld [vmem:[#allocation23 + $0x204] ss:$8 sps:$4 sm:$0xff]   ;;  %v9441_v29 = vld [vmem:[#allocation7 + $0x28] sm:$0x1]  ;;  %v19348_v54 = vrot.slane %v9713_v33, 7 }
 0xbf9   : > { %11520 = vmatprep.subr.bf16.mxu1 %v15077_v28  ;;  %v15119_v28 = vld [vmem:[#allocation23 + $0x214] ss:$8 sps:$4 sm:$0xff]   ;;  %v15134_v23 = vld [vmem:[#allocation23 + $0x264] ss:$8 sps:$4 sm:$0xff]   ;;  %v15162_v33 = vld [vmem:[#allocation23 + $0x600] ss:$8 sps:$4 sm:$0xff]  }
 0xbfc   : > { %11521 = vmatpush1.bf16.msra.mxu1 %v15075_v44  ;;  %v15122_v44 = vld [vmem:[#allocation23 + $0x224] ss:$8 sps:$4 sm:$0xff]  }
 0xbfd   : > { %11522 = vmatprep.subr.bf16.mxu1 %v15080_v48  ;;  %v9618_v48 = vrot.slane %v9441_v29, 1  ;;  %v15156_v29 = vld [vmem:[#allocation23 + $0x2e0] ss:$8 sps:$4 sm:$0xff]  }
 0xbff   : > { %11494 = vmatmul.mubr.bf16.gmra.mrb[120].mxu1 %v9792_v41  ;;  %v15125_v41 = vld [vmem:[#allocation23 + $0x234] ss:$8 sps:$4 sm:$0xff]  }
 0xc00   : > { %11503 = vmatprep.mubr.bf16.mxu1 %v19170_v14  ;;  %11523 = vmatpush1.bf16.msra.mxu1 %v15078_v24  ;;  %v15092_v14 = vld [vmem:[#allocation23 + $0x184] ss:$8 sps:$4 sm:$0xff]   ;;  %v9619_v24 = vsel %vm1175_vm4, %v19339_v15, %v9618_v48  ;;  %v15161_v48 = vld [vmem:[#allocation23 + $0x2f4] ss:$8 sps:$4 sm:$0xff]  }
 0xc01   : > { %11524 = vmatprep.subr.bf16.mxu1 %v15083_v10  ;;  %v15123_v10 = vld [vmem:[#allocation23 + $0x230] ss:$8 sps:$4 sm:$0xff]   ;;  %v9717_v52 = vshrl.u32 %v9619_v24, 16 }
 0xc04   : > { %11525 = vmatpush1.bf16.msra.mxu1 %v15081_v13  ;;  %v9719_v13 = vrot.slane %v9717_v52, 7 }
 0xc05   : > { %11526 = vmatprep.subr.bf16.mxu1 %v15086_v63  ;;  %v9720_v63 = vshll.u32 %v9619_v24, 16  ;;  %v15159_v24 = vld [vmem:[#allocation23 + $0x2f0] ss:$8 sps:$4 sm:$0xff]  }
 0xc07   : > { %11504 = vmatmul.mubr.bf16.gmra.mrb[124].mxu1 %v19175_v53  ;;  %v15099_v53 = vld [vmem:[#allocation23 + $0x1b0] ss:$8 sps:$4 sm:$0xff]  }
 0xc08   : > { %11527 = vmatpush1.bf16.msra.mxu1 %v15084_v26  ;;  %11546 = vmatprep.mubr.bf16.mxu1 %v19332_v58  ;;  %v9722_v26 = vor.u32 %v9720_v63, %v9719_v13  ;;  %v15167_v13 = vld [vmem:[#allocation23 + $0x614] ss:$8 sps:$4 sm:$0xff]  }
 0xc09   : > { %11528 = vmatprep.subr.bf16.mxu1 %v15089_v0  ;;  %v15132_v0 = vld [vmem:[#allocation23 + $0x260] ss:$8 sps:$4 sm:$0xff]  }
 0xc0c   : > { %11529 = vmatpush1.bf16.msra.mxu1 %v15087_v37  ;;  %v15137_v37 = vld [vmem:[#allocation23 + $0x274] ss:$8 sps:$4 sm:$0xff]  }
 0xc0d   : > { %11530 = vmatprep.subr.bf16.mxu1 %v15092_v14  ;;  %v9723_v14 = vsel %vm693_vm2, %v19348_v54, %v9722_v26  ;;  %v15165_v26 = vld [vmem:[#allocation23 + $0x610] ss:$8 sps:$4 sm:$0xff]  }
 0xc10   : > { %11531 = vmatpush1.bf16.msra.mxu1 %v15090_v47  ;;  %v15135_v47 = vld [vmem:[#allocation23 + $0x270] ss:$8 sps:$4 sm:$0xff]  }
 0xc11   : > { %11532 = vmatprep.subr.bf16.mxu1 %v15095_v18  ;;  %v15138_v18 = vld [vmem:[#allocation23 + $0x280] ss:$8 sps:$4 sm:$0xff]  }
 0xc14   : > { %11533 = vmatpush1.bf16.msra.mxu1 %v15093_v34  ;;  %v15143_v34 = vld [vmem:[#allocation23 + $0x294] ss:$8 sps:$4 sm:$0xff]  }
 0xc15   : > { %11534 = vmatprep.subr.bf16.mxu1 %v15098_v25  ;;  %v15141_v25 = vld [vmem:[#allocation23 + $0x290] ss:$8 sps:$4 sm:$0xff]  }
 0xc18   : > { %11535 = vmatpush1.bf16.msra.mxu1 %v15096_v56  ;;  %v15146_v56 = vld [vmem:[#allocation23 + $0x2a4] ss:$8 sps:$4 sm:$0xff]  }
 0xc19   : > { %11536 = vmatprep.subr.bf16.mxu1 %v15101_v43  ;;  %v15144_v43 = vld [vmem:[#allocation23 + $0x2a0] ss:$8 sps:$4 sm:$0xff]  }
 0xc1c   : > { %11537 = vmatpush1.bf16.msra.mxu1 %v15099_v53  ;;  %v15149_v53 = vld [vmem:[#allocation23 + $0x2b4] ss:$8 sps:$4 sm:$0xff]  }
 0xc1d   : > { %11538 = vmatprep.subr.bf16.mxu1 %v15104_v40  ;;  %v9440_v40 = vld [vmem:[#allocation7 + $0x20] sm:$0x1] }
 0xc20   : > { %11539 = vmatpush1.bf16.msra.mxu1 %v15102_v30  ;;  %v15152_v30 = vld [vmem:[#allocation23 + $0x2c4] ss:$8 sps:$4 sm:$0xff]  }
 0xc21   : > { %11540 = vmatprep.subr.bf16.mxu1 %v15107_v20  ;;  %v9616_v20 = vrot.slane %v9440_v40, 1  ;;  %v15174_v40 = vld [vmem:[#allocation23 + $0x640] ss:$8 sps:$4 sm:$0xff]  }
 0xc24   : > { %11541 = vmatpush1.bf16.msra.mxu1 %v15105_v32  ;;  %v15150_v32 = vld [vmem:[#allocation23 + $0x2c0] ss:$8 sps:$4 sm:$0xff]  }
 0xc25   : > { %11542 = vmatprep.subr.bf16.mxu1 %v15110_v50  ;;  %v15155_v50 = vld [vmem:[#allocation23 + $0x2d4] ss:$8 sps:$4 sm:$0xff]  }
 0xc28   : > { %11543 = vmatpush1.bf16.msra.mxu1 %v15108_v51  ;;  %v9617_v51 = vsel %vm1175_vm4, %v19339_v15, %v9616_v20  ;;  %v15180_v20 = vld [vmem:[#allocation23 + $0x660] ss:$8 sps:$4 sm:$0xff]  }
 0xc29   : > { %11544 = vmatprep.subr.bf16.mxu1 %v15113_v55  ;;  %v9457_v55 = vld [vmem:[#allocation7 + $0xe8] sm:$0x1] }
 0xc2c   : > { %11545 = vmatpush1.bf16.msra.mxu1 %v15111_v31  ;;  %v15153_v31 = vld [vmem:[#allocation23 + $0x2d0] ss:$8 sps:$4 sm:$0xff]  }
 0xc2d   : > { %11587 = vmatprep.subr.bf16.mxu1 %v15116_v49  ;;  %v9705_v49 = vshrl.u32 %v9617_v51, 16 }
 0xc2f   : > { %11547 = vmatmul.mubr.bf16.vlgmr.msra.gmra.mrb[112].mxu1 %v19332_v58 }
 0xc30   : > { %11556 = vmatprep.mubr.bf16.mxu1 %v19200_v4  ;;  %11588 = vmatpush1.bf16.msra.mxu1 %v15114_v17  ;;  %v15128_v4 = vld [vmem:[#allocation23 + $0x244] ss:$8 sps:$4 sm:$0xff]  }
 0xc31   : > { %11589 = vmatprep.subr.bf16.mxu1 %v15119_v28  ;;  %v15158_v17 = vld [vmem:[#allocation23 + $0x2e4] ss:$8 sps:$4 sm:$0xff]   ;;  %v9642_v28 = vrot.slane %v9457_v55, 1  ;;  %v15186_v55 = vld [vmem:[#allocation23 + $0x680] ss:$8 sps:$4 sm:$0xff]  }
 0xc34   : > { %11590 = vmatpush1.bf16.msra.mxu1 %v15117_v8  ;;  %v9707_v8 = vrot.slane %v9705_v49, 7  ;;  %v15194_v49 = vld [vmem:[#allocation23 + $0x6a4] ss:$8 sps:$4 sm:$0xff]  }
 0xc35   : > { %11591 = vmatprep.subr.bf16.mxu1 %v15122_v44  ;;  %v9708_v44 = vshll.u32 %v9617_v51, 16  ;;  %v15188_v51 = vld [vmem:[#allocation23 + $0x684] ss:$8 sps:$4 sm:$0xff]  }
 0xc37   : > { %11557 = vmatmul.mubr.bf16.gmra.mrb[116].mxu1 %v19224_v60  ;;  %v15129_v60 = vld [vmem:[#allocation23 + $0x250] ss:$8 sps:$4 sm:$0xff]  }
 0xc38   : > { %11592 = vmatpush1.bf16.msra.mxu1 %v15120_v38  ;;  %11566 = vmatprep.mubr.bf16.mxu1 %v19332_v58  ;;  %v9643_v38 = vsel %vm1175_vm4, %v19339_v15, %v9642_v28  ;;  %v15197_v28 = vld [vmem:[#allocation23 + $0x6b4] ss:$8 sps:$4 sm:$0xff]  }
 0xc39   : > { %11593 = vmatprep.subr.bf16.mxu1 %v15125_v41  ;;  %v9456_v41 = vld [vmem:[#allocation7 + $0xe0] sm:$0x1]  ;;  %v9841_v52 = vshrl.u32 %v9643_v38, 16 }
 0xc3b   : > { %v9843_v63 = vrot.slane %v9841_v52, 7  ;;  %v15212_v52 = vld [vmem:[#allocation23 + $0x704] ss:$8 sps:$4 sm:$0xff]  }
 0xc3c   : > { %11594 = vmatpush1.bf16.msra.mxu1 %v15123_v10  ;;  %v9710_v10 = vor.u32 %v9708_v44, %v9707_v8  ;;  %v15203_v8 = vld [vmem:[#allocation23 + $0x6d4] ss:$8 sps:$4 sm:$0xff]   ;;  %v15201_v44 = vld [vmem:[#allocation23 + $0x6d0] ss:$8 sps:$4 sm:$0xff]  }
 0xc3d   : > { %11595 = vmatprep.subr.bf16.mxu1 %v15128_v4  ;;  %v15164_v4 = vld [vmem:[#allocation23 + $0x604] ss:$8 sps:$4 sm:$0xff]  }
 0xc3f   : > { %11567 = vmatmul.mubr.bf16.gmra.mrb[120].mxu1 %v19332_v58 }
 0xc40   : > { %11576 = vmatprep.mubr.bf16.mxu1 %v19245_v46  ;;  %11596 = vmatpush1.bf16.msra.mxu1 %v15126_v5  ;;  %v15140_v46 = vld [vmem:[#allocation23 + $0x284] ss:$8 sps:$4 sm:$0xff]   ;;  %v9640_v5 = vrot.slane %v9456_v41, 1  ;;  %v15204_v41 = vld [vmem:[#allocation23 + $0x6e0] ss:$8 sps:$4 sm:$0xff]  }
 0xc41   : > { %11597 = vmatprep.subr.bf16.mxu1 %v15131_v16  ;;  %v9711_v16 = vsel %vm693_vm2, %v19348_v54, %v9710_v10 }
 0xc44   : > { %11598 = vmatpush1.bf16.msra.mxu1 %v15129_v60  ;;  %v9844_v60 = vshll.u32 %v9643_v38, 16  ;;  %v9419_v38 = vld [vmem:[#allocation7 + $0x98] sm:$0x80] }
 0xc45   : > { %11599 = vmatprep.subr.bf16.mxu1 %v15134_v23  ;;  %v9641_v23 = vsel %vm1175_vm4, %v19339_v15, %v9640_v5  ;;  %v11668_v10 = vshrl.u32 %v9419_v38, 16  ;;  %v15260_v38 = vld [vmem:[#allocation23 + $0x804] ss:$8 sps:$4 sm:$0xff]  }
 0xc47   : > { %11577 = vmatmul.mubr.bf16.gmra.mrb[124].mxu1 %v19250_v35  ;;  %v15147_v35 = vld [vmem:[#allocation23 + $0x2b0] ss:$8 sps:$4 sm:$0xff]   ;;  %v11670_v5 = vrot.slane %v11668_v10, 7 }
 0xc48   : > { %11600 = vmatpush1.bf16.msra.mxu1 %v15132_v0  ;;  %11619 = vmatprep.mubr.bf16.mxu1 %v9723_v14  ;;  %v9829_v0 = vshrl.u32 %v9641_v23, 16  ;;  %v9846_v14 = vor.u32 %v9844_v60, %v9843_v63  ;;  %v15215_v63 = vld [vmem:[#allocation23 + $0x714] ss:$8 sps:$4 sm:$0xff]   ;;  %v15261_v10 = vld [vmem:[#allocation23 + $0x810] ss:$8 sps:$4 sm:$0xff]  }
 0xc49   : > { %11601 = vmatprep.subr.bf16.mxu1 %v15137_v37  ;;  %v15170_v37 = vld [vmem:[#allocation23 + $0x624] ss:$8 sps:$4 sm:$0xff]   ;;  %v11673_v60 = vsel %vm693_vm2, %v11670_v5, %v19310_v7  ;;  %v15269_v5 = vld [vmem:[#allocation23 + $0x834] ss:$8 sps:$4 sm:$0xff]  }
 0xc4c   : > { %11602 = vmatpush1.bf16.msra.mxu1 %v15135_v47  ;;  %v15168_v47 = vld [vmem:[#allocation23 + $0x620] ss:$8 sps:$4 sm:$0xff]  }
 0xc4d   : > { %11603 = vmatprep.subr.bf16.mxu1 %v15140_v46  ;;  %v9831_v46 = vrot.slane %v9829_v0, 7  ;;  %v15218_v0 = vld [vmem:[#allocation23 + $0x724] ss:$8 sps:$4 sm:$0xff]  }
 0xc50   : > { %11604 = vmatpush1.bf16.msra.mxu1 %v15138_v18  ;;  %v9832_v18 = vshll.u32 %v9641_v23, 16  ;;  %v15213_v23 = vld [vmem:[#allocation23 + $0x710] ss:$8 sps:$4 sm:$0xff]  }
 0xc51   : > { %11605 = vmatprep.subr.bf16.mxu1 %v15143_v34  ;;  %v15173_v34 = vld [vmem:[#allocation23 + $0x634] ss:$8 sps:$4 sm:$0xff]  }
 0xc54   : > { %11606 = vmatpush1.bf16.msra.mxu1 %v15141_v25  ;;  %v9847_v25 = vsel %vm693_vm2, %v19348_v54, %v9846_v14 }
 0xc55   : > { %11607 = vmatprep.subr.bf16.mxu1 %v15146_v56  ;;  %v15171_v56 = vld [vmem:[#allocation23 + $0x630] ss:$8 sps:$4 sm:$0xff]  }
 0xc58   : > { %11608 = vmatpush1.bf16.msra.mxu1 %v15144_v43  ;;  %v15176_v43 = vld [vmem:[#allocation23 + $0x644] ss:$8 sps:$4 sm:$0xff]  }
 0xc59   : > { %11609 = vmatprep.subr.bf16.mxu1 %v15149_v53 }
 0xc5c   : > { %11610 = vmatpush1.bf16.msra.mxu1 %v15147_v35  ;;  %v15179_v35 = vld [vmem:[#allocation23 + $0x654] ss:$8 sps:$4 sm:$0xff]  }
 0xc5d   : > { %11611 = vmatprep.subr.bf16.mxu1 %v15152_v30  ;;  %v15177_v30 = vld [vmem:[#allocation23 + $0x650] ss:$8 sps:$4 sm:$0xff]  }
 0xc60   : > { %11612 = vmatpush1.bf16.msra.mxu1 %v15150_v32  ;;  %v15185_v32 = vld [vmem:[#allocation23 + $0x674] ss:$8 sps:$4 sm:$0xff]  }
 0xc61   : > { %11613 = vmatprep.subr.bf16.mxu1 %v15155_v50  ;;  %v15183_v50 = vld [vmem:[#allocation23 + $0x670] ss:$8 sps:$4 sm:$0xff]  }
 0xc64   : > { %11614 = vmatpush1.bf16.msra.mxu1 %v15153_v31  ;;  %v15189_v31 = vld [vmem:[#allocation23 + $0x690] ss:$8 sps:$4 sm:$0xff]  }
 0xc65   : > { %11615 = vmatprep.subr.bf16.mxu1 %v15158_v17  ;;  %v15192_v17 = vld [vmem:[#allocation23 + $0x6a0] ss:$8 sps:$4 sm:$0xff]  }
 0xc68   : > { %11616 = vmatpush1.bf16.msra.mxu1 %v15156_v29  ;;  %v15200_v29 = vld [vmem:[#allocation23 + $0x6c4] ss:$8 sps:$4 sm:$0xff]  }
 0xc69   : > { %11617 = vmatprep.subr.bf16.mxu1 %v15161_v48  ;;  %v15206_v48 = vld [vmem:[#allocation23 + $0x6e4] ss:$8 sps:$4 sm:$0xff]  }
 0xc6c   : > { %11618 = vmatpush1.bf16.msra.mxu1 %v15159_v24  ;;  %v15209_v24 = vld [vmem:[#allocation23 + $0x6f4] ss:$8 sps:$4 sm:$0xff]  }
 0xc6d   : > { %12372 = vmatprep.subr.bf16.mxu1 %v15164_v4  ;;  %v15207_v4 = vld [vmem:[#allocation23 + $0x6f0] ss:$8 sps:$4 sm:$0xff]  }
 0xc6f   : > { %11620 = vmatmul.mubr.bf16.vlgmr.msra.gmra.mrb[112].mxu1 %v9711_v16  ;;  %v9418_v16 = vld [vmem:[#allocation7 + $0x90] sm:$0x80] }
 0xc70   : > { %11629 = vmatprep.mubr.bf16.mxu1 %v19262_v45  ;;  %12373 = vmatpush1.bf16.msra.mxu1 %v15162_v33  ;;  %v9834_v45 = vor.u32 %v9832_v18, %v9831_v46  ;;  %v15210_v33 = vld [vmem:[#allocation23 + $0x700] ss:$8 sps:$4 sm:$0xff]   ;;  %v15221_v46 = vld [vmem:[#allocation23 + $0x734] ss:$8 sps:$4 sm:$0xff]  }
 0xc71   : > { %12374 = vmatprep.subr.bf16.mxu1 %v15167_v13  ;;  %v11661_v13 = vshrl.u32 %v9418_v16, 16  ;;  %v15267_v16 = vld [vmem:[#allocation23 + $0x830] ss:$8 sps:$4 sm:$0xff]  }
 0xc72   : > { %v9835_v53 = vsel %vm693_vm2, %v19348_v54, %v9834_v45  ;;  %v15222_v45 = vld [vmem:[#allocation23 + $0x740] ss:$8 sps:$4 sm:$0xff]  }
 0xc74   : > { %12375 = vmatpush1.bf16.msra.mxu1 %v15165_v26  ;;  %v11663_v26 = vrot.slane %v11661_v13, 7  ;;  %v15275_v13 = vld [vmem:[#allocation23 + $0x854] ss:$8 sps:$4 sm:$0xff]  }
 0xc75   : > { %12376 = vmatprep.subr.bf16.mxu1 %v15170_v37  ;;  %v9435_v37 = vld [vmem:[#allocation7 + $0x158] sm:$0x80] }
 0xc76   : > { %v11666_v14 = vsel %vm693_vm2, %v11663_v26, %v19310_v7  ;;  %v11730_v18 = vshrl.u32 %v9435_v37, 16  ;;  %v15279_v26 = vld [vmem:[#allocation23 + $0x870] ss:$8 sps:$4 sm:$0xff]   ;;  %v15287_v37 = vld [vmem:[#allocation23 + $0x894] ss:$8 sps:$4 sm:$0xff]  }
 0xc77   : > { %11630 = vmatmul.mubr.bf16.gmra.mrb[116].mxu1 %v19276_v11  ;;  %v15182_v11 = vld [vmem:[#allocation23 + $0x664] ss:$8 sps:$4 sm:$0xff]  }
 0xc78   : > { %12377 = vmatpush1.bf16.msra.mxu1 %v15168_v47  ;;  %11639 = vmatprep.mubr.bf16.mxu1 %v9847_v25  ;;  %v15216_v47 = vld [vmem:[#allocation23 + $0x720] ss:$8 sps:$4 sm:$0xff]   ;;  %v11732_v25 = vrot.slane %v11730_v18, 7  ;;  %v15293_v18 = vld [vmem:[#allocation23 + $0x8b4] ss:$8 sps:$4 sm:$0xff]  }
 0xc79   : > { %12378 = vmatprep.subr.bf16.mxu1 %v15173_v34  ;;  %v15224_v34 = vld [vmem:[#allocation23 + $0x744] ss:$8 sps:$4 sm:$0xff]  }
 0xc7c   : > { %12379 = vmatpush1.bf16.msra.mxu1 %v15171_v56  ;;  %v9434_v56 = vld [vmem:[#allocation7 + $0x150] sm:$0x80] }
 0xc7d   : > { %12380 = vmatprep.subr.bf16.mxu1 %v15176_v43  ;;  %v11723_v43 = vshrl.u32 %v9434_v56, 16  ;;  %v15299_v56 = vld [vmem:[#allocation23 + $0x8d4] ss:$8 sps:$4 sm:$0xff]  }
 0xc7f   : > { %11640 = vmatmul.mubr.bf16.gmra.mrb[120].mxu1 %v9835_v53  ;;  %v15227_v53 = vld [vmem:[#allocation23 + $0x754] ss:$8 sps:$4 sm:$0xff]  }
 0xc80   : > { %11649 = vmatprep.mubr.bf16.mxu1 %v19290_v42  ;;  %12381 = vmatpush1.bf16.msra.mxu1 %v15174_v40  ;;  %v15191_v42 = vld [vmem:[#allocation23 + $0x694] ss:$8 sps:$4 sm:$0xff]   ;;  %v11735_v40 = vsel %vm693_vm2, %v11732_v25, %v19310_v7  ;;  %v15294_v25 = vld [vmem:[#allocation23 + $0x8c0] ss:$8 sps:$4 sm:$0xff]  }
 0xc81   : > { %12382 = vmatprep.subr.bf16.mxu1 %v15179_v35  ;;  %v15225_v35 = vld [vmem:[#allocation23 + $0x750] ss:$8 sps:$4 sm:$0xff]  }
 0xc84   : > { %12383 = vmatpush1.bf16.msra.mxu1 %v15177_v30  ;;  %v15230_v30 = vld [vmem:[#allocation23 + $0x764] ss:$8 sps:$4 sm:$0xff]  }
 0xc85   : > { %12384 = vmatprep.subr.bf16.mxu1 %v15182_v11 }
 0xc87   : > { %11650 = vmatmul.mubr.bf16.gmra.mrb[124].mxu1 %v19301_v3  ;;  %v15195_v3 = vld [vmem:[#allocation23 + $0x6b0] ss:$8 sps:$4 sm:$0xff]  }
 0xc88   : > { %12385 = vmatpush1.bf16.msra.mxu1 %v15180_v20  ;;  %12404 = vmatprep.mubr.bf16.mxu1 %v19139_v1  ;;  %v15198_v1 = vld [vmem:[#allocation23 + $0x6c0] ss:$8 sps:$4 sm:$0xff]  }
 0xc89   : > { %12386 = vmatprep.subr.bf16.mxu1 %v15185_v32  ;;  %v15228_v20 = vld [vmem:[#allocation23 + $0x760] ss:$8 sps:$4 sm:$0xff]   ;;  %v15233_v32 = vld [vmem:[#allocation23 + $0x774] ss:$8 sps:$4 sm:$0xff]  }
 0xc8c   : > { %12387 = vmatpush1.bf16.msra.mxu1 %v15183_v50  ;;  %v15231_v50 = vld [vmem:[#allocation23 + $0x770] ss:$8 sps:$4 sm:$0xff]  }
 0xc8d   : > { %12388 = vmatprep.subr.bf16.mxu1 %v15188_v51  ;;  %v15234_v51 = vld [vmem:[#allocation23 + $0x780] ss:$8 sps:$4 sm:$0xff]  }
 0xc90   : > { %12389 = vmatpush1.bf16.msra.mxu1 %v15186_v55  ;;  %v15239_v55 = vld [vmem:[#allocation23 + $0x794] ss:$8 sps:$4 sm:$0xff]  }
 0xc91   : > { %12390 = vmatprep.subr.bf16.mxu1 %v15191_v42  ;;  %v15237_v42 = vld [vmem:[#allocation23 + $0x790] ss:$8 sps:$4 sm:$0xff]  }
 0xc94   : > { %12391 = vmatpush1.bf16.msra.mxu1 %v15189_v31  ;;  %v15242_v31 = vld [vmem:[#allocation23 + $0x7a4] ss:$8 sps:$4 sm:$0xff]  }
 0xc95   : > { %12392 = vmatprep.subr.bf16.mxu1 %v15194_v49  ;;  %v15245_v49 = vld [vmem:[#allocation23 + $0x7b4] ss:$8 sps:$4 sm:$0xff]  }
 0xc98   : > { %12393 = vmatpush1.bf16.msra.mxu1 %v15192_v17  ;;  %v15243_v17 = vld [vmem:[#allocation23 + $0x7b0] ss:$8 sps:$4 sm:$0xff]  }
 0xc99   : > { %12394 = vmatprep.subr.bf16.mxu1 %v15197_v28  ;;  %v15248_v28 = vld [vmem:[#allocation23 + $0x7c4] ss:$8 sps:$4 sm:$0xff]  }
 0xc9c   : > { %12395 = vmatpush1.bf16.msra.mxu1 %v15195_v3  ;;  %v15251_v3 = vld [vmem:[#allocation23 + $0x7d4] ss:$8 sps:$4 sm:$0xff]  }
 0xc9d   : > { %12396 = vmatprep.subr.bf16.mxu1 %v15200_v29  ;;  %v15249_v29 = vld [vmem:[#allocation23 + $0x7d0] ss:$8 sps:$4 sm:$0xff]  }
 0xca0   : > { %12397 = vmatpush1.bf16.msra.mxu1 %v15198_v1  ;;  %v15254_v1 = vld [vmem:[#allocation23 + $0x7e4] ss:$8 sps:$4 sm:$0xff]  }
 0xca1   : > { %12398 = vmatprep.subr.bf16.mxu1 %v15203_v8  ;;  %v15252_v8 = vld [vmem:[#allocation23 + $0x7e0] ss:$8 sps:$4 sm:$0xff]  }
 0xca4   : > { %12399 = vmatpush1.bf16.msra.mxu1 %v15201_v44  ;;  %v15257_v44 = vld [vmem:[#allocation23 + $0x7f4] ss:$8 sps:$4 sm:$0xff]  }
 0xca5   : > { %12400 = vmatprep.subr.bf16.mxu1 %v15206_v48  ;;  %v15255_v48 = vld [vmem:[#allocation23 + $0x7f0] ss:$8 sps:$4 sm:$0xff]  }
 0xca8   : > { %12401 = vmatpush1.bf16.msra.mxu1 %v15204_v41  ;;  %v15258_v41 = vld [vmem:[#allocation23 + $0x800] ss:$8 sps:$4 sm:$0xff]  }
 0xca9   : > { %12402 = vmatprep.subr.bf16.mxu1 %v15209_v24  ;;  %v15263_v24 = vld [vmem:[#allocation23 + $0x814] ss:$8 sps:$4 sm:$0xff]  }
 0xcac   : > { %12403 = vmatpush1.bf16.msra.mxu1 %v15207_v4  ;;  %v15266_v4 = vld [vmem:[#allocation23 + $0x824] ss:$8 sps:$4 sm:$0xff]  }
 0xcad   : > { %12445 = vmatprep.subr.bf16.mxu1 %v15212_v52  ;;  %v15264_v52 = vld [vmem:[#allocation23 + $0x820] ss:$8 sps:$4 sm:$0xff]  }
 0xcaf   : > { %12405 = vmatmul.mubr.bf16.vlgmr.msra.gmra.mrb[112].mxu1 %v19144_v27  ;;  %v15219_v27 = vld [vmem:[#allocation23 + $0x730] ss:$8 sps:$4 sm:$0xff]  }
 0xcb0   : > { %12446 = vmatpush1.bf16.msra.mxu1 %v15210_v33  ;;  %12414 = vmatprep.mubr.bf16.mxu1 %v11673_v60  ;;  %v15272_v33 = vld [vmem:[#allocation23 + $0x844] ss:$8 sps:$4 sm:$0xff]  }
 0xcb1   : > { %12447 = vmatprep.subr.bf16.mxu1 %v15215_v63  ;;  %v15273_v63 = vld [vmem:[#allocation23 + $0x850] ss:$8 sps:$4 sm:$0xff]   ;;  %v15278_v60 = vld [vmem:[#allocation23 + $0x864] ss:$8 sps:$4 sm:$0xff]  }
 0xcb4   : > { %12448 = vmatpush1.bf16.msra.mxu1 %v15213_v23  ;;  %v15276_v23 = vld [vmem:[#allocation23 + $0x860] ss:$8 sps:$4 sm:$0xff]  }
 0xcb5   : > { %12449 = vmatprep.subr.bf16.mxu1 %v15218_v0  ;;  %v15284_v0 = vld [vmem:[#allocation23 + $0x884] ss:$8 sps:$4 sm:$0xff]  }
 0xcb7   : > { %12415 = vmatmul.mubr.bf16.gmra.mrb[116].mxu1 %v11666_v14  ;;  %v15285_v14 = vld [vmem:[#allocation23 + $0x890] ss:$8 sps:$4 sm:$0xff]  }
 0xcb8   : > { %12424 = vmatprep.mubr.bf16.mxu1 %v19192_v12  ;;  %12450 = vmatpush1.bf16.msra.mxu1 %v15216_v47  ;;  %v11725_v12 = vrot.slane %v11723_v43, 7  ;;  %v15290_v47 = vld [vmem:[#allocation23 + $0x8a4] ss:$8 sps:$4 sm:$0xff]   ;;  %v9452_v43 = vld [vmem:[#allocation7 + $0xb0] sm:$0x1] }
 0xcb9   : > { %12451 = vmatprep.subr.bf16.mxu1 %v15221_v46  ;;  %v15288_v46 = vld [vmem:[#allocation23 + $0x8a0] ss:$8 sps:$4 sm:$0xff]  }
 0xcba   : > { %v11728_v11 = vsel %vm693_vm2, %v11725_v12, %v19310_v7  ;;  %v15240_v7 = vld [vmem:[#allocation23 + $0x7a0] ss:$8 sps:$4 sm:$0xff]   ;;  %v9634_v12 = vrot.slane %v9452_v43, 1 }
 0xcbc   : > { %12452 = vmatpush1.bf16.msra.mxu1 %v15219_v27  ;;  %v9453_v27 = vld [vmem:[#allocation7 + $0xb8] sm:$0x1] }
 0xcbd   : > { %12453 = vmatprep.subr.bf16.mxu1 %v15224_v34  ;;  %v9636_v34 = vrot.slane %v9453_v27, 1 }
 0xcbf   : > { %12425 = vmatmul.mubr.bf16.gmra.mrb[120].mxu1 %v19196_v59  ;;  %v15236_v59 = vld [vmem:[#allocation23 + $0x784] ss:$8 sps:$4 sm:$0xff]  }
 0xcc0   : > { %12454 = vmatpush1.bf16.msra.mxu1 %v15222_v45  ;;  %12434 = vmatprep.mubr.bf16.mxu1 %v11735_v40  ;;  %v9637_v45 = vsel %vm1175_vm4, %v19339_v15, %v9636_v34  ;;  %v15302_v40 = vld [vmem:[#allocation23 + $0x8e4] ss:$8 sps:$4 sm:$0xff]  }
 0xcc1   : > { %12455 = vmatprep.subr.bf16.mxu1 %v15227_v53  ;;  %v15297_v53 = vld [vmem:[#allocation23 + $0x8d0] ss:$8 sps:$4 sm:$0xff]  }
 0xcc4   : > { %12456 = vmatpush1.bf16.msra.mxu1 %v15225_v35  ;;  %v11715_v35 = vshrl.u32 %v9637_v45, 16 }
 0xcc5   : > { %12457 = vmatprep.subr.bf16.mxu1 %v15230_v30  ;;  %v15300_v30 = vld [vmem:[#allocation23 + $0x8e0] ss:$8 sps:$4 sm:$0xff]  }
 0xcc7   : > { %12435 = vmatmul.mubr.bf16.gmra.mrb[124].mxu1 %v11728_v11  ;;  %v15305_v11 = vld [vmem:[#allocation23 + $0x8f4] ss:$8 sps:$4 sm:$0xff]  }
 0xcc8   : > { %12458 = vmatpush1.bf16.msra.mxu1 %v15228_v20  ;;  %12477 = vmatprep.mubr.bf16.mxu1 %v19230_v39  ;;  %v15246_v39 = vld [vmem:[#allocation23 + $0x7c0] ss:$8 sps:$4 sm:$0xff]   ;;  %v11717_v20 = vrot.slane %v11715_v35, 7 }
 0xcc9   : > { %12459 = vmatprep.subr.bf16.mxu1 %v15233_v32  ;;  %v11718_v32 = vshll.u32 %v9637_v45, 16 }
 0xccc   : > { %12460 = vmatpush1.bf16.msra.mxu1 %v15231_v50  ;;  %v9635_v50 = vsel %vm1175_vm4, %v19339_v15, %v9634_v12 }
 0xccd   : > { %12461 = vmatprep.subr.bf16.mxu1 %v15236_v59  ;;  %v9469_v59 = vld [vmem:[#allocation7 + $0x178] sm:$0x1] }
 0xcd0   : > { %12462 = vmatpush1.bf16.msra.mxu1 %v15234_v51  ;;  %v15303_v51 = vld [vmem:[#allocation23 + $0x8f0] ss:$8 sps:$4 sm:$0xff]  }
 0xcd1   : > { %12463 = vmatprep.subr.bf16.mxu1 %v15239_v55  ;;  %v11703_v55 = vshrl.u32 %v9635_v50, 16 }
 0xcd4   : > { %12464 = vmatpush1.bf16.msra.mxu1 %v15237_v42  ;;  %v11720_v42 = vor.u32 %v11718_v32, %v11717_v20 }
 0xcd5   : > { %12465 = vmatprep.subr.bf16.mxu1 %v15242_v31  ;;  %v9660_v31 = vrot.slane %v9469_v59, 1 }
 0xcd8   : > { %12466 = vmatpush1.bf16.msra.mxu1 %v15240_v7  ;;  %v11705_v7 = vrot.slane %v11703_v55, 7 }
 0xcd9   : > { %12467 = vmatprep.subr.bf16.mxu1 %v15245_v49  ;;  %v11706_v49 = vshll.u32 %v9635_v50, 16 }
 0xcdc   : > { %12468 = vmatpush1.bf16.msra.mxu1 %v15243_v17  ;;  %v11721_v17 = vsel %vm693_vm2, %v19348_v54, %v11720_v42 }
 0xcdd   : > { %12469 = vmatprep.subr.bf16.mxu1 %v15248_v28  ;;  %v9661_v28 = vsel %vm1175_vm4, %v19339_v15, %v9660_v31 }
 0xce0   : > { %12470 = vmatpush1.bf16.msra.mxu1 %v15246_v39  ;;  %v9468_v39 = vld [vmem:[#allocation7 + $0x170] sm:$0x1] }
 0xce1   : > { %12471 = vmatprep.subr.bf16.mxu1 %v15251_v3  ;;  %v11708_v3 = vor.u32 %v11706_v49, %v11705_v7 }
 0xce4   : > { %12472 = vmatpush1.bf16.msra.mxu1 %v15249_v29  ;;  %v11777_v29 = vshrl.u32 %v9661_v28, 16 }
 0xce5   : > { %12473 = vmatprep.subr.bf16.mxu1 %v15254_v1  ;;  %v9658_v1 = vrot.slane %v9468_v39, 1 }
 0xce8   : > { %12474 = vmatpush1.bf16.msra.mxu1 %v15252_v8  ;;  %v11709_v8 = vsel %vm693_vm2, %v19348_v54, %v11708_v3 }
 0xce9   : > { %12475 = vmatprep.subr.bf16.mxu1 %v15257_v44  ;;  %v11779_v44 = vrot.slane %v11777_v29, 7 }
 0xcec   : > { %12476 = vmatpush1.bf16.msra.mxu1 %v15255_v48  ;;  %v11780_v48 = vshll.u32 %v9661_v28, 16 }
 0xced   : > { %12518 = vmatprep.subr.bf16.mxu1 %v15260_v38  ;;  %v9659_v38 = vsel %vm1175_vm4, %v19339_v15, %v9658_v1 }
 0xcef   : > { %12478 = vmatmul.mubr.bf16.vlgmr.msra.gmra.mrb[112].mxu1 %v19239_v61  ;;  %v15270_v61 = vld [vmem:[#allocation23 + $0x840] ss:$8 sps:$4 sm:$0xff]  }
 0xcf0   : > { %12519 = vmatpush1.bf16.msra.mxu1 %v15258_v41  ;;  %12487 = vmatprep.mubr.bf16.mxu1 %v19332_v58  ;;  %v11765_v41 = vshrl.u32 %v9659_v38, 16 }
 0xcf1   : > { %12520 = vmatprep.subr.bf16.mxu1 %v15263_v24  ;;  %v11782_v24 = vor.u32 %v11780_v48, %v11779_v44 }
 0xcf4   : > { %12521 = vmatpush1.bf16.msra.mxu1 %v15261_v10  ;;  %v11767_v10 = vrot.slane %v11765_v41, 7 }
 0xcf5   : > { %12522 = vmatprep.subr.bf16.mxu1 %v15266_v4  ;;  %v11783_v4 = vsel %vm693_vm2, %v19348_v54, %v11782_v24 }
 0xcf7   : > { %12488 = vmatmul.mubr.bf16.gmra.mrb[116].mxu1 %v19332_v58 }
 0xcf8   : > { %12497 = vmatprep.mubr.bf16.mxu1 %v19254_v2  ;;  %12523 = vmatpush1.bf16.msra.mxu1 %v15264_v52  ;;  %v15281_v2 = vld [vmem:[#allocation23 + $0x874] ss:$8 sps:$4 sm:$0xff]  }
 0xcf9   : > { %12524 = vmatprep.subr.bf16.mxu1 %v15269_v5 }
 0xcfc   : > { %12525 = vmatpush1.bf16.msra.mxu1 %v15267_v16  ;;  %v12607_v16 = vld [vmem:[#allocation25] sm:$0x3] }
 0xcfd   : > { %12526 = vmatprep.subr.bf16.mxu1 %v15272_v33 }
 0xcff   : > { %12498 = vmatmul.mubr.bf16.gmra.mrb[120].mxu1 %v19258_v19  ;;  %v15282_v19 = vld [vmem:[#allocation23 + $0x880] ss:$8 sps:$4 sm:$0xff]  }
 0xd00   : > { %12527 = vmatpush1.bf16.msra.mxu1 %v15270_v61  ;;  %12507 = vmatprep.mubr.bf16.mxu1 %v19332_v58  ;;  %v12612_v61 = vrot.slane %v12607_v16, %v9276_v9 }
 0xd01   : > { %12528 = vmatprep.subr.bf16.mxu1 %v15275_v13 }
 0xd04   : > { %12529 = vmatpush1.bf16.msra.mxu1 %v15273_v63  ;;  %v12616_v63 = vrot.slane %v12607_v16, %v9280_v57 }
 0xd05   : > { %12530 = vmatprep.subr.bf16.mxu1 %v15278_v60 }
 0xd07   : > { %12508 = vmatmul.mubr.bf16.gmra.mrb[124].mxu1 %v19332_v58  ;;  %v15291_v58 = vld [vmem:[#allocation23 + $0x8b0] ss:$8 sps:$4 sm:$0xff]  }
 0xd08   : > { %12531 = vmatpush1.bf16.msra.mxu1 %v15276_v23  ;;  %12550 = vmatprep.mubr.bf16.mxu1 %v19280_v21  ;;  %v15296_v21 = vld [vmem:[#allocation23 + $0x8c4] ss:$8 sps:$4 sm:$0xff]  }
 0xd09   : > { %12532 = vmatprep.subr.bf16.mxu1 %v15281_v2 }
 0xd0c   : > { %12533 = vmatpush1.bf16.msra.mxu1 %v15279_v26 }
 0xd0d   : > { %12534 = vmatprep.subr.bf16.mxu1 %v15284_v0 }
 0xd10   : > { %12535 = vmatpush1.bf16.msra.mxu1 %v15282_v19 }
 0xd11   : > { %12536 = vmatprep.subr.bf16.mxu1 %v15287_v37 }
 0xd14   : > { %12537 = vmatpush1.bf16.msra.mxu1 %v15285_v14 }
 0xd15   : > { %12538 = vmatprep.subr.bf16.mxu1 %v15290_v47 }
 0xd18   : > { %12539 = vmatpush1.bf16.msra.mxu1 %v15288_v46 }
 0xd19   : > { %12540 = vmatprep.subr.bf16.mxu1 %v15293_v18 }
 0xd1c   : > { %12541 = vmatpush1.bf16.msra.mxu1 %v15291_v58 }
 0xd1d   : > { %12542 = vmatprep.subr.bf16.mxu1 %v15296_v21 }
 0xd20   : > { %12543 = vmatpush1.bf16.msra.mxu1 %v15294_v25 }
 0xd21   : > { %12544 = vmatprep.subr.bf16.mxu1 %v15299_v56 }
 0xd24   : > { %12545 = vmatpush1.bf16.msra.mxu1 %v15297_v53 }
 0xd25   : > { %12546 = vmatprep.subr.bf16.mxu1 %v15302_v40 }
 0xd28   : > { %12547 = vmatpush1.bf16.msra.mxu1 %v15300_v30 }
 0xd29   : > { %12548 = vmatprep.subr.bf16.mxu1 %v15305_v11 }
 0xd2c   : > { %12549 = vmatpush1.bf16.msra.mxu1 %v15303_v51 }
 0xd2f   : > { %12551 = vmatmul.mubr.bf16.vlgmr.msra.gmra.mrb[112].mxu1 %v19286_v36  ;;  %v11768_v36 = vshll.u32 %v9659_v38, 16 }
 0xd30   : > { %12560 = vmatprep.mubr.bf16.mxu1 %v11721_v17 }
 0xd31   : > { %v11770_v52 = vor.u32 %v11768_v36, %v11767_v10 }
 0xd33   : > { %v11771_v5 = vsel %vm693_vm2, %v19348_v54, %v11770_v52 }
 0xd37   : > { %12561 = vmatmul.mubr.bf16.gmra.mrb[116].mxu1 %v11709_v8 }
 0xd38   : > { %12570 = vmatprep.mubr.bf16.mxu1 %v19305_v62 }
 0xd3f   : > { %12571 = vmatmul.mubr.bf16.gmra.mrb[120].mxu1 %v19315_v22 }
 0xd40   : > { %12580 = vmatprep.mubr.bf16.mxu1 %v11783_v4 }
 0xd47   : > { %12581 = vmatmul.mubr.bf16.gmra.mrb[124].mxu1 %v11771_v5 }
 0xe02   : > { %v12552_v15 = vpop.f32.mrb[112].mxu1 }
 0xe03   : > { %v12554_v62 = vpop.f32.mrb[113].mxu1  ;;  %v12619_v22 = vadd.f32 %v12612_v61, %v12552_v15 }
 0xe04   : > { %v12556_v33 = vpop.f32.mrb[114].mxu1  ;;  %v12620_v60 = vadd.f32 %v12616_v63, %v12554_v62 }
 0xe05   : > { %v12558_v13 = vpop.f32.mrb[115].mxu1  ;;  %v12621_v2 = vadd.f32 %v12612_v61, %v12556_v33  ;;  %v12635_v14 = vmax.f32 %v12619_v22, 0.0 }
 0xe06   : > { %v12622_v0 = vadd.f32 %v12616_v63, %v12558_v13  ;;  %v12636_v18 = vmax.f32 %v12620_v60, 0.0 }
 0xe07   : > { %v12637_v57 = vmax.f32 %v12621_v2, 0.0 }
 0xe08   : > { %v12638_v34 = vmax.f32 %v12622_v0, 0.0 }
 0xe0a   : > { %v12562_v23 = vpop.f32.mrb[116].mxu1 }
 0xe0b   : > { %v12623_v54 = vadd.f32 %v12612_v61, %v12562_v23  ;;  %v12564_v26 = vpop.f32.mrb[117].mxu1 }
 0xe0c   : > { %v12624_v19 = vadd.f32 %v12616_v63, %v12564_v26  ;;  %v12566_v37 = vpop.f32.mrb[118].mxu1 }
 0xe0d   : > { %v12639_v47 = vmax.f32 %v12623_v54, 0.0  ;;  %v12625_v46 = vadd.f32 %v12612_v61, %v12566_v37  ;;  %v12568_v9 = vpop.f32.mrb[119].mxu1 }
 0xe0e   : > { %v12640_v27 = vmax.f32 %v12624_v19, 0.0  ;;  %v12626_v6 = vadd.f32 %v12616_v63, %v12568_v9 }
 0xe0f   : > { %v12651_v58 = vmax.f32 %v12635_v14, %v12639_v47  ;;  %v12641_v21 = vmax.f32 %v12625_v46, 0.0 }
 0xe10   : > { %v12652_v25 = vmax.f32 %v12636_v18, %v12640_v27  ;;  %v12642_v56 = vmax.f32 %v12626_v6, 0.0 }
 0xe11   : > { %12659 = vst [vmem:[%s19416_s5] sm:$0xff] %v12651_v58  ;;  %v12653_v45 = vmax.f32 %v12637_v57, %v12641_v21 }
 0xe12   : > { %12660 = vst [vmem:[%s19416_s5 + $0x8] sm:$0xff] %v12652_v25  ;;  %v12654_v43 = vmax.f32 %v12638_v34, %v12642_v56  ;;  %v12572_v53 = vpop.f32.mrb[120].mxu1 }
 0xe13   : > { %12661 = vst [vmem:[%s19416_s5 + $0x10] sm:$0xff] %v12653_v45  ;;  %v12574_v40 = vpop.f32.mrb[121].mxu1  ;;  %v12627_v30 = vadd.f32 %v12612_v61, %v12572_v53 }
 0xe14   : > { %12662 = vst [vmem:[%s19416_s5 + $0x18] sm:$0xff] %v12654_v43  ;;  %v12576_v35 = vpop.f32.mrb[122].mxu1  ;;  %v12628_v11 = vadd.f32 %v12616_v63, %v12574_v40 }
 0xe15   : > { %v12578_v12 = vpop.f32.mrb[123].mxu1  ;;  %v12629_v32 = vadd.f32 %v12612_v61, %v12576_v35  ;;  %v12643_v31 = vmax.f32 %v12627_v30, 0.0 }
 0xe16   : > { %v12630_v51 = vadd.f32 %v12616_v63, %v12578_v12  ;;  %v12644_v28 = vmax.f32 %v12628_v11, 0.0 }
 0xe17   : > { %v12645_v29 = vmax.f32 %v12629_v32, 0.0 }
 0xe18   : > { %v12646_v44 = vmax.f32 %v12630_v51, 0.0 }
 0xe1a   : > { %v12582_v20 = vpop.f32.mrb[124].mxu1 }
 0xe1b   : > { %v12631_v50 = vadd.f32 %v12612_v61, %v12582_v20  ;;  %v12584_v59 = vpop.f32.mrb[125].mxu1 }
 0xe1c   : > { %v12632_v55 = vadd.f32 %v12616_v63, %v12584_v59  ;;  %v12586_v42 = vpop.f32.mrb[126].mxu1 }
 0xe1d   : > { %v12647_v7 = vmax.f32 %v12631_v50, 0.0  ;;  %v12633_v49 = vadd.f32 %v12612_v61, %v12586_v42  ;;  %v12588_v17 = vpop.f32.mrb[127].mxu1 }
 0xe1e   : > { %v12648_v39 = vmax.f32 %v12632_v55, 0.0  ;;  %v12634_v3 = vadd.f32 %v12616_v63, %v12588_v17 }
 0xe1f   : > { %v12655_v1 = vmax.f32 %v12643_v31, %v12647_v7  ;;  %v12649_v8 = vmax.f32 %v12633_v49, 0.0 }
 0xe20   : > { %v12656_v48 = vmax.f32 %v12644_v28, %v12648_v39  ;;  %v12650_v38 = vmax.f32 %v12634_v3, 0.0 }
 0xe21   : > { %12663 = vst [vmem:[%s19416_s5 + $0x20] sm:$0xff] %v12655_v1  ;;  %v12657_v41 = vmax.f32 %v12645_v29, %v12649_v8 }
 0xe22   : > { %12664 = vst [vmem:[%s19416_s5 + $0x28] sm:$0xff] %v12656_v48  ;;  %v12658_v24 = vmax.f32 %v12646_v44, %v12650_v38 }
 0xe23   : > { %12665 = vst [vmem:[%s19416_s5 + $0x30] sm:$0xff] %v12657_v41 }
 0xe24   : > { %12666 = vst [vmem:[%s19416_s5 + $0x38] sm:$0xff] %v12658_v24 }
 0xe25   : > { %15668 = shalt.err (!%p15665_p10)
}
 0xe26   : > { %s15669_s30 = scalar_lea.hbm %s19431_s28, 1024  ;;  %s15673_s27 = scalar_lea.hbm %s19581_s24, 2048 }
 0xe27   : > { %p15670_p2 = scmp.ne.s32.totalorder %s19431_s28, %s15669_s30  ;;  %p15674_p7 = scmp.lt.u32.totalorder %s19431_s28, %s19581_s24 }
 0xe28   : > { %p15675_p8 = scmp.lt.u32.totalorder %s15673_s27, %s15669_s30  ;;  %p15677_p13 = scmp.lt.u32.totalorder %s15669_s30, %s19431_s28 }
 0xe29   : > { %p15671_p3 = pnand %p15670_p2, %p19582_p1 }
 0xe2a   : > { %p15676_p11 = por %p15675_p8, %p15674_p7 }
 0xe2b   : > { %p15672_p4 = pneg %p15671_p3 }
 0xe2c   : > { %p15678_p0 = por %p15677_p13, %p15676_p11 }
 0xe2e   : > { %p15679_p6 = pnand %p15678_p0, %p15672_p4 }
 0xe30   : > { %15682 = shalt.err (!%p15679_p6)
}
 0xe31   : > { %s15765_s5 = smov 256   ;;  %s15766_s2 = smov 16  }
 0xe32   : > { %14327 = dma.vmem_to_hbm [thread:$0]  (%p19582_p1), %s19424_s21, 1024, %s19431_s28, %s19437_s29, %s15765_s5, %s15765_s5, %s15766_s2  }
 0xe33 PF: > { %s19583_s19 = sld [smem:[#allocation36_spill]]  ;;  %s19584_s17 = sld [smem:[#allocation34_spill]] }
 0xe34   : > { %s19585_s20 = sld [smem:[#allocation39_spill]] }
 0xe39   : > { %p14389_p5 = scmp.ge.s32.totalorder %s19583_s19, 2  ;;  %s12697_s23 = sand.u32 1, %s19584_s17  }
 0xe3a   : > { %p19586_p9 = scmp.ne.s32.totalorder %s19585_s20, 0  ;;  %s12698_s22 = scalar_lea.sflag [#allocation10], %s12697_s23 }
 0xe3c   : > { %p14364_p12 = pnand %p14389_p5, %p19586_p9 }
 0xe3e   : > { %15724 = dma.done.wait (!%p14364_p12), %s12698_s22, 1024  }
 0xe3f   : > { %15726 = vsyncadd (!%p14364_p12), %s12698_s22, 4294966272  ;;  %s19587_s28 = sld [smem:[#allocation37_spill]]  ;;  %s19588_s14 = sld [smem:[#allocation35_spill]] }
 0xe40   : > { %s19589_s27 = sld [smem:[#allocation38_spill]]  ;;  %s19590_s25 = smov %s15733_s26 }
 0xe45   : > { %p29_p10 = scmp.ge.s32.totalorder %s19587_s28, 4   ;;  %s19591_s26 = smov %s19588_s14 }
 0xe47   :  { %31 = sbr.rel (!%p29_p10) target bundleno = 13 (0xd), region = 164 }
 0xe4e   :  { %12703 = vsyncpa [#allocation9], 1 }
 0xe4f   :  { %12705 = vsyncpa [#allocation9 + $0x1], 1 }
 0xe50   :  { %12706 = vsyncpa [#allocation12], 1 }
 0xe51   :  { %12707 = vsyncpa [#allocation15], 1 }
 0xe52   :  { %12708 = vsyncpa [#allocation18], 1 }
 0xe53   :  { %12709 = vsyncpa [#allocation21], 1 }
 0xe54   :  { %12710 = vsyncpa [#allocation24], 1 }
 0xe55   :  { %12711 = vsyncpa [#allocation10], 1 }
 0xe56   :  { %12713 = vsyncpa [#allocation10 + $0x1], 1 }

</bundles_post_ra>
